<compile_context>
chip_gen: v5e
topology: v5e:2x2
jax: 0.10.0
libtpu: 0.0.40
codegen_flags: <defaults>
</compile_context>

<pallas_src>
import functools
import math

import jax
import jax.numpy as jnp
from jax.experimental import pallas as pl
from jax.experimental.pallas import tpu as pltpu

NEG_INF = -1e9
LEAKY_SLOPE = 0.01
EPS = 1e-5


def _round_up(x, m):
    return (x + m - 1) // m * m


def _pick_tm(M):
    """M tile from {512,...,16}: minimize padding, prefer >=2 grid steps."""
    if M <= 16:
        return max(8, _round_up(M, 8))          # full extent, single block
    cands = (512, 256, 128, 64) if M >= 64 else (32, 16)

    def key(t):
        Mp = _round_up(M, t)
        return (Mp, 0 if Mp // t >= 2 else 1, -t)

    return min(cands, key=key)


def _row_block(rows, ncols, budget_bytes=2 * 1024 * 1024):
    """Row block for norm kernels: VMEM-budgeted, divides rows, >=2 steps."""
    cap = max(8, min(512, budget_bytes // max(1, ncols * 4)))
    rb = 1 << (cap.bit_length() - 1)
    while rb > 8 and (rows % rb != 0 or rows // rb < 2):
        rb //= 2
    if rows % rb != 0:
        rb = rows                                # full extent (small inputs)
    return rb


# ---------------------------------------------------------------------------
# Matmul (bf16 MXU, f32 accumulation, fused bias / activation epilogue)
# ---------------------------------------------------------------------------
def _mm_resident_kernel(a_ref, b_ref, bias_ref, o_ref, *, act):
    y = jnp.dot(a_ref[...], b_ref[...], preferred_element_type=jnp.float32)
    y = y + bias_ref[...]
    if act == 'relu':
        y = jnp.maximum(y, 0.0)
    elif act == 'leaky':
        y = jnp.where(y >= 0, y, LEAKY_SLOPE * y)
    o_ref[...] = y.astype(o_ref.dtype)


def _mm_tiled_kernel(a_ref, b_ref, bias_ref, o_ref, acc_ref, *, act):
    @pl.when(pl.program_id(2) == 0)
    def _():
        acc_ref[...] = jnp.zeros_like(acc_ref)

    acc_ref[...] += jnp.dot(a_ref[...], b_ref[...],
                            preferred_element_type=jnp.float32)

    @pl.when(pl.program_id(2) == pl.num_programs(2) - 1)
    def _():
        y = acc_ref[...] + bias_ref[...]
        if act == 'relu':
            y = jnp.maximum(y, 0.0)
        elif act == 'leaky':
            y = jnp.where(y >= 0, y, LEAKY_SLOPE * y)
        o_ref[...] = y.astype(o_ref.dtype)


def matmul(a, b, bias=None, act=None, out_dtype=jnp.float32):
    """(M, K) @ (K, N): bf16 MXU, f32 acc, lane-dense output, fused bias/act."""
    M, K = a.shape
    K2, N = b.shape
    assert K == K2, (a.shape, b.shape)
    a = a.astype(jnp.bfloat16)
    b = b.astype(jnp.bfloat16)
    if bias is None:
        bias2 = jnp.zeros((1, N), jnp.float32)
    else:
        bias2 = bias.astype(jnp.float32).reshape(1, N)

    Np = _round_up(N, 128)                       # lane-dense output
    tm = _pick_tm(M)
    Mp = _round_up(M, tm)

    # Weight-resident path: whole (K, Np) weight + bias live in VMEM with a
    # constant index_map; grid runs over M only (weights DMA'd once).
    resident = (K <= 2048 and Np <= 512 and
                (K * Np * 2 + 2 * tm * (K * 2 + Np * 4)) <= 12 * 1024 * 1024)

    if resident:
        Kp = _round_up(K, 8)
        tk, tn = Kp, Np
    else:
        tk = 512
        Kp = _round_up(K, tk)
        tn = 512 if Np % 512 == 0 else (256 if Np % 256 == 0 else 128)

    if (Mp, Kp) != (M, K):
        a = jnp.pad(a, ((0, Mp - M), (0, Kp - K)))
    if (Kp, Np) != (K, N):
        b = jnp.pad(b, ((0, Kp - K), (0, Np - N)))
    if Np != N:
        bias2 = jnp.pad(bias2, ((0, 0), (0, Np - N)))

    if resident:
        out = pl.pallas_call(
            functools.partial(_mm_resident_kernel, act=act),
            out_shape=jax.ShapeDtypeStruct((Mp, Np), out_dtype),
            grid=(Mp // tm,),
            in_specs=[pl.BlockSpec((tm, Kp), lambda i: (i, 0)),
                      pl.BlockSpec((Kp, Np), lambda i: (0, 0)),
                      pl.BlockSpec((1, Np), lambda i: (0, 0))],
            out_specs=pl.BlockSpec((tm, Np), lambda i: (i, 0)),
            compiler_params=pltpu.CompilerParams(
                dimension_semantics=("parallel",)),
        )(a, b, bias2)
    else:
        out = pl.pallas_call(
            functools.partial(_mm_tiled_kernel, act=act),
            out_shape=jax.ShapeDtypeStruct((Mp, Np), out_dtype),
            grid_spec=pltpu.PrefetchScalarGridSpec(
                num_scalar_prefetch=0,
                grid=(Mp // tm, Np // tn, Kp // tk),
                in_specs=[pl.BlockSpec((tm, tk), lambda i, j, k: (i, k)),
                          pl.BlockSpec((tk, tn), lambda i, j, k: (k, j)),
                          pl.BlockSpec((1, tn), lambda i, j, k: (0, j))],
                out_specs=pl.BlockSpec((tm, tn), lambda i, j, k: (i, j)),
                scratch_shapes=[pltpu.VMEM((tm, tn), jnp.float32)]),
            compiler_params=pltpu.CompilerParams(
                dimension_semantics=("parallel", "parallel", "arbitrary")),
        )(a, b, bias2)

    if (Mp, Np) != (M, N):
        out = out[:M, :N]
    return out


# ---------------------------------------------------------------------------
# InstanceNorm (channels-last) kernels, one-pass mean/var, f32 math
# ---------------------------------------------------------------------------
def _instnorm_kernel(x_ref, g_ref, b_ref, o_ref, *, act, inv_n):
    x = x_ref[...].astype(jnp.float32)                       # (1, S, C)
    m = jnp.sum(x, axis=1, keepdims=True) * inv_n
    v = jnp.sum(x * x, axis=1, keepdims=True) * inv_n - m * m
    y = (x - m) * jax.lax.rsqrt(v + EPS) * g_ref[...] + b_ref[...]
    if act:
        y = jnp.where(y >= 0, y, LEAKY_SLOPE * y)
    o_ref[...] = y.astype(o_ref.dtype)


def instance_norm(x, gamma, beta, act, out_dtype=jnp.bfloat16):
    """InstanceNorm3d(affine=True) on channels-last x, optional LeakyReLU."""
    B, D, H, W, C = x.shape
    S = D * H * W
    x3 = x.reshape(B, S, C)
    g = gamma.reshape(1, 1, C).astype(jnp.float32)
    b = beta.reshape(1, 1, C).astype(jnp.float32)
    out = pl.pallas_call(
        functools.partial(_instnorm_kernel, act=act, inv_n=1.0 / S),
        out_shape=jax.ShapeDtypeStruct((B, S, C), out_dtype),
        grid=(B,),
        in_specs=[pl.BlockSpec((1, S, C), lambda i: (i, 0, 0)),
                  pl.BlockSpec((1, 1, C), lambda i: (0, 0, 0)),
                  pl.BlockSpec((1, 1, C), lambda i: (0, 0, 0))],
        out_specs=pl.BlockSpec((1, S, C), lambda i: (i, 0, 0)),
        compiler_params=pltpu.CompilerParams(dimension_semantics=("parallel",)),
    )(x3, g, b)
    return out.reshape(B, D, H, W, C)


def _in_add_leaky_kernel(x_ref, gx_ref, bx_ref, s_ref, gs_ref, bs_ref, o_ref,
                         *, inv_n):
    def _norm(t_ref, g_ref, b_ref):
        t = t_ref[...].astype(jnp.float32)
        m = jnp.sum(t, axis=1, keepdims=True) * inv_n
        v = jnp.sum(t * t, axis=1, keepdims=True) * inv_n - m * m
        return (t - m) * jax.lax.rsqrt(v + EPS) * g_ref[...] + b_ref[...]

    y = _norm(x_ref, gx_ref, bx_ref) + _norm(s_ref, gs_ref, bs_ref)
    o_ref[...] = jnp.where(y >= 0, y, LEAKY_SLOPE * y).astype(o_ref.dtype)


def instance_norm_add_leaky(x, gx, bx, s, gs, bs, out_dtype=jnp.bfloat16):
    """leaky_relu(IN(x) + IN(s)) fused (residual block epilogue), channels-last."""
    B, D, H, W, C = x.shape
    S = D * H * W
    x3 = x.reshape(B, S, C)
    s3 = s.reshape(B, S, C)
    gx2 = gx.reshape(1, 1, C).astype(jnp.float32)
    bx2 = bx.reshape(1, 1, C).astype(jnp.float32)
    gs2 = gs.reshape(1, 1, C).astype(jnp.float32)
    bs2 = bs.reshape(1, 1, C).astype(jnp.float32)
    out = pl.pallas_call(
        functools.partial(_in_add_leaky_kernel, inv_n=1.0 / S),
        out_shape=jax.ShapeDtypeStruct((B, S, C), out_dtype),
        grid=(B,),
        in_specs=[pl.BlockSpec((1, S, C), lambda i: (i, 0, 0)),
                  pl.BlockSpec((1, 1, C), lambda i: (0, 0, 0)),
                  pl.BlockSpec((1, 1, C), lambda i: (0, 0, 0)),
                  pl.BlockSpec((1, S, C), lambda i: (i, 0, 0)),
                  pl.BlockSpec((1, 1, C), lambda i: (0, 0, 0)),
                  pl.BlockSpec((1, 1, C), lambda i: (0, 0, 0))],
        out_specs=pl.BlockSpec((1, S, C), lambda i: (i, 0, 0)),
        compiler_params=pltpu.CompilerParams(dimension_semantics=("parallel",)),
    )(x3, gx2, bx2, s3, gs2, bs2)
    return out.reshape(B, D, H, W, C)


# ---------------------------------------------------------------------------
# Residual-add + LayerNorm (transformer), one-pass mean/var
# ---------------------------------------------------------------------------
def _add_ln_kernel(x_ref, y_ref, g_ref, b_ref, o_ref, *, inv_d):
    t = x_ref[...].astype(jnp.float32) + y_ref[...].astype(jnp.float32)
    m = jnp.sum(t, axis=-1, keepdims=True) * inv_d
    v = jnp.sum(t * t, axis=-1, keepdims=True) * inv_d - m * m
    o_ref[...] = (t - m) * jax.lax.rsqrt(v + EPS) * g_ref[...] + b_ref[...]


def add_layer_norm(x2d, y2d, gamma, beta):
    R, D = x2d.shape
    rb = _row_block(R, D)
    return pl.pallas_call(
        functools.partial(_add_ln_kernel, inv_d=1.0 / D),
        out_shape=jax.ShapeDtypeStruct((R, D), jnp.float32),
        grid=(R // rb,),
        in_specs=[pl.BlockSpec((rb, D), lambda i: (i, 0)),
                  pl.BlockSpec((rb, D), lambda i: (i, 0)),
                  pl.BlockSpec((1, D), lambda i: (0, 0)),
                  pl.BlockSpec((1, D), lambda i: (0, 0))],
        out_specs=pl.BlockSpec((rb, D), lambda i: (i, 0)),
        compiler_params=pltpu.CompilerParams(dimension_semantics=("parallel",)),
    )(x2d, y2d, gamma[None, :], beta[None, :])


# ---------------------------------------------------------------------------
# Attention
# ---------------------------------------------------------------------------
def _attention_kernel(q_ref, k_ref, v_ref, *rest, scale, causal, has_bias):
    if has_bias:
        bias_ref, o_ref = rest
    else:
        (o_ref,) = rest
    q = q_ref[...]
    k = k_ref[...]
    v = v_ref[...]
    s = jnp.einsum('bqd,bkd->bqk', q, k,
                   preferred_element_type=jnp.float32) * scale
    if has_bias:
        s = s + bias_ref[...]                     # (gb, 1, Lk) key-padding bias
    if causal:
        Lq, Lk = s.shape[1], s.shape[2]
        rq = jax.lax.broadcasted_iota(jnp.int32, (Lq, Lk), 0)
        rk = jax.lax.broadcasted_iota(jnp.int32, (Lq, Lk), 1)
        s = jnp.where((rk > rq)[None], NEG_INF, s)   # no mask tensor / extra add
    m = jnp.max(s, axis=-1, keepdims=True)
    p = jnp.exp(s - m)
    denom = jnp.maximum(jnp.sum(p, axis=-1, keepdims=True), 1e-20)
    inv = pl.reciprocal(denom, approx=True)
    o = jnp.einsum('bqk,bkd->bqd', p.astype(v.dtype), v,
                   preferred_element_type=jnp.float32)
    o_ref[...] = (o * inv).astype(o_ref.dtype)


def _attn_group(bh, lq, lk, dh, budget_bytes=4 * 1024 * 1024):
    per = 4 * (lq * dh + 2 * lk * dh + 2 * lq * lk) + 2 * (lq * dh + 2 * lk * dh)
    cap = max(1, min(bh, budget_bytes // max(1, per)))
    if bh >= 2:
        cap = min(cap, max(1, bh // 2))           # >=2 grid steps (v7x megacore)
    for g in range(cap, 0, -1):
        if bh % g == 0:
            return g
    return 1


def attention(q, k, v, key_bias=None, causal=False):
    """Fused attention over batched heads: q,k,v (B*H, L, Dh); bf16 in/out."""
    BH, Lq, Dh = q.shape
    Lk = k.shape[1]
    scale = 1.0 / math.sqrt(Dh)
    gb = _attn_group(BH, Lq, Lk, Dh)
    q = q.astype(jnp.bfloat16)
    k = k.astype(jnp.bfloat16)
    v = v.astype(jnp.bfloat16)
    in_specs = [pl.BlockSpec((gb, Lq, Dh), lambda i: (i, 0, 0)),
                pl.BlockSpec((gb, Lk, Dh), lambda i: (i, 0, 0)),
                pl.BlockSpec((gb, Lk, Dh), lambda i: (i, 0, 0))]
    args = [q, k, v]
    has_bias = key_bias is not None
    if has_bias:
        in_specs.append(pl.BlockSpec((gb, 1, Lk), lambda i: (i, 0, 0)))
        args.append(key_bias.reshape(BH, 1, Lk).astype(jnp.float32))
    return pl.pallas_call(
        functools.partial(_attention_kernel, scale=scale, causal=causal,
                          has_bias=has_bias),
        out_shape=jax.ShapeDtypeStruct((BH, Lq, Dh), jnp.bfloat16),
        grid=(BH // gb,),
        in_specs=in_specs,
        out_specs=pl.BlockSpec((gb, Lq, Dh), lambda i: (i, 0, 0)),
        compiler_params=pltpu.CompilerParams(dimension_semantics=("parallel",)),
    )(*args)


# ---------------------------------------------------------------------------
# Glue: conv (channels-last im2col), positional embeddings, module wiring
# ---------------------------------------------------------------------------
def conv3d(x, w, b, stride, padding, out_dtype=jnp.bfloat16):
    """Conv3d (PyTorch weight layout) on channels-last (B,D,H,W,Cin) input.

    Taps are stacked along the last axis so the im2col reshape is layout-free
    (no 6-D transpose); the matmul runs in bf16 with bias fused.
    """
    B, D, H, W, Cin = x.shape
    Cout, _, kd, kh, kw = w.shape
    sd, sh, sw = stride
    pd, ph, pw = padding
    Do = (D + 2 * pd - kd) // sd + 1
    Ho = (H + 2 * ph - kh) // sh + 1
    Wo = (W + 2 * pw - kw) // sw + 1
    xp = x.astype(jnp.bfloat16)
    if (pd, ph, pw) != (0, 0, 0):
        xp = jnp.pad(xp, ((0, 0), (pd, pd), (ph, ph), (pw, pw), (0, 0)))
    taps = []
    for dz in range(kd):
        for dy in range(kh):
            for dx in range(kw):
                taps.append(xp[:, dz:dz + sd * Do:sd,
                               dy:dy + sh * Ho:sh,
                               dx:dx + sw * Wo:sw, :])
    M = B * Do * Ho * Wo
    if len(taps) == 1:
        col = taps[0].reshape(M, Cin)
    else:
        col = jnp.stack(taps, axis=-1).reshape(M, Cin * kd * kh * kw)
    w2 = w.reshape(Cout, Cin * kd * kh * kw).T
    out = matmul(col, w2, bias=b, out_dtype=out_dtype)   # bias fused in epilogue
    return out.reshape(B, Do, Ho, Wo, Cout)


def residual_block(x, p, stride, skip):
    pad1 = tuple((k - 1) // 2 for k in p['conv1_w'].shape[2:])
    y = conv3d(x, p['conv1_w'], p['conv1_b'], stride, pad1)
    y = instance_norm(y, p['in1_g'], p['in1_b'], act=True)
    y = conv3d(y, p['conv2_w'], p['conv2_b'], (1, 1, 1), (1, 1, 1))
    if skip:
        s = conv3d(x, p['sc_w'], p['sc_b'], stride, (0, 0, 0))
        return instance_norm_add_leaky(y, p['in2_g'], p['in2_b'],
                                       s, p['sc_in_g'], p['sc_in_b'])
    return instance_norm(y, p['in2_g'], p['in2_b'], act=True)


def posemb_sincos_3d(dim, d, h, w, temperature=10000.0):
    # NB: meshgrid argument order (d, w, h) matches the PyTorch reference.
    z, y, x = jnp.meshgrid(jnp.arange(d), jnp.arange(w), jnp.arange(h),
                           indexing='ij')
    fourier_dim = dim // 6
    omega = jnp.arange(fourier_dim) / max(fourier_dim - 1, 1)
    omega = 1.0 / temperature ** omega
    z = z.flatten()[:, None] * omega[None, :]
    y = y.flatten()[:, None] * omega[None, :]
    x = x.flatten()[:, None] * omega[None, :]
    pe = jnp.concatenate([jnp.sin(x), jnp.cos(x), jnp.sin(y), jnp.cos(y),
                          jnp.sin(z), jnp.cos(z)], axis=1)
    return jnp.pad(pe, ((0, 0), (0, dim - fourier_dim * 6))).astype(jnp.float32)


def posemb_sincos_1d(n, dim, temperature=10000.0):
    pos = jnp.arange(n)
    omega = jnp.arange(dim // 2) / max(dim // 2 - 1, 1)
    omega = 1.0 / temperature ** omega
    t = pos[:, None] * omega[None, :]
    return jnp.concatenate([jnp.sin(t), jnp.cos(t)], axis=1).astype(jnp.float32)


def _split_heads(t, B, L, heads, Dh):
    return t.reshape(B, L, heads, Dh).transpose(0, 2, 1, 3).reshape(B * heads, L, Dh)


def _merge_heads(o, B, L, heads, Dh):
    return o.reshape(B, heads, L, Dh).transpose(0, 2, 1, 3).reshape(B * L, heads * Dh)


def mha_self(x, pos, p, heads, key_bias=None, causal=False):
    """Self-attention; Q/K projections fused ([wq|wk] on x+pos), V on x."""
    B, L, D = x.shape
    Dh = D // heads
    x_pos = (x + pos[None]).reshape(B * L, D)
    qk = matmul(x_pos, p['wqk'], bias=p['bqk'], out_dtype=jnp.bfloat16)
    v = matmul(x.reshape(B * L, D), p['wv'], bias=p['bv'], out_dtype=jnp.bfloat16)
    q = _split_heads(qk[:, :D], B, L, heads, Dh)
    k = _split_heads(qk[:, D:], B, L, heads, Dh)
    v = _split_heads(v, B, L, heads, Dh)
    if key_bias is not None:
        key_bias = jnp.repeat(key_bias, heads, axis=0)       # (B*H, L)
    o = attention(q, k, v, key_bias=key_bias, causal=causal)
    o = _merge_heads(o, B, L, heads, Dh)
    return matmul(o, p['wo'], bias=p['bo']).reshape(B, L, D)


def mha_cross(x, mem, seq_pos, pos, p, heads):
    B, L, D = x.shape
    S = mem.shape[1]
    Dh = D // heads
    q = matmul((x + seq_pos[None]).reshape(B * L, D), p['wq'], bias=p['bq'],
               out_dtype=jnp.bfloat16)
    k = matmul((mem + pos[None]).reshape(B * S, D), p['wk'], bias=p['bk'],
               out_dtype=jnp.bfloat16)
    v = matmul(mem.reshape(B * S, D), p['wv'], bias=p['bv'],
               out_dtype=jnp.bfloat16)
    o = attention(_split_heads(q, B, L, heads, Dh),
                  _split_heads(k, B, S, heads, Dh),
                  _split_heads(v, B, S, heads, Dh))
    o = _merge_heads(o, B, L, heads, Dh)
    return matmul(o, p['wo'], bias=p['bo']).reshape(B, L, D)


def encoder_layer(src, pos, p, heads):
    B, S, D = src.shape
    sa = mha_self(src, pos, p['sa'], heads)
    x = add_layer_norm(src.reshape(B * S, D), sa.reshape(B * S, D),
                       p['ln1_g'], p['ln1_b'])
    ff = matmul(x, p['ff1_w'], bias=p['ff1_b'], act='relu',
                out_dtype=jnp.bfloat16)                       # ReLU fused
    ff = matmul(ff, p['ff2_w'], bias=p['ff2_b'])
    x = add_layer_norm(x, ff, p['ln2_g'], p['ln2_b'])
    return x.reshape(B, S, D)


def decoder_layer(tgt, memory, seq_pos, pos, p, heads, pad_bias):
    B, L, D = tgt.shape
    sa = mha_self(tgt, seq_pos, p['sa'], heads, key_bias=pad_bias, causal=True)
    x = add_layer_norm(tgt.reshape(B * L, D), sa.reshape(B * L, D),
                       p['ln1_g'], p['ln1_b']).reshape(B, L, D)
    ca = mha_cross(x, memory, seq_pos, pos, p['ca'], heads)
    x2 = add_layer_norm(x.reshape(B * L, D), ca.reshape(B * L, D),
                        p['ln2_g'], p['ln2_b'])
    ff = matmul(x2, p['ff1_w'], bias=p['ff1_b'], act='relu',
                out_dtype=jnp.bfloat16)
    ff = matmul(ff, p['ff2_w'], bias=p['ff2_b'])
    out = add_layer_norm(x2, ff, p['ln3_g'], p['ln3_b'])
    return out.reshape(B, L, D)


def neu2seq_forward(params, img, tgt, *, stride_list, heads, pad_idx):
    # CNN trunk (channels-last throughout; one small relayout of the input).
    x = img.transpose(0, 2, 3, 4, 1)                          # NCDHW -> NDHWC
    x = residual_block(x, params['pre'], (1, 1, 1), skip=False)
    for dp, stride in zip(params['downs'], stride_list):
        x = residual_block(x, dp, stride, skip=True)
    x = conv3d(x, params['proj_w'], params['proj_b'], (1, 1, 1), (0, 0, 0),
               out_dtype=jnp.float32)

    B, d, h, w, D_ = x.shape
    pos = posemb_sincos_3d(D_, d, h, w)                       # (d*h*w, dim)
    src = x.reshape(B, d * h * w, D_)                         # layout-free

    # key-padding bias (additive, per key); causal mask is built in-kernel.
    pad_bias = jnp.where(tgt == pad_idx, NEG_INF, 0.0).astype(jnp.float32)

    L = tgt.shape[1]
    tgt_emb = params['embedding'][tgt]                        # (B, L, dim)
    seq_pos = posemb_sincos_1d(L, D_)

    mem = src
    for p in params['enc']:
        mem = encoder_layer(mem, pos, p, heads)
    hs = tgt_emb
    for p in params['dec']:
        hs = decoder_layer(hs, mem, seq_pos, pos, p, heads, pad_bias)

    out = matmul(hs.reshape(B * L, D_), params['head_w'], bias=params['head_b'])
    return out.reshape(B, L, -1)


# ---------------------------------------------------------------------------
# Deterministic parameter init
# ---------------------------------------------------------------------------
def init_params(key, in_channels, base_channels, down_kernel_list, dim,
                encoder_depth, decoder_depth, vocab_size, ffn_dim):
    keys = iter(jax.random.split(key, 512))

    def w(shape, scale=0.05):
        return jax.random.normal(next(keys), shape, jnp.float32) * scale

    def zeros(n):
        return jnp.zeros((n,), jnp.float32)

    def ones(n):
        return jnp.ones((n,), jnp.float32)

    def res_block(cin, cout, kernel, with_shortcut):
        p = {
            'conv1_w': w((cout, cin) + tuple(kernel)), 'conv1_b': zeros(cout),
            'in1_g': ones(cout), 'in1_b': zeros(cout),
            'conv2_w': w((cout, cout, 3, 3, 3)), 'conv2_b': zeros(cout),
            'in2_g': ones(cout), 'in2_b': zeros(cout),
        }
        if with_shortcut:
            p.update({'sc_w': w((cout, cin, 1, 1, 1)), 'sc_b': zeros(cout),
                      'sc_in_g': ones(cout), 'sc_in_b': zeros(cout)})
        return p

    def attn_self():
        return {'wqk': w((dim, 2 * dim)), 'bqk': zeros(2 * dim),
                'wv': w((dim, dim)), 'bv': zeros(dim),
                'wo': w((dim, dim)), 'bo': zeros(dim)}

    def attn_cross():
        return {'wq': w((dim, dim)), 'bq': zeros(dim),
                'wk': w((dim, dim)), 'bk': zeros(dim),
                'wv': w((dim, dim)), 'bv': zeros(dim),
                'wo': w((dim, dim)), 'bo': zeros(dim)}

    def enc_layer():
        return {'sa': attn_self(),
                'ln1_g': ones(dim), 'ln1_b': zeros(dim),
                'ln2_g': ones(dim), 'ln2_b': zeros(dim),
                'ff1_w': w((dim, ffn_dim)), 'ff1_b': zeros(ffn_dim),
                'ff2_w': w((ffn_dim, dim)), 'ff2_b': zeros(dim)}

    def dec_layer():
        p = enc_layer()
        p['ca'] = attn_cross()
        p['ln3_g'] = ones(dim)
        p['ln3_b'] = zeros(dim)
        return p

    params = {'pre': res_block(in_channels, base_channels, (3, 3, 3),
                               with_shortcut=False)}
    cin, cout = base_channels, 2 * base_channels
    downs = []
    for kernel in down_kernel_list:
        downs.append(res_block(cin, cout, kernel, with_shortcut=True))
        cin, cout = cout, 2 * cout
    params['downs'] = downs
    trunk_out = cout // 2
    params['proj_w'] = w((dim, trunk_out, 1, 1, 1))
    params['proj_b'] = zeros(dim)
    params['embedding'] = w((vocab_size, dim))
    params['enc'] = [enc_layer() for _ in range(encoder_depth)]
    params['dec'] = [dec_layer() for _ in range(decoder_depth)]
    params['head_w'] = w((dim, vocab_size))
    params['head_b'] = zeros(vocab_size)
    return params


if __name__ == "__main__":
    in_channels = 1
    base_channels = 4
    down_kernel_list = [(3, 3, 3), (3, 3, 3)]
    stride_list = ((2, 2, 2), (2, 2, 2))
    dim = 32
    encoder_depth = 1
    decoder_depth = 1
    heads = 4
    vocab_size = 20
    pad_idx = 0
    ffn_dim = 4 * dim
    B, D0, H0, W0 = 2, 8, 8, 8
    L = 8

    key = jax.random.PRNGKey(0)
    k_img, k_tgt, k_par = jax.random.split(key, 3)
    img = jax.random.normal(k_img, (B, in_channels, D0, H0, W0), jnp.float32)
    tgt = jax.random.randint(k_tgt, (B, L), 1, vocab_size)  # avoid pad_idx rows

    params = init_params(k_par, in_channels, base_channels, down_kernel_list,
                         dim, encoder_depth, decoder_depth, vocab_size, ffn_dim)

    fwd = jax.jit(functools.partial(neu2seq_forward, stride_list=stride_list,
                                    heads=heads, pad_idx=pad_idx))
    out = fwd(params, img, tgt)
    out = jax.block_until_ready(out)
    assert out.shape == (B, L, vocab_size), out.shape
    assert bool(jnp.all(jnp.isfinite(out)))
    print("KERNEL_OK")
</pallas_src>

<mosaic_0001>
module attributes {stable_mosaic.version = 11 : i64} {
  func.func @_mm_resident_kernel(%arg0: i32, %arg1: memref<512x32xbf16, #tpu.memory_space<vmem>>, %arg2: memref<32x128xbf16, #tpu.memory_space<vmem>>, %arg3: memref<1x128xf32, #tpu.memory_space<vmem>>, %arg4: memref<512x128xbf16, #tpu.memory_space<vmem>>) attributes {dimension_semantics = [#tpu.dimension_semantics<parallel>], iteration_bounds = array<i64: 2>, scalar_prefetch = 0 : i64, scratch_operands = 0 : i64, tpu.core_type = #tpu.core_type<tc>, window_params = [{transform_indices = @transform_0, window_bounds = array<i64: 512, 32>}, {pipeline_mode = #tpu.pipeline_mode<synchronous>, transform_indices = @transform_1, window_bounds = array<i64: 32, 128>}, {pipeline_mode = #tpu.pipeline_mode<synchronous>, transform_indices = @transform_2, window_bounds = array<i64: 1, 128>}, {transform_indices = @transform_3, window_bounds = array<i64: 512, 128>}]} {
    %c0 = arith.constant 0 : index
    %c0_0 = arith.constant 0 : index
    %0 = vector.load %arg1[%c0, %c0_0] : memref<512x32xbf16, #tpu.memory_space<vmem>>, vector<512x32xbf16>
    %c0_1 = arith.constant 0 : index
    %c0_2 = arith.constant 0 : index
    %1 = vector.load %arg2[%c0_1, %c0_2] : memref<32x128xbf16, #tpu.memory_space<vmem>>, vector<32x128xbf16>
    %cst = arith.constant dense<0.000000e+00> : vector<512x128xf32>
    %2 = tpu.matmul %0, %1, %cst {dimension_numbers = #tpu.dot_dimension_numbers<[1], [0], [0], [1], [0, 0, 1, 1], [], []>} : vector<512x32xbf16>, vector<32x128xbf16>, vector<512x128xf32> -> vector<512x128xf32>
    %c0_3 = arith.constant 0 : index
    %c0_4 = arith.constant 0 : index
    %3 = vector.load %arg3[%c0_3, %c0_4] : memref<1x128xf32, #tpu.memory_space<vmem>>, vector<1x128xf32>
    %4 = vector.broadcast %3 : vector<1x128xf32> to vector<512x128xf32>
    %5 = arith.addf %2, %4 : vector<512x128xf32>
    %6 = arith.truncf %5 : vector<512x128xf32> to vector<512x128xbf16>
    %c0_5 = arith.constant 0 : index
    %c0_6 = arith.constant 0 : index
    %7 = vector.load %arg4[%c0_5, %c0_6] : memref<512x128xbf16, #tpu.memory_space<vmem>>, vector<512x128xbf16>
    tpu.vector_store %arg4[%c0_5, %c0_6], %6 {strides = array<i32>} : memref<512x128xbf16, #tpu.memory_space<vmem>>, vector<512x128xbf16>,
    return
  }
  func.func @transform_0(%arg0: i32) -> (i32, i32) {
    %c0_i32 = arith.constant 0 : i32
    %c0_i32_0 = arith.constant 0 : i32
    return %arg0, %c0_i32 : i32, i32
  }
  func.func @transform_1(%arg0: i32) -> (i32, i32) {
    %c0_i32 = arith.constant 0 : i32
    %c0_i32_0 = arith.constant 0 : i32
    %c0_i32_1 = arith.constant 0 : i32
    return %c0_i32, %c0_i32_0 : i32, i32
  }
  func.func @transform_2(%arg0: i32) -> (i32, i32) {
    %c0_i32 = arith.constant 0 : i32
    %c0_i32_0 = arith.constant 0 : i32
    %c0_i32_1 = arith.constant 0 : i32
    return %c0_i32, %c0_i32_0 : i32, i32
  }
  func.func @transform_3(%arg0: i32) -> (i32, i32) {
    %c0_i32 = arith.constant 0 : i32
    %c0_i32_0 = arith.constant 0 : i32
    return %arg0, %c0_i32 : i32, i32
  }
}

module attributes {stable_mosaic.version = 11 : i64} {
  func.func @_instnorm_kernel(%arg0: i32, %arg1: memref<1x512x4xbf16, #tpu.memory_space<vmem>>, %arg2: memref<1x1x4xf32, #tpu.memory_space<vmem>>, %arg3: memref<1x1x4xf32, #tpu.memory_space<vmem>>, %arg4: memref<1x512x4xbf16, #tpu.memory_space<vmem>>) attributes {dimension_semantics = [#tpu.dimension_semantics<parallel>], iteration_bounds = array<i64: 2>, scalar_prefetch = 0 : i64, scratch_operands = 0 : i64, tpu.core_type = #tpu.core_type<tc>, window_params = [{transform_indices = @transform_0, window_bounds = array<i64: 1, 512, 4>}, {pipeline_mode = #tpu.pipeline_mode<synchronous>, transform_indices = @transform_1, window_bounds = array<i64: 1, 1, 4>}, {pipeline_mode = #tpu.pipeline_mode<synchronous>, transform_indices = @transform_2, window_bounds = array<i64: 1, 1, 4>}, {transform_indices = @transform_3, window_bounds = array<i64: 1, 512, 4>}]} {
    %c0 = arith.constant 0 : index
    %c0_0 = arith.constant 0 : index
    %c0_1 = arith.constant 0 : index
    %0 = vector.load %arg1[%c0, %c0_0, %c0_1] : memref<1x512x4xbf16, #tpu.memory_space<vmem>>, vector<1x512x4xbf16>
    %1 = arith.extf %0 : vector<1x512x4xbf16> to vector<1x512x4xf32>
    %cst = arith.constant dense<0.000000e+00> : vector<1x4xf32>
    %2 = vector.multi_reduction <add>, %1, %cst [1] : vector<1x512x4xf32> to vector<1x4xf32>
    %3 = vector.shape_cast %2 : vector<1x4xf32> to vector<1x1x4xf32>
    %cst_2 = arith.constant 0.001953125 : f32
    %4 = vector.broadcast %cst_2 : f32 to vector<1x1x4xf32>
    %5 = arith.mulf %3, %4 : vector<1x1x4xf32>
    %6 = arith.mulf %1, %1 : vector<1x512x4xf32>
    %cst_3 = arith.constant dense<0.000000e+00> : vector<1x4xf32>
    %7 = vector.multi_reduction <add>, %6, %cst_3 [1] : vector<1x512x4xf32> to vector<1x4xf32>
    %8 = vector.shape_cast %7 : vector<1x4xf32> to vector<1x1x4xf32>
    %cst_4 = arith.constant 0.001953125 : f32
    %9 = vector.broadcast %cst_4 : f32 to vector<1x1x4xf32>
    %10 = arith.mulf %8, %9 : vector<1x1x4xf32>
    %11 = arith.mulf %5, %5 : vector<1x1x4xf32>
    %12 = arith.subf %10, %11 : vector<1x1x4xf32>
    %13 = vector.broadcast %5 : vector<1x1x4xf32> to vector<1x512x4xf32>
    %14 = arith.subf %1, %13 : vector<1x512x4xf32>
    %cst_5 = arith.constant 9.99999974E-6 : f32
    %15 = vector.broadcast %cst_5 : f32 to vector<1x1x4xf32>
    %16 = arith.addf %12, %15 : vector<1x1x4xf32>
    %17 = math.rsqrt %16 : vector<1x1x4xf32>
    %18 = vector.broadcast %17 : vector<1x1x4xf32> to vector<1x512x4xf32>
    %19 = arith.mulf %14, %18 : vector<1x512x4xf32>
    %c0_6 = arith.constant 0 : index
    %c0_7 = arith.constant 0 : index
    %c0_8 = arith.constant 0 : index
    %20 = vector.load %arg2[%c0_6, %c0_7, %c0_8] : memref<1x1x4xf32, #tpu.memory_space<vmem>>, vector<1x1x4xf32>
    %21 = vector.broadcast %20 : vector<1x1x4xf32> to vector<1x512x4xf32>
    %22 = arith.mulf %19, %21 : vector<1x512x4xf32>
    %c0_9 = arith.constant 0 : index
    %c0_10 = arith.constant 0 : index
    %c0_11 = arith.constant 0 : index
    %23 = vector.load %arg3[%c0_9, %c0_10, %c0_11] : memref<1x1x4xf32, #tpu.memory_space<vmem>>, vector<1x1x4xf32>
    %24 = vector.broadcast %23 : vector<1x1x4xf32> to vector<1x512x4xf32>
    %25 = arith.addf %22, %24 : vector<1x512x4xf32>
    %cst_12 = arith.constant 0.000000e+00 : f32
    %26 = vector.broadcast %cst_12 : f32 to vector<1x512x4xf32>
    %27 = arith.cmpf oge, %25, %26 : vector<1x512x4xf32>
    %cst_13 = arith.constant 0.00999999977 : f32
    %28 = vector.broadcast %cst_13 : f32 to vector<1x512x4xf32>
    %29 = arith.mulf %28, %25 : vector<1x512x4xf32>
    %30 = arith.select %27, %25, %29 : vector<1x512x4xi1>, vector<1x512x4xf32>
    %31 = arith.truncf %30 : vector<1x512x4xf32> to vector<1x512x4xbf16>
    %c0_14 = arith.constant 0 : index
    %c0_15 = arith.constant 0 : index
    %c0_16 = arith.constant 0 : index
    %32 = vector.load %arg4[%c0_14, %c0_15, %c0_16] : memref<1x512x4xbf16, #tpu.memory_space<vmem>>, vector<1x512x4xbf16>
    tpu.vector_store %arg4[%c0_14, %c0_15, %c0_16], %31 {strides = array<i32>} : memref<1x512x4xbf16, #tpu.memory_space<vmem>>, vector<1x512x4xbf16>,
    return
  }
  func.func @transform_0(%arg0: i32) -> (i32, i32, i32) {
    %c0_i32 = arith.constant 0 : i32
    %c0_i32_0 = arith.constant 0 : i32
    %c0_i32_1 = arith.constant 0 : i32
    return %arg0, %c0_i32, %c0_i32_0 : i32, i32, i32
  }
  func.func @transform_1(%arg0: i32) -> (i32, i32, i32) {
    %c0_i32 = arith.constant 0 : i32
    %c0_i32_0 = arith.constant 0 : i32
    %c0_i32_1 = arith.constant 0 : i32
    %c0_i32_2 = arith.constant 0 : i32
    return %c0_i32, %c0_i32_0, %c0_i32_1 : i32, i32, i32
  }
  func.func @transform_2(%arg0: i32) -> (i32, i32, i32) {
    %c0_i32 = arith.constant 0 : i32
    %c0_i32_0 = arith.constant 0 : i32
    %c0_i32_1 = arith.constant 0 : i32
    %c0_i32_2 = arith.constant 0 : i32
    return %c0_i32, %c0_i32_0, %c0_i32_1 : i32, i32, i32
  }
  func.func @transform_3(%arg0: i32) -> (i32, i32, i32) {
    %c0_i32 = arith.constant 0 : i32
    %c0_i32_0 = arith.constant 0 : i32
    %c0_i32_1 = arith.constant 0 : i32
    return %arg0, %c0_i32, %c0_i32_0 : i32, i32, i32
  }
}

module attributes {stable_mosaic.version = 11 : i64} {
  func.func @_mm_resident_kernel(%arg0: i32, %arg1: memref<512x112xbf16, #tpu.memory_space<vmem>>, %arg2: memref<112x128xbf16, #tpu.memory_space<vmem>>, %arg3: memref<1x128xf32, #tpu.memory_space<vmem>>, %arg4: memref<512x128xbf16, #tpu.memory_space<vmem>>) attributes {dimension_semantics = [#tpu.dimension_semantics<parallel>], iteration_bounds = array<i64: 2>, scalar_prefetch = 0 : i64, scratch_operands = 0 : i64, tpu.core_type = #tpu.core_type<tc>, window_params = [{transform_indices = @transform_0, window_bounds = array<i64: 512, 112>}, {pipeline_mode = #tpu.pipeline_mode<synchronous>, transform_indices = @transform_1, window_bounds = array<i64: 112, 128>}, {pipeline_mode = #tpu.pipeline_mode<synchronous>, transform_indices = @transform_2, window_bounds = array<i64: 1, 128>}, {transform_indices = @transform_3, window_bounds = array<i64: 512, 128>}]} {
    %c0 = arith.constant 0 : index
    %c0_0 = arith.constant 0 : index
    %0 = vector.load %arg1[%c0, %c0_0] : memref<512x112xbf16, #tpu.memory_space<vmem>>, vector<512x112xbf16>
    %c0_1 = arith.constant 0 : index
    %c0_2 = arith.constant 0 : index
    %1 = vector.load %arg2[%c0_1, %c0_2] : memref<112x128xbf16, #tpu.memory_space<vmem>>, vector<112x128xbf16>
    %cst = arith.constant dense<0.000000e+00> : vector<512x128xf32>
    %2 = tpu.matmul %0, %1, %cst {dimension_numbers = #tpu.dot_dimension_numbers<[1], [0], [0], [1], [0, 0, 1, 1], [], []>} : vector<512x112xbf16>, vector<112x128xbf16>, vector<512x128xf32> -> vector<512x128xf32>
    %c0_3 = arith.constant 0 : index
    %c0_4 = arith.constant 0 : index
    %3 = vector.load %arg3[%c0_3, %c0_4] : memref<1x128xf32, #tpu.memory_space<vmem>>, vector<1x128xf32>
    %4 = vector.broadcast %3 : vector<1x128xf32> to vector<512x128xf32>
    %5 = arith.addf %2, %4 : vector<512x128xf32>
    %6 = arith.truncf %5 : vector<512x128xf32> to vector<512x128xbf16>
    %c0_5 = arith.constant 0 : index
    %c0_6 = arith.constant 0 : index
    %7 = vector.load %arg4[%c0_5, %c0_6] : memref<512x128xbf16, #tpu.memory_space<vmem>>, vector<512x128xbf16>
    tpu.vector_store %arg4[%c0_5, %c0_6], %6 {strides = array<i32>} : memref<512x128xbf16, #tpu.memory_space<vmem>>, vector<512x128xbf16>,
    return
  }
  func.func @transform_0(%arg0: i32) -> (i32, i32) {
    %c0_i32 = arith.constant 0 : i32
    %c0_i32_0 = arith.constant 0 : i32
    return %arg0, %c0_i32 : i32, i32
  }
  func.func @transform_1(%arg0: i32) -> (i32, i32) {
    %c0_i32 = arith.constant 0 : i32
    %c0_i32_0 = arith.constant 0 : i32
    %c0_i32_1 = arith.constant 0 : i32
    return %c0_i32, %c0_i32_0 : i32, i32
  }
  func.func @transform_2(%arg0: i32) -> (i32, i32) {
    %c0_i32 = arith.constant 0 : i32
    %c0_i32_0 = arith.constant 0 : i32
    %c0_i32_1 = arith.constant 0 : i32
    return %c0_i32, %c0_i32_0 : i32, i32
  }
  func.func @transform_3(%arg0: i32) -> (i32, i32) {
    %c0_i32 = arith.constant 0 : i32
    %c0_i32_0 = arith.constant 0 : i32
    return %arg0, %c0_i32 : i32, i32
  }
}

module attributes {stable_mosaic.version = 11 : i64} {
  func.func @_instnorm_kernel(%arg0: i32, %arg1: memref<1x512x4xbf16, #tpu.memory_space<vmem>>, %arg2: memref<1x1x4xf32, #tpu.memory_space<vmem>>, %arg3: memref<1x1x4xf32, #tpu.memory_space<vmem>>, %arg4: memref<1x512x4xbf16, #tpu.memory_space<vmem>>) attributes {dimension_semantics = [#tpu.dimension_semantics<parallel>], iteration_bounds = array<i64: 2>, scalar_prefetch = 0 : i64, scratch_operands = 0 : i64, tpu.core_type = #tpu.core_type<tc>, window_params = [{transform_indices = @transform_0, window_bounds = array<i64: 1, 512, 4>}, {pipeline_mode = #tpu.pipeline_mode<synchronous>, transform_indices = @transform_1, window_bounds = array<i64: 1, 1, 4>}, {pipeline_mode = #tpu.pipeline_mode<synchronous>, transform_indices = @transform_2, window_bounds = array<i64: 1, 1, 4>}, {transform_indices = @transform_3, window_bounds = array<i64: 1, 512, 4>}]} {
    %c0 = arith.constant 0 : index
    %c0_0 = arith.constant 0 : index
    %c0_1 = arith.constant 0 : index
    %0 = vector.load %arg1[%c0, %c0_0, %c0_1] : memref<1x512x4xbf16, #tpu.memory_space<vmem>>, vector<1x512x4xbf16>
    %1 = arith.extf %0 : vector<1x512x4xbf16> to vector<1x512x4xf32>
    %cst = arith.constant dense<0.000000e+00> : vector<1x4xf32>
    %2 = vector.multi_reduction <add>, %1, %cst [1] : vector<1x512x4xf32> to vector<1x4xf32>
    %3 = vector.shape_cast %2 : vector<1x4xf32> to vector<1x1x4xf32>
    %cst_2 = arith.constant 0.001953125 : f32
    %4 = vector.broadcast %cst_2 : f32 to vector<1x1x4xf32>
    %5 = arith.mulf %3, %4 : vector<1x1x4xf32>
    %6 = arith.mulf %1, %1 : vector<1x512x4xf32>
    %cst_3 = arith.constant dense<0.000000e+00> : vector<1x4xf32>
    %7 = vector.multi_reduction <add>, %6, %cst_3 [1] : vector<1x512x4xf32> to vector<1x4xf32>
    %8 = vector.shape_cast %7 : vector<1x4xf32> to vector<1x1x4xf32>
    %cst_4 = arith.constant 0.001953125 : f32
    %9 = vector.broadcast %cst_4 : f32 to vector<1x1x4xf32>
    %10 = arith.mulf %8, %9 : vector<1x1x4xf32>
    %11 = arith.mulf %5, %5 : vector<1x1x4xf32>
    %12 = arith.subf %10, %11 : vector<1x1x4xf32>
    %13 = vector.broadcast %5 : vector<1x1x4xf32> to vector<1x512x4xf32>
    %14 = arith.subf %1, %13 : vector<1x512x4xf32>
    %cst_5 = arith.constant 9.99999974E-6 : f32
    %15 = vector.broadcast %cst_5 : f32 to vector<1x1x4xf32>
    %16 = arith.addf %12, %15 : vector<1x1x4xf32>
    %17 = math.rsqrt %16 : vector<1x1x4xf32>
    %18 = vector.broadcast %17 : vector<1x1x4xf32> to vector<1x512x4xf32>
    %19 = arith.mulf %14, %18 : vector<1x512x4xf32>
    %c0_6 = arith.constant 0 : index
    %c0_7 = arith.constant 0 : index
    %c0_8 = arith.constant 0 : index
    %20 = vector.load %arg2[%c0_6, %c0_7, %c0_8] : memref<1x1x4xf32, #tpu.memory_space<vmem>>, vector<1x1x4xf32>
    %21 = vector.broadcast %20 : vector<1x1x4xf32> to vector<1x512x4xf32>
    %22 = arith.mulf %19, %21 : vector<1x512x4xf32>
    %c0_9 = arith.constant 0 : index
    %c0_10 = arith.constant 0 : index
    %c0_11 = arith.constant 0 : index
    %23 = vector.load %arg3[%c0_9, %c0_10, %c0_11] : memref<1x1x4xf32, #tpu.memory_space<vmem>>, vector<1x1x4xf32>
    %24 = vector.broadcast %23 : vector<1x1x4xf32> to vector<1x512x4xf32>
    %25 = arith.addf %22, %24 : vector<1x512x4xf32>
    %cst_12 = arith.constant 0.000000e+00 : f32
    %26 = vector.broadcast %cst_12 : f32 to vector<1x512x4xf32>
    %27 = arith.cmpf oge, %25, %26 : vector<1x512x4xf32>
    %cst_13 = arith.constant 0.00999999977 : f32
    %28 = vector.broadcast %cst_13 : f32 to vector<1x512x4xf32>
    %29 = arith.mulf %28, %25 : vector<1x512x4xf32>
    %30 = arith.select %27, %25, %29 : vector<1x512x4xi1>, vector<1x512x4xf32>
    %31 = arith.truncf %30 : vector<1x512x4xf32> to vector<1x512x4xbf16>
    %c0_14 = arith.constant 0 : index
    %c0_15 = arith.constant 0 : index
    %c0_16 = arith.constant 0 : index
    %32 = vector.load %arg4[%c0_14, %c0_15, %c0_16] : memref<1x512x4xbf16, #tpu.memory_space<vmem>>, vector<1x512x4xbf16>
    tpu.vector_store %arg4[%c0_14, %c0_15, %c0_16], %31 {strides = array<i32>} : memref<1x512x4xbf16, #tpu.memory_space<vmem>>, vector<1x512x4xbf16>,
    return
  }
  func.func @transform_0(%arg0: i32) -> (i32, i32, i32) {
    %c0_i32 = arith.constant 0 : i32
    %c0_i32_0 = arith.constant 0 : i32
    %c0_i32_1 = arith.constant 0 : i32
    return %arg0, %c0_i32, %c0_i32_0 : i32, i32, i32
  }
  func.func @transform_1(%arg0: i32) -> (i32, i32, i32) {
    %c0_i32 = arith.constant 0 : i32
    %c0_i32_0 = arith.constant 0 : i32
    %c0_i32_1 = arith.constant 0 : i32
    %c0_i32_2 = arith.constant 0 : i32
    return %c0_i32, %c0_i32_0, %c0_i32_1 : i32, i32, i32
  }
  func.func @transform_2(%arg0: i32) -> (i32, i32, i32) {
    %c0_i32 = arith.constant 0 : i32
    %c0_i32_0 = arith.constant 0 : i32
    %c0_i32_1 = arith.constant 0 : i32
    %c0_i32_2 = arith.constant 0 : i32
    return %c0_i32, %c0_i32_0, %c0_i32_1 : i32, i32, i32
  }
  func.func @transform_3(%arg0: i32) -> (i32, i32, i32) {
    %c0_i32 = arith.constant 0 : i32
    %c0_i32_0 = arith.constant 0 : i32
    %c0_i32_1 = arith.constant 0 : i32
    return %arg0, %c0_i32, %c0_i32_0 : i32, i32, i32
  }
}

module attributes {stable_mosaic.version = 11 : i64} {
  func.func @_mm_resident_kernel(%arg0: i32, %arg1: memref<64x112xbf16, #tpu.memory_space<vmem>>, %arg2: memref<112x128xbf16, #tpu.memory_space<vmem>>, %arg3: memref<1x128xf32, #tpu.memory_space<vmem>>, %arg4: memref<64x128xbf16, #tpu.memory_space<vmem>>) attributes {dimension_semantics = [#tpu.dimension_semantics<parallel>], iteration_bounds = array<i64: 2>, scalar_prefetch = 0 : i64, scratch_operands = 0 : i64, tpu.core_type = #tpu.core_type<tc>, window_params = [{transform_indices = @transform_0, window_bounds = array<i64: 64, 112>}, {pipeline_mode = #tpu.pipeline_mode<synchronous>, transform_indices = @transform_1, window_bounds = array<i64: 112, 128>}, {pipeline_mode = #tpu.pipeline_mode<synchronous>, transform_indices = @transform_2, window_bounds = array<i64: 1, 128>}, {transform_indices = @transform_3, window_bounds = array<i64: 64, 128>}]} {
    %c0 = arith.constant 0 : index
    %c0_0 = arith.constant 0 : index
    %0 = vector.load %arg1[%c0, %c0_0] : memref<64x112xbf16, #tpu.memory_space<vmem>>, vector<64x112xbf16>
    %c0_1 = arith.constant 0 : index
    %c0_2 = arith.constant 0 : index
    %1 = vector.load %arg2[%c0_1, %c0_2] : memref<112x128xbf16, #tpu.memory_space<vmem>>, vector<112x128xbf16>
    %cst = arith.constant dense<0.000000e+00> : vector<64x128xf32>
    %2 = tpu.matmul %0, %1, %cst {dimension_numbers = #tpu.dot_dimension_numbers<[1], [0], [0], [1], [0, 0, 1, 1], [], []>} : vector<64x112xbf16>, vector<112x128xbf16>, vector<64x128xf32> -> vector<64x128xf32>
    %c0_3 = arith.constant 0 : index
    %c0_4 = arith.constant 0 : index
    %3 = vector.load %arg3[%c0_3, %c0_4] : memref<1x128xf32, #tpu.memory_space<vmem>>, vector<1x128xf32>
    %4 = vector.broadcast %3 : vector<1x128xf32> to vector<64x128xf32>
    %5 = arith.addf %2, %4 : vector<64x128xf32>
    %6 = arith.truncf %5 : vector<64x128xf32> to vector<64x128xbf16>
    %c0_5 = arith.constant 0 : index
    %c0_6 = arith.constant 0 : index
    %7 = vector.load %arg4[%c0_5, %c0_6] : memref<64x128xbf16, #tpu.memory_space<vmem>>, vector<64x128xbf16>
    tpu.vector_store %arg4[%c0_5, %c0_6], %6 {strides = array<i32>} : memref<64x128xbf16, #tpu.memory_space<vmem>>, vector<64x128xbf16>,
    return
  }
  func.func @transform_0(%arg0: i32) -> (i32, i32) {
    %c0_i32 = arith.constant 0 : i32
    %c0_i32_0 = arith.constant 0 : i32
    return %arg0, %c0_i32 : i32, i32
  }
  func.func @transform_1(%arg0: i32) -> (i32, i32) {
    %c0_i32 = arith.constant 0 : i32
    %c0_i32_0 = arith.constant 0 : i32
    %c0_i32_1 = arith.constant 0 : i32
    return %c0_i32, %c0_i32_0 : i32, i32
  }
  func.func @transform_2(%arg0: i32) -> (i32, i32) {
    %c0_i32 = arith.constant 0 : i32
    %c0_i32_0 = arith.constant 0 : i32
    %c0_i32_1 = arith.constant 0 : i32
    return %c0_i32, %c0_i32_0 : i32, i32
  }
  func.func @transform_3(%arg0: i32) -> (i32, i32) {
    %c0_i32 = arith.constant 0 : i32
    %c0_i32_0 = arith.constant 0 : i32
    return %arg0, %c0_i32 : i32, i32
  }
}

module attributes {stable_mosaic.version = 11 : i64} {
  func.func @_instnorm_kernel(%arg0: i32, %arg1: memref<1x64x8xbf16, #tpu.memory_space<vmem>>, %arg2: memref<1x1x8xf32, #tpu.memory_space<vmem>>, %arg3: memref<1x1x8xf32, #tpu.memory_space<vmem>>, %arg4: memref<1x64x8xbf16, #tpu.memory_space<vmem>>) attributes {dimension_semantics = [#tpu.dimension_semantics<parallel>], iteration_bounds = array<i64: 2>, scalar_prefetch = 0 : i64, scratch_operands = 0 : i64, tpu.core_type = #tpu.core_type<tc>, window_params = [{transform_indices = @transform_0, window_bounds = array<i64: 1, 64, 8>}, {pipeline_mode = #tpu.pipeline_mode<synchronous>, transform_indices = @transform_1, window_bounds = array<i64: 1, 1, 8>}, {pipeline_mode = #tpu.pipeline_mode<synchronous>, transform_indices = @transform_2, window_bounds = array<i64: 1, 1, 8>}, {transform_indices = @transform_3, window_bounds = array<i64: 1, 64, 8>}]} {
    %c0 = arith.constant 0 : index
    %c0_0 = arith.constant 0 : index
    %c0_1 = arith.constant 0 : index
    %0 = vector.load %arg1[%c0, %c0_0, %c0_1] : memref<1x64x8xbf16, #tpu.memory_space<vmem>>, vector<1x64x8xbf16>
    %1 = arith.extf %0 : vector<1x64x8xbf16> to vector<1x64x8xf32>
    %cst = arith.constant dense<0.000000e+00> : vector<1x8xf32>
    %2 = vector.multi_reduction <add>, %1, %cst [1] : vector<1x64x8xf32> to vector<1x8xf32>
    %3 = vector.shape_cast %2 : vector<1x8xf32> to vector<1x1x8xf32>
    %cst_2 = arith.constant 1.562500e-02 : f32
    %4 = vector.broadcast %cst_2 : f32 to vector<1x1x8xf32>
    %5 = arith.mulf %3, %4 : vector<1x1x8xf32>
    %6 = arith.mulf %1, %1 : vector<1x64x8xf32>
    %cst_3 = arith.constant dense<0.000000e+00> : vector<1x8xf32>
    %7 = vector.multi_reduction <add>, %6, %cst_3 [1] : vector<1x64x8xf32> to vector<1x8xf32>
    %8 = vector.shape_cast %7 : vector<1x8xf32> to vector<1x1x8xf32>
    %cst_4 = arith.constant 1.562500e-02 : f32
    %9 = vector.broadcast %cst_4 : f32 to vector<1x1x8xf32>
    %10 = arith.mulf %8, %9 : vector<1x1x8xf32>
    %11 = arith.mulf %5, %5 : vector<1x1x8xf32>
    %12 = arith.subf %10, %11 : vector<1x1x8xf32>
    %13 = vector.broadcast %5 : vector<1x1x8xf32> to vector<1x64x8xf32>
    %14 = arith.subf %1, %13 : vector<1x64x8xf32>
    %cst_5 = arith.constant 9.99999974E-6 : f32
    %15 = vector.broadcast %cst_5 : f32 to vector<1x1x8xf32>
    %16 = arith.addf %12, %15 : vector<1x1x8xf32>
    %17 = math.rsqrt %16 : vector<1x1x8xf32>
    %18 = vector.broadcast %17 : vector<1x1x8xf32> to vector<1x64x8xf32>
    %19 = arith.mulf %14, %18 : vector<1x64x8xf32>
    %c0_6 = arith.constant 0 : index
    %c0_7 = arith.constant 0 : index
    %c0_8 = arith.constant 0 : index
    %20 = vector.load %arg2[%c0_6, %c0_7, %c0_8] : memref<1x1x8xf32, #tpu.memory_space<vmem>>, vector<1x1x8xf32>
    %21 = vector.broadcast %20 : vector<1x1x8xf32> to vector<1x64x8xf32>
    %22 = arith.mulf %19, %21 : vector<1x64x8xf32>
    %c0_9 = arith.constant 0 : index
    %c0_10 = arith.constant 0 : index
    %c0_11 = arith.constant 0 : index
    %23 = vector.load %arg3[%c0_9, %c0_10, %c0_11] : memref<1x1x8xf32, #tpu.memory_space<vmem>>, vector<1x1x8xf32>
    %24 = vector.broadcast %23 : vector<1x1x8xf32> to vector<1x64x8xf32>
    %25 = arith.addf %22, %24 : vector<1x64x8xf32>
    %cst_12 = arith.constant 0.000000e+00 : f32
    %26 = vector.broadcast %cst_12 : f32 to vector<1x64x8xf32>
    %27 = arith.cmpf oge, %25, %26 : vector<1x64x8xf32>
    %cst_13 = arith.constant 0.00999999977 : f32
    %28 = vector.broadcast %cst_13 : f32 to vector<1x64x8xf32>
    %29 = arith.mulf %28, %25 : vector<1x64x8xf32>
    %30 = arith.select %27, %25, %29 : vector<1x64x8xi1>, vector<1x64x8xf32>
    %31 = arith.truncf %30 : vector<1x64x8xf32> to vector<1x64x8xbf16>
    %c0_14 = arith.constant 0 : index
    %c0_15 = arith.constant 0 : index
    %c0_16 = arith.constant 0 : index
    %32 = vector.load %arg4[%c0_14, %c0_15, %c0_16] : memref<1x64x8xbf16, #tpu.memory_space<vmem>>, vector<1x64x8xbf16>
    tpu.vector_store %arg4[%c0_14, %c0_15, %c0_16], %31 {strides = array<i32>} : memref<1x64x8xbf16, #tpu.memory_space<vmem>>, vector<1x64x8xbf16>,
    return
  }
  func.func @transform_0(%arg0: i32) -> (i32, i32, i32) {
    %c0_i32 = arith.constant 0 : i32
    %c0_i32_0 = arith.constant 0 : i32
    %c0_i32_1 = arith.constant 0 : i32
    return %arg0, %c0_i32, %c0_i32_0 : i32, i32, i32
  }
  func.func @transform_1(%arg0: i32) -> (i32, i32, i32) {
    %c0_i32 = arith.constant 0 : i32
    %c0_i32_0 = arith.constant 0 : i32
    %c0_i32_1 = arith.constant 0 : i32
    %c0_i32_2 = arith.constant 0 : i32
    return %c0_i32, %c0_i32_0, %c0_i32_1 : i32, i32, i32
  }
  func.func @transform_2(%arg0: i32) -> (i32, i32, i32) {
    %c0_i32 = arith.constant 0 : i32
    %c0_i32_0 = arith.constant 0 : i32
    %c0_i32_1 = arith.constant 0 : i32
    %c0_i32_2 = arith.constant 0 : i32
    return %c0_i32, %c0_i32_0, %c0_i32_1 : i32, i32, i32
  }
  func.func @transform_3(%arg0: i32) -> (i32, i32, i32) {
    %c0_i32 = arith.constant 0 : i32
    %c0_i32_0 = arith.constant 0 : i32
    %c0_i32_1 = arith.constant 0 : i32
    return %arg0, %c0_i32, %c0_i32_0 : i32, i32, i32
  }
}

module attributes {stable_mosaic.version = 11 : i64} {
  func.func @_mm_resident_kernel(%arg0: i32, %arg1: memref<64x216xbf16, #tpu.memory_space<vmem>>, %arg2: memref<216x128xbf16, #tpu.memory_space<vmem>>, %arg3: memref<1x128xf32, #tpu.memory_space<vmem>>, %arg4: memref<64x128xbf16, #tpu.memory_space<vmem>>) attributes {dimension_semantics = [#tpu.dimension_semantics<parallel>], iteration_bounds = array<i64: 2>, scalar_prefetch = 0 : i64, scratch_operands = 0 : i64, tpu.core_type = #tpu.core_type<tc>, window_params = [{transform_indices = @transform_0, window_bounds = array<i64: 64, 216>}, {pipeline_mode = #tpu.pipeline_mode<synchronous>, transform_indices = @transform_1, window_bounds = array<i64: 216, 128>}, {pipeline_mode = #tpu.pipeline_mode<synchronous>, transform_indices = @transform_2, window_bounds = array<i64: 1, 128>}, {transform_indices = @transform_3, window_bounds = array<i64: 64, 128>}]} {
    %c0 = arith.constant 0 : index
    %c0_0 = arith.constant 0 : index
    %0 = vector.load %arg1[%c0, %c0_0] : memref<64x216xbf16, #tpu.memory_space<vmem>>, vector<64x216xbf16>
    %c0_1 = arith.constant 0 : index
    %c0_2 = arith.constant 0 : index
    %1 = vector.load %arg2[%c0_1, %c0_2] : memref<216x128xbf16, #tpu.memory_space<vmem>>, vector<216x128xbf16>
    %cst = arith.constant dense<0.000000e+00> : vector<64x128xf32>
    %2 = tpu.matmul %0, %1, %cst {dimension_numbers = #tpu.dot_dimension_numbers<[1], [0], [0], [1], [0, 0, 1, 1], [], []>} : vector<64x216xbf16>, vector<216x128xbf16>, vector<64x128xf32> -> vector<64x128xf32>
    %c0_3 = arith.constant 0 : index
    %c0_4 = arith.constant 0 : index
    %3 = vector.load %arg3[%c0_3, %c0_4] : memref<1x128xf32, #tpu.memory_space<vmem>>, vector<1x128xf32>
    %4 = vector.broadcast %3 : vector<1x128xf32> to vector<64x128xf32>
    %5 = arith.addf %2, %4 : vector<64x128xf32>
    %6 = arith.truncf %5 : vector<64x128xf32> to vector<64x128xbf16>
    %c0_5 = arith.constant 0 : index
    %c0_6 = arith.constant 0 : index
    %7 = vector.load %arg4[%c0_5, %c0_6] : memref<64x128xbf16, #tpu.memory_space<vmem>>, vector<64x128xbf16>
    tpu.vector_store %arg4[%c0_5, %c0_6], %6 {strides = array<i32>} : memref<64x128xbf16, #tpu.memory_space<vmem>>, vector<64x128xbf16>,
    return
  }
  func.func @transform_0(%arg0: i32) -> (i32, i32) {
    %c0_i32 = arith.constant 0 : i32
    %c0_i32_0 = arith.constant 0 : i32
    return %arg0, %c0_i32 : i32, i32
  }
  func.func @transform_1(%arg0: i32) -> (i32, i32) {
    %c0_i32 = arith.constant 0 : i32
    %c0_i32_0 = arith.constant 0 : i32
    %c0_i32_1 = arith.constant 0 : i32
    return %c0_i32, %c0_i32_0 : i32, i32
  }
  func.func @transform_2(%arg0: i32) -> (i32, i32) {
    %c0_i32 = arith.constant 0 : i32
    %c0_i32_0 = arith.constant 0 : i32
    %c0_i32_1 = arith.constant 0 : i32
    return %c0_i32, %c0_i32_0 : i32, i32
  }
  func.func @transform_3(%arg0: i32) -> (i32, i32) {
    %c0_i32 = arith.constant 0 : i32
    %c0_i32_0 = arith.constant 0 : i32
    return %arg0, %c0_i32 : i32, i32
  }
}

module attributes {stable_mosaic.version = 11 : i64} {
  func.func @_mm_resident_kernel(%arg0: i32, %arg1: memref<64x8xbf16, #tpu.memory_space<vmem>>, %arg2: memref<8x128xbf16, #tpu.memory_space<vmem>>, %arg3: memref<1x128xf32, #tpu.memory_space<vmem>>, %arg4: memref<64x128xbf16, #tpu.memory_space<vmem>>) attributes {dimension_semantics = [#tpu.dimension_semantics<parallel>], iteration_bounds = array<i64: 2>, scalar_prefetch = 0 : i64, scratch_operands = 0 : i64, tpu.core_type = #tpu.core_type<tc>, window_params = [{transform_indices = @transform_0, window_bounds = array<i64: 64, 8>}, {pipeline_mode = #tpu.pipeline_mode<synchronous>, transform_indices = @transform_1, window_bounds = array<i64: 8, 128>}, {pipeline_mode = #tpu.pipeline_mode<synchronous>, transform_indices = @transform_2, window_bounds = array<i64: 1, 128>}, {transform_indices = @transform_3, window_bounds = array<i64: 64, 128>}]} {
    %c0 = arith.constant 0 : index
    %c0_0 = arith.constant 0 : index
    %0 = vector.load %arg1[%c0, %c0_0] : memref<64x8xbf16, #tpu.memory_space<vmem>>, vector<64x8xbf16>
    %c0_1 = arith.constant 0 : index
    %c0_2 = arith.constant 0 : index
    %1 = vector.load %arg2[%c0_1, %c0_2] : memref<8x128xbf16, #tpu.memory_space<vmem>>, vector<8x128xbf16>
    %cst = arith.constant dense<0.000000e+00> : vector<64x128xf32>
    %2 = tpu.matmul %0, %1, %cst {dimension_numbers = #tpu.dot_dimension_numbers<[1], [0], [0], [1], [0, 0, 1, 1], [], []>} : vector<64x8xbf16>, vector<8x128xbf16>, vector<64x128xf32> -> vector<64x128xf32>
    %c0_3 = arith.constant 0 : index
    %c0_4 = arith.constant 0 : index
    %3 = vector.load %arg3[%c0_3, %c0_4] : memref<1x128xf32, #tpu.memory_space<vmem>>, vector<1x128xf32>
    %4 = vector.broadcast %3 : vector<1x128xf32> to vector<64x128xf32>
    %5 = arith.addf %2, %4 : vector<64x128xf32>
    %6 = arith.truncf %5 : vector<64x128xf32> to vector<64x128xbf16>
    %c0_5 = arith.constant 0 : index
    %c0_6 = arith.constant 0 : index
    %7 = vector.load %arg4[%c0_5, %c0_6] : memref<64x128xbf16, #tpu.memory_space<vmem>>, vector<64x128xbf16>
    tpu.vector_store %arg4[%c0_5, %c0_6], %6 {strides = array<i32>} : memref<64x128xbf16, #tpu.memory_space<vmem>>, vector<64x128xbf16>,
    return
  }
  func.func @transform_0(%arg0: i32) -> (i32, i32) {
    %c0_i32 = arith.constant 0 : i32
    %c0_i32_0 = arith.constant 0 : i32
    return %arg0, %c0_i32 : i32, i32
  }
  func.func @transform_1(%arg0: i32) -> (i32, i32) {
    %c0_i32 = arith.constant 0 : i32
    %c0_i32_0 = arith.constant 0 : i32
    %c0_i32_1 = arith.constant 0 : i32
    return %c0_i32, %c0_i32_0 : i32, i32
  }
  func.func @transform_2(%arg0: i32) -> (i32, i32) {
    %c0_i32 = arith.constant 0 : i32
    %c0_i32_0 = arith.constant 0 : i32
    %c0_i32_1 = arith.constant 0 : i32
    return %c0_i32, %c0_i32_0 : i32, i32
  }
  func.func @transform_3(%arg0: i32) -> (i32, i32) {
    %c0_i32 = arith.constant 0 : i32
    %c0_i32_0 = arith.constant 0 : i32
    return %arg0, %c0_i32 : i32, i32
  }
}

module attributes {stable_mosaic.version = 11 : i64} {
  func.func @_in_add_leaky_kernel(%arg0: i32, %arg1: memref<1x64x8xbf16, #tpu.memory_space<vmem>>, %arg2: memref<1x1x8xf32, #tpu.memory_space<vmem>>, %arg3: memref<1x1x8xf32, #tpu.memory_space<vmem>>, %arg4: memref<1x64x8xbf16, #tpu.memory_space<vmem>>, %arg5: memref<1x1x8xf32, #tpu.memory_space<vmem>>, %arg6: memref<1x1x8xf32, #tpu.memory_space<vmem>>, %arg7: memref<1x64x8xbf16, #tpu.memory_space<vmem>>) attributes {dimension_semantics = [#tpu.dimension_semantics<parallel>], iteration_bounds = array<i64: 2>, scalar_prefetch = 0 : i64, scratch_operands = 0 : i64, tpu.core_type = #tpu.core_type<tc>, window_params = [{transform_indices = @transform_0, window_bounds = array<i64: 1, 64, 8>}, {pipeline_mode = #tpu.pipeline_mode<synchronous>, transform_indices = @transform_1, window_bounds = array<i64: 1, 1, 8>}, {pipeline_mode = #tpu.pipeline_mode<synchronous>, transform_indices = @transform_2, window_bounds = array<i64: 1, 1, 8>}, {transform_indices = @transform_3, window_bounds = array<i64: 1, 64, 8>}, {pipeline_mode = #tpu.pipeline_mode<synchronous>, transform_indices = @transform_4, window_bounds = array<i64: 1, 1, 8>}, {pipeline_mode = #tpu.pipeline_mode<synchronous>, transform_indices = @transform_5, window_bounds = array<i64: 1, 1, 8>}, {transform_indices = @transform_6, window_bounds = array<i64: 1, 64, 8>}]} {
    %c0 = arith.constant 0 : index
    %c0_0 = arith.constant 0 : index
    %c0_1 = arith.constant 0 : index
    %0 = vector.load %arg1[%c0, %c0_0, %c0_1] : memref<1x64x8xbf16, #tpu.memory_space<vmem>>, vector<1x64x8xbf16>
    %1 = arith.extf %0 : vector<1x64x8xbf16> to vector<1x64x8xf32>
    %cst = arith.constant dense<0.000000e+00> : vector<1x8xf32>
    %2 = vector.multi_reduction <add>, %1, %cst [1] : vector<1x64x8xf32> to vector<1x8xf32>
    %3 = vector.shape_cast %2 : vector<1x8xf32> to vector<1x1x8xf32>
    %cst_2 = arith.constant 1.562500e-02 : f32
    %4 = vector.broadcast %cst_2 : f32 to vector<1x1x8xf32>
    %5 = arith.mulf %3, %4 : vector<1x1x8xf32>
    %6 = arith.mulf %1, %1 : vector<1x64x8xf32>
    %cst_3 = arith.constant dense<0.000000e+00> : vector<1x8xf32>
    %7 = vector.multi_reduction <add>, %6, %cst_3 [1] : vector<1x64x8xf32> to vector<1x8xf32>
    %8 = vector.shape_cast %7 : vector<1x8xf32> to vector<1x1x8xf32>
    %cst_4 = arith.constant 1.562500e-02 : f32
    %9 = vector.broadcast %cst_4 : f32 to vector<1x1x8xf32>
    %10 = arith.mulf %8, %9 : vector<1x1x8xf32>
    %11 = arith.mulf %5, %5 : vector<1x1x8xf32>
    %12 = arith.subf %10, %11 : vector<1x1x8xf32>
    %13 = vector.broadcast %5 : vector<1x1x8xf32> to vector<1x64x8xf32>
    %14 = arith.subf %1, %13 : vector<1x64x8xf32>
    %cst_5 = arith.constant 9.99999974E-6 : f32
    %15 = vector.broadcast %cst_5 : f32 to vector<1x1x8xf32>
    %16 = arith.addf %12, %15 : vector<1x1x8xf32>
    %17 = math.rsqrt %16 : vector<1x1x8xf32>
    %18 = vector.broadcast %17 : vector<1x1x8xf32> to vector<1x64x8xf32>
    %19 = arith.mulf %14, %18 : vector<1x64x8xf32>
    %c0_6 = arith.constant 0 : index
    %c0_7 = arith.constant 0 : index
    %c0_8 = arith.constant 0 : index
    %20 = vector.load %arg2[%c0_6, %c0_7, %c0_8] : memref<1x1x8xf32, #tpu.memory_space<vmem>>, vector<1x1x8xf32>
    %21 = vector.broadcast %20 : vector<1x1x8xf32> to vector<1x64x8xf32>
    %22 = arith.mulf %19, %21 : vector<1x64x8xf32>
    %c0_9 = arith.constant 0 : index
    %c0_10 = arith.constant 0 : index
    %c0_11 = arith.constant 0 : index
    %23 = vector.load %arg3[%c0_9, %c0_10, %c0_11] : memref<1x1x8xf32, #tpu.memory_space<vmem>>, vector<1x1x8xf32>
    %24 = vector.broadcast %23 : vector<1x1x8xf32> to vector<1x64x8xf32>
    %25 = arith.addf %22, %24 : vector<1x64x8xf32>
    %c0_12 = arith.constant 0 : index
    %c0_13 = arith.constant 0 : index
    %c0_14 = arith.constant 0 : index
    %26 = vector.load %arg4[%c0_12, %c0_13, %c0_14] : memref<1x64x8xbf16, #tpu.memory_space<vmem>>, vector<1x64x8xbf16>
    %27 = arith.extf %26 : vector<1x64x8xbf16> to vector<1x64x8xf32>
    %cst_15 = arith.constant dense<0.000000e+00> : vector<1x8xf32>
    %28 = vector.multi_reduction <add>, %27, %cst_15 [1] : vector<1x64x8xf32> to vector<1x8xf32>
    %29 = vector.shape_cast %28 : vector<1x8xf32> to vector<1x1x8xf32>
    %cst_16 = arith.constant 1.562500e-02 : f32
    %30 = vector.broadcast %cst_16 : f32 to vector<1x1x8xf32>
    %31 = arith.mulf %29, %30 : vector<1x1x8xf32>
    %32 = arith.mulf %27, %27 : vector<1x64x8xf32>
    %cst_17 = arith.constant dense<0.000000e+00> : vector<1x8xf32>
    %33 = vector.multi_reduction <add>, %32, %cst_17 [1] : vector<1x64x8xf32> to vector<1x8xf32>
    %34 = vector.shape_cast %33 : vector<1x8xf32> to vector<1x1x8xf32>
    %cst_18 = arith.constant 1.562500e-02 : f32
    %35 = vector.broadcast %cst_18 : f32 to vector<1x1x8xf32>
    %36 = arith.mulf %34, %35 : vector<1x1x8xf32>
    %37 = arith.mulf %31, %31 : vector<1x1x8xf32>
    %38 = arith.subf %36, %37 : vector<1x1x8xf32>
    %39 = vector.broadcast %31 : vector<1x1x8xf32> to vector<1x64x8xf32>
    %40 = arith.subf %27, %39 : vector<1x64x8xf32>
    %cst_19 = arith.constant 9.99999974E-6 : f32
    %41 = vector.broadcast %cst_19 : f32 to vector<1x1x8xf32>
    %42 = arith.addf %38, %41 : vector<1x1x8xf32>
    %43 = math.rsqrt %42 : vector<1x1x8xf32>
    %44 = vector.broadcast %43 : vector<1x1x8xf32> to vector<1x64x8xf32>
    %45 = arith.mulf %40, %44 : vector<1x64x8xf32>
    %c0_20 = arith.constant 0 : index
    %c0_21 = arith.constant 0 : index
    %c0_22 = arith.constant 0 : index
    %46 = vector.load %arg5[%c0_20, %c0_21, %c0_22] : memref<1x1x8xf32, #tpu.memory_space<vmem>>, vector<1x1x8xf32>
    %47 = vector.broadcast %46 : vector<1x1x8xf32> to vector<1x64x8xf32>
    %48 = arith.mulf %45, %47 : vector<1x64x8xf32>
    %c0_23 = arith.constant 0 : index
    %c0_24 = arith.constant 0 : index
    %c0_25 = arith.constant 0 : index
    %49 = vector.load %arg6[%c0_23, %c0_24, %c0_25] : memref<1x1x8xf32, #tpu.memory_space<vmem>>, vector<1x1x8xf32>
    %50 = vector.broadcast %49 : vector<1x1x8xf32> to vector<1x64x8xf32>
    %51 = arith.addf %48, %50 : vector<1x64x8xf32>
    %52 = arith.addf %25, %51 : vector<1x64x8xf32>
    %cst_26 = arith.constant 0.000000e+00 : f32
    %53 = vector.broadcast %cst_26 : f32 to vector<1x64x8xf32>
    %54 = arith.cmpf oge, %52, %53 : vector<1x64x8xf32>
    %cst_27 = arith.constant 0.00999999977 : f32
    %55 = vector.broadcast %cst_27 : f32 to vector<1x64x8xf32>
    %56 = arith.mulf %55, %52 : vector<1x64x8xf32>
    %57 = arith.select %54, %52, %56 : vector<1x64x8xi1>, vector<1x64x8xf32>
    %58 = arith.truncf %57 : vector<1x64x8xf32> to vector<1x64x8xbf16>
    %c0_28 = arith.constant 0 : index
    %c0_29 = arith.constant 0 : index
    %c0_30 = arith.constant 0 : index
    %59 = vector.load %arg7[%c0_28, %c0_29, %c0_30] : memref<1x64x8xbf16, #tpu.memory_space<vmem>>, vector<1x64x8xbf16>
    tpu.vector_store %arg7[%c0_28, %c0_29, %c0_30], %58 {strides = array<i32>} : memref<1x64x8xbf16, #tpu.memory_space<vmem>>, vector<1x64x8xbf16>,
    return
  }
  func.func @transform_0(%arg0: i32) -> (i32, i32, i32) {
    %c0_i32 = arith.constant 0 : i32
    %c0_i32_0 = arith.constant 0 : i32
    %c0_i32_1 = arith.constant 0 : i32
    return %arg0, %c0_i32, %c0_i32_0 : i32, i32, i32
  }
  func.func @transform_1(%arg0: i32) -> (i32, i32, i32) {
    %c0_i32 = arith.constant 0 : i32
    %c0_i32_0 = arith.constant 0 : i32
    %c0_i32_1 = arith.constant 0 : i32
    %c0_i32_2 = arith.constant 0 : i32
    return %c0_i32, %c0_i32_0, %c0_i32_1 : i32, i32, i32
  }
  func.func @transform_2(%arg0: i32) -> (i32, i32, i32) {
    %c0_i32 = arith.constant 0 : i32
    %c0_i32_0 = arith.constant 0 : i32
    %c0_i32_1 = arith.constant 0 : i32
    %c0_i32_2 = arith.constant 0 : i32
    return %c0_i32, %c0_i32_0, %c0_i32_1 : i32, i32, i32
  }
  func.func @transform_3(%arg0: i32) -> (i32, i32, i32) {
    %c0_i32 = arith.constant 0 : i32
    %c0_i32_0 = arith.constant 0 : i32
    %c0_i32_1 = arith.constant 0 : i32
    return %arg0, %c0_i32, %c0_i32_0 : i32, i32, i32
  }
  func.func @transform_4(%arg0: i32) -> (i32, i32, i32) {
    %c0_i32 = arith.constant 0 : i32
    %c0_i32_0 = arith.constant 0 : i32
    %c0_i32_1 = arith.constant 0 : i32
    %c0_i32_2 = arith.constant 0 : i32
    return %c0_i32, %c0_i32_0, %c0_i32_1 : i32, i32, i32
  }
  func.func @transform_5(%arg0: i32) -> (i32, i32, i32) {
    %c0_i32 = arith.constant 0 : i32
    %c0_i32_0 = arith.constant 0 : i32
    %c0_i32_1 = arith.constant 0 : i32
    %c0_i32_2 = arith.constant 0 : i32
    return %c0_i32, %c0_i32_0, %c0_i32_1 : i32, i32, i32
  }
  func.func @transform_6(%arg0: i32) -> (i32, i32, i32) {
    %c0_i32 = arith.constant 0 : i32
    %c0_i32_0 = arith.constant 0 : i32
    %c0_i32_1 = arith.constant 0 : i32
    return %arg0, %c0_i32, %c0_i32_0 : i32, i32, i32
  }
}

module attributes {stable_mosaic.version = 11 : i64} {
  func.func @_mm_resident_kernel(%arg0: i32, %arg1: memref<16x216xbf16, #tpu.memory_space<vmem>>, %arg2: memref<216x128xbf16, #tpu.memory_space<vmem>>, %arg3: memref<1x128xf32, #tpu.memory_space<vmem>>, %arg4: memref<16x128xbf16, #tpu.memory_space<vmem>>) attributes {dimension_semantics = [#tpu.dimension_semantics<parallel>], iteration_bounds = array<i64: 1>, scalar_prefetch = 0 : i64, scratch_operands = 0 : i64, tpu.core_type = #tpu.core_type<tc>, window_params = [{transform_indices = @transform_0, window_bounds = array<i64: 16, 216>}, {pipeline_mode = #tpu.pipeline_mode<synchronous>, transform_indices = @transform_1, window_bounds = array<i64: 216, 128>}, {pipeline_mode = #tpu.pipeline_mode<synchronous>, transform_indices = @transform_2, window_bounds = array<i64: 1, 128>}, {transform_indices = @transform_3, window_bounds = array<i64: 16, 128>}]} {
    %c0 = arith.constant 0 : index
    %c0_0 = arith.constant 0 : index
    %0 = vector.load %arg1[%c0, %c0_0] : memref<16x216xbf16, #tpu.memory_space<vmem>>, vector<16x216xbf16>
    %c0_1 = arith.constant 0 : index
    %c0_2 = arith.constant 0 : index
    %1 = vector.load %arg2[%c0_1, %c0_2] : memref<216x128xbf16, #tpu.memory_space<vmem>>, vector<216x128xbf16>
    %cst = arith.constant dense<0.000000e+00> : vector<16x128xf32>
    %2 = tpu.matmul %0, %1, %cst {dimension_numbers = #tpu.dot_dimension_numbers<[1], [0], [0], [1], [0, 0, 1, 1], [], []>} : vector<16x216xbf16>, vector<216x128xbf16>, vector<16x128xf32> -> vector<16x128xf32>
    %c0_3 = arith.constant 0 : index
    %c0_4 = arith.constant 0 : index
    %3 = vector.load %arg3[%c0_3, %c0_4] : memref<1x128xf32, #tpu.memory_space<vmem>>, vector<1x128xf32>
    %4 = vector.broadcast %3 : vector<1x128xf32> to vector<16x128xf32>
    %5 = arith.addf %2, %4 : vector<16x128xf32>
    %6 = arith.truncf %5 : vector<16x128xf32> to vector<16x128xbf16>
    %c0_5 = arith.constant 0 : index
    %c0_6 = arith.constant 0 : index
    %7 = vector.load %arg4[%c0_5, %c0_6] : memref<16x128xbf16, #tpu.memory_space<vmem>>, vector<16x128xbf16>
    tpu.vector_store %arg4[%c0_5, %c0_6], %6 {strides = array<i32>} : memref<16x128xbf16, #tpu.memory_space<vmem>>, vector<16x128xbf16>,
    return
  }
  func.func @transform_0(%arg0: i32) -> (i32, i32) {
    %c0_i32 = arith.constant 0 : i32
    %c0_i32_0 = arith.constant 0 : i32
    return %arg0, %c0_i32 : i32, i32
  }
  func.func @transform_1(%arg0: i32) -> (i32, i32) {
    %c0_i32 = arith.constant 0 : i32
    %c0_i32_0 = arith.constant 0 : i32
    %c0_i32_1 = arith.constant 0 : i32
    return %c0_i32, %c0_i32_0 : i32, i32
  }
  func.func @transform_2(%arg0: i32) -> (i32, i32) {
    %c0_i32 = arith.constant 0 : i32
    %c0_i32_0 = arith.constant 0 : i32
    %c0_i32_1 = arith.constant 0 : i32
    return %c0_i32, %c0_i32_0 : i32, i32
  }
  func.func @transform_3(%arg0: i32) -> (i32, i32) {
    %c0_i32 = arith.constant 0 : i32
    %c0_i32_0 = arith.constant 0 : i32
    return %arg0, %c0_i32 : i32, i32
  }
}

module attributes {stable_mosaic.version = 11 : i64} {
  func.func @_instnorm_kernel(%arg0: i32, %arg1: memref<1x8x16xbf16, #tpu.memory_space<vmem>>, %arg2: memref<1x1x16xf32, #tpu.memory_space<vmem>>, %arg3: memref<1x1x16xf32, #tpu.memory_space<vmem>>, %arg4: memref<1x8x16xbf16, #tpu.memory_space<vmem>>) attributes {dimension_semantics = [#tpu.dimension_semantics<parallel>], iteration_bounds = array<i64: 2>, scalar_prefetch = 0 : i64, scratch_operands = 0 : i64, tpu.core_type = #tpu.core_type<tc>, window_params = [{transform_indices = @transform_0, window_bounds = array<i64: 1, 8, 16>}, {pipeline_mode = #tpu.pipeline_mode<synchronous>, transform_indices = @transform_1, window_bounds = array<i64: 1, 1, 16>}, {pipeline_mode = #tpu.pipeline_mode<synchronous>, transform_indices = @transform_2, window_bounds = array<i64: 1, 1, 16>}, {transform_indices = @transform_3, window_bounds = array<i64: 1, 8, 16>}]} {
    %c0 = arith.constant 0 : index
    %c0_0 = arith.constant 0 : index
    %c0_1 = arith.constant 0 : index
    %0 = vector.load %arg1[%c0, %c0_0, %c0_1] : memref<1x8x16xbf16, #tpu.memory_space<vmem>>, vector<1x8x16xbf16>
    %1 = arith.extf %0 : vector<1x8x16xbf16> to vector<1x8x16xf32>
    %cst = arith.constant dense<0.000000e+00> : vector<1x16xf32>
    %2 = vector.multi_reduction <add>, %1, %cst [1] : vector<1x8x16xf32> to vector<1x16xf32>
    %3 = vector.shape_cast %2 : vector<1x16xf32> to vector<1x1x16xf32>
    %cst_2 = arith.constant 1.250000e-01 : f32
    %4 = vector.broadcast %cst_2 : f32 to vector<1x1x16xf32>
    %5 = arith.mulf %3, %4 : vector<1x1x16xf32>
    %6 = arith.mulf %1, %1 : vector<1x8x16xf32>
    %cst_3 = arith.constant dense<0.000000e+00> : vector<1x16xf32>
    %7 = vector.multi_reduction <add>, %6, %cst_3 [1] : vector<1x8x16xf32> to vector<1x16xf32>
    %8 = vector.shape_cast %7 : vector<1x16xf32> to vector<1x1x16xf32>
    %cst_4 = arith.constant 1.250000e-01 : f32
    %9 = vector.broadcast %cst_4 : f32 to vector<1x1x16xf32>
    %10 = arith.mulf %8, %9 : vector<1x1x16xf32>
    %11 = arith.mulf %5, %5 : vector<1x1x16xf32>
    %12 = arith.subf %10, %11 : vector<1x1x16xf32>
    %13 = vector.broadcast %5 : vector<1x1x16xf32> to vector<1x8x16xf32>
    %14 = arith.subf %1, %13 : vector<1x8x16xf32>
    %cst_5 = arith.constant 9.99999974E-6 : f32
    %15 = vector.broadcast %cst_5 : f32 to vector<1x1x16xf32>
    %16 = arith.addf %12, %15 : vector<1x1x16xf32>
    %17 = math.rsqrt %16 : vector<1x1x16xf32>
    %18 = vector.broadcast %17 : vector<1x1x16xf32> to vector<1x8x16xf32>
    %19 = arith.mulf %14, %18 : vector<1x8x16xf32>
    %c0_6 = arith.constant 0 : index
    %c0_7 = arith.constant 0 : index
    %c0_8 = arith.constant 0 : index
    %20 = vector.load %arg2[%c0_6, %c0_7, %c0_8] : memref<1x1x16xf32, #tpu.memory_space<vmem>>, vector<1x1x16xf32>
    %21 = vector.broadcast %20 : vector<1x1x16xf32> to vector<1x8x16xf32>
    %22 = arith.mulf %19, %21 : vector<1x8x16xf32>
    %c0_9 = arith.constant 0 : index
    %c0_10 = arith.constant 0 : index
    %c0_11 = arith.constant 0 : index
    %23 = vector.load %arg3[%c0_9, %c0_10, %c0_11] : memref<1x1x16xf32, #tpu.memory_space<vmem>>, vector<1x1x16xf32>
    %24 = vector.broadcast %23 : vector<1x1x16xf32> to vector<1x8x16xf32>
    %25 = arith.addf %22, %24 : vector<1x8x16xf32>
    %cst_12 = arith.constant 0.000000e+00 : f32
    %26 = vector.broadcast %cst_12 : f32 to vector<1x8x16xf32>
    %27 = arith.cmpf oge, %25, %26 : vector<1x8x16xf32>
    %cst_13 = arith.constant 0.00999999977 : f32
    %28 = vector.broadcast %cst_13 : f32 to vector<1x8x16xf32>
    %29 = arith.mulf %28, %25 : vector<1x8x16xf32>
    %30 = arith.select %27, %25, %29 : vector<1x8x16xi1>, vector<1x8x16xf32>
    %31 = arith.truncf %30 : vector<1x8x16xf32> to vector<1x8x16xbf16>
    %c0_14 = arith.constant 0 : index
    %c0_15 = arith.constant 0 : index
    %c0_16 = arith.constant 0 : index
    %32 = vector.load %arg4[%c0_14, %c0_15, %c0_16] : memref<1x8x16xbf16, #tpu.memory_space<vmem>>, vector<1x8x16xbf16>
    tpu.vector_store %arg4[%c0_14, %c0_15, %c0_16], %31 {strides = array<i32>} : memref<1x8x16xbf16, #tpu.memory_space<vmem>>, vector<1x8x16xbf16>,
    return
  }
  func.func @transform_0(%arg0: i32) -> (i32, i32, i32) {
    %c0_i32 = arith.constant 0 : i32
    %c0_i32_0 = arith.constant 0 : i32
    %c0_i32_1 = arith.constant 0 : i32
    return %arg0, %c0_i32, %c0_i32_0 : i32, i32, i32
  }
  func.func @transform_1(%arg0: i32) -> (i32, i32, i32) {
    %c0_i32 = arith.constant 0 : i32
    %c0_i32_0 = arith.constant 0 : i32
    %c0_i32_1 = arith.constant 0 : i32
    %c0_i32_2 = arith.constant 0 : i32
    return %c0_i32, %c0_i32_0, %c0_i32_1 : i32, i32, i32
  }
  func.func @transform_2(%arg0: i32) -> (i32, i32, i32) {
    %c0_i32 = arith.constant 0 : i32
    %c0_i32_0 = arith.constant 0 : i32
    %c0_i32_1 = arith.constant 0 : i32
    %c0_i32_2 = arith.constant 0 : i32
    return %c0_i32, %c0_i32_0, %c0_i32_1 : i32, i32, i32
  }
  func.func @transform_3(%arg0: i32) -> (i32, i32, i32) {
    %c0_i32 = arith.constant 0 : i32
    %c0_i32_0 = arith.constant 0 : i32
    %c0_i32_1 = arith.constant 0 : i32
    return %arg0, %c0_i32, %c0_i32_0 : i32, i32, i32
  }
}

module attributes {stable_mosaic.version = 11 : i64} {
  func.func @_in_add_leaky_kernel(%arg0: i32, %arg1: memref<1x8x16xbf16, #tpu.memory_space<vmem>>, %arg2: memref<1x1x16xf32, #tpu.memory_space<vmem>>, %arg3: memref<1x1x16xf32, #tpu.memory_space<vmem>>, %arg4: memref<1x8x16xbf16, #tpu.memory_space<vmem>>, %arg5: memref<1x1x16xf32, #tpu.memory_space<vmem>>, %arg6: memref<1x1x16xf32, #tpu.memory_space<vmem>>, %arg7: memref<1x8x16xbf16, #tpu.memory_space<vmem>>) attributes {dimension_semantics = [#tpu.dimension_semantics<parallel>], iteration_bounds = array<i64: 2>, scalar_prefetch = 0 : i64, scratch_operands = 0 : i64, tpu.core_type = #tpu.core_type<tc>, window_params = [{transform_indices = @transform_0, window_bounds = array<i64: 1, 8, 16>}, {pipeline_mode = #tpu.pipeline_mode<synchronous>, transform_indices = @transform_1, window_bounds = array<i64: 1, 1, 16>}, {pipeline_mode = #tpu.pipeline_mode<synchronous>, transform_indices = @transform_2, window_bounds = array<i64: 1, 1, 16>}, {transform_indices = @transform_3, window_bounds = array<i64: 1, 8, 16>}, {pipeline_mode = #tpu.pipeline_mode<synchronous>, transform_indices = @transform_4, window_bounds = array<i64: 1, 1, 16>}, {pipeline_mode = #tpu.pipeline_mode<synchronous>, transform_indices = @transform_5, window_bounds = array<i64: 1, 1, 16>}, {transform_indices = @transform_6, window_bounds = array<i64: 1, 8, 16>}]} {
    %c0 = arith.constant 0 : index
    %c0_0 = arith.constant 0 : index
    %c0_1 = arith.constant 0 : index
    %0 = vector.load %arg1[%c0, %c0_0, %c0_1] : memref<1x8x16xbf16, #tpu.memory_space<vmem>>, vector<1x8x16xbf16>
    %1 = arith.extf %0 : vector<1x8x16xbf16> to vector<1x8x16xf32>
    %cst = arith.constant dense<0.000000e+00> : vector<1x16xf32>
    %2 = vector.multi_reduction <add>, %1, %cst [1] : vector<1x8x16xf32> to vector<1x16xf32>
    %3 = vector.shape_cast %2 : vector<1x16xf32> to vector<1x1x16xf32>
    %cst_2 = arith.constant 1.250000e-01 : f32
    %4 = vector.broadcast %cst_2 : f32 to vector<1x1x16xf32>
    %5 = arith.mulf %3, %4 : vector<1x1x16xf32>
    %6 = arith.mulf %1, %1 : vector<1x8x16xf32>
    %cst_3 = arith.constant dense<0.000000e+00> : vector<1x16xf32>
    %7 = vector.multi_reduction <add>, %6, %cst_3 [1] : vector<1x8x16xf32> to vector<1x16xf32>
    %8 = vector.shape_cast %7 : vector<1x16xf32> to vector<1x1x16xf32>
    %cst_4 = arith.constant 1.250000e-01 : f32
    %9 = vector.broadcast %cst_4 : f32 to vector<1x1x16xf32>
    %10 = arith.mulf %8, %9 : vector<1x1x16xf32>
    %11 = arith.mulf %5, %5 : vector<1x1x16xf32>
    %12 = arith.subf %10, %11 : vector<1x1x16xf32>
    %13 = vector.broadcast %5 : vector<1x1x16xf32> to vector<1x8x16xf32>
    %14 = arith.subf %1, %13 : vector<1x8x16xf32>
    %cst_5 = arith.constant 9.99999974E-6 : f32
    %15 = vector.broadcast %cst_5 : f32 to vector<1x1x16xf32>
    %16 = arith.addf %12, %15 : vector<1x1x16xf32>
    %17 = math.rsqrt %16 : vector<1x1x16xf32>
    %18 = vector.broadcast %17 : vector<1x1x16xf32> to vector<1x8x16xf32>
    %19 = arith.mulf %14, %18 : vector<1x8x16xf32>
    %c0_6 = arith.constant 0 : index
    %c0_7 = arith.constant 0 : index
    %c0_8 = arith.constant 0 : index
    %20 = vector.load %arg2[%c0_6, %c0_7, %c0_8] : memref<1x1x16xf32, #tpu.memory_space<vmem>>, vector<1x1x16xf32>
    %21 = vector.broadcast %20 : vector<1x1x16xf32> to vector<1x8x16xf32>
    %22 = arith.mulf %19, %21 : vector<1x8x16xf32>
    %c0_9 = arith.constant 0 : index
    %c0_10 = arith.constant 0 : index
    %c0_11 = arith.constant 0 : index
    %23 = vector.load %arg3[%c0_9, %c0_10, %c0_11] : memref<1x1x16xf32, #tpu.memory_space<vmem>>, vector<1x1x16xf32>
    %24 = vector.broadcast %23 : vector<1x1x16xf32> to vector<1x8x16xf32>
    %25 = arith.addf %22, %24 : vector<1x8x16xf32>
    %c0_12 = arith.constant 0 : index
    %c0_13 = arith.constant 0 : index
    %c0_14 = arith.constant 0 : index
    %26 = vector.load %arg4[%c0_12, %c0_13, %c0_14] : memref<1x8x16xbf16, #tpu.memory_space<vmem>>, vector<1x8x16xbf16>
    %27 = arith.extf %26 : vector<1x8x16xbf16> to vector<1x8x16xf32>
    %cst_15 = arith.constant dense<0.000000e+00> : vector<1x16xf32>
    %28 = vector.multi_reduction <add>, %27, %cst_15 [1] : vector<1x8x16xf32> to vector<1x16xf32>
    %29 = vector.shape_cast %28 : vector<1x16xf32> to vector<1x1x16xf32>
    %cst_16 = arith.constant 1.250000e-01 : f32
    %30 = vector.broadcast %cst_16 : f32 to vector<1x1x16xf32>
    %31 = arith.mulf %29, %30 : vector<1x1x16xf32>
    %32 = arith.mulf %27, %27 : vector<1x8x16xf32>
    %cst_17 = arith.constant dense<0.000000e+00> : vector<1x16xf32>
    %33 = vector.multi_reduction <add>, %32, %cst_17 [1] : vector<1x8x16xf32> to vector<1x16xf32>
    %34 = vector.shape_cast %33 : vector<1x16xf32> to vector<1x1x16xf32>
    %cst_18 = arith.constant 1.250000e-01 : f32
    %35 = vector.broadcast %cst_18 : f32 to vector<1x1x16xf32>
    %36 = arith.mulf %34, %35 : vector<1x1x16xf32>
    %37 = arith.mulf %31, %31 : vector<1x1x16xf32>
    %38 = arith.subf %36, %37 : vector<1x1x16xf32>
    %39 = vector.broadcast %31 : vector<1x1x16xf32> to vector<1x8x16xf32>
    %40 = arith.subf %27, %39 : vector<1x8x16xf32>
    %cst_19 = arith.constant 9.99999974E-6 : f32
    %41 = vector.broadcast %cst_19 : f32 to vector<1x1x16xf32>
    %42 = arith.addf %38, %41 : vector<1x1x16xf32>
    %43 = math.rsqrt %42 : vector<1x1x16xf32>
    %44 = vector.broadcast %43 : vector<1x1x16xf32> to vector<1x8x16xf32>
    %45 = arith.mulf %40, %44 : vector<1x8x16xf32>
    %c0_20 = arith.constant 0 : index
    %c0_21 = arith.constant 0 : index
    %c0_22 = arith.constant 0 : index
    %46 = vector.load %arg5[%c0_20, %c0_21, %c0_22] : memref<1x1x16xf32, #tpu.memory_space<vmem>>, vector<1x1x16xf32>
    %47 = vector.broadcast %46 : vector<1x1x16xf32> to vector<1x8x16xf32>
    %48 = arith.mulf %45, %47 : vector<1x8x16xf32>
    %c0_23 = arith.constant 0 : index
    %c0_24 = arith.constant 0 : index
    %c0_25 = arith.constant 0 : index
    %49 = vector.load %arg6[%c0_23, %c0_24, %c0_25] : memref<1x1x16xf32, #tpu.memory_space<vmem>>, vector<1x1x16xf32>
    %50 = vector.broadcast %49 : vector<1x1x16xf32> to vector<1x8x16xf32>
    %51 = arith.addf %48, %50 : vector<1x8x16xf32>
    %52 = arith.addf %25, %51 : vector<1x8x16xf32>
    %cst_26 = arith.constant 0.000000e+00 : f32
    %53 = vector.broadcast %cst_26 : f32 to vector<1x8x16xf32>
    %54 = arith.cmpf oge, %52, %53 : vector<1x8x16xf32>
    %cst_27 = arith.constant 0.00999999977 : f32
    %55 = vector.broadcast %cst_27 : f32 to vector<1x8x16xf32>
    %56 = arith.mulf %55, %52 : vector<1x8x16xf32>
    %57 = arith.select %54, %52, %56 : vector<1x8x16xi1>, vector<1x8x16xf32>
    %58 = arith.truncf %57 : vector<1x8x16xf32> to vector<1x8x16xbf16>
    %c0_28 = arith.constant 0 : index
    %c0_29 = arith.constant 0 : index
    %c0_30 = arith.constant 0 : index
    %59 = vector.load %arg7[%c0_28, %c0_29, %c0_30] : memref<1x8x16xbf16, #tpu.memory_space<vmem>>, vector<1x8x16xbf16>
    tpu.vector_store %arg7[%c0_28, %c0_29, %c0_30], %58 {strides = array<i32>} : memref<1x8x16xbf16, #tpu.memory_space<vmem>>, vector<1x8x16xbf16>,
    return
  }
  func.func @transform_0(%arg0: i32) -> (i32, i32, i32) {
    %c0_i32 = arith.constant 0 : i32
    %c0_i32_0 = arith.constant 0 : i32
    %c0_i32_1 = arith.constant 0 : i32
    return %arg0, %c0_i32, %c0_i32_0 : i32, i32, i32
  }
  func.func @transform_1(%arg0: i32) -> (i32, i32, i32) {
    %c0_i32 = arith.constant 0 : i32
    %c0_i32_0 = arith.constant 0 : i32
    %c0_i32_1 = arith.constant 0 : i32
    %c0_i32_2 = arith.constant 0 : i32
    return %c0_i32, %c0_i32_0, %c0_i32_1 : i32, i32, i32
  }
  func.func @transform_2(%arg0: i32) -> (i32, i32, i32) {
    %c0_i32 = arith.constant 0 : i32
    %c0_i32_0 = arith.constant 0 : i32
    %c0_i32_1 = arith.constant 0 : i32
    %c0_i32_2 = arith.constant 0 : i32
    return %c0_i32, %c0_i32_0, %c0_i32_1 : i32, i32, i32
  }
  func.func @transform_3(%arg0: i32) -> (i32, i32, i32) {
    %c0_i32 = arith.constant 0 : i32
    %c0_i32_0 = arith.constant 0 : i32
    %c0_i32_1 = arith.constant 0 : i32
    return %arg0, %c0_i32, %c0_i32_0 : i32, i32, i32
  }
  func.func @transform_4(%arg0: i32) -> (i32, i32, i32) {
    %c0_i32 = arith.constant 0 : i32
    %c0_i32_0 = arith.constant 0 : i32
    %c0_i32_1 = arith.constant 0 : i32
    %c0_i32_2 = arith.constant 0 : i32
    return %c0_i32, %c0_i32_0, %c0_i32_1 : i32, i32, i32
  }
  func.func @transform_5(%arg0: i32) -> (i32, i32, i32) {
    %c0_i32 = arith.constant 0 : i32
    %c0_i32_0 = arith.constant 0 : i32
    %c0_i32_1 = arith.constant 0 : i32
    %c0_i32_2 = arith.constant 0 : i32
    return %c0_i32, %c0_i32_0, %c0_i32_1 : i32, i32, i32
  }
  func.func @transform_6(%arg0: i32) -> (i32, i32, i32) {
    %c0_i32 = arith.constant 0 : i32
    %c0_i32_0 = arith.constant 0 : i32
    %c0_i32_1 = arith.constant 0 : i32
    return %arg0, %c0_i32, %c0_i32_0 : i32, i32, i32
  }
}

module attributes {stable_mosaic.version = 11 : i64} {
  func.func @_mm_resident_kernel(%arg0: i32, %arg1: memref<16x432xbf16, #tpu.memory_space<vmem>>, %arg2: memref<432x128xbf16, #tpu.memory_space<vmem>>, %arg3: memref<1x128xf32, #tpu.memory_space<vmem>>, %arg4: memref<16x128xbf16, #tpu.memory_space<vmem>>) attributes {dimension_semantics = [#tpu.dimension_semantics<parallel>], iteration_bounds = array<i64: 1>, scalar_prefetch = 0 : i64, scratch_operands = 0 : i64, tpu.core_type = #tpu.core_type<tc>, window_params = [{transform_indices = @transform_0, window_bounds = array<i64: 16, 432>}, {pipeline_mode = #tpu.pipeline_mode<synchronous>, transform_indices = @transform_1, window_bounds = array<i64: 432, 128>}, {pipeline_mode = #tpu.pipeline_mode<synchronous>, transform_indices = @transform_2, window_bounds = array<i64: 1, 128>}, {transform_indices = @transform_3, window_bounds = array<i64: 16, 128>}]} {
    %c0 = arith.constant 0 : index
    %c0_0 = arith.constant 0 : index
    %0 = vector.load %arg1[%c0, %c0_0] : memref<16x432xbf16, #tpu.memory_space<vmem>>, vector<16x432xbf16>
    %c0_1 = arith.constant 0 : index
    %c0_2 = arith.constant 0 : index
    %1 = vector.load %arg2[%c0_1, %c0_2] : memref<432x128xbf16, #tpu.memory_space<vmem>>, vector<432x128xbf16>
    %cst = arith.constant dense<0.000000e+00> : vector<16x128xf32>
    %2 = tpu.matmul %0, %1, %cst {dimension_numbers = #tpu.dot_dimension_numbers<[1], [0], [0], [1], [0, 0, 1, 1], [], []>} : vector<16x432xbf16>, vector<432x128xbf16>, vector<16x128xf32> -> vector<16x128xf32>
    %c0_3 = arith.constant 0 : index
    %c0_4 = arith.constant 0 : index
    %3 = vector.load %arg3[%c0_3, %c0_4] : memref<1x128xf32, #tpu.memory_space<vmem>>, vector<1x128xf32>
    %4 = vector.broadcast %3 : vector<1x128xf32> to vector<16x128xf32>
    %5 = arith.addf %2, %4 : vector<16x128xf32>
    %6 = arith.truncf %5 : vector<16x128xf32> to vector<16x128xbf16>
    %c0_5 = arith.constant 0 : index
    %c0_6 = arith.constant 0 : index
    %7 = vector.load %arg4[%c0_5, %c0_6] : memref<16x128xbf16, #tpu.memory_space<vmem>>, vector<16x128xbf16>
    tpu.vector_store %arg4[%c0_5, %c0_6], %6 {strides = array<i32>} : memref<16x128xbf16, #tpu.memory_space<vmem>>, vector<16x128xbf16>,
    return
  }
  func.func @transform_0(%arg0: i32) -> (i32, i32) {
    %c0_i32 = arith.constant 0 : i32
    %c0_i32_0 = arith.constant 0 : i32
    return %arg0, %c0_i32 : i32, i32
  }
  func.func @transform_1(%arg0: i32) -> (i32, i32) {
    %c0_i32 = arith.constant 0 : i32
    %c0_i32_0 = arith.constant 0 : i32
    %c0_i32_1 = arith.constant 0 : i32
    return %c0_i32, %c0_i32_0 : i32, i32
  }
  func.func @transform_2(%arg0: i32) -> (i32, i32) {
    %c0_i32 = arith.constant 0 : i32
    %c0_i32_0 = arith.constant 0 : i32
    %c0_i32_1 = arith.constant 0 : i32
    return %c0_i32, %c0_i32_0 : i32, i32
  }
  func.func @transform_3(%arg0: i32) -> (i32, i32) {
    %c0_i32 = arith.constant 0 : i32
    %c0_i32_0 = arith.constant 0 : i32
    return %arg0, %c0_i32 : i32, i32
  }
}

module attributes {stable_mosaic.version = 11 : i64} {
  func.func @_mm_resident_kernel(%arg0: i32, %arg1: memref<16x8xbf16, #tpu.memory_space<vmem>>, %arg2: memref<8x128xbf16, #tpu.memory_space<vmem>>, %arg3: memref<1x128xf32, #tpu.memory_space<vmem>>, %arg4: memref<16x128xbf16, #tpu.memory_space<vmem>>) attributes {dimension_semantics = [#tpu.dimension_semantics<parallel>], iteration_bounds = array<i64: 1>, scalar_prefetch = 0 : i64, scratch_operands = 0 : i64, tpu.core_type = #tpu.core_type<tc>, window_params = [{transform_indices = @transform_0, window_bounds = array<i64: 16, 8>}, {pipeline_mode = #tpu.pipeline_mode<synchronous>, transform_indices = @transform_1, window_bounds = array<i64: 8, 128>}, {pipeline_mode = #tpu.pipeline_mode<synchronous>, transform_indices = @transform_2, window_bounds = array<i64: 1, 128>}, {transform_indices = @transform_3, window_bounds = array<i64: 16, 128>}]} {
    %c0 = arith.constant 0 : index
    %c0_0 = arith.constant 0 : index
    %0 = vector.load %arg1[%c0, %c0_0] : memref<16x8xbf16, #tpu.memory_space<vmem>>, vector<16x8xbf16>
    %c0_1 = arith.constant 0 : index
    %c0_2 = arith.constant 0 : index
    %1 = vector.load %arg2[%c0_1, %c0_2] : memref<8x128xbf16, #tpu.memory_space<vmem>>, vector<8x128xbf16>
    %cst = arith.constant dense<0.000000e+00> : vector<16x128xf32>
    %2 = tpu.matmul %0, %1, %cst {dimension_numbers = #tpu.dot_dimension_numbers<[1], [0], [0], [1], [0, 0, 1, 1], [], []>} : vector<16x8xbf16>, vector<8x128xbf16>, vector<16x128xf32> -> vector<16x128xf32>
    %c0_3 = arith.constant 0 : index
    %c0_4 = arith.constant 0 : index
    %3 = vector.load %arg3[%c0_3, %c0_4] : memref<1x128xf32, #tpu.memory_space<vmem>>, vector<1x128xf32>
    %4 = vector.broadcast %3 : vector<1x128xf32> to vector<16x128xf32>
    %5 = arith.addf %2, %4 : vector<16x128xf32>
    %6 = arith.truncf %5 : vector<16x128xf32> to vector<16x128xbf16>
    %c0_5 = arith.constant 0 : index
    %c0_6 = arith.constant 0 : index
    %7 = vector.load %arg4[%c0_5, %c0_6] : memref<16x128xbf16, #tpu.memory_space<vmem>>, vector<16x128xbf16>
    tpu.vector_store %arg4[%c0_5, %c0_6], %6 {strides = array<i32>} : memref<16x128xbf16, #tpu.memory_space<vmem>>, vector<16x128xbf16>,
    return
  }
  func.func @transform_0(%arg0: i32) -> (i32, i32) {
    %c0_i32 = arith.constant 0 : i32
    %c0_i32_0 = arith.constant 0 : i32
    return %arg0, %c0_i32 : i32, i32
  }
  func.func @transform_1(%arg0: i32) -> (i32, i32) {
    %c0_i32 = arith.constant 0 : i32
    %c0_i32_0 = arith.constant 0 : i32
    %c0_i32_1 = arith.constant 0 : i32
    return %c0_i32, %c0_i32_0 : i32, i32
  }
  func.func @transform_2(%arg0: i32) -> (i32, i32) {
    %c0_i32 = arith.constant 0 : i32
    %c0_i32_0 = arith.constant 0 : i32
    %c0_i32_1 = arith.constant 0 : i32
    return %c0_i32, %c0_i32_0 : i32, i32
  }
  func.func @transform_3(%arg0: i32) -> (i32, i32) {
    %c0_i32 = arith.constant 0 : i32
    %c0_i32_0 = arith.constant 0 : i32
    return %arg0, %c0_i32 : i32, i32
  }
}

module attributes {stable_mosaic.version = 11 : i64} {
  func.func @_mm_resident_kernel(%arg0: i32, %arg1: memref<16x16xbf16, #tpu.memory_space<vmem>>, %arg2: memref<16x128xbf16, #tpu.memory_space<vmem>>, %arg3: memref<1x128xf32, #tpu.memory_space<vmem>>, %arg4: memref<16x128xf32, #tpu.memory_space<vmem>>) attributes {dimension_semantics = [#tpu.dimension_semantics<parallel>], iteration_bounds = array<i64: 1>, scalar_prefetch = 0 : i64, scratch_operands = 0 : i64, tpu.core_type = #tpu.core_type<tc>, window_params = [{transform_indices = @transform_0, window_bounds = array<i64: 16, 16>}, {pipeline_mode = #tpu.pipeline_mode<synchronous>, transform_indices = @transform_1, window_bounds = array<i64: 16, 128>}, {pipeline_mode = #tpu.pipeline_mode<synchronous>, transform_indices = @transform_2, window_bounds = array<i64: 1, 128>}, {transform_indices = @transform_3, window_bounds = array<i64: 16, 128>}]} {
    %c0 = arith.constant 0 : index
    %c0_0 = arith.constant 0 : index
    %0 = vector.load %arg1[%c0, %c0_0] : memref<16x16xbf16, #tpu.memory_space<vmem>>, vector<16x16xbf16>
    %c0_1 = arith.constant 0 : index
    %c0_2 = arith.constant 0 : index
    %1 = vector.load %arg2[%c0_1, %c0_2] : memref<16x128xbf16, #tpu.memory_space<vmem>>, vector<16x128xbf16>
    %cst = arith.constant dense<0.000000e+00> : vector<16x128xf32>
    %2 = tpu.matmul %0, %1, %cst {dimension_numbers = #tpu.dot_dimension_numbers<[1], [0], [0], [1], [0, 0, 1, 1], [], []>} : vector<16x16xbf16>, vector<16x128xbf16>, vector<16x128xf32> -> vector<16x128xf32>
    %c0_3 = arith.constant 0 : index
    %c0_4 = arith.constant 0 : index
    %3 = vector.load %arg3[%c0_3, %c0_4] : memref<1x128xf32, #tpu.memory_space<vmem>>, vector<1x128xf32>
    %4 = vector.broadcast %3 : vector<1x128xf32> to vector<16x128xf32>
    %5 = arith.addf %2, %4 : vector<16x128xf32>
    %c0_5 = arith.constant 0 : index
    %c0_6 = arith.constant 0 : index
    %6 = vector.load %arg4[%c0_5, %c0_6] : memref<16x128xf32, #tpu.memory_space<vmem>>, vector<16x128xf32>
    tpu.vector_store %arg4[%c0_5, %c0_6], %5 {strides = array<i32>} : memref<16x128xf32, #tpu.memory_space<vmem>>, vector<16x128xf32>,
    return
  }
  func.func @transform_0(%arg0: i32) -> (i32, i32) {
    %c0_i32 = arith.constant 0 : i32
    %c0_i32_0 = arith.constant 0 : i32
    return %arg0, %c0_i32 : i32, i32
  }
  func.func @transform_1(%arg0: i32) -> (i32, i32) {
    %c0_i32 = arith.constant 0 : i32
    %c0_i32_0 = arith.constant 0 : i32
    %c0_i32_1 = arith.constant 0 : i32
    return %c0_i32, %c0_i32_0 : i32, i32
  }
  func.func @transform_2(%arg0: i32) -> (i32, i32) {
    %c0_i32 = arith.constant 0 : i32
    %c0_i32_0 = arith.constant 0 : i32
    %c0_i32_1 = arith.constant 0 : i32
    return %c0_i32, %c0_i32_0 : i32, i32
  }
  func.func @transform_3(%arg0: i32) -> (i32, i32) {
    %c0_i32 = arith.constant 0 : i32
    %c0_i32_0 = arith.constant 0 : i32
    return %arg0, %c0_i32 : i32, i32
  }
}

module attributes {stable_mosaic.version = 11 : i64} {
  func.func @_mm_resident_kernel(%arg0: i32, %arg1: memref<16x32xbf16, #tpu.memory_space<vmem>>, %arg2: memref<32x128xbf16, #tpu.memory_space<vmem>>, %arg3: memref<1x128xf32, #tpu.memory_space<vmem>>, %arg4: memref<16x128xbf16, #tpu.memory_space<vmem>>) attributes {dimension_semantics = [#tpu.dimension_semantics<parallel>], iteration_bounds = array<i64: 1>, scalar_prefetch = 0 : i64, scratch_operands = 0 : i64, tpu.core_type = #tpu.core_type<tc>, window_params = [{transform_indices = @transform_0, window_bounds = array<i64: 16, 32>}, {pipeline_mode = #tpu.pipeline_mode<synchronous>, transform_indices = @transform_1, window_bounds = array<i64: 32, 128>}, {pipeline_mode = #tpu.pipeline_mode<synchronous>, transform_indices = @transform_2, window_bounds = array<i64: 1, 128>}, {transform_indices = @transform_3, window_bounds = array<i64: 16, 128>}]} {
    %c0 = arith.constant 0 : index
    %c0_0 = arith.constant 0 : index
    %0 = vector.load %arg1[%c0, %c0_0] : memref<16x32xbf16, #tpu.memory_space<vmem>>, vector<16x32xbf16>
    %c0_1 = arith.constant 0 : index
    %c0_2 = arith.constant 0 : index
    %1 = vector.load %arg2[%c0_1, %c0_2] : memref<32x128xbf16, #tpu.memory_space<vmem>>, vector<32x128xbf16>
    %cst = arith.constant dense<0.000000e+00> : vector<16x128xf32>
    %2 = tpu.matmul %0, %1, %cst {dimension_numbers = #tpu.dot_dimension_numbers<[1], [0], [0], [1], [0, 0, 1, 1], [], []>} : vector<16x32xbf16>, vector<32x128xbf16>, vector<16x128xf32> -> vector<16x128xf32>
    %c0_3 = arith.constant 0 : index
    %c0_4 = arith.constant 0 : index
    %3 = vector.load %arg3[%c0_3, %c0_4] : memref<1x128xf32, #tpu.memory_space<vmem>>, vector<1x128xf32>
    %4 = vector.broadcast %3 : vector<1x128xf32> to vector<16x128xf32>
    %5 = arith.addf %2, %4 : vector<16x128xf32>
    %6 = arith.truncf %5 : vector<16x128xf32> to vector<16x128xbf16>
    %c0_5 = arith.constant 0 : index
    %c0_6 = arith.constant 0 : index
    %7 = vector.load %arg4[%c0_5, %c0_6] : memref<16x128xbf16, #tpu.memory_space<vmem>>, vector<16x128xbf16>
    tpu.vector_store %arg4[%c0_5, %c0_6], %6 {strides = array<i32>} : memref<16x128xbf16, #tpu.memory_space<vmem>>, vector<16x128xbf16>,
    return
  }
  func.func @transform_0(%arg0: i32) -> (i32, i32) {
    %c0_i32 = arith.constant 0 : i32
    %c0_i32_0 = arith.constant 0 : i32
    return %arg0, %c0_i32 : i32, i32
  }
  func.func @transform_1(%arg0: i32) -> (i32, i32) {
    %c0_i32 = arith.constant 0 : i32
    %c0_i32_0 = arith.constant 0 : i32
    %c0_i32_1 = arith.constant 0 : i32
    return %c0_i32, %c0_i32_0 : i32, i32
  }
  func.func @transform_2(%arg0: i32) -> (i32, i32) {
    %c0_i32 = arith.constant 0 : i32
    %c0_i32_0 = arith.constant 0 : i32
    %c0_i32_1 = arith.constant 0 : i32
    return %c0_i32, %c0_i32_0 : i32, i32
  }
  func.func @transform_3(%arg0: i32) -> (i32, i32) {
    %c0_i32 = arith.constant 0 : i32
    %c0_i32_0 = arith.constant 0 : i32
    return %arg0, %c0_i32 : i32, i32
  }
}

module attributes {stable_mosaic.version = 11 : i64} {
  func.func @_add_ln_kernel(%arg0: i32, %arg1: memref<8x32xf32, #tpu.memory_space<vmem>>, %arg2: memref<8x32xf32, #tpu.memory_space<vmem>>, %arg3: memref<1x32xf32, #tpu.memory_space<vmem>>, %arg4: memref<1x32xf32, #tpu.memory_space<vmem>>, %arg5: memref<8x32xf32, #tpu.memory_space<vmem>>) attributes {dimension_semantics = [#tpu.dimension_semantics<parallel>], iteration_bounds = array<i64: 2>, scalar_prefetch = 0 : i64, scratch_operands = 0 : i64, tpu.core_type = #tpu.core_type<tc>, window_params = [{transform_indices = @transform_0, window_bounds = array<i64: 8, 32>}, {transform_indices = @transform_1, window_bounds = array<i64: 8, 32>}, {pipeline_mode = #tpu.pipeline_mode<synchronous>, transform_indices = @transform_2, window_bounds = array<i64: 1, 32>}, {pipeline_mode = #tpu.pipeline_mode<synchronous>, transform_indices = @transform_3, window_bounds = array<i64: 1, 32>}, {transform_indices = @transform_4, window_bounds = array<i64: 8, 32>}]} {
    %c0 = arith.constant 0 : index
    %c0_0 = arith.constant 0 : index
    %0 = vector.load %arg1[%c0, %c0_0] : memref<8x32xf32, #tpu.memory_space<vmem>>, vector<8x32xf32>
    %c0_1 = arith.constant 0 : index
    %c0_2 = arith.constant 0 : index
    %1 = vector.load %arg2[%c0_1, %c0_2] : memref<8x32xf32, #tpu.memory_space<vmem>>, vector<8x32xf32>
    %2 = arith.addf %0, %1 : vector<8x32xf32>
    %cst = arith.constant dense<0.000000e+00> : vector<8xf32>
    %3 = vector.multi_reduction <add>, %2, %cst [1] : vector<8x32xf32> to vector<8xf32>
    %4 = vector.shape_cast %3 : vector<8xf32> to vector<8x1xf32>
    %cst_3 = arith.constant 3.125000e-02 : f32
    %5 = vector.broadcast %cst_3 : f32 to vector<8x1xf32>
    %6 = arith.mulf %4, %5 : vector<8x1xf32>
    %7 = arith.mulf %2, %2 : vector<8x32xf32>
    %cst_4 = arith.constant dense<0.000000e+00> : vector<8xf32>
    %8 = vector.multi_reduction <add>, %7, %cst_4 [1] : vector<8x32xf32> to vector<8xf32>
    %9 = vector.shape_cast %8 : vector<8xf32> to vector<8x1xf32>
    %cst_5 = arith.constant 3.125000e-02 : f32
    %10 = vector.broadcast %cst_5 : f32 to vector<8x1xf32>
    %11 = arith.mulf %9, %10 : vector<8x1xf32>
    %12 = arith.mulf %6, %6 : vector<8x1xf32>
    %13 = arith.subf %11, %12 : vector<8x1xf32>
    %14 = vector.broadcast %6 : vector<8x1xf32> to vector<8x32xf32>
    %15 = arith.subf %2, %14 : vector<8x32xf32>
    %cst_6 = arith.constant 9.99999974E-6 : f32
    %16 = vector.broadcast %cst_6 : f32 to vector<8x1xf32>
    %17 = arith.addf %13, %16 : vector<8x1xf32>
    %18 = math.rsqrt %17 : vector<8x1xf32>
    %19 = vector.broadcast %18 : vector<8x1xf32> to vector<8x32xf32>
    %20 = arith.mulf %15, %19 : vector<8x32xf32>
    %c0_7 = arith.constant 0 : index
    %c0_8 = arith.constant 0 : index
    %21 = vector.load %arg3[%c0_7, %c0_8] : memref<1x32xf32, #tpu.memory_space<vmem>>, vector<1x32xf32>
    %22 = vector.broadcast %21 : vector<1x32xf32> to vector<8x32xf32>
    %23 = arith.mulf %20, %22 : vector<8x32xf32>
    %c0_9 = arith.constant 0 : index
    %c0_10 = arith.constant 0 : index
    %24 = vector.load %arg4[%c0_9, %c0_10] : memref<1x32xf32, #tpu.memory_space<vmem>>, vector<1x32xf32>
    %25 = vector.broadcast %24 : vector<1x32xf32> to vector<8x32xf32>
    %26 = arith.addf %23, %25 : vector<8x32xf32>
    %c0_11 = arith.constant 0 : index
    %c0_12 = arith.constant 0 : index
    %27 = vector.load %arg5[%c0_11, %c0_12] : memref<8x32xf32, #tpu.memory_space<vmem>>, vector<8x32xf32>
    tpu.vector_store %arg5[%c0_11, %c0_12], %26 {strides = array<i32>} : memref<8x32xf32, #tpu.memory_space<vmem>>, vector<8x32xf32>,
    return
  }
  func.func @transform_0(%arg0: i32) -> (i32, i32) {
    %c0_i32 = arith.constant 0 : i32
    %c0_i32_0 = arith.constant 0 : i32
    return %arg0, %c0_i32 : i32, i32
  }
  func.func @transform_1(%arg0: i32) -> (i32, i32) {
    %c0_i32 = arith.constant 0 : i32
    %c0_i32_0 = arith.constant 0 : i32
    return %arg0, %c0_i32 : i32, i32
  }
  func.func @transform_2(%arg0: i32) -> (i32, i32) {
    %c0_i32 = arith.constant 0 : i32
    %c0_i32_0 = arith.constant 0 : i32
    %c0_i32_1 = arith.constant 0 : i32
    return %c0_i32, %c0_i32_0 : i32, i32
  }
  func.func @transform_3(%arg0: i32) -> (i32, i32) {
    %c0_i32 = arith.constant 0 : i32
    %c0_i32_0 = arith.constant 0 : i32
    %c0_i32_1 = arith.constant 0 : i32
    return %c0_i32, %c0_i32_0 : i32, i32
  }
  func.func @transform_4(%arg0: i32) -> (i32, i32) {
    %c0_i32 = arith.constant 0 : i32
    %c0_i32_0 = arith.constant 0 : i32
    return %arg0, %c0_i32 : i32, i32
  }
}

module attributes {stable_mosaic.version = 11 : i64} {
  func.func @_attention_kernel(%arg0: i32, %arg1: memref<4x8x8xbf16, #tpu.memory_space<vmem>>, %arg2: memref<4x8x8xbf16, #tpu.memory_space<vmem>>, %arg3: memref<4x8x8xbf16, #tpu.memory_space<vmem>>, %arg4: memref<4x8x8xbf16, #tpu.memory_space<vmem>>) attributes {dimension_semantics = [#tpu.dimension_semantics<parallel>], iteration_bounds = array<i64: 2>, scalar_prefetch = 0 : i64, scratch_operands = 0 : i64, tpu.core_type = #tpu.core_type<tc>, window_params = [{transform_indices = @transform_0, window_bounds = array<i64: 4, 8, 8>}, {transform_indices = @transform_1, window_bounds = array<i64: 4, 8, 8>}, {transform_indices = @transform_2, window_bounds = array<i64: 4, 8, 8>}, {transform_indices = @transform_3, window_bounds = array<i64: 4, 8, 8>}]} {
    %c0 = arith.constant 0 : index
    %c0_0 = arith.constant 0 : index
    %c0_1 = arith.constant 0 : index
    %0 = vector.load %arg1[%c0, %c0_0, %c0_1] : memref<4x8x8xbf16, #tpu.memory_space<vmem>>, vector<4x8x8xbf16>
    %c0_2 = arith.constant 0 : index
    %c0_3 = arith.constant 0 : index
    %c0_4 = arith.constant 0 : index
    %1 = vector.load %arg2[%c0_2, %c0_3, %c0_4] : memref<4x8x8xbf16, #tpu.memory_space<vmem>>, vector<4x8x8xbf16>
    %c0_5 = arith.constant 0 : index
    %c0_6 = arith.constant 0 : index
    %c0_7 = arith.constant 0 : index
    %2 = vector.load %arg3[%c0_5, %c0_6, %c0_7] : memref<4x8x8xbf16, #tpu.memory_space<vmem>>, vector<4x8x8xbf16>
    "tpu.trace_start"() <{level = 10 : i32, message = "bqd,bkd->bqk"}> : () -> ()
    %cst = arith.constant dense<0.000000e+00> : vector<4x8x8xf32>
    %3 = tpu.matmul %0, %1, %cst {dimension_numbers = #tpu.dot_dimension_numbers<[2], [2], [1], [1], [0, 0, 0, 1, 1, 1], [0], [0]>} : vector<4x8x8xbf16>, vector<4x8x8xbf16>, vector<4x8x8xf32> -> vector<4x8x8xf32>
    "tpu.trace_stop"() : () -> ()
    %cst_8 = arith.constant 0.353553385 : f32
    %4 = vector.broadcast %cst_8 : f32 to vector<4x8x8xf32>
    %5 = arith.mulf %3, %4 : vector<4x8x8xf32>
    %cst_9 = arith.constant dense<0xFF800000> : vector<4x8xf32>
    %6 = vector.multi_reduction <maximumf>, %5, %cst_9 [2] : vector<4x8x8xf32> to vector<4x8xf32>
    %7 = vector.shape_cast %6 : vector<4x8xf32> to vector<4x8x1xf32>
    %8 = vector.broadcast %7 : vector<4x8x1xf32> to vector<4x8x8xf32>
    %9 = arith.subf %5, %8 : vector<4x8x8xf32>
    %10 = math.exp %9 : vector<4x8x8xf32>
    %cst_10 = arith.constant dense<0.000000e+00> : vector<4x8xf32>
    %11 = vector.multi_reduction <add>, %10, %cst_10 [2] : vector<4x8x8xf32> to vector<4x8xf32>
    %12 = vector.shape_cast %11 : vector<4x8xf32> to vector<4x8x1xf32>
    %cst_11 = arith.constant 9.99999968E-21 : f32
    %13 = vector.broadcast %cst_11 : f32 to vector<4x8x1xf32>
    %14 = arith.maximumf %12, %13 : vector<4x8x1xf32>
    %15 = tpu.reciprocal %14 {approx = true} : vector<4x8x1xf32> -> vector<4x8x1xf32>
    %16 = arith.truncf %10 : vector<4x8x8xf32> to vector<4x8x8xbf16>
    "tpu.trace_start"() <{level = 10 : i32, message = "bqk,bkd->bqd"}> : () -> ()
    %cst_12 = arith.constant dense<0.000000e+00> : vector<4x8x8xf32>
    %17 = tpu.matmul %16, %2, %cst_12 {dimension_numbers = #tpu.dot_dimension_numbers<[2], [1], [1], [2], [0, 0, 0, 1, 1, 2], [0], [0]>} : vector<4x8x8xbf16>, vector<4x8x8xbf16>, vector<4x8x8xf32> -> vector<4x8x8xf32>
    "tpu.trace_stop"() : () -> ()
    %18 = vector.broadcast %15 : vector<4x8x1xf32> to vector<4x8x8xf32>
    %19 = arith.mulf %17, %18 : vector<4x8x8xf32>
    %20 = arith.truncf %19 : vector<4x8x8xf32> to vector<4x8x8xbf16>
    %c0_13 = arith.constant 0 : index
    %c0_14 = arith.constant 0 : index
    %c0_15 = arith.constant 0 : index
    %21 = vector.load %arg4[%c0_13, %c0_14, %c0_15] : memref<4x8x8xbf16, #tpu.memory_space<vmem>>, vector<4x8x8xbf16>
    tpu.vector_store %arg4[%c0_13, %c0_14, %c0_15], %20 {strides = array<i32>} : memref<4x8x8xbf16, #tpu.memory_space<vmem>>, vector<4x8x8xbf16>,
    return
  }
  func.func @transform_0(%arg0: i32) -> (i32, i32, i32) {
    %c0_i32 = arith.constant 0 : i32
    %c0_i32_0 = arith.constant 0 : i32
    %c0_i32_1 = arith.constant 0 : i32
    return %arg0, %c0_i32, %c0_i32_0 : i32, i32, i32
  }
  func.func @transform_1(%arg0: i32) -> (i32, i32, i32) {
    %c0_i32 = arith.constant 0 : i32
    %c0_i32_0 = arith.constant 0 : i32
    %c0_i32_1 = arith.constant 0 : i32
    return %arg0, %c0_i32, %c0_i32_0 : i32, i32, i32
  }
  func.func @transform_2(%arg0: i32) -> (i32, i32, i32) {
    %c0_i32 = arith.constant 0 : i32
    %c0_i32_0 = arith.constant 0 : i32
    %c0_i32_1 = arith.constant 0 : i32
    return %arg0, %c0_i32, %c0_i32_0 : i32, i32, i32
  }
  func.func @transform_3(%arg0: i32) -> (i32, i32, i32) {
    %c0_i32 = arith.constant 0 : i32
    %c0_i32_0 = arith.constant 0 : i32
    %c0_i32_1 = arith.constant 0 : i32
    return %arg0, %c0_i32, %c0_i32_0 : i32, i32, i32
  }
}

module attributes {stable_mosaic.version = 11 : i64} {
  func.func @_mm_resident_kernel(%arg0: i32, %arg1: memref<16x32xbf16, #tpu.memory_space<vmem>>, %arg2: memref<32x128xbf16, #tpu.memory_space<vmem>>, %arg3: memref<1x128xf32, #tpu.memory_space<vmem>>, %arg4: memref<16x128xf32, #tpu.memory_space<vmem>>) attributes {dimension_semantics = [#tpu.dimension_semantics<parallel>], iteration_bounds = array<i64: 1>, scalar_prefetch = 0 : i64, scratch_operands = 0 : i64, tpu.core_type = #tpu.core_type<tc>, window_params = [{transform_indices = @transform_0, window_bounds = array<i64: 16, 32>}, {pipeline_mode = #tpu.pipeline_mode<synchronous>, transform_indices = @transform_1, window_bounds = array<i64: 32, 128>}, {pipeline_mode = #tpu.pipeline_mode<synchronous>, transform_indices = @transform_2, window_bounds = array<i64: 1, 128>}, {transform_indices = @transform_3, window_bounds = array<i64: 16, 128>}]} {
    %c0 = arith.constant 0 : index
    %c0_0 = arith.constant 0 : index
    %0 = vector.load %arg1[%c0, %c0_0] : memref<16x32xbf16, #tpu.memory_space<vmem>>, vector<16x32xbf16>
    %c0_1 = arith.constant 0 : index
    %c0_2 = arith.constant 0 : index
    %1 = vector.load %arg2[%c0_1, %c0_2] : memref<32x128xbf16, #tpu.memory_space<vmem>>, vector<32x128xbf16>
    %cst = arith.constant dense<0.000000e+00> : vector<16x128xf32>
    %2 = tpu.matmul %0, %1, %cst {dimension_numbers = #tpu.dot_dimension_numbers<[1], [0], [0], [1], [0, 0, 1, 1], [], []>} : vector<16x32xbf16>, vector<32x128xbf16>, vector<16x128xf32> -> vector<16x128xf32>
    %c0_3 = arith.constant 0 : index
    %c0_4 = arith.constant 0 : index
    %3 = vector.load %arg3[%c0_3, %c0_4] : memref<1x128xf32, #tpu.memory_space<vmem>>, vector<1x128xf32>
    %4 = vector.broadcast %3 : vector<1x128xf32> to vector<16x128xf32>
    %5 = arith.addf %2, %4 : vector<16x128xf32>
    %c0_5 = arith.constant 0 : index
    %c0_6 = arith.constant 0 : index
    %6 = vector.load %arg4[%c0_5, %c0_6] : memref<16x128xf32, #tpu.memory_space<vmem>>, vector<16x128xf32>
    tpu.vector_store %arg4[%c0_5, %c0_6], %5 {strides = array<i32>} : memref<16x128xf32, #tpu.memory_space<vmem>>, vector<16x128xf32>,
    return
  }
  func.func @transform_0(%arg0: i32) -> (i32, i32) {
    %c0_i32 = arith.constant 0 : i32
    %c0_i32_0 = arith.constant 0 : i32
    return %arg0, %c0_i32 : i32, i32
  }
  func.func @transform_1(%arg0: i32) -> (i32, i32) {
    %c0_i32 = arith.constant 0 : i32
    %c0_i32_0 = arith.constant 0 : i32
    %c0_i32_1 = arith.constant 0 : i32
    return %c0_i32, %c0_i32_0 : i32, i32
  }
  func.func @transform_2(%arg0: i32) -> (i32, i32) {
    %c0_i32 = arith.constant 0 : i32
    %c0_i32_0 = arith.constant 0 : i32
    %c0_i32_1 = arith.constant 0 : i32
    return %c0_i32, %c0_i32_0 : i32, i32
  }
  func.func @transform_3(%arg0: i32) -> (i32, i32) {
    %c0_i32 = arith.constant 0 : i32
    %c0_i32_0 = arith.constant 0 : i32
    return %arg0, %c0_i32 : i32, i32
  }
}

module attributes {stable_mosaic.version = 11 : i64} {
  func.func @_mm_resident_kernel(%arg0: i32, %arg1: memref<16x32xbf16, #tpu.memory_space<vmem>>, %arg2: memref<32x128xbf16, #tpu.memory_space<vmem>>, %arg3: memref<1x128xf32, #tpu.memory_space<vmem>>, %arg4: memref<16x128xbf16, #tpu.memory_space<vmem>>) attributes {dimension_semantics = [#tpu.dimension_semantics<parallel>], iteration_bounds = array<i64: 1>, scalar_prefetch = 0 : i64, scratch_operands = 0 : i64, tpu.core_type = #tpu.core_type<tc>, window_params = [{transform_indices = @transform_0, window_bounds = array<i64: 16, 32>}, {pipeline_mode = #tpu.pipeline_mode<synchronous>, transform_indices = @transform_1, window_bounds = array<i64: 32, 128>}, {pipeline_mode = #tpu.pipeline_mode<synchronous>, transform_indices = @transform_2, window_bounds = array<i64: 1, 128>}, {transform_indices = @transform_3, window_bounds = array<i64: 16, 128>}]} {
    %c0 = arith.constant 0 : index
    %c0_0 = arith.constant 0 : index
    %0 = vector.load %arg1[%c0, %c0_0] : memref<16x32xbf16, #tpu.memory_space<vmem>>, vector<16x32xbf16>
    %c0_1 = arith.constant 0 : index
    %c0_2 = arith.constant 0 : index
    %1 = vector.load %arg2[%c0_1, %c0_2] : memref<32x128xbf16, #tpu.memory_space<vmem>>, vector<32x128xbf16>
    %cst = arith.constant dense<0.000000e+00> : vector<16x128xf32>
    %2 = tpu.matmul %0, %1, %cst {dimension_numbers = #tpu.dot_dimension_numbers<[1], [0], [0], [1], [0, 0, 1, 1], [], []>} : vector<16x32xbf16>, vector<32x128xbf16>, vector<16x128xf32> -> vector<16x128xf32>
    %c0_3 = arith.constant 0 : index
    %c0_4 = arith.constant 0 : index
    %3 = vector.load %arg3[%c0_3, %c0_4] : memref<1x128xf32, #tpu.memory_space<vmem>>, vector<1x128xf32>
    %4 = vector.broadcast %3 : vector<1x128xf32> to vector<16x128xf32>
    %5 = arith.addf %2, %4 : vector<16x128xf32>
    %cst_5 = arith.constant 0.000000e+00 : f32
    %6 = vector.broadcast %cst_5 : f32 to vector<16x128xf32>
    %7 = arith.maximumf %5, %6 : vector<16x128xf32>
    %8 = arith.truncf %7 : vector<16x128xf32> to vector<16x128xbf16>
    %c0_6 = arith.constant 0 : index
    %c0_7 = arith.constant 0 : index
    %9 = vector.load %arg4[%c0_6, %c0_7] : memref<16x128xbf16, #tpu.memory_space<vmem>>, vector<16x128xbf16>
    tpu.vector_store %arg4[%c0_6, %c0_7], %8 {strides = array<i32>} : memref<16x128xbf16, #tpu.memory_space<vmem>>, vector<16x128xbf16>,
    return
  }
  func.func @transform_0(%arg0: i32) -> (i32, i32) {
    %c0_i32 = arith.constant 0 : i32
    %c0_i32_0 = arith.constant 0 : i32
    return %arg0, %c0_i32 : i32, i32
  }
  func.func @transform_1(%arg0: i32) -> (i32, i32) {
    %c0_i32 = arith.constant 0 : i32
    %c0_i32_0 = arith.constant 0 : i32
    %c0_i32_1 = arith.constant 0 : i32
    return %c0_i32, %c0_i32_0 : i32, i32
  }
  func.func @transform_2(%arg0: i32) -> (i32, i32) {
    %c0_i32 = arith.constant 0 : i32
    %c0_i32_0 = arith.constant 0 : i32
    %c0_i32_1 = arith.constant 0 : i32
    return %c0_i32, %c0_i32_0 : i32, i32
  }
  func.func @transform_3(%arg0: i32) -> (i32, i32) {
    %c0_i32 = arith.constant 0 : i32
    %c0_i32_0 = arith.constant 0 : i32
    return %arg0, %c0_i32 : i32, i32
  }
}

module attributes {stable_mosaic.version = 11 : i64} {
  func.func @_mm_resident_kernel(%arg0: i32, %arg1: memref<16x128xbf16, #tpu.memory_space<vmem>>, %arg2: memref<128x128xbf16, #tpu.memory_space<vmem>>, %arg3: memref<1x128xf32, #tpu.memory_space<vmem>>, %arg4: memref<16x128xf32, #tpu.memory_space<vmem>>) attributes {dimension_semantics = [#tpu.dimension_semantics<parallel>], iteration_bounds = array<i64: 1>, scalar_prefetch = 0 : i64, scratch_operands = 0 : i64, tpu.core_type = #tpu.core_type<tc>, window_params = [{transform_indices = @transform_0, window_bounds = array<i64: 16, 128>}, {pipeline_mode = #tpu.pipeline_mode<synchronous>, transform_indices = @transform_1, window_bounds = array<i64: 128, 128>}, {pipeline_mode = #tpu.pipeline_mode<synchronous>, transform_indices = @transform_2, window_bounds = array<i64: 1, 128>}, {transform_indices = @transform_3, window_bounds = array<i64: 16, 128>}]} {
    %c0 = arith.constant 0 : index
    %c0_0 = arith.constant 0 : index
    %0 = vector.load %arg1[%c0, %c0_0] : memref<16x128xbf16, #tpu.memory_space<vmem>>, vector<16x128xbf16>
    %c0_1 = arith.constant 0 : index
    %c0_2 = arith.constant 0 : index
    %1 = vector.load %arg2[%c0_1, %c0_2] : memref<128x128xbf16, #tpu.memory_space<vmem>>, vector<128x128xbf16>
    %cst = arith.constant dense<0.000000e+00> : vector<16x128xf32>
    %2 = tpu.matmul %0, %1, %cst {dimension_numbers = #tpu.dot_dimension_numbers<[1], [0], [0], [1], [0, 0, 1, 1], [], []>} : vector<16x128xbf16>, vector<128x128xbf16>, vector<16x128xf32> -> vector<16x128xf32>
    %c0_3 = arith.constant 0 : index
    %c0_4 = arith.constant 0 : index
    %3 = vector.load %arg3[%c0_3, %c0_4] : memref<1x128xf32, #tpu.memory_space<vmem>>, vector<1x128xf32>
    %4 = vector.broadcast %3 : vector<1x128xf32> to vector<16x128xf32>
    %5 = arith.addf %2, %4 : vector<16x128xf32>
    %c0_5 = arith.constant 0 : index
    %c0_6 = arith.constant 0 : index
    %6 = vector.load %arg4[%c0_5, %c0_6] : memref<16x128xf32, #tpu.memory_space<vmem>>, vector<16x128xf32>
    tpu.vector_store %arg4[%c0_5, %c0_6], %5 {strides = array<i32>} : memref<16x128xf32, #tpu.memory_space<vmem>>, vector<16x128xf32>,
    return
  }
  func.func @transform_0(%arg0: i32) -> (i32, i32) {
    %c0_i32 = arith.constant 0 : i32
    %c0_i32_0 = arith.constant 0 : i32
    return %arg0, %c0_i32 : i32, i32
  }
  func.func @transform_1(%arg0: i32) -> (i32, i32) {
    %c0_i32 = arith.constant 0 : i32
    %c0_i32_0 = arith.constant 0 : i32
    %c0_i32_1 = arith.constant 0 : i32
    return %c0_i32, %c0_i32_0 : i32, i32
  }
  func.func @transform_2(%arg0: i32) -> (i32, i32) {
    %c0_i32 = arith.constant 0 : i32
    %c0_i32_0 = arith.constant 0 : i32
    %c0_i32_1 = arith.constant 0 : i32
    return %c0_i32, %c0_i32_0 : i32, i32
  }
  func.func @transform_3(%arg0: i32) -> (i32, i32) {
    %c0_i32 = arith.constant 0 : i32
    %c0_i32_0 = arith.constant 0 : i32
    return %arg0, %c0_i32 : i32, i32
  }
}

module attributes {stable_mosaic.version = 11 : i64} {
  func.func @_attention_kernel(%arg0: i32, %arg1: memref<4x8x8xbf16, #tpu.memory_space<vmem>>, %arg2: memref<4x8x8xbf16, #tpu.memory_space<vmem>>, %arg3: memref<4x8x8xbf16, #tpu.memory_space<vmem>>, %arg4: memref<4x1x8xf32, #tpu.memory_space<vmem>>, %arg5: memref<4x8x8xbf16, #tpu.memory_space<vmem>>) attributes {dimension_semantics = [#tpu.dimension_semantics<parallel>], iteration_bounds = array<i64: 2>, scalar_prefetch = 0 : i64, scratch_operands = 0 : i64, tpu.core_type = #tpu.core_type<tc>, window_params = [{transform_indices = @transform_0, window_bounds = array<i64: 4, 8, 8>}, {transform_indices = @transform_1, window_bounds = array<i64: 4, 8, 8>}, {transform_indices = @transform_2, window_bounds = array<i64: 4, 8, 8>}, {transform_indices = @transform_3, window_bounds = array<i64: 4, 1, 8>}, {transform_indices = @transform_4, window_bounds = array<i64: 4, 8, 8>}]} {
    %c0 = arith.constant 0 : index
    %c0_0 = arith.constant 0 : index
    %c0_1 = arith.constant 0 : index
    %0 = vector.load %arg1[%c0, %c0_0, %c0_1] : memref<4x8x8xbf16, #tpu.memory_space<vmem>>, vector<4x8x8xbf16>
    %c0_2 = arith.constant 0 : index
    %c0_3 = arith.constant 0 : index
    %c0_4 = arith.constant 0 : index
    %1 = vector.load %arg2[%c0_2, %c0_3, %c0_4] : memref<4x8x8xbf16, #tpu.memory_space<vmem>>, vector<4x8x8xbf16>
    %c0_5 = arith.constant 0 : index
    %c0_6 = arith.constant 0 : index
    %c0_7 = arith.constant 0 : index
    %2 = vector.load %arg3[%c0_5, %c0_6, %c0_7] : memref<4x8x8xbf16, #tpu.memory_space<vmem>>, vector<4x8x8xbf16>
    "tpu.trace_start"() <{level = 10 : i32, message = "bqd,bkd->bqk"}> : () -> ()
    %cst = arith.constant dense<0.000000e+00> : vector<4x8x8xf32>
    %3 = tpu.matmul %0, %1, %cst {dimension_numbers = #tpu.dot_dimension_numbers<[2], [2], [1], [1], [0, 0, 0, 1, 1, 1], [0], [0]>} : vector<4x8x8xbf16>, vector<4x8x8xbf16>, vector<4x8x8xf32> -> vector<4x8x8xf32>
    "tpu.trace_stop"() : () -> ()
    %cst_8 = arith.constant 0.353553385 : f32
    %4 = vector.broadcast %cst_8 : f32 to vector<4x8x8xf32>
    %5 = arith.mulf %3, %4 : vector<4x8x8xf32>
    %c0_9 = arith.constant 0 : index
    %c0_10 = arith.constant 0 : index
    %c0_11 = arith.constant 0 : index
    %6 = vector.load %arg4[%c0_9, %c0_10, %c0_11] : memref<4x1x8xf32, #tpu.memory_space<vmem>>, vector<4x1x8xf32>
    %7 = vector.broadcast %6 : vector<4x1x8xf32> to vector<4x8x8xf32>
    %8 = arith.addf %5, %7 : vector<4x8x8xf32>
    %9 = tpu.iota {dimensions = array<i32: 0>} : vector<8x8xi32>
    %10 = tpu.iota {dimensions = array<i32: 1>} : vector<8x8xi32>
    %11 = arith.cmpi sgt, %10, %9 : vector<8x8xi32>
    %12 = vector.shape_cast %11 : vector<8x8xi1> to vector<1x8x8xi1>
    %cst_12 = arith.constant -1.000000e+09 : f32
    %13 = vector.shape_cast %12 : vector<1x8x8xi1> to vector<1x8x8xi1>
    %14 = vector.broadcast %13 : vector<1x8x8xi1> to vector<4x8x8xi1>
    %15 = vector.broadcast %cst_12 : f32 to vector<4x8x8xf32>
    %16 = arith.select %14, %15, %8 : vector<4x8x8xi1>, vector<4x8x8xf32>
    %cst_13 = arith.constant dense<0xFF800000> : vector<4x8xf32>
    %17 = vector.multi_reduction <maximumf>, %16, %cst_13 [2] : vector<4x8x8xf32> to vector<4x8xf32>
    %18 = vector.shape_cast %17 : vector<4x8xf32> to vector<4x8x1xf32>
    %19 = vector.broadcast %18 : vector<4x8x1xf32> to vector<4x8x8xf32>
    %20 = arith.subf %16, %19 : vector<4x8x8xf32>
    %21 = math.exp %20 : vector<4x8x8xf32>
    %cst_14 = arith.constant dense<0.000000e+00> : vector<4x8xf32>
    %22 = vector.multi_reduction <add>, %21, %cst_14 [2] : vector<4x8x8xf32> to vector<4x8xf32>
    %23 = vector.shape_cast %22 : vector<4x8xf32> to vector<4x8x1xf32>
    %cst_15 = arith.constant 9.99999968E-21 : f32
    %24 = vector.broadcast %cst_15 : f32 to vector<4x8x1xf32>
    %25 = arith.maximumf %23, %24 : vector<4x8x1xf32>
    %26 = tpu.reciprocal %25 {approx = true} : vector<4x8x1xf32> -> vector<4x8x1xf32>
    %27 = arith.truncf %21 : vector<4x8x8xf32> to vector<4x8x8xbf16>
    "tpu.trace_start"() <{level = 10 : i32, message = "bqk,bkd->bqd"}> : () -> ()
    %cst_16 = arith.constant dense<0.000000e+00> : vector<4x8x8xf32>
    %28 = tpu.matmul %27, %2, %cst_16 {dimension_numbers = #tpu.dot_dimension_numbers<[2], [1], [1], [2], [0, 0, 0, 1, 1, 2], [0], [0]>} : vector<4x8x8xbf16>, vector<4x8x8xbf16>, vector<4x8x8xf32> -> vector<4x8x8xf32>
    "tpu.trace_stop"() : () -> ()
    %29 = vector.broadcast %26 : vector<4x8x1xf32> to vector<4x8x8xf32>
    %30 = arith.mulf %28, %29 : vector<4x8x8xf32>
    %31 = arith.truncf %30 : vector<4x8x8xf32> to vector<4x8x8xbf16>
    %c0_17 = arith.constant 0 : index
    %c0_18 = arith.constant 0 : index
    %c0_19 = arith.constant 0 : index
    %32 = vector.load %arg5[%c0_17, %c0_18, %c0_19] : memref<4x8x8xbf16, #tpu.memory_space<vmem>>, vector<4x8x8xbf16>
    tpu.vector_store %arg5[%c0_17, %c0_18, %c0_19], %31 {strides = array<i32>} : memref<4x8x8xbf16, #tpu.memory_space<vmem>>, vector<4x8x8xbf16>,
    return
  }
  func.func @transform_0(%arg0: i32) -> (i32, i32, i32) {
    %c0_i32 = arith.constant 0 : i32
    %c0_i32_0 = arith.constant 0 : i32
    %c0_i32_1 = arith.constant 0 : i32
    return %arg0, %c0_i32, %c0_i32_0 : i32, i32, i32
  }
  func.func @transform_1(%arg0: i32) -> (i32, i32, i32) {
    %c0_i32 = arith.constant 0 : i32
    %c0_i32_0 = arith.constant 0 : i32
    %c0_i32_1 = arith.constant 0 : i32
    return %arg0, %c0_i32, %c0_i32_0 : i32, i32, i32
  }
  func.func @transform_2(%arg0: i32) -> (i32, i32, i32) {
    %c0_i32 = arith.constant 0 : i32
    %c0_i32_0 = arith.constant 0 : i32
    %c0_i32_1 = arith.constant 0 : i32
    return %arg0, %c0_i32, %c0_i32_0 : i32, i32, i32
  }
  func.func @transform_3(%arg0: i32) -> (i32, i32, i32) {
    %c0_i32 = arith.constant 0 : i32
    %c0_i32_0 = arith.constant 0 : i32
    %c0_i32_1 = arith.constant 0 : i32
    return %arg0, %c0_i32, %c0_i32_0 : i32, i32, i32
  }
  func.func @transform_4(%arg0: i32) -> (i32, i32, i32) {
    %c0_i32 = arith.constant 0 : i32
    %c0_i32_0 = arith.constant 0 : i32
    %c0_i32_1 = arith.constant 0 : i32
    return %arg0, %c0_i32, %c0_i32_0 : i32, i32, i32
  }
}

module attributes {stable_mosaic.version = 11 : i64} {
  func.func @_add_ln_kernel(%arg0: i32, %arg1: memref<8x32xf32, #tpu.memory_space<vmem>>, %arg2: memref<8x32xf32, #tpu.memory_space<vmem>>, %arg3: memref<1x32xf32, #tpu.memory_space<vmem>>, %arg4: memref<1x32xf32, #tpu.memory_space<vmem>>, %arg5: memref<8x32xf32, #tpu.memory_space<vmem>>) attributes {dimension_semantics = [#tpu.dimension_semantics<parallel>], iteration_bounds = array<i64: 2>, scalar_prefetch = 0 : i64, scratch_operands = 0 : i64, tpu.core_type = #tpu.core_type<tc>, window_params = [{transform_indices = @transform_0, window_bounds = array<i64: 8, 32>}, {transform_indices = @transform_1, window_bounds = array<i64: 8, 32>}, {pipeline_mode = #tpu.pipeline_mode<synchronous>, transform_indices = @transform_2, window_bounds = array<i64: 1, 32>}, {pipeline_mode = #tpu.pipeline_mode<synchronous>, transform_indices = @transform_3, window_bounds = array<i64: 1, 32>}, {transform_indices = @transform_4, window_bounds = array<i64: 8, 32>}]} {
    %c0 = arith.constant 0 : index
    %c0_0 = arith.constant 0 : index
    %0 = vector.load %arg1[%c0, %c0_0] : memref<8x32xf32, #tpu.memory_space<vmem>>, vector<8x32xf32>
    %c0_1 = arith.constant 0 : index
    %c0_2 = arith.constant 0 : index
    %1 = vector.load %arg2[%c0_1, %c0_2] : memref<8x32xf32, #tpu.memory_space<vmem>>, vector<8x32xf32>
    %2 = arith.addf %0, %1 : vector<8x32xf32>
    %cst = arith.constant dense<0.000000e+00> : vector<8xf32>
    %3 = vector.multi_reduction <add>, %2, %cst [1] : vector<8x32xf32> to vector<8xf32>
    %4 = vector.shape_cast %3 : vector<8xf32> to vector<8x1xf32>
    %cst_3 = arith.constant 3.125000e-02 : f32
    %5 = vector.broadcast %cst_3 : f32 to vector<8x1xf32>
    %6 = arith.mulf %4, %5 : vector<8x1xf32>
    %7 = arith.mulf %2, %2 : vector<8x32xf32>
    %cst_4 = arith.constant dense<0.000000e+00> : vector<8xf32>
    %8 = vector.multi_reduction <add>, %7, %cst_4 [1] : vector<8x32xf32> to vector<8xf32>
    %9 = vector.shape_cast %8 : vector<8xf32> to vector<8x1xf32>
    %cst_5 = arith.constant 3.125000e-02 : f32
    %10 = vector.broadcast %cst_5 : f32 to vector<8x1xf32>
    %11 = arith.mulf %9, %10 : vector<8x1xf32>
    %12 = arith.mulf %6, %6 : vector<8x1xf32>
    %13 = arith.subf %11, %12 : vector<8x1xf32>
    %14 = vector.broadcast %6 : vector<8x1xf32> to vector<8x32xf32>
    %15 = arith.subf %2, %14 : vector<8x32xf32>
    %cst_6 = arith.constant 9.99999974E-6 : f32
    %16 = vector.broadcast %cst_6 : f32 to vector<8x1xf32>
    %17 = arith.addf %13, %16 : vector<8x1xf32>
    %18 = math.rsqrt %17 : vector<8x1xf32>
    %19 = vector.broadcast %18 : vector<8x1xf32> to vector<8x32xf32>
    %20 = arith.mulf %15, %19 : vector<8x32xf32>
    %c0_7 = arith.constant 0 : index
    %c0_8 = arith.constant 0 : index
    %21 = vector.load %arg3[%c0_7, %c0_8] : memref<1x32xf32, #tpu.memory_space<vmem>>, vector<1x32xf32>
    %22 = vector.broadcast %21 : vector<1x32xf32> to vector<8x32xf32>
    %23 = arith.mulf %20, %22 : vector<8x32xf32>
    %c0_9 = arith.constant 0 : index
    %c0_10 = arith.constant 0 : index
    %24 = vector.load %arg4[%c0_9, %c0_10] : memref<1x32xf32, #tpu.memory_space<vmem>>, vector<1x32xf32>
    %25 = vector.broadcast %24 : vector<1x32xf32> to vector<8x32xf32>
    %26 = arith.addf %23, %25 : vector<8x32xf32>
    %c0_11 = arith.constant 0 : index
    %c0_12 = arith.constant 0 : index
    %27 = vector.load %arg5[%c0_11, %c0_12] : memref<8x32xf32, #tpu.memory_space<vmem>>, vector<8x32xf32>
    tpu.vector_store %arg5[%c0_11, %c0_12], %26 {strides = array<i32>} : memref<8x32xf32, #tpu.memory_space<vmem>>, vector<8x32xf32>,
    return
  }
  func.func @transform_0(%arg0: i32) -> (i32, i32) {
    %c0_i32 = arith.constant 0 : i32
    %c0_i32_0 = arith.constant 0 : i32
    return %arg0, %c0_i32 : i32, i32
  }
  func.func @transform_1(%arg0: i32) -> (i32, i32) {
    %c0_i32 = arith.constant 0 : i32
    %c0_i32_0 = arith.constant 0 : i32
    return %arg0, %c0_i32 : i32, i32
  }
  func.func @transform_2(%arg0: i32) -> (i32, i32) {
    %c0_i32 = arith.constant 0 : i32
    %c0_i32_0 = arith.constant 0 : i32
    %c0_i32_1 = arith.constant 0 : i32
    return %c0_i32, %c0_i32_0 : i32, i32
  }
  func.func @transform_3(%arg0: i32) -> (i32, i32) {
    %c0_i32 = arith.constant 0 : i32
    %c0_i32_0 = arith.constant 0 : i32
    %c0_i32_1 = arith.constant 0 : i32
    return %c0_i32, %c0_i32_0 : i32, i32
  }
  func.func @transform_4(%arg0: i32) -> (i32, i32) {
    %c0_i32 = arith.constant 0 : i32
    %c0_i32_0 = arith.constant 0 : i32
    return %arg0, %c0_i32 : i32, i32
  }
}

</mosaic_0001>

<bundles_post_ra>
// kernel: neu2seq_forward.38
= control target key start
LH: loop header
LB: loop body
LE: loop exit
PB: predicated region body
PF: predicated region fallthrough
CT: control target
= control target key end

     0   :  { %s1316_s12 = smov 0   ;;  %s1515_s0 = inlined_call_operand.vmem [shape: bf16[1024,32], index: 0, kind: input, shape index: {}]   ;;  %s1516_s1 = inlined_call_operand.vmem [shape: bf16[32,128], index: 1, kind: input, shape index: {}]   ;;  %s1517_s2 = inlined_call_operand.vmem [shape: f32[1,128], index: 2, kind: input, shape index: {}]   ;;  %s1518_s3 = inlined_call_operand.vmem [shape: bf16[1024,128], index: 3, kind: output, shape index: {}]  }
   0x1 LB: > { %s869_s13 = sadd.s32 4294967295, %s1294_s12   ;;  %p873_p0 = scmp.ge.s32.totalorder %s1294_s12, 1  ;;  %s1294_s12 = sphi %s1316_s12, %s13_s12  }
   0x2   : > { %p138_p1 = scmp.lt.s32.totalorder %s1294_s12, 3 }
   0x4   : > { %p139_p2 = pnand %p873_p0, %p138_p1 }
   0x5   : > { %s874_s16 = sshll.u32 (!%p139_p2), %s869_s13, 6 }
   0x6   : > { %142 = sbr.rel (%p139_p2) target bundleno = 278 (0x116), region = 32  ;;  %p163_p3 = scmp.lt.s32.totalorder (!%p139_p2), %s874_s16, 127 }
   0xb   : > { %v1081_v0 = vld [vmem:[%s1516_s1 + $0x8] sm:$0xff]  ;;  %v1080_v1 = vld [vmem:[%s1516_s1] sm:$0xff]  ;;  %s1520_s16 = smov (!%p163_p3, %s874_s16), 127  ;;  %vm419_vm0 = vcmask 261120  }
   0xc   : > { %522 = vmatpush.bf16.msra.mxu0 %v1081_v0  ;;  %1273 = vmatpush.bf16.msra.mxu1 %v1081_v0  ;;  %s875_s19 = sshll.u32 %s1520_s16, 2  ;;  %v1407_v36 = vld [vmem:[%s1517_s2] ss:$0 sm:$0xff] }
   0xd   : > { %1274 = vmatpush.bf16.msra.mxu2 %v1081_v0  ;;  %1275 = vmatpush.bf16.msra.mxu3 %v1081_v0  ;;  %s1338_s22 = scalar_lea.vmem %s1515_s0, %s875_s19  ;;  %s1418_s27 = scalar_lea.vmem %s1518_s3, %s875_s19 }
   0xe   : > { %v1048_v2 = vld [vmem:[%s1338_s22] sm:$0xff]  ;;  %v1049_v6 = vld [vmem:[%s1338_s22 + $0x8] sm:$0xff]  ;;  %v1050_v10 = vld [vmem:[%s1338_s22 + $0x10] sm:$0xff] }
   0xf   : > { %v1056_v3 = vld [vmem:[%s1338_s22 + $0x40] sm:$0xff]  ;;  %v1057_v7 = vld [vmem:[%s1338_s22 + $0x48] sm:$0xff]  ;;  %v1058_v11 = vld [vmem:[%s1338_s22 + $0x50] sm:$0xff] }
  0x10   : > { %523 = vmatpush.bf16.msra.mxu0 %v1080_v1  ;;  %1276 = vmatpush.bf16.msra.mxu1 %v1080_v1  ;;  %v1064_v4 = vld [vmem:[%s1338_s22 + $0x80] sm:$0xff]  ;;  %v1065_v8 = vld [vmem:[%s1338_s22 + $0x88] sm:$0xff]  ;;  %v1066_v12 = vld [vmem:[%s1338_s22 + $0x90] sm:$0xff] }
  0x11   : > { %1277 = vmatpush.bf16.msra.mxu2 %v1080_v1  ;;  %1278 = vmatpush.bf16.msra.mxu3 %v1080_v1  ;;  %v1072_v5 = vld [vmem:[%s1338_s22 + $0xc0] sm:$0xff]  ;;  %v1073_v9 = vld [vmem:[%s1338_s22 + $0xc8] sm:$0xff]  ;;  %v1074_v13 = vld [vmem:[%s1338_s22 + $0xd0] sm:$0xff] }
  0x12   : > { %v1051_v14 = vld [vmem:[%s1338_s22 + $0x18] sm:$0xff]  ;;  %v1052_v18 = vld [vmem:[%s1338_s22 + $0x20] sm:$0xff]  ;;  %v1053_v22 = vld [vmem:[%s1338_s22 + $0x28] sm:$0xff] }
  0x13   : > { %1014 = vmatmul.msk.bf16.vlgmr.msra.gmra.mxu0 %vm419_vm0, %v1048_v2  ;;  %1022 = vmatmul.msk.bf16.vlgmr.msra.gmra.mxu1 %vm419_vm0, %v1056_v3  ;;  %v1059_v15 = vld [vmem:[%s1338_s22 + $0x58] sm:$0xff]  ;;  %v1060_v19 = vld [vmem:[%s1338_s22 + $0x60] sm:$0xff]  ;;  %v1061_v23 = vld [vmem:[%s1338_s22 + $0x68] sm:$0xff] }
  0x14   : > { %1030 = vmatmul.msk.bf16.vlgmr.msra.gmra.mxu2 %vm419_vm0, %v1064_v4  ;;  %1038 = vmatmul.msk.bf16.vlgmr.msra.gmra.mxu3 %vm419_vm0, %v1072_v5  ;;  %v1067_v16 = vld [vmem:[%s1338_s22 + $0x98] sm:$0xff]  ;;  %v1068_v20 = vld [vmem:[%s1338_s22 + $0xa0] sm:$0xff]  ;;  %v1069_v24 = vld [vmem:[%s1338_s22 + $0xa8] sm:$0xff] }
  0x15   : > { %v1075_v17 = vld [vmem:[%s1338_s22 + $0xd8] sm:$0xff]  ;;  %v1076_v21 = vld [vmem:[%s1338_s22 + $0xe0] sm:$0xff]  ;;  %v1077_v25 = vld [vmem:[%s1338_s22 + $0xe8] sm:$0xff] }
  0x16   : > { %v1054_v26 = vld [vmem:[%s1338_s22 + $0x30] sm:$0xff]  ;;  %v1055_v30 = vld [vmem:[%s1338_s22 + $0x38] sm:$0xff] }
  0x17   : > { %v1062_v27 = vld [vmem:[%s1338_s22 + $0x70] sm:$0xff]  ;;  %v1063_v31 = vld [vmem:[%s1338_s22 + $0x78] sm:$0xff] }
  0x18   : > { %v1070_v28 = vld [vmem:[%s1338_s22 + $0xb0] sm:$0xff]  ;;  %v1071_v32 = vld [vmem:[%s1338_s22 + $0xb8] sm:$0xff] }
  0x19   : > { %v1078_v29 = vld [vmem:[%s1338_s22 + $0xf0] sm:$0xff]  ;;  %v1079_v33 = vld [vmem:[%s1338_s22 + $0xf8] sm:$0xff] }
  0x23   : > { %1015 = vmatmul.msk.bf16.gmra.mxu0 %vm419_vm0, %v1049_v6  ;;  %1023 = vmatmul.msk.bf16.gmra.mxu1 %vm419_vm0, %v1057_v7 }
  0x24   : > { %1031 = vmatmul.msk.bf16.gmra.mxu2 %vm419_vm0, %v1065_v8  ;;  %1039 = vmatmul.msk.bf16.gmra.mxu3 %vm419_vm0, %v1073_v9 }
  0x33   : > { %1016 = vmatmul.msk.bf16.gmra.mxu0 %vm419_vm0, %v1050_v10  ;;  %1024 = vmatmul.msk.bf16.gmra.mxu1 %vm419_vm0, %v1058_v11 }
  0x34   : > { %1032 = vmatmul.msk.bf16.gmra.mxu2 %vm419_vm0, %v1066_v12  ;;  %1040 = vmatmul.msk.bf16.gmra.mxu3 %vm419_vm0, %v1074_v13 }
  0x43   : > { %1017 = vmatmul.msk.bf16.gmra.mxu0 %vm419_vm0, %v1051_v14  ;;  %1025 = vmatmul.msk.bf16.gmra.mxu1 %vm419_vm0, %v1059_v15 }
  0x44   : > { %1033 = vmatmul.msk.bf16.gmra.mxu2 %vm419_vm0, %v1067_v16  ;;  %1041 = vmatmul.msk.bf16.gmra.mxu3 %vm419_vm0, %v1075_v17 }
  0x53   : > { %1018 = vmatmul.msk.bf16.gmra.mxu0 %vm419_vm0, %v1052_v18  ;;  %1026 = vmatmul.msk.bf16.gmra.mxu1 %vm419_vm0, %v1060_v19 }
  0x54   : > { %1034 = vmatmul.msk.bf16.gmra.mxu2 %vm419_vm0, %v1068_v20  ;;  %1042 = vmatmul.msk.bf16.gmra.mxu3 %vm419_vm0, %v1076_v21 }
  0x63   : > { %1019 = vmatmul.msk.bf16.gmra.mxu0 %vm419_vm0, %v1053_v22  ;;  %1027 = vmatmul.msk.bf16.gmra.mxu1 %vm419_vm0, %v1061_v23 }
  0x64   : > { %1035 = vmatmul.msk.bf16.gmra.mxu2 %vm419_vm0, %v1069_v24  ;;  %1043 = vmatmul.msk.bf16.gmra.mxu3 %vm419_vm0, %v1077_v25 }
  0x73   : > { %1020 = vmatmul.msk.bf16.gmra.mxu0 %vm419_vm0, %v1054_v26  ;;  %1028 = vmatmul.msk.bf16.gmra.mxu1 %vm419_vm0, %v1062_v27 }
  0x74   : > { %1036 = vmatmul.msk.bf16.gmra.mxu2 %vm419_vm0, %v1070_v28  ;;  %1044 = vmatmul.msk.bf16.gmra.mxu3 %vm419_vm0, %v1078_v29 }
  0x83   : > { %1021 = vmatmul.msk.bf16.gmra.mxu0 %vm419_vm0, %v1055_v30  ;;  %1029 = vmatmul.msk.bf16.gmra.mxu1 %vm419_vm0, %v1063_v31 }
  0x84   : > { %1037 = vmatmul.msk.bf16.gmra.mxu2 %vm419_vm0, %v1071_v32  ;;  %1045 = vmatmul.msk.bf16.gmra.mxu3 %vm419_vm0, %v1079_v33 }
  0x90   : > { %v525_v34 = vpop.f32.mrf.mxu0  ;;  %v565_v35 = vpop.f32.mrf.mxu1 }
  0x91   : > { %v526_v41 = vadd.f32 %v1407_v36, %v525_v34  ;;  %v566_v42 = vadd.f32 %v1407_v36, %v565_v35 }
  0x97   : > { %v605_v37 = vpop.f32.mrf.mxu2  ;;  %v645_v38 = vpop.f32.mrf.mxu3 }
  0x98   : > { %v527_v39 = vpop.f32.mrf.mxu0  ;;  %v567_v40 = vpop.f32.mrf.mxu1  ;;  %v606_v49 = vadd.f32 %v1407_v36, %v605_v37  ;;  %v646_v50 = vadd.f32 %v1407_v36, %v645_v38 }
  0x99   : > { %v528_v43 = vadd.f32 %v1407_v36, %v527_v39  ;;  %v568_v44 = vadd.f32 %v1407_v36, %v567_v40 }
  0x9b   : > { %v1085_v45 = vpack.c.bf16 %v528_v43, %v526_v41  ;;  %v1125_v46 = vpack.c.bf16 %v568_v44, %v566_v42 }
  0x9d   : > { %1086 = vst [vmem:[%s1418_s27] sm:$0xff] %v1085_v45  }
  0x9e   : > { %1249 = vst [vmem:[%s1418_s27 + $0x40] sm:$0xff] %v1125_v46  }
  0x9f   : > { %v607_v47 = vpop.f32.mrf.mxu2  ;;  %v647_v48 = vpop.f32.mrf.mxu3 }
  0xa0   : > { %v608_v51 = vadd.f32 %v1407_v36, %v607_v47  ;;  %v648_v52 = vadd.f32 %v1407_v36, %v647_v48  ;;  %v530_v53 = vpop.f32.mrf.mxu0  ;;  %v570_v54 = vpop.f32.mrf.mxu1 }
  0xa1   : > { %v531_v61 = vadd.f32 %v1407_v36, %v530_v53  ;;  %v571_v62 = vadd.f32 %v1407_v36, %v570_v54 }
  0xa2   : > { %v1165_v55 = vpack.c.bf16 %v608_v51, %v606_v49  ;;  %v1205_v56 = vpack.c.bf16 %v648_v52, %v646_v50 }
  0xa4   : > { %1257 = vst [vmem:[%s1418_s27 + $0x80] sm:$0xff] %v1165_v55  }
  0xa5   : > { %1265 = vst [vmem:[%s1418_s27 + $0xc0] sm:$0xff] %v1205_v56  }
  0xa7   : > { %v610_v57 = vpop.f32.mrf.mxu2  ;;  %v650_v58 = vpop.f32.mrf.mxu3 }
  0xa8   : > { %v532_v59 = vpop.f32.mrf.mxu0  ;;  %v572_v60 = vpop.f32.mrf.mxu1  ;;  %v611_v5 = vadd.f32 %v1407_v36, %v610_v57  ;;  %v651_v6 = vadd.f32 %v1407_v36, %v650_v58 }
  0xa9   : > { %v533_v63 = vadd.f32 %v1407_v36, %v532_v59  ;;  %v573_v0 = vadd.f32 %v1407_v36, %v572_v60 }
  0xab   : > { %v1090_v1 = vpack.c.bf16 %v533_v63, %v531_v61  ;;  %v1130_v2 = vpack.c.bf16 %v573_v0, %v571_v62 }
  0xad   : > { %1242 = vst [vmem:[%s1418_s27 + $0x8] sm:$0xff] %v1090_v1  }
  0xae   : > { %1250 = vst [vmem:[%s1418_s27 + $0x48] sm:$0xff] %v1130_v2  }
  0xaf   : > { %v612_v3 = vpop.f32.mrf.mxu2  ;;  %v652_v4 = vpop.f32.mrf.mxu3 }
  0xb0   : > { %v613_v7 = vadd.f32 %v1407_v36, %v612_v3  ;;  %v653_v8 = vadd.f32 %v1407_v36, %v652_v4  ;;  %v535_v9 = vpop.f32.mrf.mxu0  ;;  %v575_v10 = vpop.f32.mrf.mxu1 }
  0xb1   : > { %v536_v17 = vadd.f32 %v1407_v36, %v535_v9  ;;  %v576_v18 = vadd.f32 %v1407_v36, %v575_v10 }
  0xb2   : > { %v1170_v11 = vpack.c.bf16 %v613_v7, %v611_v5  ;;  %v1210_v12 = vpack.c.bf16 %v653_v8, %v651_v6 }
  0xb4   : > { %1258 = vst [vmem:[%s1418_s27 + $0x88] sm:$0xff] %v1170_v11  }
  0xb5   : > { %1266 = vst [vmem:[%s1418_s27 + $0xc8] sm:$0xff] %v1210_v12  }
  0xb7   : > { %v615_v13 = vpop.f32.mrf.mxu2  ;;  %v655_v14 = vpop.f32.mrf.mxu3 }
  0xb8   : > { %v537_v15 = vpop.f32.mrf.mxu0  ;;  %v577_v16 = vpop.f32.mrf.mxu1  ;;  %v616_v25 = vadd.f32 %v1407_v36, %v615_v13  ;;  %v656_v26 = vadd.f32 %v1407_v36, %v655_v14 }
  0xb9   : > { %v538_v19 = vadd.f32 %v1407_v36, %v537_v15  ;;  %v578_v20 = vadd.f32 %v1407_v36, %v577_v16 }
  0xbb   : > { %v1095_v21 = vpack.c.bf16 %v538_v19, %v536_v17  ;;  %v1135_v22 = vpack.c.bf16 %v578_v20, %v576_v18 }
  0xbd   : > { %1243 = vst [vmem:[%s1418_s27 + $0x10] sm:$0xff] %v1095_v21  }
  0xbe   : > { %1251 = vst [vmem:[%s1418_s27 + $0x50] sm:$0xff] %v1135_v22  }
  0xbf   : > { %v617_v23 = vpop.f32.mrf.mxu2  ;;  %v657_v24 = vpop.f32.mrf.mxu3 }
  0xc0   : > { %v618_v27 = vadd.f32 %v1407_v36, %v617_v23  ;;  %v658_v28 = vadd.f32 %v1407_v36, %v657_v24  ;;  %v540_v29 = vpop.f32.mrf.mxu0  ;;  %v580_v30 = vpop.f32.mrf.mxu1 }
  0xc1   : > { %v541_v38 = vadd.f32 %v1407_v36, %v540_v29  ;;  %v581_v39 = vadd.f32 %v1407_v36, %v580_v30 }
  0xc2   : > { %v1175_v31 = vpack.c.bf16 %v618_v27, %v616_v25  ;;  %v1215_v32 = vpack.c.bf16 %v658_v28, %v656_v26 }
  0xc4   : > { %1259 = vst [vmem:[%s1418_s27 + $0x90] sm:$0xff] %v1175_v31  }
  0xc5   : > { %1267 = vst [vmem:[%s1418_s27 + $0xd0] sm:$0xff] %v1215_v32  }
  0xc7   : > { %v620_v33 = vpop.f32.mrf.mxu2  ;;  %v660_v34 = vpop.f32.mrf.mxu3 }
  0xc8   : > { %v542_v35 = vpop.f32.mrf.mxu0  ;;  %v582_v37 = vpop.f32.mrf.mxu1  ;;  %v621_v46 = vadd.f32 %v1407_v36, %v620_v33  ;;  %v661_v47 = vadd.f32 %v1407_v36, %v660_v34 }
  0xc9   : > { %v543_v40 = vadd.f32 %v1407_v36, %v542_v35  ;;  %v583_v41 = vadd.f32 %v1407_v36, %v582_v37 }
  0xcb   : > { %v1100_v42 = vpack.c.bf16 %v543_v40, %v541_v38  ;;  %v1140_v43 = vpack.c.bf16 %v583_v41, %v581_v39 }
  0xcd   : > { %1244 = vst [vmem:[%s1418_s27 + $0x18] sm:$0xff] %v1100_v42  }
  0xce   : > { %1252 = vst [vmem:[%s1418_s27 + $0x58] sm:$0xff] %v1140_v43  }
  0xcf   : > { %v622_v44 = vpop.f32.mrf.mxu2  ;;  %v662_v45 = vpop.f32.mrf.mxu3 }
  0xd0   : > { %v623_v48 = vadd.f32 %v1407_v36, %v622_v44  ;;  %v663_v49 = vadd.f32 %v1407_v36, %v662_v45  ;;  %v545_v50 = vpop.f32.mrf.mxu0  ;;  %v585_v51 = vpop.f32.mrf.mxu1 }
  0xd1   : > { %v546_v58 = vadd.f32 %v1407_v36, %v545_v50  ;;  %v586_v59 = vadd.f32 %v1407_v36, %v585_v51 }
  0xd2   : > { %v1180_v52 = vpack.c.bf16 %v623_v48, %v621_v46  ;;  %v1220_v53 = vpack.c.bf16 %v663_v49, %v661_v47 }
  0xd4   : > { %1260 = vst [vmem:[%s1418_s27 + $0x98] sm:$0xff] %v1180_v52  }
  0xd5   : > { %1268 = vst [vmem:[%s1418_s27 + $0xd8] sm:$0xff] %v1220_v53  }
  0xd7   : > { %v625_v54 = vpop.f32.mrf.mxu2  ;;  %v665_v55 = vpop.f32.mrf.mxu3 }
  0xd8   : > { %v547_v56 = vpop.f32.mrf.mxu0  ;;  %v587_v57 = vpop.f32.mrf.mxu1  ;;  %v626_v2 = vadd.f32 %v1407_v36, %v625_v54  ;;  %v666_v3 = vadd.f32 %v1407_v36, %v665_v55 }
  0xd9   : > { %v548_v60 = vadd.f32 %v1407_v36, %v547_v56  ;;  %v588_v61 = vadd.f32 %v1407_v36, %v587_v57 }
  0xdb   : > { %v1105_v62 = vpack.c.bf16 %v548_v60, %v546_v58  ;;  %v1145_v63 = vpack.c.bf16 %v588_v61, %v586_v59 }
  0xdd   : > { %1245 = vst [vmem:[%s1418_s27 + $0x20] sm:$0xff] %v1105_v62  }
  0xde   : > { %1253 = vst [vmem:[%s1418_s27 + $0x60] sm:$0xff] %v1145_v63  }
  0xdf   : > { %v627_v0 = vpop.f32.mrf.mxu2  ;;  %v667_v1 = vpop.f32.mrf.mxu3 }
  0xe0   : > { %v628_v4 = vadd.f32 %v1407_v36, %v627_v0  ;;  %v668_v5 = vadd.f32 %v1407_v36, %v667_v1  ;;  %v550_v6 = vpop.f32.mrf.mxu0  ;;  %v590_v7 = vpop.f32.mrf.mxu1 }
  0xe1   : > { %v551_v14 = vadd.f32 %v1407_v36, %v550_v6  ;;  %v591_v15 = vadd.f32 %v1407_v36, %v590_v7 }
  0xe2   : > { %v1185_v8 = vpack.c.bf16 %v628_v4, %v626_v2  ;;  %v1225_v9 = vpack.c.bf16 %v668_v5, %v666_v3 }
  0xe4   : > { %1261 = vst [vmem:[%s1418_s27 + $0xa0] sm:$0xff] %v1185_v8  }
  0xe5   : > { %1269 = vst [vmem:[%s1418_s27 + $0xe0] sm:$0xff] %v1225_v9  }
  0xe7   : > { %v630_v10 = vpop.f32.mrf.mxu2  ;;  %v670_v11 = vpop.f32.mrf.mxu3 }
  0xe8   : > { %v552_v12 = vpop.f32.mrf.mxu0  ;;  %v592_v13 = vpop.f32.mrf.mxu1  ;;  %v631_v22 = vadd.f32 %v1407_v36, %v630_v10  ;;  %v671_v23 = vadd.f32 %v1407_v36, %v670_v11 }
  0xe9   : > { %v553_v16 = vadd.f32 %v1407_v36, %v552_v12  ;;  %v593_v17 = vadd.f32 %v1407_v36, %v592_v13 }
  0xeb   : > { %v1110_v18 = vpack.c.bf16 %v553_v16, %v551_v14  ;;  %v1150_v19 = vpack.c.bf16 %v593_v17, %v591_v15 }
  0xed   : > { %1246 = vst [vmem:[%s1418_s27 + $0x28] sm:$0xff] %v1110_v18  }
  0xee   : > { %1254 = vst [vmem:[%s1418_s27 + $0x68] sm:$0xff] %v1150_v19  }
  0xef   : > { %v632_v20 = vpop.f32.mrf.mxu2  ;;  %v672_v21 = vpop.f32.mrf.mxu3 }
  0xf0   : > { %v633_v24 = vadd.f32 %v1407_v36, %v632_v20  ;;  %v673_v25 = vadd.f32 %v1407_v36, %v672_v21  ;;  %v555_v26 = vpop.f32.mrf.mxu0  ;;  %v595_v27 = vpop.f32.mrf.mxu1 }
  0xf1   : > { %v556_v34 = vadd.f32 %v1407_v36, %v555_v26  ;;  %v596_v35 = vadd.f32 %v1407_v36, %v595_v27 }
  0xf2   : > { %v1190_v28 = vpack.c.bf16 %v633_v24, %v631_v22  ;;  %v1230_v29 = vpack.c.bf16 %v673_v25, %v671_v23 }
  0xf4   : > { %1262 = vst [vmem:[%s1418_s27 + $0xa8] sm:$0xff] %v1190_v28  }
  0xf5   : > { %1270 = vst [vmem:[%s1418_s27 + $0xe8] sm:$0xff] %v1230_v29  }
  0xf7   : > { %v635_v30 = vpop.f32.mrf.mxu2  ;;  %v675_v31 = vpop.f32.mrf.mxu3 }
  0xf8   : > { %v557_v32 = vpop.f32.mrf.mxu0  ;;  %v597_v33 = vpop.f32.mrf.mxu1  ;;  %v636_v43 = vadd.f32 %v1407_v36, %v635_v30  ;;  %v676_v44 = vadd.f32 %v1407_v36, %v675_v31 }
  0xf9   : > { %v558_v37 = vadd.f32 %v1407_v36, %v557_v32  ;;  %v598_v38 = vadd.f32 %v1407_v36, %v597_v33 }
  0xfb   : > { %v1115_v39 = vpack.c.bf16 %v558_v37, %v556_v34  ;;  %v1155_v40 = vpack.c.bf16 %v598_v38, %v596_v35 }
  0xfd   : > { %1247 = vst [vmem:[%s1418_s27 + $0x30] sm:$0xff] %v1115_v39  }
  0xfe   : > { %1255 = vst [vmem:[%s1418_s27 + $0x70] sm:$0xff] %v1155_v40  }
  0xff   : > { %v637_v41 = vpop.f32.mrf.mxu2  ;;  %v677_v42 = vpop.f32.mrf.mxu3 }
 0x100   : > { %v638_v45 = vadd.f32 %v1407_v36, %v637_v41  ;;  %v678_v46 = vadd.f32 %v1407_v36, %v677_v42  ;;  %v560_v47 = vpop.f32.mrf.mxu0  ;;  %v600_v48 = vpop.f32.mrf.mxu1 }
 0x101   : > { %v561_v55 = vadd.f32 %v1407_v36, %v560_v47  ;;  %v601_v56 = vadd.f32 %v1407_v36, %v600_v48 }
 0x102   : > { %v1195_v49 = vpack.c.bf16 %v638_v45, %v636_v43  ;;  %v1235_v50 = vpack.c.bf16 %v678_v46, %v676_v44 }
 0x104   : > { %1263 = vst [vmem:[%s1418_s27 + $0xb0] sm:$0xff] %v1195_v49  }
 0x105   : > { %1271 = vst [vmem:[%s1418_s27 + $0xf0] sm:$0xff] %v1235_v50  }
 0x107   : > { %v640_v51 = vpop.f32.mrf.mxu2  ;;  %v680_v52 = vpop.f32.mrf.mxu3 }
 0x108   : > { %v562_v53 = vpop.f32.mrf.mxu0  ;;  %v602_v54 = vpop.f32.mrf.mxu1  ;;  %v641_v63 = vadd.f32 %v1407_v36, %v640_v51  ;;  %v681_v0 = vadd.f32 %v1407_v36, %v680_v52 }
 0x109   : > { %v563_v57 = vadd.f32 %v1407_v36, %v562_v53  ;;  %v603_v58 = vadd.f32 %v1407_v36, %v602_v54 }
 0x10b   : > { %v1120_v59 = vpack.c.bf16 %v563_v57, %v561_v55  ;;  %v1160_v60 = vpack.c.bf16 %v603_v58, %v601_v56 }
 0x10d   : > { %1248 = vst [vmem:[%s1418_s27 + $0x38] sm:$0xff] %v1120_v59  }
 0x10e   : > { %1256 = vst [vmem:[%s1418_s27 + $0x78] sm:$0xff] %v1160_v60  }
 0x10f   : > { %v642_v61 = vpop.f32.mrf.mxu2  ;;  %v682_v62 = vpop.f32.mrf.mxu3 }
 0x110   : > { %v643_v1 = vadd.f32 %v1407_v36, %v642_v61  ;;  %v683_v2 = vadd.f32 %v1407_v36, %v682_v62 }
 0x112   : > { %v1200_v3 = vpack.c.bf16 %v643_v1, %v641_v63  ;;  %v1240_v4 = vpack.c.bf16 %v683_v2, %v681_v0 }
 0x114   : > { %1264 = vst [vmem:[%s1418_s27 + $0xb8] sm:$0xff] %v1200_v3  }
 0x115   : > { %1272 = vst [vmem:[%s1418_s27 + $0xf8] sm:$0xff] %v1240_v4  }
 0x116 PF: > { %s13_s12 = sadd.s32 1, %s1294_s12  }
 0x117   : > { %p10_p4 = scmp.ge.s32.totalorder %s13_s12, 4  }
 0x119   :  { %12 = sbr.rel (!%p10_p4) target bundleno = 1 (0x1), region = 62 }

// kernel: neu2seq_forward.39
= control target key start
LH: loop header
LB: loop body
LE: loop exit
PB: predicated region body
PF: predicated region fallthrough
CT: control target
= control target key end

     0   :  { %8 = vsyncpa [#allocation3], 0  ;;  %s2663_s0 = inlined_call_operand.vmem [shape: bf16[2,512,4], index: 0, kind: input, shape index: {}]   ;;  %s2664_s1 = inlined_call_operand.hbm [shape: f32[1,1,4], index: 1, kind: input, shape index: {}]   ;;  %s2665_s2 = inlined_call_operand.hbm [shape: f32[1,1,4], index: 2, kind: input, shape index: {}]   ;;  %s2666_s3 = inlined_call_operand.vmem [shape: bf16[2,512,4], index: 3, kind: output, shape index: {}]  }
   0x1   :  { %9 = vsyncpa [#allocation5], 0  ;;  %s1646_s12 = smov 0  }
   0x2 LB: > { %s126_s15 = sshll.u32 %s2664_s1, 4  ;;  %s1337_s16 = sadd.s32 4294967295, %s1622_s12   ;;  %s1622_s12 = sphi %s1646_s12, %s15_s12   ;;  %s127_s15 = int_to_ptr.hbm [resolvable:$true] %s126_s15 }
   0x3   : > { %p1339_p0 = scmp.ge.s32.totalorder %s1622_s12, 1  ;;  %p114_p1 = scmp.lt.s32.totalorder %s1622_s12, 3 }
   0x4   : > { %p1528_p2 = scmp.eq.s32.totalorder %s1337_s16, 0  ;;  %s1624_s18 = smov [#allocation2]  }
   0x5   : > { %p1657_p3 = pnand %p1339_p0, %p114_p1  ;;  %s128_s19 = sshll.u32 %s1624_s18, 4  ;;  %s129_s19 = int_to_ptr.vmem [resolvable:$true] %s128_s19 }
   0x6   : > { %s138_s22 = sshll.u32 %s2665_s2, 4  ;;  %s1625_s23 = smov [#allocation4]   ;;  %s139_s22 = int_to_ptr.hbm [resolvable:$true] %s138_s22 }
   0x7   : > { %p1521_p4 = pneg %p1657_p3  ;;  %s140_s24 = sshll.u32 %s1625_s23, 4  ;;  %s141_s24 = int_to_ptr.vmem [resolvable:$true] %s140_s24 }
   0x8   : > { %161 = sbr.rel (%p1657_p3) target bundleno = 328 (0x148), region = 32 }
   0x9   : > { %p1522_p5 = pnand %p1528_p2, %p1521_p4 }
   0xb   : > { %1524 = dma.hbm_to_vmem [thread:$0]  (!%p1522_p5), %s127_s15, 16, %s129_s19, [#allocation3]  }
   0xc   : > { %1527 = dma.hbm_to_vmem [thread:$0]  (!%p1522_p5), %s139_s22, 16, %s141_s24, [#allocation5]  }
   0xd   : > { %1613 = dma.done.wait (%p1528_p2), [#allocation3], 16  }
   0xe   : > { %1615 = vsyncadd (%p1528_p2), [#allocation3], 4294967280 }
   0xf   : > { %1617 = dma.done.wait (%p1528_p2), [#allocation5], 16  }
  0x10   : > { %1619 = vsyncadd (%p1528_p2), [#allocation5], 4294967280  ;;  %p191_p6 = scmp.lt.s32.totalorder %s1337_s16, 1  ;;  %vm329_vm0 = vcmask 31744   ;;  %vm1195_vm4 = vcmask 27648  }
  0x12   : > { %s2751_s16 = smov (!%p191_p6, %s1337_s16), 1 }
  0x13   : > { %s1352_s25 = sshll.u32 %s2751_s16, 8 }
  0x14   : > { %s1681_s28 = scalar_lea.vmem %s2663_s0, %s1352_s25  ;;  %s2246_s4 = scalar_lea.vmem %s2666_s3, %s1352_s25 }
  0x15   : > { %v1355_v0 = vld [vmem:[%s1681_s28] sm:$0xff]   ;;  %v1482_v1 = vld [vmem:[%s1681_s28 + $0x8] sm:$0xff]   ;;  %v1483_v5 = vld [vmem:[%s1681_s28 + $0x10] sm:$0xff]  }
  0x16   : > { %v1685_v2 = vunpack.c.l.bf16 %v1355_v0  ;;  %v1687_v3 = vunpack.c.h.bf16 %v1355_v0  ;;  %v1689_v4 = vunpack.c.l.bf16 %v1482_v1  ;;  %v1692_v6 = vunpack.c.h.bf16 %v1482_v1  ;;  %v1484_v11 = vld [vmem:[%s1681_s28 + $0x18] sm:$0xff]   ;;  %v1485_v18 = vld [vmem:[%s1681_s28 + $0x20] sm:$0xff]   ;;  %v1486_v26 = vld [vmem:[%s1681_s28 + $0x28] sm:$0xff]  }
  0x17   : > { %v1694_v7 = vunpack.c.l.bf16 %v1483_v5  ;;  %v1703_v13 = vunpack.c.h.bf16 %v1483_v5  ;;  %v1707_v16 = vunpack.c.l.bf16 %v1484_v11  ;;  %v1712_v20 = vunpack.c.h.bf16 %v1484_v11  ;;  %v1487_v37 = vld [vmem:[%s1681_s28 + $0x30] sm:$0xff]   ;;  %v1488_v51 = vld [vmem:[%s1681_s28 + $0x38] sm:$0xff]   ;;  %v1489_v0 = vld [vmem:[%s1681_s28 + $0x40] sm:$0xff]  }
  0x18   : > { %v330_v8 = vsel %vm329_vm0, %v1685_v2, 0.0  ;;  %v331_v9 = vsel %vm329_vm0, %v1687_v3, 0.0  ;;  %v333_v10 = vsel %vm329_vm0, %v1689_v4, 0.0  ;;  %v335_v14 = vsel %vm329_vm0, %v1692_v6, 0.0 }
  0x19   : > { %v332_v12 = vadd.f32 %v331_v9, %v330_v8  ;;  %v337_v17 = vsel %vm329_vm0, %v1694_v7, 0.0  ;;  %v339_v21 = vsel %vm329_vm0, %v1703_v13, 0.0  ;;  %v1716_v23 = vunpack.c.l.bf16 %v1485_v18 }
  0x1a   : > { %v341_v24 = vsel %vm329_vm0, %v1707_v16, 0.0  ;;  %v464_v25 = vmul.f32 %v1685_v2, %v1685_v2  ;;  %v465_v28 = vmul.f32 %v1687_v3, %v1687_v3  ;;  %v466_v29 = vmul.f32 %v1689_v4, %v1689_v4 }
  0x1b   : > { %v334_v15 = vadd.f32 %v333_v10, %v332_v12  ;;  %v1727_v30 = vunpack.c.h.bf16 %v1485_v18  ;;  %v343_v31 = vsel %vm329_vm0, %v1712_v20, 0.0  ;;  %v467_v33 = vmul.f32 %v1692_v6, %v1692_v6 }
  0x1c   : > { %v1733_v34 = vunpack.c.l.bf16 %v1486_v26  ;;  %v345_v35 = vsel %vm329_vm0, %v1716_v23, 0.0  ;;  %v528_v36 = vsel %vm329_vm0, %v464_v25, 0.0  ;;  %v468_v39 = vmul.f32 %v1694_v7, %v1694_v7 }
  0x1d   : > { %v336_v19 = vadd.f32 %v335_v14, %v334_v15  ;;  %v529_v40 = vsel %vm329_vm0, %v465_v28, 0.0  ;;  %v531_v41 = vsel %vm329_vm0, %v466_v29, 0.0  ;;  %v1743_v42 = vunpack.c.h.bf16 %v1486_v26 }
  0x1e   : > { %v347_v43 = vsel %vm329_vm0, %v1727_v30, 0.0  ;;  %v530_v44 = vadd.f32 %v529_v40, %v528_v36  ;;  %v469_v46 = vmul.f32 %v1703_v13, %v1703_v13  ;;  %v533_v47 = vsel %vm329_vm0, %v467_v33, 0.0 }
  0x1f   : > { %v338_v22 = vadd.f32 %v337_v17, %v336_v19  ;;  %v1750_v48 = vunpack.c.l.bf16 %v1487_v37  ;;  %v349_v49 = vsel %vm329_vm0, %v1733_v34, 0.0  ;;  %v470_v53 = vmul.f32 %v1707_v16, %v1707_v16 }
  0x20   : > { %v532_v50 = vadd.f32 %v531_v41, %v530_v44  ;;  %v535_v54 = vsel %vm329_vm0, %v468_v39, 0.0  ;;  %v1758_v55 = vunpack.c.h.bf16 %v1487_v37  ;;  %v351_v56 = vsel %vm329_vm0, %v1743_v42, 0.0  ;;  %v1491_v37 = vld [vmem:[%s1681_s28 + $0x50] sm:$0xff]  }
  0x21   : > { %v340_v27 = vadd.f32 %v339_v21, %v338_v22  ;;  %v471_v59 = vmul.f32 %v1712_v20, %v1712_v20  ;;  %v537_v60 = vsel %vm329_vm0, %v469_v46, 0.0  ;;  %v1765_v61 = vunpack.c.l.bf16 %v1488_v51  ;;  %v1490_v21 = vld [vmem:[%s1681_s28 + $0x48] sm:$0xff]  }
  0x22   : > { %v534_v57 = vadd.f32 %v533_v47, %v532_v50  ;;  %v353_v62 = vsel %vm329_vm0, %v1750_v48, 0.0  ;;  %v472_v5 = vmul.f32 %v1716_v23, %v1716_v23  ;;  %v539_v8 = vsel %vm329_vm0, %v470_v53, 0.0 }
  0x23   : > { %v342_v32 = vadd.f32 %v341_v24, %v340_v27  ;;  %v1773_v9 = vunpack.c.h.bf16 %v1488_v51  ;;  %v355_v10 = vsel %vm329_vm0, %v1758_v55, 0.0  ;;  %v473_v14 = vmul.f32 %v1727_v30, %v1727_v30 }
  0x24   : > { %v536_v63 = vadd.f32 %v535_v54, %v534_v57  ;;  %v541_v15 = vsel %vm329_vm0, %v471_v59, 0.0  ;;  %v1780_v17 = vunpack.c.l.bf16 %v1489_v0  ;;  %v357_v18 = vsel %vm329_vm0, %v1765_v61, 0.0 }
  0x25   : > { %v344_v38 = vadd.f32 %v343_v31, %v342_v32  ;;  %v474_v24 = vmul.f32 %v1733_v34, %v1733_v34  ;;  %v543_v25 = vsel %vm329_vm0, %v472_v5, 0.0  ;;  %v1788_v26 = vunpack.c.h.bf16 %v1489_v0 }
  0x26   : > { %v538_v11 = vadd.f32 %v537_v60, %v536_v63  ;;  %v359_v27 = vsel %vm329_vm0, %v1773_v9, 0.0  ;;  %v475_v31 = vmul.f32 %v1743_v42, %v1743_v42  ;;  %v545_v32 = vsel %vm329_vm0, %v473_v14, 0.0 }
  0x27   : > { %v346_v45 = vadd.f32 %v345_v35, %v344_v38  ;;  %v1795_v33 = vunpack.c.l.bf16 %v1490_v21  ;;  %v361_v35 = vsel %vm329_vm0, %v1780_v17, 0.0  ;;  %v476_v39 = vmul.f32 %v1750_v48, %v1750_v48 }
  0x28   : > { %v540_v19 = vadd.f32 %v539_v8, %v538_v11  ;;  %v547_v40 = vsel %vm329_vm0, %v474_v24, 0.0  ;;  %v1803_v41 = vunpack.c.h.bf16 %v1490_v21  ;;  %v477_v46 = vmul.f32 %v1758_v55, %v1758_v55  ;;  %v1493_v8 = vld [vmem:[%s1681_s28 + $0x60] sm:$0xff]  }
  0x29   : > { %v348_v52 = vadd.f32 %v347_v43, %v346_v45  ;;  %v363_v43 = vsel %vm329_vm0, %v1788_v26, 0.0  ;;  %v549_v47 = vsel %vm329_vm0, %v475_v31, 0.0  ;;  %v365_v50 = vsel %vm329_vm0, %v1795_v33, 0.0 }
  0x2a   : > { %v542_v28 = vadd.f32 %v541_v15, %v540_v19  ;;  %v478_v54 = vmul.f32 %v1765_v61, %v1765_v61  ;;  %v1818_v57 = vunpack.c.h.bf16 %v1491_v37  ;;  %v553_v63 = vsel %vm329_vm0, %v477_v46, 0.0  ;;  %v1495_v46 = vld [vmem:[%s1681_s28 + $0x70] sm:$0xff]  }
  0x2b   : > { %v350_v58 = vadd.f32 %v349_v49, %v348_v52  ;;  %v1810_v49 = vunpack.c.l.bf16 %v1491_v37  ;;  %v1492_v52 = vld [vmem:[%s1681_s28 + $0x58] sm:$0xff]   ;;  %v480_v11 = vmul.f32 %v1780_v17, %v1780_v17  ;;  %v481_v21 = vmul.f32 %v1788_v26, %v1788_v26 }
  0x2c   : > { %v544_v36 = vadd.f32 %v543_v25, %v542_v28  ;;  %v1825_v0 = vunpack.c.l.bf16 %v1492_v52  ;;  %v1833_v14 = vunpack.c.h.bf16 %v1492_v52  ;;  %v371_v15 = vsel %vm329_vm0, %v1818_v57, 0.0  ;;  %v1494_v28 = vld [vmem:[%s1681_s28 + $0x68] sm:$0xff]  }
  0x2d   : > { %v352_v1 = vadd.f32 %v351_v56, %v350_v58  ;;  %v551_v56 = vsel %vm329_vm0, %v476_v39, 0.0  ;;  %v367_v58 = vsel %vm329_vm0, %v1803_v41, 0.0  ;;  %v1840_v24 = vunpack.c.l.bf16 %v1493_v8 }
  0x2e   : > { %v546_v44 = vadd.f32 %v545_v32, %v544_v36  ;;  %v373_v25 = vsel %vm329_vm0, %v1825_v0, 0.0  ;;  %v482_v31 = vmul.f32 %v1795_v33, %v1795_v33  ;;  %v559_v32 = vsel %vm329_vm0, %v480_v11, 0.0 }
  0x2f   : > { %v354_v12 = vadd.f32 %v353_v62, %v352_v1  ;;  %v479_v62 = vmul.f32 %v1773_v9, %v1773_v9  ;;  %v369_v1 = vsel %vm329_vm0, %v1810_v49, 0.0  ;;  %v375_v36 = vsel %vm329_vm0, %v1833_v14, 0.0 }
  0x30   : > { %v548_v51 = vadd.f32 %v547_v40, %v546_v44  ;;  %v483_v39 = vmul.f32 %v1803_v41, %v1803_v41  ;;  %v561_v40 = vsel %vm329_vm0, %v481_v21, 0.0  ;;  %v377_v44 = vsel %vm329_vm0, %v1840_v24, 0.0 }
  0x31   : > { %v356_v22 = vadd.f32 %v355_v10, %v354_v12  ;;  %v555_v12 = vsel %vm329_vm0, %v478_v54, 0.0  ;;  %v1863_v52 = vunpack.c.h.bf16 %v1494_v28  ;;  %v1878_v11 = vunpack.c.h.bf16 %v1495_v46 }
  0x32   : > { %v550_v59 = vadd.f32 %v549_v47, %v548_v51  ;;  %v563_v51 = vsel %vm329_vm0, %v482_v31, 0.0  ;;  %v488_v31 = vmul.f32 %v1840_v24, %v1840_v24 }
  0x33   : > { %v358_v29 = vadd.f32 %v357_v18, %v356_v22  ;;  %v557_v22 = vsel %vm329_vm0, %v479_v62, 0.0 }
  0x34   : > { %v552_v5 = vadd.f32 %v551_v56, %v550_v59  ;;  %v565_v59 = vsel %vm329_vm0, %v483_v39, 0.0 }
  0x35   : > { %v360_v38 = vadd.f32 %v359_v27, %v358_v29 }
  0x36   : > { %v554_v18 = vadd.f32 %v553_v63, %v552_v5 }
  0x37   : > { %v362_v45 = vadd.f32 %v361_v35, %v360_v38  ;;  %v1848_v35 = vunpack.c.h.bf16 %v1493_v8  ;;  %v486_v8 = vmul.f32 %v1825_v0, %v1825_v0 }
  0x38   : > { %v556_v27 = vadd.f32 %v555_v12, %v554_v18  ;;  %v383_v12 = vsel %vm329_vm0, %v1863_v52, 0.0 }
  0x39   : > { %v364_v53 = vadd.f32 %v363_v43, %v362_v45  ;;  %v1855_v43 = vunpack.c.l.bf16 %v1494_v28  ;;  %v1497_v28 = vld [vmem:[%s1681_s28 + $0x80] sm:$0xff]  }
  0x3a   : > { %v558_v37 = vadd.f32 %v557_v22, %v556_v27 }
  0x3b   : > { %v366_v60 = vadd.f32 %v365_v50, %v364_v53  ;;  %v484_v50 = vmul.f32 %v1810_v49, %v1810_v49  ;;  %v379_v53 = vsel %vm329_vm0, %v1848_v35, 0.0  ;;  %v381_v62 = vsel %vm329_vm0, %v1855_v43, 0.0 }
  0x3c   : > { %v560_v45 = vadd.f32 %v559_v32, %v558_v37  ;;  %v571_v32 = vsel %vm329_vm0, %v486_v8, 0.0  ;;  %v387_v37 = vsel %vm329_vm0, %v1878_v11, 0.0 }
  0x3d   : > { %v368_v10 = vadd.f32 %v367_v58, %v366_v60  ;;  %v485_v58 = vmul.f32 %v1818_v57, %v1818_v57  ;;  %v1870_v60 = vunpack.c.l.bf16 %v1495_v46 }
  0x3e   : > { %v562_v54 = vadd.f32 %v561_v40, %v560_v45  ;;  %v489_v40 = vmul.f32 %v1848_v35, %v1848_v35  ;;  %v1900_v45 = vunpack.c.l.bf16 %v1497_v28 }
  0x3f   : > { %v370_v19 = vadd.f32 %v369_v1, %v368_v10  ;;  %v1496_v1 = vld [vmem:[%s1681_s28 + $0x78] sm:$0xff]   ;;  %v567_v10 = vsel %vm329_vm0, %v484_v50, 0.0  ;;  %v569_v21 = vsel %vm329_vm0, %v485_v58, 0.0  ;;  %v1498_v50 = vld [vmem:[%s1681_s28 + $0x88] sm:$0xff]  }
  0x40   : > { %v564_v63 = vadd.f32 %v563_v51, %v562_v54  ;;  %v1885_v22 = vunpack.c.l.bf16 %v1496_v1  ;;  %v575_v54 = vsel %vm329_vm0, %v488_v31, 0.0  ;;  %v393_v8 = vsel %vm329_vm0, %v1900_v45, 0.0 }
  0x41   : > { %v372_v29 = vadd.f32 %v371_v15, %v370_v19  ;;  %v487_v19 = vmul.f32 %v1833_v14, %v1833_v14 }
  0x42   : > { %v566_v15 = vadd.f32 %v565_v59, %v564_v63  ;;  %v389_v46 = vsel %vm329_vm0, %v1885_v22, 0.0  ;;  %v491_v63 = vmul.f32 %v1863_v52, %v1863_v52 }
  0x43   : > { %v374_v38 = vadd.f32 %v373_v25, %v372_v29  ;;  %v385_v25 = vsel %vm329_vm0, %v1870_v60, 0.0 }
  0x44   : > { %v568_v27 = vadd.f32 %v567_v10, %v566_v15  ;;  %v581_v31 = vsel %vm329_vm0, %v491_v63, 0.0 }
  0x45   : > { %v376_v47 = vadd.f32 %v375_v36, %v374_v38  ;;  %v1893_v36 = vunpack.c.h.bf16 %v1496_v1  ;;  %v577_v1 = vsel %vm329_vm0, %v489_v40, 0.0 }
  0x46   : > { %v570_v38 = vadd.f32 %v569_v21, %v568_v27  ;;  %v1923_v21 = vunpack.c.h.bf16 %v1498_v50 }
  0x47   : > { %v378_v56 = vadd.f32 %v377_v44, %v376_v47  ;;  %v573_v44 = vsel %vm329_vm0, %v487_v19, 0.0  ;;  %v391_v58 = vsel %vm329_vm0, %v1893_v36, 0.0 }
  0x48   : > { %v572_v47 = vadd.f32 %v571_v32, %v570_v38 }
  0x49   : > { %v380_v5 = vadd.f32 %v379_v53, %v378_v56  ;;  %v490_v53 = vmul.f32 %v1855_v43, %v1855_v43  ;;  %v1908_v56 = vunpack.c.h.bf16 %v1497_v28 }
  0x4a   : > { %v574_v59 = vadd.f32 %v573_v44, %v572_v47  ;;  %v494_v44 = vmul.f32 %v1885_v22, %v1885_v22 }
  0x4b   : > { %v382_v18 = vadd.f32 %v381_v62, %v380_v5  ;;  %v1915_v5 = vunpack.c.l.bf16 %v1498_v50  ;;  %v579_v19 = vsel %vm329_vm0, %v490_v53, 0.0  ;;  %v399_v50 = vsel %vm329_vm0, %v1923_v21, 0.0 }
  0x4c   : > { %v576_v10 = vadd.f32 %v575_v54, %v574_v59  ;;  %v495_v54 = vmul.f32 %v1893_v36, %v1893_v36 }
  0x4d   : > { %v384_v29 = vadd.f32 %v383_v12, %v382_v18  ;;  %v1499_v12 = vld [vmem:[%s1681_s28 + $0x90] sm:$0xff]   ;;  %v492_v18 = vmul.f32 %v1870_v60, %v1870_v60 }
  0x4e   : > { %v578_v27 = vadd.f32 %v577_v1, %v576_v10  ;;  %v1930_v32 = vunpack.c.l.bf16 %v1499_v12  ;;  %v1938_v47 = vunpack.c.h.bf16 %v1499_v12  ;;  %v1501_v1 = vld [vmem:[%s1681_s28 + $0xa0] sm:$0xff]   ;;  %v496_v10 = vmul.f32 %v1900_v45, %v1900_v45 }
  0x4f   : > { %v386_v39 = vadd.f32 %v385_v25, %v384_v29  ;;  %v395_v25 = vsel %vm329_vm0, %v1908_v56, 0.0  ;;  %v493_v29 = vmul.f32 %v1878_v11, %v1878_v11  ;;  %v587_v12 = vsel %vm329_vm0, %v494_v44, 0.0 }
  0x50   : > { %v580_v38 = vadd.f32 %v579_v19, %v578_v27  ;;  %2692 = vst [vmem:[#allocation8_spill] sm:$0xff] %v1938_v47  ;;  %v497_v27 = vmul.f32 %v1908_v56, %v1908_v56  ;;  %v591_v44 = vsel %vm329_vm0, %v496_v10, 0.0  ;;  %v1503_v10 = vld [vmem:[%s1681_s28 + $0xb0] sm:$0xff]  }
  0x51   : > { %v388_v51 = vadd.f32 %v387_v37, %v386_v39  ;;  %v397_v37 = vsel %vm329_vm0, %v1915_v5, 0.0  ;;  %v1500_v39 = vld [vmem:[%s1681_s28 + $0x98] sm:$0xff]  }
  0x52   : > { %v1945_v59 = vunpack.c.l.bf16 %v1500_v39 }
  0x53   : > { %v390_v62 = vadd.f32 %v389_v46, %v388_v51  ;;  %v583_v46 = vsel %vm329_vm0, %v492_v18, 0.0  ;;  %v582_v51 = vadd.f32 %v581_v31, %v580_v38  ;;  %v403_v18 = vsel %vm329_vm0, %v1938_v47, 0.0  ;;  %v1502_v38 = vld [vmem:[%s1681_s28 + $0xa8] sm:$0xff]  }
  0x54   : > { %2693 = vst [vmem:[#allocation9_spill] sm:$0xff] %v1945_v59  ;;  %v405_v31 = vsel %vm329_vm0, %v1945_v59, 0.0 }
  0x55   : > { %v392_v15 = vadd.f32 %v391_v58, %v390_v62  ;;  %v585_v58 = vsel %vm329_vm0, %v493_v29, 0.0  ;;  %v401_v62 = vsel %vm329_vm0, %v1930_v32, 0.0  ;;  %v584_v63 = vadd.f32 %v583_v46, %v582_v51 }
  0x56   : > { %v1960_v29 = vunpack.c.l.bf16 %v1501_v1  ;;  %v1968_v46 = vunpack.c.h.bf16 %v1501_v1 }
  0x57   : > { %v394_v28 = vadd.f32 %v393_v8, %v392_v15  ;;  %v1953_v15 = vunpack.c.h.bf16 %v1500_v39  ;;  %v586_v19 = vadd.f32 %v585_v58, %v584_v63  ;;  %v593_v58 = vsel %vm329_vm0, %v497_v27, 0.0 }
  0x58   : > { %2695 = vst [vmem:[#allocation11_spill] sm:$0xff] %v1960_v29  ;;  %v409_v63 = vsel %vm329_vm0, %v1960_v29, 0.0 }
  0x59   : > { %v396_v40 = vadd.f32 %v395_v25, %v394_v28  ;;  %2694 = vst [vmem:[#allocation10_spill] sm:$0xff] %v1953_v15  ;;  %v589_v28 = vsel %vm329_vm0, %v495_v54, 0.0  ;;  %v499_v54 = vmul.f32 %v1923_v21, %v1923_v21 }
  0x5a   : > { %2696 = vst [vmem:[#allocation12_spill] sm:$0xff] %v1968_v46 }
  0x5b   : > { %v398_v53 = vadd.f32 %v397_v37, %v396_v40  ;;  %v588_v37 = vadd.f32 %v587_v12, %v586_v19  ;;  %v498_v40 = vmul.f32 %v1915_v5, %v1915_v5  ;;  %v500_v12 = vmul.f32 %v1930_v32, %v1930_v32 }
  0x5c   : > { %v1983_v19 = vunpack.c.h.bf16 %v1502_v38 }
  0x5d   : > { %v400_v8 = vadd.f32 %v399_v50, %v398_v53  ;;  %v407_v50 = vsel %vm329_vm0, %v1953_v15, 0.0  ;;  %v590_v51 = vadd.f32 %v589_v28, %v588_v37  ;;  %v597_v37 = vsel %vm329_vm0, %v499_v54, 0.0 }
  0x5e   : > { %2698 = vst [vmem:[#allocation14_spill] sm:$0xff] %v1983_v19 }
  0x5f   : > { %v402_v25 = vadd.f32 %v401_v62, %v400_v8  ;;  %v1975_v62 = vunpack.c.l.bf16 %v1502_v38  ;;  %v592_v8 = vadd.f32 %v591_v44, %v590_v51  ;;  %v502_v51 = vmul.f32 %v1945_v59, %v1945_v59 }
  0x61   : > { %v404_v39 = vadd.f32 %v403_v18, %v402_v25  ;;  %2697 = vst [vmem:[#allocation13_spill] sm:$0xff] %v1975_v62  ;;  %v595_v18 = vsel %vm329_vm0, %v498_v40, 0.0  ;;  %v411_v25 = vsel %vm329_vm0, %v1968_v46, 0.0  ;;  %v594_v27 = vadd.f32 %v593_v58, %v592_v8  ;;  %v1504_v40 = vld [vmem:[%s1681_s28 + $0xb8] sm:$0xff]  }
  0x62   : > { %v413_v44 = vsel %vm329_vm0, %v1975_v62, 0.0  ;;  %v1998_v58 = vunpack.c.h.bf16 %v1503_v10 }
  0x63   : > { %v406_v53 = vadd.f32 %v405_v31, %v404_v39  ;;  %v501_v31 = vmul.f32 %v1938_v47, %v1938_v47  ;;  %v1990_v39 = vunpack.c.l.bf16 %v1503_v10 }
  0x64   : > { %2700 = vst [vmem:[#allocation16_spill] sm:$0xff] %v1998_v58 }
  0x65   : > { %v408_v1 = vadd.f32 %v407_v50, %v406_v53  ;;  %2699 = vst [vmem:[#allocation15_spill] sm:$0xff] %v1990_v39  ;;  %v596_v50 = vadd.f32 %v595_v18, %v594_v27  ;;  %v599_v53 = vsel %vm329_vm0, %v500_v12, 0.0  ;;  %v601_v47 = vsel %vm329_vm0, %v501_v31, 0.0  ;;  %v1505_v12 = vld [vmem:[%s1681_s28 + $0xc0] sm:$0xff]  }
  0x66   : > { %v2005_v18 = vunpack.c.l.bf16 %v1504_v40 }
  0x67   : > { %v410_v28 = vadd.f32 %v409_v63, %v408_v1  ;;  %v415_v63 = vsel %vm329_vm0, %v1983_v19, 0.0  ;;  %v598_v54 = vadd.f32 %v597_v37, %v596_v50  ;;  %v503_v1 = vmul.f32 %v1953_v15, %v1953_v15 }
  0x68   : > { %2701 = vst [vmem:[#allocation17_spill] sm:$0xff] %v2005_v18  ;;  %v603_v37 = vsel %vm329_vm0, %v502_v51, 0.0  ;;  %v419_v50 = vsel %vm329_vm0, %v1998_v58, 0.0  ;;  %v505_v15 = vmul.f32 %v1968_v46, %v1968_v46  ;;  %v1506_v51 = vld [vmem:[%s1681_s28 + $0xc8] sm:$0xff]   ;;  %v507_v46 = vmul.f32 %v1983_v19, %v1983_v19 }
  0x69   : > { %v412_v38 = vadd.f32 %v411_v25, %v410_v28  ;;  %v417_v25 = vsel %vm329_vm0, %v1990_v39, 0.0  ;;  %v600_v27 = vadd.f32 %v599_v53, %v598_v54  ;;  %v504_v28 = vmul.f32 %v1960_v29, %v1960_v29 }
  0x6a   : > { %v605_v59 = vsel %vm329_vm0, %v503_v1, 0.0  ;;  %v2020_v53 = vunpack.c.l.bf16 %v1505_v12  ;;  %v609_v29 = vsel %vm329_vm0, %v505_v15, 0.0  ;;  %v509_v19 = vmul.f32 %v1998_v58, %v1998_v58 }
  0x6b   : > { %v414_v8 = vadd.f32 %v413_v44, %v412_v38  ;;  %v2013_v44 = vunpack.c.h.bf16 %v1504_v40  ;;  %v602_v31 = vadd.f32 %v601_v47, %v600_v27  ;;  %v607_v47 = vsel %vm329_vm0, %v504_v28, 0.0  ;;  %v1507_v28 = vld [vmem:[%s1681_s28 + $0xd0] sm:$0xff]  }
  0x6c   : > { %2703 = vst [vmem:[#allocation19_spill] sm:$0xff] %v2020_v53 }
  0x6d   : > { %v416_v10 = vadd.f32 %v415_v63, %v414_v8  ;;  %2702 = vst [vmem:[#allocation18_spill] sm:$0xff] %v2013_v44  ;;  %v421_v63 = vsel %vm329_vm0, %v2005_v18, 0.0  ;;  %v604_v54 = vadd.f32 %v603_v37, %v602_v31  ;;  %v506_v8 = vmul.f32 %v1975_v62, %v1975_v62 }
  0x6e   : > { %v423_v27 = vsel %vm329_vm0, %v2013_v44, 0.0  ;;  %v2035_v37 = vunpack.c.l.bf16 %v1506_v51  ;;  %v613_v62 = vsel %vm329_vm0, %v507_v46, 0.0  ;;  %v511_v58 = vmul.f32 %v2013_v44, %v2013_v44 }
  0x6f   : > { %v418_v38 = vadd.f32 %v417_v25, %v416_v10  ;;  %v2028_v25 = vunpack.c.h.bf16 %v1505_v12  ;;  %v606_v1 = vadd.f32 %v605_v59, %v604_v54  ;;  %v611_v59 = vsel %vm329_vm0, %v506_v8, 0.0  ;;  %v1508_v8 = vld [vmem:[%s1681_s28 + $0xd8] sm:$0xff]  }
  0x70   : > { %2705 = vst [vmem:[#allocation21_spill] sm:$0xff] %v2035_v37 }
  0x71   : > { %v420_v40 = vadd.f32 %v419_v50, %v418_v38  ;;  %2704 = vst [vmem:[#allocation20_spill] sm:$0xff] %v2028_v25  ;;  %v425_v50 = vsel %vm329_vm0, %v2020_v53, 0.0  ;;  %v608_v31 = vadd.f32 %v607_v47, %v606_v1  ;;  %v508_v38 = vmul.f32 %v1990_v39, %v1990_v39 }
  0x72   : > { %v427_v54 = vsel %vm329_vm0, %v2028_v25, 0.0  ;;  %v2050_v47 = vunpack.c.l.bf16 %v1507_v28  ;;  %v617_v39 = vsel %vm329_vm0, %v509_v19, 0.0  ;;  %v513_v44 = vmul.f32 %v2028_v25, %v2028_v25 }
  0x73   : > { %v422_v10 = vadd.f32 %v421_v63, %v420_v40  ;;  %v2043_v63 = vunpack.c.h.bf16 %v1506_v51  ;;  %v610_v15 = vadd.f32 %v609_v29, %v608_v31  ;;  %v615_v29 = vsel %vm329_vm0, %v508_v38, 0.0  ;;  %v1509_v38 = vld [vmem:[%s1681_s28 + $0xe0] sm:$0xff]  }
  0x74   : > { %2707 = vst [vmem:[#allocation23_spill] sm:$0xff] %v2050_v47 }
  0x75   : > { %v424_v12 = vadd.f32 %v423_v27, %v422_v10  ;;  %2706 = vst [vmem:[#allocation22_spill] sm:$0xff] %v2043_v63  ;;  %v429_v27 = vsel %vm329_vm0, %v2035_v37, 0.0  ;;  %v612_v1 = vadd.f32 %v611_v59, %v610_v15  ;;  %v510_v10 = vmul.f32 %v2005_v18, %v2005_v18 }
  0x76   : > { %v431_v31 = vsel %vm329_vm0, %v2043_v63, 0.0  ;;  %v2065_v59 = vunpack.c.l.bf16 %v1508_v8  ;;  %v621_v18 = vsel %vm329_vm0, %v511_v58, 0.0  ;;  %v515_v25 = vmul.f32 %v2043_v63, %v2043_v63 }
  0x77   : > { %v426_v40 = vadd.f32 %v425_v50, %v424_v12  ;;  %v2058_v50 = vunpack.c.h.bf16 %v1507_v28  ;;  %v614_v46 = vadd.f32 %v613_v62, %v612_v1  ;;  %v619_v62 = vsel %vm329_vm0, %v510_v10, 0.0  ;;  %v1510_v10 = vld [vmem:[%s1681_s28 + $0xe8] sm:$0xff]  }
  0x78   : > { %2709 = vst [vmem:[#allocation25_spill] sm:$0xff] %v2065_v59 }
  0x79   : > { %v428_v51 = vadd.f32 %v427_v54, %v426_v40  ;;  %2708 = vst [vmem:[#allocation24_spill] sm:$0xff] %v2058_v50  ;;  %v433_v54 = vsel %vm329_vm0, %v2050_v47, 0.0  ;;  %v616_v15 = vadd.f32 %v615_v29, %v614_v46  ;;  %v512_v40 = vmul.f32 %v2020_v53, %v2020_v53 }
  0x7a   : > { %v435_v1 = vsel %vm329_vm0, %v2058_v50, 0.0  ;;  %v2080_v29 = vunpack.c.l.bf16 %v1509_v38  ;;  %v625_v53 = vsel %vm329_vm0, %v513_v44, 0.0  ;;  %v517_v63 = vmul.f32 %v2058_v50, %v2058_v50 }
  0x7b   : > { %v430_v12 = vadd.f32 %v429_v27, %v428_v51  ;;  %v2073_v27 = vunpack.c.h.bf16 %v1508_v8  ;;  %v618_v19 = vadd.f32 %v617_v39, %v616_v15  ;;  %v623_v39 = vsel %vm329_vm0, %v512_v40, 0.0  ;;  %v1511_v40 = vld [vmem:[%s1681_s28 + $0xf0] sm:$0xff]  }
  0x7c   : > { %v633_v50 = vsel %vm329_vm0, %v517_v63, 0.0 }
  0x7d   : > { %v432_v28 = vadd.f32 %v431_v31, %v430_v12  ;;  %v437_v31 = vsel %vm329_vm0, %v2065_v59, 0.0  ;;  %v620_v46 = vadd.f32 %v619_v62, %v618_v19  ;;  %v514_v12 = vmul.f32 %v2035_v37, %v2035_v37 }
  0x7e   : > { %v439_v15 = vsel %vm329_vm0, %v2073_v27, 0.0  ;;  %v2095_v62 = vunpack.c.l.bf16 %v1510_v10  ;;  %v629_v37 = vsel %vm329_vm0, %v515_v25, 0.0 }
  0x7f   : > { %v434_v51 = vadd.f32 %v433_v54, %v432_v28  ;;  %v2088_v54 = vunpack.c.h.bf16 %v1509_v38  ;;  %v622_v58 = vadd.f32 %v621_v18, %v620_v46  ;;  %v627_v18 = vsel %vm329_vm0, %v514_v12, 0.0 }
  0x81   : > { %v436_v8 = vadd.f32 %v435_v1, %v434_v51  ;;  %2710 = vst [vmem:[#allocation26_spill] sm:$0xff] %v2088_v54  ;;  %v441_v1 = vsel %vm329_vm0, %v2080_v29, 0.0  ;;  %v624_v19 = vadd.f32 %v623_v39, %v622_v58  ;;  %v516_v51 = vmul.f32 %v2050_v47, %v2050_v47 }
  0x82   : > { %v443_v46 = vsel %vm329_vm0, %v2088_v54, 0.0  ;;  %v2110_v39 = vunpack.c.l.bf16 %v1511_v40  ;;  %v521_v63 = vmul.f32 %v2088_v54, %v2088_v54 }
  0x83   : > { %v438_v28 = vadd.f32 %v437_v31, %v436_v8  ;;  %v2103_v31 = vunpack.c.h.bf16 %v1510_v10  ;;  %v626_v44 = vadd.f32 %v625_v53, %v624_v19  ;;  %v518_v10 = vmul.f32 %v2065_v59, %v2065_v59 }
  0x84   : > { %2712 = vst [vmem:[#allocation28_spill] sm:$0xff] %v2110_v39  ;;  %v631_v47 = vsel %vm329_vm0, %v516_v51, 0.0  ;;  %v2118_v53 = vunpack.c.h.bf16 %v1511_v40  ;;  %v520_v40 = vmul.f32 %v2080_v29, %v2080_v29 }
  0x85   : > { %v440_v38 = vadd.f32 %v439_v15, %v438_v28  ;;  %2711 = vst [vmem:[#allocation27_spill] sm:$0xff] %v2103_v31  ;;  %v445_v15 = vsel %vm329_vm0, %v2095_v62, 0.0  ;;  %v628_v58 = vadd.f32 %v627_v18, %v626_v44  ;;  %v1512_v28 = vld [vmem:[%s1681_s28 + $0xf8] sm:$0xff]   ;;  %v635_v51 = vsel %vm329_vm0, %v518_v10, 0.0 }
  0x86   : > { %2713 = vst [vmem:[#allocation29_spill] sm:$0xff] %v2118_v53  ;;  %v2125_v18 = vunpack.c.l.bf16 %v1512_v28  ;;  %v2132_v59 = vunpack.c.h.bf16 %v1512_v28  ;;  %v522_v10 = vmul.f32 %v2095_v62, %v2095_v62  ;;  %v639_v28 = vsel %vm329_vm0, %v520_v40, 0.0 }
  0x87   : > { %v442_v8 = vadd.f32 %v441_v1, %v440_v38  ;;  %v447_v1 = vsel %vm329_vm0, %v2103_v31, 0.0  ;;  %v630_v19 = vadd.f32 %v629_v37, %v628_v58  ;;  %v519_v38 = vmul.f32 %v2073_v27, %v2073_v27 }
  0x88   : > { %2714 = vst [vmem:[#allocation30_spill] sm:$0xff] %v2125_v18  ;;  %v451_v37 = vsel %vm329_vm0, %v2118_v53, 0.0  ;;  %v525_v40 = vmul.f32 %v2118_v53, %v2118_v53 }
  0x89   : > { %v444_v12 = vadd.f32 %v443_v46, %v442_v8  ;;  %v449_v46 = vsel %vm329_vm0, %v2110_v39, 0.0  ;;  %v632_v44 = vadd.f32 %v631_v47, %v630_v19  ;;  %2715 = vst [vmem:[#allocation31_spill] sm:$0xff] %v2132_v59  ;;  %v453_v47 = vsel %vm329_vm0, %v2125_v18, 0.0 }
  0x8b   : > { %v446_v25 = vadd.f32 %v445_v15, %v444_v12  ;;  %v634_v15 = vadd.f32 %v633_v50, %v632_v44  ;;  %v637_v12 = vsel %vm329_vm0, %v519_v38, 0.0  ;;  %v523_v44 = vmul.f32 %v2103_v31, %v2103_v31 }
  0x8c   : > { %v641_v38 = vsel %vm329_vm0, %v521_v63, 0.0 }
  0x8d   : > { %v448_v8 = vadd.f32 %v447_v1, %v446_v25  ;;  %v636_v1 = vadd.f32 %v635_v51, %v634_v15  ;;  %v455_v25 = vsel %vm329_vm0, %v2132_v59, 0.0  ;;  %v524_v51 = vmul.f32 %v2110_v39, %v2110_v39 }
  0x8f   : > { %v450_v58 = vadd.f32 %v449_v46, %v448_v8  ;;  %v638_v50 = vadd.f32 %v637_v12, %v636_v1  ;;  %v645_v12 = vsel %vm329_vm0, %v523_v44, 0.0  ;;  %v647_v63 = vsel %vm329_vm0, %v524_v51, 0.0 }
  0x91   : > { %v452_v19 = vadd.f32 %v451_v37, %v450_v58  ;;  %v640_v8 = vadd.f32 %v639_v28, %v638_v50  ;;  %v643_v37 = vsel %vm329_vm0, %v522_v10, 0.0  ;;  %v527_v50 = vmul.f32 %v2132_v59, %v2132_v59 }
  0x92   : > { %v649_v10 = vsel %vm329_vm0, %v525_v40, 0.0 }
  0x93   : > { %v454_v46 = vadd.f32 %v453_v47, %v452_v19  ;;  %v642_v15 = vadd.f32 %v641_v38, %v640_v8  ;;  %v526_v19 = vmul.f32 %v2125_v18, %v2125_v18  ;;  %v653_v44 = vsel %vm329_vm0, %v527_v50, 0.0 }
  0x95   : > { %v456_v54 = vadd.f32 %v455_v25, %v454_v46  ;;  %v644_v47 = vadd.f32 %v643_v37, %v642_v15  ;;  %v651_v38 = vsel %vm329_vm0, %v526_v19, 0.0 }
  0x97   : > { %v457_v58 = vrot.slane %v456_v54, 4  ;;  %v646_v28 = vadd.f32 %v645_v12, %v644_v47 }
  0x99   : > { %v458_v1 = vadd.f32 %v457_v58, %v456_v54  ;;  %v648_v46 = vadd.f32 %v647_v63, %v646_v28 }
  0x9b   : > { %v459_v25 = vrot.slane %v458_v1, 2  ;;  %v650_v53 = vadd.f32 %v649_v10, %v648_v46 }
  0x9d   : > { %v460_v8 = vadd.f32 %v459_v25, %v458_v1  ;;  %v652_v54 = vadd.f32 %v651_v38, %v650_v53 }
  0x9f   : > { %v461_v37 = vrot.slane %v460_v8, 1  ;;  %v654_v15 = vadd.f32 %v653_v44, %v652_v54  ;;  %v2197_v54 = vld [vmem:[#allocation2] ss:$0 sm:$0xff] }
  0xa1   : > { %v655_v58 = vrot.slane %v654_v15, 4  ;;  %v462_v18 = vadd.f32 %v461_v37, %v460_v8 }
  0xa3   : > { %v656_v51 = vadd.f32 %v655_v58, %v654_v15  ;;  %v2163_v47 = vmul.f32 0.001953125, %v462_v18 }
  0xa5   : > { %v657_v12 = vrot.slane %v656_v51, 2  ;;  %v662_v40 = vmul.f32 %v2163_v47, %v2163_v47  ;;  %v664_v50 = vsub.f32 %v1685_v2, %v2163_v47  ;;  %v665_v18 = vsub.f32 %v1687_v3, %v2163_v47 }
  0xa6   : > { %v669_v38 = vsub.f32 %v1703_v13, %v2163_v47  ;;  %v670_v2 = vsub.f32 %v1707_v16, %v2163_v47  ;;  %v671_v8 = vsub.f32 %v1712_v20, %v2163_v47  ;;  %v672_v3 = vsub.f32 %v1716_v23, %v2163_v47 }
  0xa7   : > { %v658_v39 = vadd.f32 %v657_v12, %v656_v51 }
  0xa9   : > { %v659_v59 = vrot.slane %v658_v39, 1 }
  0xab   : > { %v660_v31 = vadd.f32 %v659_v59, %v658_v39  ;;  %v666_v59 = vsub.f32 %v1689_v4, %v2163_v47  ;;  %v668_v39 = vsub.f32 %v1694_v7, %v2163_v47  ;;  %v673_v4 = vsub.f32 %v1727_v30, %v2163_v47 }
  0xac   : > { %v675_v7 = vsub.f32 %v1743_v42, %v2163_v47 }
  0xad   : > { %v661_v19 = vmul.f32 0.001953125, %v660_v31  ;;  %v667_v31 = vsub.f32 %v1692_v6, %v2163_v47  ;;  %v674_v6 = vsub.f32 %v1733_v34, %v2163_v47 }
  0xaf   : > { %v663_v1 = vsub.f32 %v661_v19, %v662_v40 }
  0xb1   : > { %v728_v63 = vadd.f32 1e-05, %v663_v1 }
  0xb3   : > { %1544 = vrsqrt.f32 %v728_v63  ;;  %vm735_vm1 = vweird.f32 %v728_v63 }
  0xb9   : > { %v1545_v28 = vpop.eup %1544 }
  0xba   : > { %v730_v53 = vmul.f32 %v1545_v28, %v728_v63  ;;  %vm736_vm2 = vweird.f32 %v1545_v28 }
  0xbb   : > { %vm737_vm3 = vmor %vm735_vm1, %vm736_vm2 }
  0xbc   : > { %v731_v25 = vmul.f32 %v1545_v28, %v730_v53  ;;  %v2216_v53 = vld [vmem:[#allocation4] ss:$0 sm:$0xff] }
  0xbe   : > { %v732_v10 = vmul.f32 0.5, %v731_v25 }
  0xc0   : > { %v733_v46 = vsub.f32 1.5, %v732_v10 }
  0xc2   : > { %v734_v13 = vmul.f32 %v1545_v28, %v733_v46 }
  0xc4   : > { %v2207_v12 = vsel %vm737_vm3, %v1545_v28, %v734_v13 }
  0xc5   : > { %v739_v63 = vmul.f32 %v2207_v12, %v664_v50  ;;  %v740_v25 = vmul.f32 %v2207_v12, %v665_v18  ;;  %v741_v10 = vmul.f32 %v2207_v12, %v666_v59  ;;  %v742_v28 = vmul.f32 %v2207_v12, %v667_v31 }
  0xc6   : > { %v743_v46 = vmul.f32 %v2207_v12, %v668_v39  ;;  %v744_v13 = vmul.f32 %v2207_v12, %v669_v38  ;;  %v745_v19 = vmul.f32 %v2207_v12, %v670_v2  ;;  %v746_v40 = vmul.f32 %v2207_v12, %v671_v8 }
  0xc7   : > { %v807_v1 = vmul.f32 %v2197_v54, %v739_v63  ;;  %v808_v50 = vmul.f32 %v2197_v54, %v740_v25  ;;  %v809_v51 = vmul.f32 %v2197_v54, %v741_v10  ;;  %v810_v18 = vmul.f32 %v2197_v54, %v742_v28 }
  0xc8   : > { %v811_v59 = vmul.f32 %v2197_v54, %v743_v46  ;;  %v812_v31 = vmul.f32 %v2197_v54, %v744_v13  ;;  %v813_v39 = vmul.f32 %v2197_v54, %v745_v19  ;;  %v814_v38 = vmul.f32 %v2197_v54, %v746_v40 }
  0xc9   : > { %v875_v2 = vadd.f32 %v2216_v53, %v807_v1  ;;  %v876_v8 = vadd.f32 %v2216_v53, %v808_v50  ;;  %v877_v63 = vadd.f32 %v2216_v53, %v809_v51  ;;  %v878_v25 = vadd.f32 %v2216_v53, %v810_v18 }
  0xca   : > { %v879_v10 = vadd.f32 %v2216_v53, %v811_v59  ;;  %v880_v28 = vadd.f32 %v2216_v53, %v812_v31  ;;  %v881_v46 = vadd.f32 %v2216_v53, %v813_v39  ;;  %v882_v13 = vadd.f32 %v2216_v53, %v814_v38 }
  0xcb   : > { %vm939_vm5 = vcmp.ge.f32.partialorder %v875_v2, 0.0  ;;  %v1003_v19 = vmul.f32 0.01, %v875_v2  ;;  %vm940_vm6 = vcmp.ge.f32.partialorder %v876_v8, 0.0  ;;  %v1004_v40 = vmul.f32 0.01, %v876_v8 }
  0xcc   : > { %vm941_vm7 = vcmp.ge.f32.partialorder %v877_v63, 0.0  ;;  %v1005_v1 = vmul.f32 0.01, %v877_v63  ;;  %vm942_vm8 = vcmp.ge.f32.partialorder %v878_v25, 0.0  ;;  %v1006_v50 = vmul.f32 0.01, %v878_v25 }
  0xcd   : > { %v1067_v51 = vsel %vm939_vm5, %v875_v2, %v1003_v19  ;;  %v1068_v18 = vsel %vm940_vm6, %v876_v8, %v1004_v40  ;;  %vm943_vm9 = vcmp.ge.f32.partialorder %v879_v10, 0.0  ;;  %v1007_v59 = vmul.f32 0.01, %v879_v10 }
  0xce   : > { %v1131_v31 = vpack.c.bf16 %v1067_v51, %v1067_v51  ;;  %v1132_v39 = vpack.c.bf16 %v1068_v18, %v1068_v18  ;;  %v1069_v38 = vsel %vm941_vm7, %v877_v63, %v1005_v1  ;;  %v1070_v58 = vsel %vm942_vm8, %v878_v25, %v1006_v50 }
  0xcf   : > { %v1133_v15 = vpack.c.bf16 %v1069_v38, %v1069_v38  ;;  %v1134_v37 = vpack.c.bf16 %v1070_v58, %v1070_v58  ;;  %v1071_v44 = vsel %vm943_vm9, %v879_v10, %v1007_v59  ;;  %vm944_vm10 = vcmp.ge.f32.partialorder %v880_v28, 0.0 }
  0xd0   : > { %1196 = vst.msk [vmem:[%s2246_s4] sm:$0xf] %vm1195_vm4, %v1131_v31  ;;  %v1135_v20 = vpack.c.bf16 %v1071_v44, %v1071_v44  ;;  %v1008_v16 = vmul.f32 0.01, %v880_v28  ;;  %vm945_vm11 = vcmp.ge.f32.partialorder %v881_v46, 0.0  ;;  %vm946_vm12 = vcmp.ge.f32.partialorder %v882_v13, 0.0 }
  0xd1   : > { %1197 = vst.msk [vmem:[%s2246_s4 + $0x4] sm:$0xf] %vm1195_vm4, %v1132_v39  ;;  %v1009_v2 = vmul.f32 0.01, %v881_v46  ;;  %v1010_v8 = vmul.f32 0.01, %v882_v13  ;;  %v747_v63 = vmul.f32 %v2207_v12, %v672_v3  ;;  %v748_v58 = vmul.f32 %v2207_v12, %v673_v4 }
  0xd2   : > { %1198 = vst.msk [vmem:[%s2246_s4 + $0x8] sm:$0xf] %vm1195_vm4, %v1133_v15  ;;  %v1072_v44 = vsel %vm944_vm10, %v880_v28, %v1008_v16  ;;  %v749_v25 = vmul.f32 %v2207_v12, %v674_v6  ;;  %v750_v23 = vmul.f32 %v2207_v12, %v675_v7  ;;  %v2716_v3 = vsub.f32 %v1750_v48, %v2163_v47 }
  0xd3   : > { %1199 = vst.msk [vmem:[%s2246_s4 + $0xc] sm:$0xf] %vm1195_vm4, %v1134_v37  ;;  %v1136_v4 = vpack.c.bf16 %v1072_v44, %v1072_v44  ;;  %v1073_v16 = vsel %vm945_vm11, %v881_v46, %v1009_v2  ;;  %v1074_v15 = vsel %vm946_vm12, %v882_v13, %v1010_v8  ;;  %v815_v34 = vmul.f32 %v2197_v54, %v747_v63 }
  0xd4   : > { %v751_v30 = vmul.f32 %v2207_v12, %v2716_v3  ;;  %1200 = vst.msk [vmem:[%s2246_s4 + $0x10] sm:$0xf] %vm1195_vm4, %v1135_v20  ;;  %v1137_v6 = vpack.c.bf16 %v1073_v16, %v1073_v16  ;;  %v1138_v42 = vpack.c.bf16 %v1074_v15, %v1074_v15  ;;  %v816_v7 = vmul.f32 %v2197_v54, %v748_v58 }
  0xd5   : > { %v817_v10 = vmul.f32 %v2197_v54, %v749_v25  ;;  %1201 = vst.msk [vmem:[%s2246_s4 + $0x14] sm:$0xf] %vm1195_vm4, %v1136_v4  ;;  %v883_v48 = vadd.f32 %v2216_v53, %v815_v34  ;;  %v818_v37 = vmul.f32 %v2197_v54, %v750_v23  ;;  %v2717_v46 = vsub.f32 %v1758_v55, %v2163_v47 }
  0xd6   : > { %v819_v28 = vmul.f32 %v2197_v54, %v751_v30  ;;  %1202 = vst.msk [vmem:[%s2246_s4 + $0x18] sm:$0xf] %vm1195_vm4, %v1137_v6  ;;  %v884_v20 = vadd.f32 %v2216_v53, %v816_v7  ;;  %v2718_v40 = vsub.f32 %v1765_v61, %v2163_v47  ;;  %v2719_v50 = vsub.f32 %v1773_v9, %v2163_v47 }
  0xd7   : > { %v752_v13 = vmul.f32 %v2207_v12, %v2717_v46  ;;  %v885_v19 = vadd.f32 %v2216_v53, %v817_v10  ;;  %1203 = vst.msk [vmem:[%s2246_s4 + $0x1c] sm:$0xf] %vm1195_vm4, %v1138_v42  ;;  %vm947_vm13 = vcmp.ge.f32.partialorder %v883_v48, 0.0  ;;  %v1011_v55 = vmul.f32 0.01, %v883_v48 }
  0xd8   : > { %v753_v1 = vmul.f32 %v2207_v12, %v2718_v40  ;;  %v754_v51 = vmul.f32 %v2207_v12, %v2719_v50  ;;  %v886_v18 = vadd.f32 %v2216_v53, %v818_v37  ;;  %v887_v59 = vadd.f32 %v2216_v53, %v819_v28 }
  0xd9   : > { %vm948_vm14 = vcmp.ge.f32.partialorder %v884_v20, 0.0  ;;  %v1012_v31 = vmul.f32 0.01, %v884_v20  ;;  %vm949_vm15 = vcmp.ge.f32.partialorder %v885_v19, 0.0  ;;  %v1013_v61 = vmul.f32 0.01, %v885_v19 }
  0xda   : > { %v1075_v39 = vsel %vm947_vm13, %v883_v48, %v1011_v55  ;;  %vm950_vm0 = vcmp.ge.f32.partialorder %v886_v18, 0.0  ;;  %v1014_v38 = vmul.f32 0.01, %v886_v18  ;;  %vm951_vm1 = vcmp.ge.f32.partialorder %v887_v59, 0.0 }
  0xdb   : > { %v1139_v9 = vpack.c.bf16 %v1075_v39, %v1075_v39  ;;  %v1076_v2 = vsel %vm948_vm14, %v884_v20, %v1012_v31  ;;  %v1077_v8 = vsel %vm949_vm15, %v885_v19, %v1013_v61  ;;  %v1015_v63 = vmul.f32 0.01, %v887_v59 }
  0xdc   : > { %v1140_v58 = vpack.c.bf16 %v1076_v2, %v1076_v2  ;;  %v1141_v44 = vpack.c.bf16 %v1077_v8, %v1077_v8  ;;  %v1078_v25 = vsel %vm950_vm0, %v886_v18, %v1014_v38  ;;  %v820_v23 = vmul.f32 %v2197_v54, %v752_v13 }
  0xdd   : > { %1204 = vst.msk [vmem:[%s2246_s4 + $0x20] sm:$0xf] %vm1195_vm4, %v1139_v9  ;;  %v1142_v3 = vpack.c.bf16 %v1078_v25, %v1078_v25  ;;  %v1079_v30 = vsel %vm951_vm1, %v887_v59, %v1015_v63  ;;  %v821_v4 = vmul.f32 %v2197_v54, %v753_v1  ;;  %v822_v16 = vmul.f32 %v2197_v54, %v754_v51 }
  0xde   : > { %1205 = vst.msk [vmem:[%s2246_s4 + $0x24] sm:$0xf] %vm1195_vm4, %v1140_v58  ;;  %v1143_v15 = vpack.c.bf16 %v1079_v30, %v1079_v30  ;;  %v888_v34 = vadd.f32 %v2216_v53, %v820_v23  ;;  %v2720_v6 = vsub.f32 %v1780_v17, %v2163_v47  ;;  %v2721_v7 = vsub.f32 %v1788_v26, %v2163_v47 }
  0xdf   : > { %1206 = vst.msk [vmem:[%s2246_s4 + $0x28] sm:$0xf] %vm1195_vm4, %v1141_v44  ;;  %v889_v48 = vadd.f32 %v2216_v53, %v821_v4  ;;  %v890_v37 = vadd.f32 %v2216_v53, %v822_v16  ;;  %v2722_v28 = vsub.f32 %v1795_v33, %v2163_v47  ;;  %v2723_v17 = vsub.f32 %v1803_v41, %v2163_v47 }
  0xe0   : > { %v755_v42 = vmul.f32 %v2207_v12, %v2720_v6  ;;  %v756_v10 = vmul.f32 %v2207_v12, %v2721_v7  ;;  %1207 = vst.msk [vmem:[%s2246_s4 + $0x2c] sm:$0xf] %vm1195_vm4, %v1142_v3  ;;  %vm952_vm2 = vcmp.ge.f32.partialorder %v888_v34, 0.0  ;;  %v1016_v26 = vmul.f32 0.01, %v888_v34 }
  0xe1   : > { %v757_v46 = vmul.f32 %v2207_v12, %v2722_v28  ;;  %v758_v13 = vmul.f32 %v2207_v12, %v2723_v17  ;;  %1208 = vst.msk [vmem:[%s2246_s4 + $0x30] sm:$0xf] %vm1195_vm4, %v1143_v15  ;;  %vm953_vm3 = vcmp.ge.f32.partialorder %v889_v48, 0.0  ;;  %v1017_v33 = vmul.f32 0.01, %v889_v48 }
  0xe2   : > { %v823_v20 = vmul.f32 %v2197_v54, %v755_v42  ;;  %v824_v19 = vmul.f32 %v2197_v54, %v756_v10  ;;  %vm954_vm5 = vcmp.ge.f32.partialorder %v890_v37, 0.0  ;;  %v1080_v1 = vsel %vm952_vm2, %v888_v34, %v1016_v26 }
  0xe3   : > { %v825_v40 = vmul.f32 %v2197_v54, %v757_v46  ;;  %v1018_v41 = vmul.f32 0.01, %v890_v37  ;;  %v1144_v55 = vpack.c.bf16 %v1080_v1, %v1080_v1  ;;  %v1081_v18 = vsel %vm953_vm3, %v889_v48, %v1017_v33 }
  0xe4   : > { %v891_v50 = vadd.f32 %v2216_v53, %v823_v20  ;;  %v892_v51 = vadd.f32 %v2216_v53, %v824_v19  ;;  %v826_v31 = vmul.f32 %v2197_v54, %v758_v13  ;;  %v1145_v61 = vpack.c.bf16 %v1081_v18, %v1081_v18 }
  0xe5   : > { %v893_v59 = vadd.f32 %v2216_v53, %v825_v40  ;;  %v1082_v39 = vsel %vm954_vm5, %v890_v37, %v1018_v41  ;;  %1209 = vst.msk [vmem:[%s2246_s4 + $0x34] sm:$0xf] %vm1195_vm4, %v1144_v55  ;;  %v2724_v44 = vsub.f32 %v1810_v49, %v2163_v47  ;;  %v2725_v30 = vsub.f32 %v1818_v57, %v2163_v47 }
  0xe6   : > { %vm955_vm6 = vcmp.ge.f32.partialorder %v891_v50, 0.0  ;;  %v1019_v38 = vmul.f32 0.01, %v891_v50  ;;  %v1146_v9 = vpack.c.bf16 %v1082_v39, %v1082_v39  ;;  %vm956_vm7 = vcmp.ge.f32.partialorder %v892_v51, 0.0  ;;  %1210 = vst.msk [vmem:[%s2246_s4 + $0x38] sm:$0xf] %vm1195_vm4, %v1145_v61 }
  0xe7   : > { %v1020_v2 = vmul.f32 0.01, %v892_v51  ;;  %vm957_vm8 = vcmp.ge.f32.partialorder %v893_v59, 0.0  ;;  %v1021_v63 = vmul.f32 0.01, %v893_v59  ;;  %v894_v58 = vadd.f32 %v2216_v53, %v826_v31 }
  0xe8   : > { %v1083_v8 = vsel %vm955_vm6, %v891_v50, %v1019_v38  ;;  %v759_v25 = vmul.f32 %v2207_v12, %v2724_v44  ;;  %1211 = vst.msk [vmem:[%s2246_s4 + $0x3c] sm:$0xf] %vm1195_vm4, %v1146_v9  ;;  %v760_v4 = vmul.f32 %v2207_v12, %v2725_v30  ;;  %v686_v16 = vsub.f32 %v1825_v0, %v2163_v47 }
  0xe9   : > { %v1147_v23 = vpack.c.bf16 %v1083_v8, %v1083_v8  ;;  %v1084_v3 = vsel %vm956_vm7, %v892_v51, %v1020_v2  ;;  %v1085_v34 = vsel %vm957_vm8, %v893_v59, %v1021_v63  ;;  %vm958_vm9 = vcmp.ge.f32.partialorder %v894_v58, 0.0 }
  0xea   : > { %v1148_v15 = vpack.c.bf16 %v1084_v3, %v1084_v3  ;;  %v1022_v49 = vmul.f32 0.01, %v894_v58  ;;  %v1149_v6 = vpack.c.bf16 %v1085_v34, %v1085_v34  ;;  %v827_v42 = vmul.f32 %v2197_v54, %v759_v25 }
  0xeb   : > { %1212 = vst.msk [vmem:[%s2246_s4 + $0x40] sm:$0xf] %vm1195_vm4, %v1147_v23  ;;  %v828_v7 = vmul.f32 %v2197_v54, %v760_v4  ;;  %v761_v57 = vmul.f32 %v2207_v12, %v686_v16  ;;  %v687_v0 = vsub.f32 %v1833_v14, %v2163_v47  ;;  %v688_v48 = vsub.f32 %v1840_v24, %v2163_v47 }
  0xec   : > { %1213 = vst.msk [vmem:[%s2246_s4 + $0x44] sm:$0xf] %vm1195_vm4, %v1148_v15  ;;  %v1086_v10 = vsel %vm958_vm9, %v894_v58, %v1022_v49  ;;  %v689_v37 = vsub.f32 %v1848_v35, %v2163_v47  ;;  %v895_v46 = vadd.f32 %v2216_v53, %v827_v42  ;;  %v690_v24 = vsub.f32 %v1855_v43, %v2163_v47 }
  0xed   : > { %1214 = vst.msk [vmem:[%s2246_s4 + $0x48] sm:$0xf] %vm1195_vm4, %v1149_v6  ;;  %v1150_v28 = vpack.c.bf16 %v1086_v10, %v1086_v10  ;;  %v896_v17 = vadd.f32 %v2216_v53, %v828_v7  ;;  %v829_v13 = vmul.f32 %v2197_v54, %v761_v57  ;;  %v762_v26 = vmul.f32 %v2207_v12, %v687_v0 }
  0xee   : > { %v763_v20 = vmul.f32 %v2207_v12, %v688_v48  ;;  %v764_v14 = vmul.f32 %v2207_v12, %v689_v37  ;;  %vm959_vm10 = vcmp.ge.f32.partialorder %v895_v46, 0.0  ;;  %v1023_v35 = vmul.f32 0.01, %v895_v46 }
  0xef   : > { %1215 = vst.msk [vmem:[%s2246_s4 + $0x4c] sm:$0xf] %vm1195_vm4, %v1150_v28  ;;  %vm960_vm11 = vcmp.ge.f32.partialorder %v896_v17, 0.0  ;;  %v897_v19 = vadd.f32 %v2216_v53, %v829_v13  ;;  %v1024_v33 = vmul.f32 0.01, %v896_v17  ;;  %v830_v40 = vmul.f32 %v2197_v54, %v762_v26 }
  0xf0   : > { %v831_v1 = vmul.f32 %v2197_v54, %v763_v20  ;;  %v832_v41 = vmul.f32 %v2197_v54, %v764_v14  ;;  %v1087_v50 = vsel %vm959_vm10, %v895_v46, %v1023_v35  ;;  %v765_v43 = vmul.f32 %v2207_v12, %v690_v24 }
  0xf1   : > { %vm961_vm12 = vcmp.ge.f32.partialorder %v897_v19, 0.0  ;;  %v1025_v51 = vmul.f32 0.01, %v897_v19  ;;  %v1151_v55 = vpack.c.bf16 %v1087_v50, %v1087_v50  ;;  %v1088_v18 = vsel %vm960_vm11, %v896_v17, %v1024_v33 }
  0xf2   : > { %v898_v59 = vadd.f32 %v2216_v53, %v830_v40  ;;  %v899_v31 = vadd.f32 %v2216_v53, %v831_v1  ;;  %v1152_v61 = vpack.c.bf16 %v1088_v18, %v1088_v18  ;;  %v900_v38 = vadd.f32 %v2216_v53, %v832_v41 }
  0xf3   : > { %v1089_v39 = vsel %vm961_vm12, %v897_v19, %v1025_v51  ;;  %v833_v9 = vmul.f32 %v2197_v54, %v765_v43  ;;  %1216 = vst.msk [vmem:[%s2246_s4 + $0x50] sm:$0xf] %vm1195_vm4, %v1151_v55  ;;  %v691_v44 = vsub.f32 %v1863_v52, %v2163_v47  ;;  %v692_v3 = vsub.f32 %v1870_v60, %v2163_v47 }
  0xf4   : > { %v1153_v2 = vpack.c.bf16 %v1089_v39, %v1089_v39  ;;  %vm962_vm13 = vcmp.ge.f32.partialorder %v898_v59, 0.0  ;;  %v1026_v8 = vmul.f32 0.01, %v898_v59  ;;  %vm963_vm14 = vcmp.ge.f32.partialorder %v899_v31, 0.0  ;;  %1217 = vst.msk [vmem:[%s2246_s4 + $0x54] sm:$0xf] %vm1195_vm4, %v1152_v61 }
  0xf5   : > { %v1027_v63 = vmul.f32 0.01, %v899_v31  ;;  %vm964_vm15 = vcmp.ge.f32.partialorder %v900_v38, 0.0  ;;  %v901_v58 = vadd.f32 %v2216_v53, %v833_v9  ;;  %v1028_v23 = vmul.f32 0.01, %v900_v38 }
  0xf6   : > { %1218 = vst.msk [vmem:[%s2246_s4 + $0x58] sm:$0xf] %vm1195_vm4, %v1153_v2  ;;  %v1090_v25 = vsel %vm962_vm13, %v898_v59, %v1026_v8  ;;  %v693_v30 = vsub.f32 %v1878_v11, %v2163_v47  ;;  %v766_v52 = vmul.f32 %v2207_v12, %v691_v44  ;;  %v767_v6 = vmul.f32 %v2207_v12, %v692_v3 }
  0xf7   : > { %v1154_v4 = vpack.c.bf16 %v1090_v25, %v1090_v25  ;;  %v1091_v16 = vsel %vm963_vm14, %v899_v31, %v1027_v63  ;;  %vm965_vm0 = vcmp.ge.f32.partialorder %v901_v58, 0.0  ;;  %v1029_v15 = vmul.f32 0.01, %v901_v58 }
  0xf8   : > { %v1155_v34 = vpack.c.bf16 %v1091_v16, %v1091_v16  ;;  %v1092_v49 = vsel %vm964_vm15, %v900_v38, %v1028_v23  ;;  %v768_v60 = vmul.f32 %v2207_v12, %v693_v30  ;;  %v694_v11 = vsub.f32 %v1885_v22, %v2163_v47 }
  0xf9   : > { %1219 = vst.msk [vmem:[%s2246_s4 + $0x5c] sm:$0xf] %vm1195_vm4, %v1154_v4  ;;  %v1156_v42 = vpack.c.bf16 %v1092_v49, %v1092_v49  ;;  %v1093_v7 = vsel %vm965_vm0, %v901_v58, %v1029_v15  ;;  %v834_v10 = vmul.f32 %v2197_v54, %v766_v52  ;;  %v835_v0 = vmul.f32 %v2197_v54, %v767_v6  ;;  %v2726_v15 = vld [vmem:[#allocation8_spill] sm:$0xff] }
  0xfa   : > { %1220 = vst.msk [vmem:[%s2246_s4 + $0x60] sm:$0xf] %vm1195_vm4, %v1155_v34  ;;  %v1157_v57 = vpack.c.bf16 %v1093_v7, %v1093_v7  ;;  %v695_v48 = vsub.f32 %v1893_v36, %v2163_v47  ;;  %v836_v37 = vmul.f32 %v2197_v54, %v768_v60  ;;  %v769_v28 = vmul.f32 %v2207_v12, %v694_v11 }
  0xfb   : > { %1221 = vst.msk [vmem:[%s2246_s4 + $0x64] sm:$0xf] %vm1195_vm4, %v1156_v42  ;;  %v696_v46 = vsub.f32 %v1900_v45, %v2163_v47  ;;  %v697_v22 = vsub.f32 %v1908_v56, %v2163_v47  ;;  %v902_v17 = vadd.f32 %v2216_v53, %v834_v10  ;;  %v903_v13 = vadd.f32 %v2216_v53, %v835_v0  ;;  %v2727_v0 = vld [vmem:[#allocation9_spill] sm:$0xff] }
  0xfc   : > { %1222 = vst.msk [vmem:[%s2246_s4 + $0x68] sm:$0xf] %vm1195_vm4, %v1157_v57  ;;  %v770_v36 = vmul.f32 %v2207_v12, %v695_v48  ;;  %v698_v26 = vsub.f32 %v1915_v5, %v2163_v47  ;;  %v904_v20 = vadd.f32 %v2216_v53, %v836_v37  ;;  %v837_v14 = vmul.f32 %v2197_v54, %v769_v28  ;;  %v2728_v37 = vld [vmem:[#allocation10_spill] sm:$0xff] }
  0xfd   : > { %v771_v45 = vmul.f32 %v2207_v12, %v696_v46  ;;  %v772_v24 = vmul.f32 %v2207_v12, %v697_v22  ;;  %vm966_vm1 = vcmp.ge.f32.partialorder %v902_v17, 0.0  ;;  %v1030_v56 = vmul.f32 0.01, %v902_v17 }
  0xfe   : > { %vm967_vm2 = vcmp.ge.f32.partialorder %v903_v13, 0.0  ;;  %v1031_v35 = vmul.f32 0.01, %v903_v13  ;;  %vm968_vm3 = vcmp.ge.f32.partialorder %v904_v20, 0.0  ;;  %v1032_v19 = vmul.f32 0.01, %v904_v20 }
  0xff   : > { %v905_v33 = vadd.f32 %v2216_v53, %v837_v14  ;;  %v838_v40 = vmul.f32 %v2197_v54, %v770_v36  ;;  %v1094_v5 = vsel %vm966_vm1, %v902_v17, %v1030_v56  ;;  %v839_v41 = vmul.f32 %v2197_v54, %v771_v45  ;;  %v2729_v17 = vld [vmem:[#allocation11_spill] sm:$0xff]  ;;  %v2730_v36 = vld [vmem:[#allocation12_spill] sm:$0xff] }
 0x100   : > { %v1095_v1 = vsel %vm967_vm2, %v903_v13, %v1031_v35  ;;  %v840_v50 = vmul.f32 %v2197_v54, %v772_v24  ;;  %v1158_v51 = vpack.c.bf16 %v1094_v5, %v1094_v5  ;;  %v1096_v55 = vsel %vm968_vm3, %v904_v20, %v1032_v19  ;;  %v2731_v5 = vld [vmem:[#allocation13_spill] sm:$0xff] }
 0x101   : > { %v1159_v43 = vpack.c.bf16 %v1095_v1, %v1095_v1  ;;  %vm969_vm5 = vcmp.ge.f32.partialorder %v905_v33, 0.0  ;;  %v1160_v18 = vpack.c.bf16 %v1096_v55, %v1096_v55  ;;  %v1033_v59 = vmul.f32 0.01, %v905_v33 }
 0x102   : > { %v906_v31 = vadd.f32 %v2216_v53, %v838_v40  ;;  %v907_v61 = vadd.f32 %v2216_v53, %v839_v41  ;;  %1223 = vst.msk [vmem:[%s2246_s4 + $0x6c] sm:$0xf] %vm1195_vm4, %v1158_v51  ;;  %v908_v39 = vadd.f32 %v2216_v53, %v840_v50  ;;  %v773_v38 = vmul.f32 %v2207_v12, %v698_v26 }
 0x103   : > { %v699_v9 = vsub.f32 %v1923_v21, %v2163_v47  ;;  %v700_v2 = vsub.f32 %v1930_v32, %v2163_v47  ;;  %1224 = vst.msk [vmem:[%s2246_s4 + $0x70] sm:$0xf] %vm1195_vm4, %v1159_v43  ;;  %v1097_v8 = vsel %vm969_vm5, %v905_v33, %v1033_v59  ;;  %v701_v34 = vsub.f32 %v2726_v15, %v2163_v47 }
 0x104   : > { %vm970_vm6 = vcmp.ge.f32.partialorder %v906_v31, 0.0  ;;  %v1034_v63 = vmul.f32 0.01, %v906_v31  ;;  %vm971_vm7 = vcmp.ge.f32.partialorder %v907_v61, 0.0  ;;  %1225 = vst.msk [vmem:[%s2246_s4 + $0x74] sm:$0xf] %vm1195_vm4, %v1160_v18  ;;  %v1161_v58 = vpack.c.bf16 %v1097_v8, %v1097_v8 }
 0x105   : > { %v1035_v44 = vmul.f32 0.01, %v907_v61  ;;  %vm972_vm8 = vcmp.ge.f32.partialorder %v908_v39, 0.0  ;;  %v841_v25 = vmul.f32 %v2197_v54, %v773_v38  ;;  %v1036_v21 = vmul.f32 0.01, %v908_v39  ;;  %v2732_v38 = vld [vmem:[#allocation14_spill] sm:$0xff] }
 0x106   : > { %v1098_v23 = vsel %vm970_vm6, %v906_v31, %v1034_v63  ;;  %v774_v3 = vmul.f32 %v2207_v12, %v699_v9  ;;  %v775_v32 = vmul.f32 %v2207_v12, %v700_v2  ;;  %1226 = vst.msk [vmem:[%s2246_s4 + $0x78] sm:$0xf] %vm1195_vm4, %v1161_v58  ;;  %v776_v11 = vmul.f32 %v2207_v12, %v701_v34 }
 0x107   : > { %v1162_v30 = vpack.c.bf16 %v1098_v23, %v1098_v23  ;;  %v1099_v4 = vsel %vm971_vm7, %v907_v61, %v1035_v44  ;;  %v909_v16 = vadd.f32 %v2216_v53, %v841_v25  ;;  %v1100_v52 = vsel %vm972_vm8, %v908_v39, %v1036_v21  ;;  %v2733_v21 = vld [vmem:[#allocation15_spill] sm:$0xff] }
 0x108   : > { %v1163_v49 = vpack.c.bf16 %v1099_v4, %v1099_v4  ;;  %v842_v6 = vmul.f32 %v2197_v54, %v774_v3  ;;  %v843_v42 = vmul.f32 %v2197_v54, %v775_v32  ;;  %v1164_v7 = vpack.c.bf16 %v1100_v52, %v1100_v52 }
 0x109   : > { %1227 = vst.msk [vmem:[%s2246_s4 + $0x7c] sm:$0xf] %vm1195_vm4, %v1162_v30  ;;  %vm973_vm9 = vcmp.ge.f32.partialorder %v909_v16, 0.0  ;;  %v1037_v60 = vmul.f32 0.01, %v909_v16  ;;  %v702_v48 = vsub.f32 %v2727_v0, %v2163_v47  ;;  %v703_v28 = vsub.f32 %v2728_v37, %v2163_v47  ;;  %v2734_v30 = vld [vmem:[#allocation16_spill] sm:$0xff] }
 0x10a   : > { %1228 = vst.msk [vmem:[%s2246_s4 + $0x80] sm:$0xf] %vm1195_vm4, %v1163_v49  ;;  %v910_v57 = vadd.f32 %v2216_v53, %v842_v6  ;;  %v911_v10 = vadd.f32 %v2216_v53, %v843_v42  ;;  %v844_v22 = vmul.f32 %v2197_v54, %v776_v11  ;;  %v704_v13 = vsub.f32 %v2729_v17, %v2163_v47  ;;  %v2735_v17 = vld [vmem:[#allocation17_spill] sm:$0xff] }
 0x10b   : > { %1229 = vst.msk [vmem:[%s2246_s4 + $0x84] sm:$0xf] %vm1195_vm4, %v1164_v7  ;;  %v1101_v46 = vsel %vm973_vm9, %v909_v16, %v1037_v60  ;;  %v705_v26 = vsub.f32 %v2730_v36, %v2163_v47  ;;  %v777_v56 = vmul.f32 %v2207_v12, %v702_v48  ;;  %v778_v35 = vmul.f32 %v2207_v12, %v703_v28  ;;  %v2736_v36 = vld [vmem:[#allocation18_spill] sm:$0xff] }
 0x10c   : > { %v1165_v20 = vpack.c.bf16 %v1101_v46, %v1101_v46  ;;  %vm974_vm10 = vcmp.ge.f32.partialorder %v910_v57, 0.0  ;;  %v1038_v14 = vmul.f32 0.01, %v910_v57  ;;  %vm975_vm11 = vcmp.ge.f32.partialorder %v911_v10, 0.0 }
 0x10d   : > { %v1039_v45 = vmul.f32 0.01, %v911_v10  ;;  %v912_v24 = vadd.f32 %v2216_v53, %v844_v22  ;;  %v779_v33 = vmul.f32 %v2207_v12, %v704_v13  ;;  %v780_v40 = vmul.f32 %v2207_v12, %v705_v26 }
 0x10e   : > { %1230 = vst.msk [vmem:[%s2246_s4 + $0x88] sm:$0xf] %vm1195_vm4, %v1165_v20  ;;  %v1102_v19 = vsel %vm974_vm10, %v910_v57, %v1038_v14  ;;  %v706_v1 = vsub.f32 %v2731_v5, %v2163_v47  ;;  %v845_v55 = vmul.f32 %v2197_v54, %v777_v56  ;;  %v846_v18 = vmul.f32 %v2197_v54, %v778_v35  ;;  %v2737_v20 = vld [vmem:[#allocation19_spill] sm:$0xff] }
 0x10f   : > { %v1166_v41 = vpack.c.bf16 %v1102_v19, %v1102_v19  ;;  %v1103_v50 = vsel %vm975_vm11, %v911_v10, %v1039_v45  ;;  %vm976_vm12 = vcmp.ge.f32.partialorder %v912_v24, 0.0  ;;  %v1040_v51 = vmul.f32 0.01, %v912_v24 }
 0x110   : > { %v1167_v43 = vpack.c.bf16 %v1103_v50, %v1103_v50  ;;  %v847_v59 = vmul.f32 %v2197_v54, %v779_v33  ;;  %v848_v61 = vmul.f32 %v2197_v54, %v780_v40  ;;  %v781_v39 = vmul.f32 %v2207_v12, %v706_v1 }
 0x111   : > { %1231 = vst.msk [vmem:[%s2246_s4 + $0x8c] sm:$0xf] %vm1195_vm4, %v1166_v41  ;;  %v1104_v31 = vsel %vm976_vm12, %v912_v24, %v1040_v51  ;;  %v707_v9 = vsub.f32 %v2732_v38, %v2163_v47  ;;  %v913_v8 = vadd.f32 %v2216_v53, %v845_v55  ;;  %v914_v63 = vadd.f32 %v2216_v53, %v846_v18 }
 0x112   : > { %1232 = vst.msk [vmem:[%s2246_s4 + $0x90] sm:$0xf] %vm1195_vm4, %v1167_v43  ;;  %v1168_v2 = vpack.c.bf16 %v1104_v31, %v1104_v31  ;;  %v915_v58 = vadd.f32 %v2216_v53, %v847_v59  ;;  %v916_v44 = vadd.f32 %v2216_v53, %v848_v61  ;;  %v849_v25 = vmul.f32 %v2197_v54, %v781_v39  ;;  %v2738_v31 = vld [vmem:[#allocation20_spill] sm:$0xff]  ;;  %v2739_v39 = vld [vmem:[#allocation21_spill] sm:$0xff] }
 0x113   : > { %v782_v23 = vmul.f32 %v2207_v12, %v707_v9  ;;  %v708_v3 = vsub.f32 %v2733_v21, %v2163_v47  ;;  %vm977_vm13 = vcmp.ge.f32.partialorder %v913_v8, 0.0  ;;  %v1041_v32 = vmul.f32 0.01, %v913_v8 }
 0x114   : > { %1233 = vst.msk [vmem:[%s2246_s4 + $0x94] sm:$0xf] %vm1195_vm4, %v1168_v2  ;;  %vm978_vm14 = vcmp.ge.f32.partialorder %v914_v63, 0.0  ;;  %v709_v4 = vsub.f32 %v2734_v30, %v2163_v47  ;;  %v1042_v16 = vmul.f32 0.01, %v914_v63  ;;  %vm979_vm15 = vcmp.ge.f32.partialorder %v915_v58, 0.0 }
 0x115   : > { %v1043_v15 = vmul.f32 0.01, %v915_v58  ;;  %vm980_vm0 = vcmp.ge.f32.partialorder %v916_v44, 0.0  ;;  %v1105_v34 = vsel %vm977_vm13, %v913_v8, %v1041_v32  ;;  %v1044_v49 = vmul.f32 0.01, %v916_v44 }
 0x116   : > { %v917_v52 = vadd.f32 %v2216_v53, %v849_v25  ;;  %v850_v6 = vmul.f32 %v2197_v54, %v782_v23  ;;  %v1169_v42 = vpack.c.bf16 %v1105_v34, %v1105_v34  ;;  %v1106_v7 = vsel %vm978_vm14, %v914_v63, %v1042_v16 }
 0x117   : > { %v1107_v60 = vsel %vm979_vm15, %v915_v58, %v1043_v15  ;;  %v783_v11 = vmul.f32 %v2207_v12, %v708_v3  ;;  %v1170_v57 = vpack.c.bf16 %v1106_v7, %v1106_v7  ;;  %v1108_v0 = vsel %vm980_vm0, %v916_v44, %v1044_v49  ;;  %v2740_v3 = vld [vmem:[#allocation22_spill] sm:$0xff]  ;;  %v2741_v7 = vld [vmem:[#allocation23_spill] sm:$0xff] }
 0x118   : > { %v1171_v10 = vpack.c.bf16 %v1107_v60, %v1107_v60  ;;  %vm981_vm1 = vcmp.ge.f32.partialorder %v917_v52, 0.0  ;;  %1234 = vst.msk [vmem:[%s2246_s4 + $0x98] sm:$0xf] %vm1195_vm4, %v1169_v42  ;;  %v1172_v48 = vpack.c.bf16 %v1108_v0, %v1108_v0  ;;  %v1045_v37 = vmul.f32 0.01, %v917_v52 }
 0x119   : > { %v918_v28 = vadd.f32 %v2216_v53, %v850_v6  ;;  %v851_v46 = vmul.f32 %v2197_v54, %v783_v11  ;;  %1235 = vst.msk [vmem:[%s2246_s4 + $0x9c] sm:$0xf] %vm1195_vm4, %v1170_v57  ;;  %v784_v22 = vmul.f32 %v2207_v12, %v709_v4  ;;  %v710_v13 = vsub.f32 %v2735_v17, %v2163_v47 }
 0x11a   : > { %v711_v26 = vsub.f32 %v2736_v36, %v2163_v47  ;;  %v712_v14 = vsub.f32 %v2737_v20, %v2163_v47  ;;  %1236 = vst.msk [vmem:[%s2246_s4 + $0xa0] sm:$0xf] %vm1195_vm4, %v1171_v10  ;;  %v1109_v45 = vsel %vm981_vm1, %v917_v52, %v1045_v37  ;;  %v713_v61 = vsub.f32 %v2738_v31, %v2163_v47 }
 0x11b   : > { %vm982_vm2 = vcmp.ge.f32.partialorder %v918_v28, 0.0  ;;  %v1046_v24 = vmul.f32 0.01, %v918_v28  ;;  %v919_v56 = vadd.f32 %v2216_v53, %v851_v46  ;;  %1237 = vst.msk [vmem:[%s2246_s4 + $0xa4] sm:$0xf] %vm1195_vm4, %v1172_v48  ;;  %v1173_v35 = vpack.c.bf16 %v1109_v45, %v1109_v45  ;;  %v2742_v46 = vld [vmem:[#allocation24_spill] sm:$0xff] }
 0x11c   : > { %v852_v19 = vmul.f32 %v2197_v54, %v784_v22  ;;  %v785_v33 = vmul.f32 %v2207_v12, %v710_v13  ;;  %v786_v40 = vmul.f32 %v2207_v12, %v711_v26  ;;  %v787_v41 = vmul.f32 %v2207_v12, %v712_v14  ;;  %v2743_v13 = vld [vmem:[#allocation25_spill] sm:$0xff] }
 0x11d   : > { %v1110_v5 = vsel %vm982_vm2, %v918_v28, %v1046_v24  ;;  %vm983_vm3 = vcmp.ge.f32.partialorder %v919_v56, 0.0  ;;  %v1047_v1 = vmul.f32 0.01, %v919_v56  ;;  %1238 = vst.msk [vmem:[%s2246_s4 + $0xa8] sm:$0xf] %vm1195_vm4, %v1173_v35  ;;  %v714_v38 = vsub.f32 %v2739_v39, %v2163_v47 }
 0x11e   : > { %v1174_v50 = vpack.c.bf16 %v1110_v5, %v1110_v5  ;;  %v920_v51 = vadd.f32 %v2216_v53, %v852_v19  ;;  %v853_v43 = vmul.f32 %v2197_v54, %v785_v33  ;;  %v854_v55 = vmul.f32 %v2197_v54, %v786_v40 }
 0x11f   : > { %v1111_v18 = vsel %vm983_vm3, %v919_v56, %v1047_v1  ;;  %v855_v59 = vmul.f32 %v2197_v54, %v787_v41  ;;  %v788_v44 = vmul.f32 %v2207_v12, %v713_v61  ;;  %v789_v25 = vmul.f32 %v2207_v12, %v714_v38 }
 0x120   : > { %1239 = vst.msk [vmem:[%s2246_s4 + $0xac] sm:$0xf] %vm1195_vm4, %v1174_v50  ;;  %v1175_v9 = vpack.c.bf16 %v1111_v18, %v1111_v18  ;;  %vm984_vm5 = vcmp.ge.f32.partialorder %v920_v51, 0.0  ;;  %v1048_v2 = vmul.f32 0.01, %v920_v51  ;;  %v921_v8 = vadd.f32 %v2216_v53, %v853_v43 }
 0x121   : > { %v922_v63 = vadd.f32 %v2216_v53, %v854_v55  ;;  %v923_v58 = vadd.f32 %v2216_v53, %v855_v59  ;;  %v715_v32 = vsub.f32 %v2740_v3, %v2163_v47  ;;  %v856_v34 = vmul.f32 %v2197_v54, %v788_v44 }
 0x122   : > { %1240 = vst.msk [vmem:[%s2246_s4 + $0xb0] sm:$0xf] %vm1195_vm4, %v1175_v9  ;;  %v1112_v23 = vsel %vm984_vm5, %v920_v51, %v1048_v2  ;;  %vm985_vm6 = vcmp.ge.f32.partialorder %v921_v8, 0.0  ;;  %v1049_v21 = vmul.f32 0.01, %v921_v8  ;;  %v857_v49 = vmul.f32 %v2197_v54, %v789_v25 }
 0x123   : > { %v1176_v30 = vpack.c.bf16 %v1112_v23, %v1112_v23  ;;  %vm986_vm7 = vcmp.ge.f32.partialorder %v922_v63, 0.0  ;;  %v1050_v4 = vmul.f32 0.01, %v922_v63  ;;  %vm987_vm8 = vcmp.ge.f32.partialorder %v923_v58, 0.0 }
 0x124   : > { %v1113_v16 = vsel %vm985_vm6, %v921_v8, %v1049_v21  ;;  %v1051_v15 = vmul.f32 0.01, %v923_v58  ;;  %v790_v42 = vmul.f32 %v2207_v12, %v715_v32  ;;  %v716_v60 = vsub.f32 %v2741_v7, %v2163_v47 }
 0x125   : > { %1241 = vst.msk [vmem:[%s2246_s4 + $0xb4] sm:$0xf] %vm1195_vm4, %v1176_v30  ;;  %v1177_v52 = vpack.c.bf16 %v1113_v16, %v1113_v16  ;;  %v1114_v6 = vsel %vm986_vm7, %v922_v63, %v1050_v4  ;;  %v924_v10 = vadd.f32 %v2216_v53, %v856_v34  ;;  %v925_v0 = vadd.f32 %v2216_v53, %v857_v49 }
 0x126   : > { %v1178_v11 = vpack.c.bf16 %v1114_v6, %v1114_v6  ;;  %v1115_v57 = vsel %vm987_vm8, %v923_v58, %v1051_v15  ;;  %v858_v37 = vmul.f32 %v2197_v54, %v790_v42  ;;  %v791_v28 = vmul.f32 %v2207_v12, %v716_v60  ;;  %v2745_v42 = vld [vmem:[#allocation27_spill] sm:$0xff]  ;;  %v2746_v60 = vld [vmem:[#allocation28_spill] sm:$0xff] }
 0x127   : > { %1242 = vst.msk [vmem:[%s2246_s4 + $0xb8] sm:$0xf] %vm1195_vm4, %v1177_v52  ;;  %v1179_v48 = vpack.c.bf16 %v1115_v57, %v1115_v57  ;;  %v717_v22 = vsub.f32 %v2742_v46, %v2163_v47  ;;  %vm988_vm9 = vcmp.ge.f32.partialorder %v924_v10, 0.0  ;;  %v1052_v17 = vmul.f32 0.01, %v924_v10 }
 0x128   : > { %1243 = vst.msk [vmem:[%s2246_s4 + $0xbc] sm:$0xf] %vm1195_vm4, %v1178_v11  ;;  %vm989_vm10 = vcmp.ge.f32.partialorder %v925_v0, 0.0  ;;  %v718_v36 = vsub.f32 %v2743_v13, %v2163_v47  ;;  %v1053_v26 = vmul.f32 0.01, %v925_v0  ;;  %v926_v20 = vadd.f32 %v2216_v53, %v858_v37  ;;  %v2748_v13 = vld [vmem:[#allocation30_spill] sm:$0xff] }
 0x129   : > { %1244 = vst.msk [vmem:[%s2246_s4 + $0xc0] sm:$0xf] %vm1195_vm4, %v1179_v48  ;;  %v859_v14 = vmul.f32 %v2197_v54, %v791_v28  ;;  %v792_v45 = vmul.f32 %v2207_v12, %v717_v22  ;;  %v1116_v24 = vsel %vm988_vm9, %v924_v10, %v1052_v17  ;;  %v719_v35 = vsub.f32 %v2073_v27, %v2163_v47  ;;  %v2747_v22 = vld [vmem:[#allocation29_spill] sm:$0xff] }
 0x12a   : > { %v793_v56 = vmul.f32 %v2207_v12, %v718_v36  ;;  %v720_v19 = vsub.f32 %v2080_v29, %v2163_v47  ;;  %v1180_v33 = vpack.c.bf16 %v1116_v24, %v1116_v24  ;;  %v1117_v40 = vsel %vm989_vm10, %v925_v0, %v1053_v26  ;;  %v2744_v29 = vld [vmem:[#allocation26_spill] sm:$0xff]  ;;  %v2749_v26 = vld [vmem:[#allocation31_spill] sm:$0xff] }
 0x12b   : > { %vm990_vm11 = vcmp.ge.f32.partialorder %v926_v20, 0.0  ;;  %v1054_v5 = vmul.f32 0.01, %v926_v20  ;;  %v1181_v1 = vpack.c.bf16 %v1117_v40, %v1117_v40  ;;  %v927_v41 = vadd.f32 %v2216_v53, %v859_v14 }
 0x12c   : > { %v860_v50 = vmul.f32 %v2197_v54, %v792_v45  ;;  %v861_v51 = vmul.f32 %v2197_v54, %v793_v56  ;;  %1245 = vst.msk [vmem:[%s2246_s4 + $0xc4] sm:$0xf] %vm1195_vm4, %v1180_v33  ;;  %v794_v27 = vmul.f32 %v2207_v12, %v719_v35  ;;  %v795_v55 = vmul.f32 %v2207_v12, %v720_v19  ;;  %v1546_v45 = vld [vmem:[#allocation2] ss:$0 sm:$0xff] }
 0x12d   : > { %v1118_v43 = vsel %vm990_vm11, %v926_v20, %v1054_v5  ;;  %v721_v18 = vsub.f32 %v2744_v29, %v2163_v47  ;;  %1246 = vst.msk [vmem:[%s2246_s4 + $0xc8] sm:$0xf] %vm1195_vm4, %v1181_v1  ;;  %vm991_vm12 = vcmp.ge.f32.partialorder %v927_v41, 0.0  ;;  %v1055_v31 = vmul.f32 0.01, %v927_v41 }
 0x12e   : > { %v1182_v59 = vpack.c.bf16 %v1118_v43, %v1118_v43  ;;  %v928_v61 = vadd.f32 %v2216_v53, %v860_v50  ;;  %v929_v39 = vadd.f32 %v2216_v53, %v861_v51  ;;  %v862_v38 = vmul.f32 %v2197_v54, %v794_v27  ;;  %v1547_v5 = vld [vmem:[#allocation4] ss:$0 sm:$0xff] }
 0x12f   : > { %v863_v9 = vmul.f32 %v2197_v54, %v795_v55  ;;  %v796_v2 = vmul.f32 %v2207_v12, %v721_v18  ;;  %v1119_v8 = vsel %vm991_vm12, %v927_v41, %v1055_v31  ;;  %v722_v58 = vsub.f32 %v2095_v62, %v2163_v47 }
 0x130   : > { %1247 = vst.msk [vmem:[%s2246_s4 + $0xcc] sm:$0xf] %vm1195_vm4, %v1182_v59  ;;  %vm992_vm13 = vcmp.ge.f32.partialorder %v928_v61, 0.0  ;;  %v1056_v63 = vmul.f32 0.01, %v928_v61  ;;  %v1183_v44 = vpack.c.bf16 %v1119_v8, %v1119_v8  ;;  %vm993_vm14 = vcmp.ge.f32.partialorder %v929_v39, 0.0 }
 0x131   : > { %v1057_v25 = vmul.f32 0.01, %v929_v39  ;;  %v930_v23 = vadd.f32 %v2216_v53, %v862_v38  ;;  %v931_v3 = vadd.f32 %v2216_v53, %v863_v9  ;;  %v864_v32 = vmul.f32 %v2197_v54, %v796_v2 }
 0x132   : > { %v1120_v21 = vsel %vm992_vm13, %v928_v61, %v1056_v63  ;;  %v797_v30 = vmul.f32 %v2207_v12, %v722_v58  ;;  %1248 = vst.msk [vmem:[%s2246_s4 + $0xd0] sm:$0xf] %vm1195_vm4, %v1183_v44  ;;  %v723_v7 = vsub.f32 %v2745_v42, %v2163_v47  ;;  %v724_v11 = vsub.f32 %v2746_v60, %v2163_v47 }
 0x133   : > { %v1184_v4 = vpack.c.bf16 %v1120_v21, %v1120_v21  ;;  %v1121_v16 = vsel %vm993_vm14, %v929_v39, %v1057_v25  ;;  %vm994_vm15 = vcmp.ge.f32.partialorder %v930_v23, 0.0  ;;  %v1058_v62 = vmul.f32 0.01, %v930_v23 }
 0x134   : > { %v1185_v15 = vpack.c.bf16 %v1121_v16, %v1121_v16  ;;  %vm995_vm0 = vcmp.ge.f32.partialorder %v931_v3, 0.0  ;;  %v1059_v34 = vmul.f32 0.01, %v931_v3  ;;  %v932_v49 = vadd.f32 %v2216_v53, %v864_v32 }
 0x135   : > { %1249 = vst.msk [vmem:[%s2246_s4 + $0xd4] sm:$0xf] %vm1195_vm4, %v1184_v4  ;;  %v1122_v52 = vsel %vm994_vm15, %v930_v23, %v1058_v62  ;;  %v865_v6 = vmul.f32 %v2197_v54, %v797_v30  ;;  %v798_v28 = vmul.f32 %v2207_v12, %v723_v7  ;;  %v799_v54 = vmul.f32 %v2207_v12, %v724_v11 }
 0x136   : > { %1250 = vst.msk [vmem:[%s2246_s4 + $0xd8] sm:$0xf] %vm1195_vm4, %v1185_v15  ;;  %v1186_v57 = vpack.c.bf16 %v1122_v52, %v1122_v52  ;;  %v1123_v10 = vsel %vm995_vm0, %v931_v3, %v1059_v34  ;;  %vm996_vm1 = vcmp.ge.f32.partialorder %v932_v49, 0.0  ;;  %v1060_v0 = vmul.f32 0.01, %v932_v49 }
 0x137   : > { %v1187_v48 = vpack.c.bf16 %v1123_v10, %v1123_v10  ;;  %v933_v37 = vadd.f32 %v2216_v53, %v865_v6  ;;  %v725_v17 = vsub.f32 %v2747_v22, %v2163_v47  ;;  %v726_v36 = vsub.f32 %v2748_v13, %v2163_v47 }
 0x138   : > { %1251 = vst.msk [vmem:[%s2246_s4 + $0xdc] sm:$0xf] %vm1195_vm4, %v1186_v57  ;;  %v1124_v46 = vsel %vm996_vm1, %v932_v49, %v1060_v0  ;;  %v727_v20 = vsub.f32 %v2749_v26, %v2163_v47  ;;  %v866_v24 = vmul.f32 %v1546_v45, %v798_v28  ;;  %v867_v56 = vmul.f32 %v1546_v45, %v799_v54 }
 0x139   : > { %1252 = vst.msk [vmem:[%s2246_s4 + $0xe0] sm:$0xf] %vm1195_vm4, %v1187_v48  ;;  %v1188_v53 = vpack.c.bf16 %v1124_v46, %v1124_v46  ;;  %vm997_vm2 = vcmp.ge.f32.partialorder %v933_v37, 0.0  ;;  %v1061_v14 = vmul.f32 0.01, %v933_v37  ;;  %v800_v35 = vmul.f32 %v2207_v12, %v725_v17 }
 0x13a   : > { %v801_v19 = vmul.f32 %v2207_v12, %v726_v36  ;;  %v802_v33 = vmul.f32 %v2207_v12, %v727_v20  ;;  %v934_v47 = vadd.f32 %v1547_v5, %v866_v24  ;;  %v935_v41 = vadd.f32 %v1547_v5, %v867_v56 }
 0x13b   : > { %1253 = vst.msk [vmem:[%s2246_s4 + $0xe4] sm:$0xf] %vm1195_vm4, %v1188_v53  ;;  %v1125_v40 = vsel %vm997_vm2, %v933_v37, %v1061_v14  ;;  %v868_v50 = vmul.f32 %v1546_v45, %v800_v35 }
 0x13c   : > { %v1189_v1 = vpack.c.bf16 %v1125_v40, %v1125_v40  ;;  %v869_v51 = vmul.f32 %v1546_v45, %v801_v19  ;;  %vm998_vm3 = vcmp.ge.f32.partialorder %v934_v47, 0.0  ;;  %v1062_v43 = vmul.f32 0.01, %v934_v47 }
 0x13d   : > { %v870_v27 = vmul.f32 %v1546_v45, %v802_v33  ;;  %vm999_vm5 = vcmp.ge.f32.partialorder %v935_v41, 0.0  ;;  %v1063_v55 = vmul.f32 0.01, %v935_v41  ;;  %v936_v29 = vadd.f32 %v1547_v5, %v868_v50 }
 0x13e   : > { %1254 = vst.msk [vmem:[%s2246_s4 + $0xe8] sm:$0xf] %vm1195_vm4, %v1189_v1  ;;  %v937_v12 = vadd.f32 %v1547_v5, %v869_v51  ;;  %v1126_v18 = vsel %vm998_vm3, %v934_v47, %v1062_v43 }
 0x13f   : > { %v938_v59 = vadd.f32 %v1547_v5, %v870_v27  ;;  %v1190_v31 = vpack.c.bf16 %v1126_v18, %v1126_v18  ;;  %v1127_v61 = vsel %vm999_vm5, %v935_v41, %v1063_v55  ;;  %vm1000_vm6 = vcmp.ge.f32.partialorder %v936_v29, 0.0 }
 0x140   : > { %v1064_v39 = vmul.f32 0.01, %v936_v29  ;;  %v1191_v38 = vpack.c.bf16 %v1127_v61, %v1127_v61  ;;  %vm1001_vm7 = vcmp.ge.f32.partialorder %v937_v12, 0.0  ;;  %v1065_v9 = vmul.f32 0.01, %v937_v12 }
 0x141   : > { %vm1002_vm8 = vcmp.ge.f32.partialorder %v938_v59, 0.0  ;;  %1255 = vst.msk [vmem:[%s2246_s4 + $0xec] sm:$0xf] %vm1195_vm4, %v1190_v31  ;;  %v1066_v8 = vmul.f32 0.01, %v938_v59 }
 0x142   : > { %v1128_v2 = vsel %vm1000_vm6, %v936_v29, %v1064_v39  ;;  %1256 = vst.msk [vmem:[%s2246_s4 + $0xf0] sm:$0xf] %vm1195_vm4, %v1191_v38  ;;  %v1129_v58 = vsel %vm1001_vm7, %v937_v12, %v1065_v9 }
 0x143   : > { %v1192_v63 = vpack.c.bf16 %v1128_v2, %v1128_v2  ;;  %v1193_v44 = vpack.c.bf16 %v1129_v58, %v1129_v58  ;;  %v1130_v25 = vsel %vm1002_vm8, %v938_v59, %v1066_v8 }
 0x144   : > { %v1194_v23 = vpack.c.bf16 %v1130_v25, %v1130_v25 }
 0x145   : > { %1257 = vst.msk [vmem:[%s2246_s4 + $0xf4] sm:$0xf] %vm1195_vm4, %v1192_v63 }
 0x146   : > { %1258 = vst.msk [vmem:[%s2246_s4 + $0xf8] sm:$0xf] %vm1195_vm4, %v1193_v44 }
 0x147   : > { %1259 = vst.msk [vmem:[%s2246_s4 + $0xfc] sm:$0xf] %vm1195_vm4, %v1194_v23 }
 0x148 PF: > { %s15_s12 = sadd.s32 1, %s1622_s12  }
 0x149   : > { %p12_p7 = scmp.ge.s32.totalorder %s15_s12, 4  }
 0x14b   :  { %14 = sbr.rel (!%p12_p7) target bundleno = 2 (0x2), region = 71 }
 0x150   :  { %1281 = vsyncpa [#allocation3], 1 }
 0x151   :  { %1283 = vsyncpa [#allocation3 + $0x1], 1 }
 0x152   :  { %1284 = vsyncpa [#allocation5], 1 }

// kernel: neu2seq_forward.40
= control target key start
LH: loop header
LB: loop body
LE: loop exit
PB: predicated region body
PF: predicated region fallthrough
CT: control target
= control target key end

     0   :  { %s1396_s12 = smov 0   ;;  %s1610_s0 = inlined_call_operand.vmem [shape: bf16[1024,112], index: 0, kind: input, shape index: {}]   ;;  %s1611_s1 = inlined_call_operand.vmem [shape: bf16[112,128], index: 1, kind: input, shape index: {}]   ;;  %s1612_s2 = inlined_call_operand.vmem [shape: f32[1,128], index: 2, kind: input, shape index: {}]   ;;  %s1613_s3 = inlined_call_operand.vmem [shape: bf16[1024,128], index: 3, kind: output, shape index: {}]  }
   0x1 LB: > { %s909_s13 = sadd.s32 4294967295, %s1374_s12   ;;  %p913_p0 = scmp.ge.s32.totalorder %s1374_s12, 1  ;;  %s1374_s12 = sphi %s1396_s12, %s13_s12  }
   0x2   : > { %p138_p1 = scmp.lt.s32.totalorder %s1374_s12, 3 }
   0x4   : > { %p139_p2 = pnand %p913_p0, %p138_p1 }
   0x5   : > { %s914_s20 = sshll.u32 (!%p139_p2), %s909_s13, 6 }
   0x6   : > { %142 = sbr.rel (%p139_p2) target bundleno = 298 (0x12a), region = 32  ;;  %p163_p3 = scmp.lt.s32.totalorder (!%p139_p2), %s914_s20, 127 }
   0xb   : > { %v1146_v0 = vld [vmem:[%s1611_s1 + $0x30] sm:$0xff]  ;;  %v1145_v1 = vld [vmem:[%s1611_s1 + $0x28] sm:$0xff]  ;;  %v1144_v2 = vld [vmem:[%s1611_s1 + $0x20] sm:$0xff]  ;;  %s1615_s20 = smov (!%p163_p3, %s914_s20), 127  ;;  %vm459_vm0 = vcmask 916480  }
   0xc   : > { %557 = vmatpush.bf16.msra.mxu0 %v1146_v0  ;;  %1338 = vmatpush.bf16.msra.mxu1 %v1146_v0  ;;  %v1143_v3 = vld [vmem:[%s1611_s1 + $0x18] sm:$0xff]  ;;  %v1142_v4 = vld [vmem:[%s1611_s1 + $0x10] sm:$0xff]  ;;  %v1141_v5 = vld [vmem:[%s1611_s1 + $0x8] sm:$0xff]  ;;  %s915_s27 = sshll.u32 %s1615_s20, 2 }
   0xd   : > { %1339 = vmatpush.bf16.msra.mxu2 %v1146_v0  ;;  %1340 = vmatpush.bf16.msra.mxu3 %v1146_v0  ;;  %v1140_v6 = vld [vmem:[%s1611_s1] sm:$0xff]  ;;  %s1433_s5 = scalar_lea.vmem %s1610_s0, %s915_s27  ;;  %s1513_s10 = scalar_lea.vmem %s1613_s3, %s915_s27 }
   0xe   : > { %v1108_v7 = vld [vmem:[%s1433_s5] sm:$0xff]  ;;  %v1109_v11 = vld [vmem:[%s1433_s5 + $0x8] sm:$0xff]  ;;  %v1110_v15 = vld [vmem:[%s1433_s5 + $0x10] sm:$0xff] }
   0xf   : > { %v1116_v8 = vld [vmem:[%s1433_s5 + $0x40] sm:$0xff]  ;;  %v1117_v12 = vld [vmem:[%s1433_s5 + $0x48] sm:$0xff]  ;;  %v1118_v16 = vld [vmem:[%s1433_s5 + $0x50] sm:$0xff] }
  0x10   : > { %558 = vmatpush.bf16.msra.mxu0 %v1145_v1  ;;  %1341 = vmatpush.bf16.msra.mxu1 %v1145_v1  ;;  %v1124_v9 = vld [vmem:[%s1433_s5 + $0x80] sm:$0xff]  ;;  %v1125_v13 = vld [vmem:[%s1433_s5 + $0x88] sm:$0xff]  ;;  %v1126_v17 = vld [vmem:[%s1433_s5 + $0x90] sm:$0xff] }
  0x11   : > { %1342 = vmatpush.bf16.msra.mxu2 %v1145_v1  ;;  %1343 = vmatpush.bf16.msra.mxu3 %v1145_v1  ;;  %v1132_v10 = vld [vmem:[%s1433_s5 + $0xc0] sm:$0xff]  ;;  %v1133_v14 = vld [vmem:[%s1433_s5 + $0xc8] sm:$0xff]  ;;  %v1134_v18 = vld [vmem:[%s1433_s5 + $0xd0] sm:$0xff] }
  0x12   : > { %v1111_v19 = vld [vmem:[%s1433_s5 + $0x18] sm:$0xff]  ;;  %v1112_v23 = vld [vmem:[%s1433_s5 + $0x20] sm:$0xff]  ;;  %v1113_v27 = vld [vmem:[%s1433_s5 + $0x28] sm:$0xff] }
  0x13   : > { %v1119_v20 = vld [vmem:[%s1433_s5 + $0x58] sm:$0xff]  ;;  %v1120_v24 = vld [vmem:[%s1433_s5 + $0x60] sm:$0xff]  ;;  %v1121_v28 = vld [vmem:[%s1433_s5 + $0x68] sm:$0xff] }
  0x14   : > { %559 = vmatpush.bf16.msra.mxu0 %v1144_v2  ;;  %1344 = vmatpush.bf16.msra.mxu1 %v1144_v2  ;;  %v1127_v21 = vld [vmem:[%s1433_s5 + $0x98] sm:$0xff]  ;;  %v1128_v25 = vld [vmem:[%s1433_s5 + $0xa0] sm:$0xff]  ;;  %v1129_v29 = vld [vmem:[%s1433_s5 + $0xa8] sm:$0xff] }
  0x15   : > { %1345 = vmatpush.bf16.msra.mxu2 %v1144_v2  ;;  %1346 = vmatpush.bf16.msra.mxu3 %v1144_v2  ;;  %v1135_v22 = vld [vmem:[%s1433_s5 + $0xd8] sm:$0xff]  ;;  %v1136_v26 = vld [vmem:[%s1433_s5 + $0xe0] sm:$0xff]  ;;  %v1137_v30 = vld [vmem:[%s1433_s5 + $0xe8] sm:$0xff] }
  0x16   : > { %v1114_v31 = vld [vmem:[%s1433_s5 + $0x30] sm:$0xff]  ;;  %v1115_v35 = vld [vmem:[%s1433_s5 + $0x38] sm:$0xff]  ;;  %v1502_v41 = vld [vmem:[%s1612_s2] ss:$0 sm:$0xff] }
  0x17   : > { %v1122_v32 = vld [vmem:[%s1433_s5 + $0x70] sm:$0xff]  ;;  %v1123_v36 = vld [vmem:[%s1433_s5 + $0x78] sm:$0xff] }
  0x18   : > { %560 = vmatpush.bf16.msra.mxu0 %v1143_v3  ;;  %1347 = vmatpush.bf16.msra.mxu1 %v1143_v3  ;;  %v1130_v33 = vld [vmem:[%s1433_s5 + $0xb0] sm:$0xff]  ;;  %v1131_v37 = vld [vmem:[%s1433_s5 + $0xb8] sm:$0xff] }
  0x19   : > { %1348 = vmatpush.bf16.msra.mxu2 %v1143_v3  ;;  %1349 = vmatpush.bf16.msra.mxu3 %v1143_v3  ;;  %v1138_v34 = vld [vmem:[%s1433_s5 + $0xf0] sm:$0xff]  ;;  %v1139_v38 = vld [vmem:[%s1433_s5 + $0xf8] sm:$0xff] }
  0x1c   : > { %561 = vmatpush.bf16.msra.mxu0 %v1142_v4  ;;  %1350 = vmatpush.bf16.msra.mxu1 %v1142_v4 }
  0x1d   : > { %1351 = vmatpush.bf16.msra.mxu2 %v1142_v4  ;;  %1352 = vmatpush.bf16.msra.mxu3 %v1142_v4 }
  0x20   : > { %562 = vmatpush.bf16.msra.mxu0 %v1141_v5  ;;  %1353 = vmatpush.bf16.msra.mxu1 %v1141_v5 }
  0x21   : > { %1354 = vmatpush.bf16.msra.mxu2 %v1141_v5  ;;  %1355 = vmatpush.bf16.msra.mxu3 %v1141_v5 }
  0x24   : > { %563 = vmatpush.bf16.msra.mxu0 %v1140_v6  ;;  %1356 = vmatpush.bf16.msra.mxu1 %v1140_v6 }
  0x25   : > { %1357 = vmatpush.bf16.msra.mxu2 %v1140_v6  ;;  %1358 = vmatpush.bf16.msra.mxu3 %v1140_v6 }
  0x27   : > { %1074 = vmatmul.msk.bf16.vlgmr.msra.gmra.mxu0 %vm459_vm0, %v1108_v7  ;;  %1082 = vmatmul.msk.bf16.vlgmr.msra.gmra.mxu1 %vm459_vm0, %v1116_v8 }
  0x28   : > { %1090 = vmatmul.msk.bf16.vlgmr.msra.gmra.mxu2 %vm459_vm0, %v1124_v9  ;;  %1098 = vmatmul.msk.bf16.vlgmr.msra.gmra.mxu3 %vm459_vm0, %v1132_v10 }
  0x37   : > { %1075 = vmatmul.msk.bf16.gmra.mxu0 %vm459_vm0, %v1109_v11  ;;  %1083 = vmatmul.msk.bf16.gmra.mxu1 %vm459_vm0, %v1117_v12 }
  0x38   : > { %1091 = vmatmul.msk.bf16.gmra.mxu2 %vm459_vm0, %v1125_v13  ;;  %1099 = vmatmul.msk.bf16.gmra.mxu3 %vm459_vm0, %v1133_v14 }
  0x47   : > { %1076 = vmatmul.msk.bf16.gmra.mxu0 %vm459_vm0, %v1110_v15  ;;  %1084 = vmatmul.msk.bf16.gmra.mxu1 %vm459_vm0, %v1118_v16 }
  0x48   : > { %1092 = vmatmul.msk.bf16.gmra.mxu2 %vm459_vm0, %v1126_v17  ;;  %1100 = vmatmul.msk.bf16.gmra.mxu3 %vm459_vm0, %v1134_v18 }
  0x57   : > { %1077 = vmatmul.msk.bf16.gmra.mxu0 %vm459_vm0, %v1111_v19  ;;  %1085 = vmatmul.msk.bf16.gmra.mxu1 %vm459_vm0, %v1119_v20 }
  0x58   : > { %1093 = vmatmul.msk.bf16.gmra.mxu2 %vm459_vm0, %v1127_v21  ;;  %1101 = vmatmul.msk.bf16.gmra.mxu3 %vm459_vm0, %v1135_v22 }
  0x67   : > { %1078 = vmatmul.msk.bf16.gmra.mxu0 %vm459_vm0, %v1112_v23  ;;  %1086 = vmatmul.msk.bf16.gmra.mxu1 %vm459_vm0, %v1120_v24 }
  0x68   : > { %1094 = vmatmul.msk.bf16.gmra.mxu2 %vm459_vm0, %v1128_v25  ;;  %1102 = vmatmul.msk.bf16.gmra.mxu3 %vm459_vm0, %v1136_v26 }
  0x77   : > { %1079 = vmatmul.msk.bf16.gmra.mxu0 %vm459_vm0, %v1113_v27  ;;  %1087 = vmatmul.msk.bf16.gmra.mxu1 %vm459_vm0, %v1121_v28 }
  0x78   : > { %1095 = vmatmul.msk.bf16.gmra.mxu2 %vm459_vm0, %v1129_v29  ;;  %1103 = vmatmul.msk.bf16.gmra.mxu3 %vm459_vm0, %v1137_v30 }
  0x87   : > { %1080 = vmatmul.msk.bf16.gmra.mxu0 %vm459_vm0, %v1114_v31  ;;  %1088 = vmatmul.msk.bf16.gmra.mxu1 %vm459_vm0, %v1122_v32 }
  0x88   : > { %1096 = vmatmul.msk.bf16.gmra.mxu2 %vm459_vm0, %v1130_v33  ;;  %1104 = vmatmul.msk.bf16.gmra.mxu3 %vm459_vm0, %v1138_v34 }
  0x97   : > { %1081 = vmatmul.msk.bf16.gmra.mxu0 %vm459_vm0, %v1115_v35  ;;  %1089 = vmatmul.msk.bf16.gmra.mxu1 %vm459_vm0, %v1123_v36 }
  0x98   : > { %1097 = vmatmul.msk.bf16.gmra.mxu2 %vm459_vm0, %v1131_v37  ;;  %1105 = vmatmul.msk.bf16.gmra.mxu3 %vm459_vm0, %v1139_v38 }
  0xa4   : > { %v565_v39 = vpop.f32.mrf.mxu0  ;;  %v605_v40 = vpop.f32.mrf.mxu1 }
  0xa5   : > { %v566_v46 = vadd.f32 %v1502_v41, %v565_v39  ;;  %v606_v47 = vadd.f32 %v1502_v41, %v605_v40 }
  0xab   : > { %v645_v42 = vpop.f32.mrf.mxu2  ;;  %v685_v43 = vpop.f32.mrf.mxu3 }
  0xac   : > { %v567_v44 = vpop.f32.mrf.mxu0  ;;  %v607_v45 = vpop.f32.mrf.mxu1  ;;  %v646_v54 = vadd.f32 %v1502_v41, %v645_v42  ;;  %v686_v55 = vadd.f32 %v1502_v41, %v685_v43 }
  0xad   : > { %v568_v48 = vadd.f32 %v1502_v41, %v567_v44  ;;  %v608_v49 = vadd.f32 %v1502_v41, %v607_v45 }
  0xaf   : > { %v1150_v50 = vpack.c.bf16 %v568_v48, %v566_v46  ;;  %v1190_v51 = vpack.c.bf16 %v608_v49, %v606_v47 }
  0xb1   : > { %1151 = vst [vmem:[%s1513_s10] sm:$0xff] %v1150_v50  }
  0xb2   : > { %1314 = vst [vmem:[%s1513_s10 + $0x40] sm:$0xff] %v1190_v51  }
  0xb3   : > { %v647_v52 = vpop.f32.mrf.mxu2  ;;  %v687_v53 = vpop.f32.mrf.mxu3 }
  0xb4   : > { %v648_v56 = vadd.f32 %v1502_v41, %v647_v52  ;;  %v688_v57 = vadd.f32 %v1502_v41, %v687_v53  ;;  %v570_v58 = vpop.f32.mrf.mxu0  ;;  %v610_v59 = vpop.f32.mrf.mxu1 }
  0xb5   : > { %v571_v2 = vadd.f32 %v1502_v41, %v570_v58  ;;  %v611_v3 = vadd.f32 %v1502_v41, %v610_v59 }
  0xb6   : > { %v1230_v60 = vpack.c.bf16 %v648_v56, %v646_v54  ;;  %v1270_v61 = vpack.c.bf16 %v688_v57, %v686_v55 }
  0xb8   : > { %1322 = vst [vmem:[%s1513_s10 + $0x80] sm:$0xff] %v1230_v60  }
  0xb9   : > { %1330 = vst [vmem:[%s1513_s10 + $0xc0] sm:$0xff] %v1270_v61  }
  0xbb   : > { %v650_v62 = vpop.f32.mrf.mxu2  ;;  %v690_v63 = vpop.f32.mrf.mxu3 }
  0xbc   : > { %v572_v0 = vpop.f32.mrf.mxu0  ;;  %v612_v1 = vpop.f32.mrf.mxu1  ;;  %v651_v10 = vadd.f32 %v1502_v41, %v650_v62  ;;  %v691_v11 = vadd.f32 %v1502_v41, %v690_v63 }
  0xbd   : > { %v573_v4 = vadd.f32 %v1502_v41, %v572_v0  ;;  %v613_v5 = vadd.f32 %v1502_v41, %v612_v1 }
  0xbf   : > { %v1155_v6 = vpack.c.bf16 %v573_v4, %v571_v2  ;;  %v1195_v7 = vpack.c.bf16 %v613_v5, %v611_v3 }
  0xc1   : > { %1307 = vst [vmem:[%s1513_s10 + $0x8] sm:$0xff] %v1155_v6  }
  0xc2   : > { %1315 = vst [vmem:[%s1513_s10 + $0x48] sm:$0xff] %v1195_v7  }
  0xc3   : > { %v652_v8 = vpop.f32.mrf.mxu2  ;;  %v692_v9 = vpop.f32.mrf.mxu3 }
  0xc4   : > { %v653_v12 = vadd.f32 %v1502_v41, %v652_v8  ;;  %v693_v13 = vadd.f32 %v1502_v41, %v692_v9  ;;  %v575_v14 = vpop.f32.mrf.mxu0  ;;  %v615_v15 = vpop.f32.mrf.mxu1 }
  0xc5   : > { %v576_v22 = vadd.f32 %v1502_v41, %v575_v14  ;;  %v616_v23 = vadd.f32 %v1502_v41, %v615_v15 }
  0xc6   : > { %v1235_v16 = vpack.c.bf16 %v653_v12, %v651_v10  ;;  %v1275_v17 = vpack.c.bf16 %v693_v13, %v691_v11 }
  0xc8   : > { %1323 = vst [vmem:[%s1513_s10 + $0x88] sm:$0xff] %v1235_v16  }
  0xc9   : > { %1331 = vst [vmem:[%s1513_s10 + $0xc8] sm:$0xff] %v1275_v17  }
  0xcb   : > { %v655_v18 = vpop.f32.mrf.mxu2  ;;  %v695_v19 = vpop.f32.mrf.mxu3 }
  0xcc   : > { %v577_v20 = vpop.f32.mrf.mxu0  ;;  %v617_v21 = vpop.f32.mrf.mxu1  ;;  %v656_v30 = vadd.f32 %v1502_v41, %v655_v18  ;;  %v696_v31 = vadd.f32 %v1502_v41, %v695_v19 }
  0xcd   : > { %v578_v24 = vadd.f32 %v1502_v41, %v577_v20  ;;  %v618_v25 = vadd.f32 %v1502_v41, %v617_v21 }
  0xcf   : > { %v1160_v26 = vpack.c.bf16 %v578_v24, %v576_v22  ;;  %v1200_v27 = vpack.c.bf16 %v618_v25, %v616_v23 }
  0xd1   : > { %1308 = vst [vmem:[%s1513_s10 + $0x10] sm:$0xff] %v1160_v26  }
  0xd2   : > { %1316 = vst [vmem:[%s1513_s10 + $0x50] sm:$0xff] %v1200_v27  }
  0xd3   : > { %v657_v28 = vpop.f32.mrf.mxu2  ;;  %v697_v29 = vpop.f32.mrf.mxu3 }
  0xd4   : > { %v658_v32 = vadd.f32 %v1502_v41, %v657_v28  ;;  %v698_v33 = vadd.f32 %v1502_v41, %v697_v29  ;;  %v580_v34 = vpop.f32.mrf.mxu0  ;;  %v620_v35 = vpop.f32.mrf.mxu1 }
  0xd5   : > { %v581_v43 = vadd.f32 %v1502_v41, %v580_v34  ;;  %v621_v44 = vadd.f32 %v1502_v41, %v620_v35 }
  0xd6   : > { %v1240_v36 = vpack.c.bf16 %v658_v32, %v656_v30  ;;  %v1280_v37 = vpack.c.bf16 %v698_v33, %v696_v31 }
  0xd8   : > { %1324 = vst [vmem:[%s1513_s10 + $0x90] sm:$0xff] %v1240_v36  }
  0xd9   : > { %1332 = vst [vmem:[%s1513_s10 + $0xd0] sm:$0xff] %v1280_v37  }
  0xdb   : > { %v660_v38 = vpop.f32.mrf.mxu2  ;;  %v700_v39 = vpop.f32.mrf.mxu3 }
  0xdc   : > { %v582_v40 = vpop.f32.mrf.mxu0  ;;  %v622_v42 = vpop.f32.mrf.mxu1  ;;  %v661_v51 = vadd.f32 %v1502_v41, %v660_v38  ;;  %v701_v52 = vadd.f32 %v1502_v41, %v700_v39 }
  0xdd   : > { %v583_v45 = vadd.f32 %v1502_v41, %v582_v40  ;;  %v623_v46 = vadd.f32 %v1502_v41, %v622_v42 }
  0xdf   : > { %v1165_v47 = vpack.c.bf16 %v583_v45, %v581_v43  ;;  %v1205_v48 = vpack.c.bf16 %v623_v46, %v621_v44 }
  0xe1   : > { %1309 = vst [vmem:[%s1513_s10 + $0x18] sm:$0xff] %v1165_v47  }
  0xe2   : > { %1317 = vst [vmem:[%s1513_s10 + $0x58] sm:$0xff] %v1205_v48  }
  0xe3   : > { %v662_v49 = vpop.f32.mrf.mxu2  ;;  %v702_v50 = vpop.f32.mrf.mxu3 }
  0xe4   : > { %v663_v53 = vadd.f32 %v1502_v41, %v662_v49  ;;  %v703_v54 = vadd.f32 %v1502_v41, %v702_v50  ;;  %v585_v55 = vpop.f32.mrf.mxu0  ;;  %v625_v56 = vpop.f32.mrf.mxu1 }
  0xe5   : > { %v586_v63 = vadd.f32 %v1502_v41, %v585_v55  ;;  %v626_v0 = vadd.f32 %v1502_v41, %v625_v56 }
  0xe6   : > { %v1245_v57 = vpack.c.bf16 %v663_v53, %v661_v51  ;;  %v1285_v58 = vpack.c.bf16 %v703_v54, %v701_v52 }
  0xe8   : > { %1325 = vst [vmem:[%s1513_s10 + $0x98] sm:$0xff] %v1245_v57  }
  0xe9   : > { %1333 = vst [vmem:[%s1513_s10 + $0xd8] sm:$0xff] %v1285_v58  }
  0xeb   : > { %v665_v59 = vpop.f32.mrf.mxu2  ;;  %v705_v60 = vpop.f32.mrf.mxu3 }
  0xec   : > { %v587_v61 = vpop.f32.mrf.mxu0  ;;  %v627_v62 = vpop.f32.mrf.mxu1  ;;  %v666_v7 = vadd.f32 %v1502_v41, %v665_v59  ;;  %v706_v8 = vadd.f32 %v1502_v41, %v705_v60 }
  0xed   : > { %v588_v1 = vadd.f32 %v1502_v41, %v587_v61  ;;  %v628_v2 = vadd.f32 %v1502_v41, %v627_v62 }
  0xef   : > { %v1170_v3 = vpack.c.bf16 %v588_v1, %v586_v63  ;;  %v1210_v4 = vpack.c.bf16 %v628_v2, %v626_v0 }
  0xf1   : > { %1310 = vst [vmem:[%s1513_s10 + $0x20] sm:$0xff] %v1170_v3  }
  0xf2   : > { %1318 = vst [vmem:[%s1513_s10 + $0x60] sm:$0xff] %v1210_v4  }
  0xf3   : > { %v667_v5 = vpop.f32.mrf.mxu2  ;;  %v707_v6 = vpop.f32.mrf.mxu3 }
  0xf4   : > { %v668_v9 = vadd.f32 %v1502_v41, %v667_v5  ;;  %v708_v10 = vadd.f32 %v1502_v41, %v707_v6  ;;  %v590_v11 = vpop.f32.mrf.mxu0  ;;  %v630_v12 = vpop.f32.mrf.mxu1 }
  0xf5   : > { %v591_v19 = vadd.f32 %v1502_v41, %v590_v11  ;;  %v631_v20 = vadd.f32 %v1502_v41, %v630_v12 }
  0xf6   : > { %v1250_v13 = vpack.c.bf16 %v668_v9, %v666_v7  ;;  %v1290_v14 = vpack.c.bf16 %v708_v10, %v706_v8 }
  0xf8   : > { %1326 = vst [vmem:[%s1513_s10 + $0xa0] sm:$0xff] %v1250_v13  }
  0xf9   : > { %1334 = vst [vmem:[%s1513_s10 + $0xe0] sm:$0xff] %v1290_v14  }
  0xfb   : > { %v670_v15 = vpop.f32.mrf.mxu2  ;;  %v710_v16 = vpop.f32.mrf.mxu3 }
  0xfc   : > { %v592_v17 = vpop.f32.mrf.mxu0  ;;  %v632_v18 = vpop.f32.mrf.mxu1  ;;  %v671_v27 = vadd.f32 %v1502_v41, %v670_v15  ;;  %v711_v28 = vadd.f32 %v1502_v41, %v710_v16 }
  0xfd   : > { %v593_v21 = vadd.f32 %v1502_v41, %v592_v17  ;;  %v633_v22 = vadd.f32 %v1502_v41, %v632_v18 }
  0xff   : > { %v1175_v23 = vpack.c.bf16 %v593_v21, %v591_v19  ;;  %v1215_v24 = vpack.c.bf16 %v633_v22, %v631_v20 }
 0x101   : > { %1311 = vst [vmem:[%s1513_s10 + $0x28] sm:$0xff] %v1175_v23  }
 0x102   : > { %1319 = vst [vmem:[%s1513_s10 + $0x68] sm:$0xff] %v1215_v24  }
 0x103   : > { %v672_v25 = vpop.f32.mrf.mxu2  ;;  %v712_v26 = vpop.f32.mrf.mxu3 }
 0x104   : > { %v673_v29 = vadd.f32 %v1502_v41, %v672_v25  ;;  %v713_v30 = vadd.f32 %v1502_v41, %v712_v26  ;;  %v595_v31 = vpop.f32.mrf.mxu0  ;;  %v635_v32 = vpop.f32.mrf.mxu1 }
 0x105   : > { %v596_v39 = vadd.f32 %v1502_v41, %v595_v31  ;;  %v636_v40 = vadd.f32 %v1502_v41, %v635_v32 }
 0x106   : > { %v1255_v33 = vpack.c.bf16 %v673_v29, %v671_v27  ;;  %v1295_v34 = vpack.c.bf16 %v713_v30, %v711_v28 }
 0x108   : > { %1327 = vst [vmem:[%s1513_s10 + $0xa8] sm:$0xff] %v1255_v33  }
 0x109   : > { %1335 = vst [vmem:[%s1513_s10 + $0xe8] sm:$0xff] %v1295_v34  }
 0x10b   : > { %v675_v35 = vpop.f32.mrf.mxu2  ;;  %v715_v36 = vpop.f32.mrf.mxu3 }
 0x10c   : > { %v597_v37 = vpop.f32.mrf.mxu0  ;;  %v637_v38 = vpop.f32.mrf.mxu1  ;;  %v676_v48 = vadd.f32 %v1502_v41, %v675_v35  ;;  %v716_v49 = vadd.f32 %v1502_v41, %v715_v36 }
 0x10d   : > { %v598_v42 = vadd.f32 %v1502_v41, %v597_v37  ;;  %v638_v43 = vadd.f32 %v1502_v41, %v637_v38 }
 0x10f   : > { %v1180_v44 = vpack.c.bf16 %v598_v42, %v596_v39  ;;  %v1220_v45 = vpack.c.bf16 %v638_v43, %v636_v40 }
 0x111   : > { %1312 = vst [vmem:[%s1513_s10 + $0x30] sm:$0xff] %v1180_v44  }
 0x112   : > { %1320 = vst [vmem:[%s1513_s10 + $0x70] sm:$0xff] %v1220_v45  }
 0x113   : > { %v677_v46 = vpop.f32.mrf.mxu2  ;;  %v717_v47 = vpop.f32.mrf.mxu3 }
 0x114   : > { %v678_v50 = vadd.f32 %v1502_v41, %v677_v46  ;;  %v718_v51 = vadd.f32 %v1502_v41, %v717_v47  ;;  %v600_v52 = vpop.f32.mrf.mxu0  ;;  %v640_v53 = vpop.f32.mrf.mxu1 }
 0x115   : > { %v601_v60 = vadd.f32 %v1502_v41, %v600_v52  ;;  %v641_v61 = vadd.f32 %v1502_v41, %v640_v53 }
 0x116   : > { %v1260_v54 = vpack.c.bf16 %v678_v50, %v676_v48  ;;  %v1300_v55 = vpack.c.bf16 %v718_v51, %v716_v49 }
 0x118   : > { %1328 = vst [vmem:[%s1513_s10 + $0xb0] sm:$0xff] %v1260_v54  }
 0x119   : > { %1336 = vst [vmem:[%s1513_s10 + $0xf0] sm:$0xff] %v1300_v55  }
 0x11b   : > { %v680_v56 = vpop.f32.mrf.mxu2  ;;  %v720_v57 = vpop.f32.mrf.mxu3 }
 0x11c   : > { %v602_v58 = vpop.f32.mrf.mxu0  ;;  %v642_v59 = vpop.f32.mrf.mxu1  ;;  %v681_v4 = vadd.f32 %v1502_v41, %v680_v56  ;;  %v721_v5 = vadd.f32 %v1502_v41, %v720_v57 }
 0x11d   : > { %v603_v62 = vadd.f32 %v1502_v41, %v602_v58  ;;  %v643_v63 = vadd.f32 %v1502_v41, %v642_v59 }
 0x11f   : > { %v1185_v0 = vpack.c.bf16 %v603_v62, %v601_v60  ;;  %v1225_v1 = vpack.c.bf16 %v643_v63, %v641_v61 }
 0x121   : > { %1313 = vst [vmem:[%s1513_s10 + $0x38] sm:$0xff] %v1185_v0  }
 0x122   : > { %1321 = vst [vmem:[%s1513_s10 + $0x78] sm:$0xff] %v1225_v1  }
 0x123   : > { %v682_v2 = vpop.f32.mrf.mxu2  ;;  %v722_v3 = vpop.f32.mrf.mxu3 }
 0x124   : > { %v683_v6 = vadd.f32 %v1502_v41, %v682_v2  ;;  %v723_v7 = vadd.f32 %v1502_v41, %v722_v3 }
 0x126   : > { %v1265_v8 = vpack.c.bf16 %v683_v6, %v681_v4  ;;  %v1305_v9 = vpack.c.bf16 %v723_v7, %v721_v5 }
 0x128   : > { %1329 = vst [vmem:[%s1513_s10 + $0xb8] sm:$0xff] %v1265_v8  }
 0x129   : > { %1337 = vst [vmem:[%s1513_s10 + $0xf8] sm:$0xff] %v1305_v9  }
 0x12a PF: > { %s13_s12 = sadd.s32 1, %s1374_s12  }
 0x12b   : > { %p10_p4 = scmp.ge.s32.totalorder %s13_s12, 4  }
 0x12d   :  { %12 = sbr.rel (!%p10_p4) target bundleno = 1 (0x1), region = 62 }

// kernel: neu2seq_forward.41
= control target key start
LH: loop header
LB: loop body
LE: loop exit
PB: predicated region body
PF: predicated region fallthrough
CT: control target
= control target key end

     0   :  { %s1499_s12 = smov 0   ;;  %s2509_s0 = inlined_call_operand.vmem [shape: bf16[2,512,4], index: 0, kind: input, shape index: {}]   ;;  %s2510_s1 = inlined_call_operand.vmem [shape: f32[1,1,4], index: 1, kind: input, shape index: {}]   ;;  %s2511_s2 = inlined_call_operand.vmem [shape: f32[1,1,4], index: 2, kind: input, shape index: {}]   ;;  %s2512_s3 = inlined_call_operand.vmem [shape: bf16[2,512,4], index: 3, kind: output, shape index: {}]  }
   0x1 LB: > { %s1285_s13 = sadd.s32 4294967295, %s1477_s12   ;;  %p1289_p0 = scmp.ge.s32.totalorder %s1477_s12, 1  ;;  %s1477_s12 = sphi %s1499_s12, %s13_s12  }
   0x2   : > { %p137_p1 = scmp.lt.s32.totalorder %s1477_s12, 3 }
   0x4   : > { %p138_p2 = pnand %p1289_p0, %p137_p1 }
   0x6   : > { %141 = sbr.rel (%p138_p2) target bundleno = 323 (0x143), region = 32 }
   0xb   : > { %p161_p3 = scmp.lt.s32.totalorder %s1285_s13, 1  ;;  %vm299_vm0 = vcmask 31744   ;;  %vm1165_vm4 = vcmask 27648  }
   0xd   : > { %s2596_s13 = smov (!%p161_p3, %s1285_s13), 1 }
   0xe   : > { %s1296_s14 = sshll.u32 %s2596_s13, 8 }
   0xf   : > { %s1515_s17 = scalar_lea.vmem %s2509_s0, %s1296_s14  ;;  %s2086_s24 = scalar_lea.vmem %s2512_s3, %s1296_s14 }
  0x10   : > { %v1299_v0 = vld [vmem:[%s1515_s17] sm:$0xff]   ;;  %v1426_v1 = vld [vmem:[%s1515_s17 + $0x8] sm:$0xff]   ;;  %v1427_v5 = vld [vmem:[%s1515_s17 + $0x10] sm:$0xff]  }
  0x11   : > { %v1519_v2 = vunpack.c.l.bf16 %v1299_v0  ;;  %v1521_v3 = vunpack.c.h.bf16 %v1299_v0  ;;  %v1523_v4 = vunpack.c.l.bf16 %v1426_v1  ;;  %v1526_v6 = vunpack.c.h.bf16 %v1426_v1  ;;  %v1428_v11 = vld [vmem:[%s1515_s17 + $0x18] sm:$0xff]   ;;  %v1429_v18 = vld [vmem:[%s1515_s17 + $0x20] sm:$0xff]   ;;  %v1430_v26 = vld [vmem:[%s1515_s17 + $0x28] sm:$0xff]  }
  0x12   : > { %v1528_v7 = vunpack.c.l.bf16 %v1427_v5  ;;  %v1537_v13 = vunpack.c.h.bf16 %v1427_v5  ;;  %v1541_v16 = vunpack.c.l.bf16 %v1428_v11  ;;  %v1546_v20 = vunpack.c.h.bf16 %v1428_v11  ;;  %v1431_v37 = vld [vmem:[%s1515_s17 + $0x30] sm:$0xff]   ;;  %v1432_v51 = vld [vmem:[%s1515_s17 + $0x38] sm:$0xff]   ;;  %v1433_v0 = vld [vmem:[%s1515_s17 + $0x40] sm:$0xff]  }
  0x13   : > { %v300_v8 = vsel %vm299_vm0, %v1519_v2, 0.0  ;;  %v301_v9 = vsel %vm299_vm0, %v1521_v3, 0.0  ;;  %v303_v10 = vsel %vm299_vm0, %v1523_v4, 0.0  ;;  %v305_v14 = vsel %vm299_vm0, %v1526_v6, 0.0 }
  0x14   : > { %v302_v12 = vadd.f32 %v301_v9, %v300_v8  ;;  %v307_v17 = vsel %vm299_vm0, %v1528_v7, 0.0  ;;  %v309_v21 = vsel %vm299_vm0, %v1537_v13, 0.0  ;;  %v1550_v23 = vunpack.c.l.bf16 %v1429_v18 }
  0x15   : > { %v311_v24 = vsel %vm299_vm0, %v1541_v16, 0.0  ;;  %v434_v25 = vmul.f32 %v1519_v2, %v1519_v2  ;;  %v435_v28 = vmul.f32 %v1521_v3, %v1521_v3  ;;  %v436_v29 = vmul.f32 %v1523_v4, %v1523_v4 }
  0x16   : > { %v304_v15 = vadd.f32 %v303_v10, %v302_v12  ;;  %v1561_v30 = vunpack.c.h.bf16 %v1429_v18  ;;  %v313_v31 = vsel %vm299_vm0, %v1546_v20, 0.0  ;;  %v437_v33 = vmul.f32 %v1526_v6, %v1526_v6 }
  0x17   : > { %v1567_v34 = vunpack.c.l.bf16 %v1430_v26  ;;  %v315_v35 = vsel %vm299_vm0, %v1550_v23, 0.0  ;;  %v498_v36 = vsel %vm299_vm0, %v434_v25, 0.0  ;;  %v438_v39 = vmul.f32 %v1528_v7, %v1528_v7 }
  0x18   : > { %v306_v19 = vadd.f32 %v305_v14, %v304_v15  ;;  %v499_v40 = vsel %vm299_vm0, %v435_v28, 0.0  ;;  %v501_v41 = vsel %vm299_vm0, %v436_v29, 0.0  ;;  %v1577_v42 = vunpack.c.h.bf16 %v1430_v26 }
  0x19   : > { %v317_v43 = vsel %vm299_vm0, %v1561_v30, 0.0  ;;  %v500_v44 = vadd.f32 %v499_v40, %v498_v36  ;;  %v439_v46 = vmul.f32 %v1537_v13, %v1537_v13  ;;  %v503_v47 = vsel %vm299_vm0, %v437_v33, 0.0 }
  0x1a   : > { %v308_v22 = vadd.f32 %v307_v17, %v306_v19  ;;  %v1584_v48 = vunpack.c.l.bf16 %v1431_v37  ;;  %v319_v49 = vsel %vm299_vm0, %v1567_v34, 0.0  ;;  %v440_v53 = vmul.f32 %v1541_v16, %v1541_v16 }
  0x1b   : > { %v502_v50 = vadd.f32 %v501_v41, %v500_v44  ;;  %v505_v54 = vsel %vm299_vm0, %v438_v39, 0.0  ;;  %v1592_v55 = vunpack.c.h.bf16 %v1431_v37  ;;  %v321_v56 = vsel %vm299_vm0, %v1577_v42, 0.0  ;;  %v1435_v37 = vld [vmem:[%s1515_s17 + $0x50] sm:$0xff]  }
  0x1c   : > { %v310_v27 = vadd.f32 %v309_v21, %v308_v22  ;;  %v441_v59 = vmul.f32 %v1546_v20, %v1546_v20  ;;  %v507_v60 = vsel %vm299_vm0, %v439_v46, 0.0  ;;  %v1599_v61 = vunpack.c.l.bf16 %v1432_v51  ;;  %v1434_v21 = vld [vmem:[%s1515_s17 + $0x48] sm:$0xff]  }
  0x1d   : > { %v504_v57 = vadd.f32 %v503_v47, %v502_v50  ;;  %v323_v62 = vsel %vm299_vm0, %v1584_v48, 0.0  ;;  %v442_v5 = vmul.f32 %v1550_v23, %v1550_v23  ;;  %v509_v8 = vsel %vm299_vm0, %v440_v53, 0.0 }
  0x1e   : > { %v312_v32 = vadd.f32 %v311_v24, %v310_v27  ;;  %v1607_v9 = vunpack.c.h.bf16 %v1432_v51  ;;  %v325_v10 = vsel %vm299_vm0, %v1592_v55, 0.0  ;;  %v443_v14 = vmul.f32 %v1561_v30, %v1561_v30 }
  0x1f   : > { %v506_v63 = vadd.f32 %v505_v54, %v504_v57  ;;  %v511_v15 = vsel %vm299_vm0, %v441_v59, 0.0  ;;  %v1614_v17 = vunpack.c.l.bf16 %v1433_v0  ;;  %v327_v18 = vsel %vm299_vm0, %v1599_v61, 0.0 }
  0x20   : > { %v314_v38 = vadd.f32 %v313_v31, %v312_v32  ;;  %v444_v24 = vmul.f32 %v1567_v34, %v1567_v34  ;;  %v513_v25 = vsel %vm299_vm0, %v442_v5, 0.0  ;;  %v1622_v26 = vunpack.c.h.bf16 %v1433_v0 }
  0x21   : > { %v508_v11 = vadd.f32 %v507_v60, %v506_v63  ;;  %v329_v27 = vsel %vm299_vm0, %v1607_v9, 0.0  ;;  %v445_v31 = vmul.f32 %v1577_v42, %v1577_v42  ;;  %v515_v32 = vsel %vm299_vm0, %v443_v14, 0.0 }
  0x22   : > { %v316_v45 = vadd.f32 %v315_v35, %v314_v38  ;;  %v1629_v33 = vunpack.c.l.bf16 %v1434_v21  ;;  %v331_v35 = vsel %vm299_vm0, %v1614_v17, 0.0  ;;  %v446_v39 = vmul.f32 %v1584_v48, %v1584_v48 }
  0x23   : > { %v510_v19 = vadd.f32 %v509_v8, %v508_v11  ;;  %v517_v40 = vsel %vm299_vm0, %v444_v24, 0.0  ;;  %v1637_v41 = vunpack.c.h.bf16 %v1434_v21  ;;  %v447_v46 = vmul.f32 %v1592_v55, %v1592_v55  ;;  %v1437_v8 = vld [vmem:[%s1515_s17 + $0x60] sm:$0xff]  }
  0x24   : > { %v318_v52 = vadd.f32 %v317_v43, %v316_v45  ;;  %v333_v43 = vsel %vm299_vm0, %v1622_v26, 0.0  ;;  %v519_v47 = vsel %vm299_vm0, %v445_v31, 0.0  ;;  %v335_v50 = vsel %vm299_vm0, %v1629_v33, 0.0 }
  0x25   : > { %v512_v28 = vadd.f32 %v511_v15, %v510_v19  ;;  %v448_v54 = vmul.f32 %v1599_v61, %v1599_v61  ;;  %v1652_v57 = vunpack.c.h.bf16 %v1435_v37  ;;  %v523_v63 = vsel %vm299_vm0, %v447_v46, 0.0  ;;  %v1439_v46 = vld [vmem:[%s1515_s17 + $0x70] sm:$0xff]  }
  0x26   : > { %v320_v58 = vadd.f32 %v319_v49, %v318_v52  ;;  %v1644_v49 = vunpack.c.l.bf16 %v1435_v37  ;;  %v1436_v52 = vld [vmem:[%s1515_s17 + $0x58] sm:$0xff]   ;;  %v450_v11 = vmul.f32 %v1614_v17, %v1614_v17  ;;  %v451_v21 = vmul.f32 %v1622_v26, %v1622_v26 }
  0x27   : > { %v514_v36 = vadd.f32 %v513_v25, %v512_v28  ;;  %v1659_v0 = vunpack.c.l.bf16 %v1436_v52  ;;  %v1667_v14 = vunpack.c.h.bf16 %v1436_v52  ;;  %v341_v15 = vsel %vm299_vm0, %v1652_v57, 0.0  ;;  %v1438_v28 = vld [vmem:[%s1515_s17 + $0x68] sm:$0xff]  }
  0x28   : > { %v322_v1 = vadd.f32 %v321_v56, %v320_v58  ;;  %v521_v56 = vsel %vm299_vm0, %v446_v39, 0.0  ;;  %v337_v58 = vsel %vm299_vm0, %v1637_v41, 0.0  ;;  %v1674_v24 = vunpack.c.l.bf16 %v1437_v8 }
  0x29   : > { %v516_v44 = vadd.f32 %v515_v32, %v514_v36  ;;  %v343_v25 = vsel %vm299_vm0, %v1659_v0, 0.0  ;;  %v452_v31 = vmul.f32 %v1629_v33, %v1629_v33  ;;  %v529_v32 = vsel %vm299_vm0, %v450_v11, 0.0 }
  0x2a   : > { %v324_v12 = vadd.f32 %v323_v62, %v322_v1  ;;  %v449_v62 = vmul.f32 %v1607_v9, %v1607_v9  ;;  %v339_v1 = vsel %vm299_vm0, %v1644_v49, 0.0  ;;  %v345_v36 = vsel %vm299_vm0, %v1667_v14, 0.0 }
  0x2b   : > { %v518_v51 = vadd.f32 %v517_v40, %v516_v44  ;;  %v453_v39 = vmul.f32 %v1637_v41, %v1637_v41  ;;  %v531_v40 = vsel %vm299_vm0, %v451_v21, 0.0  ;;  %v347_v44 = vsel %vm299_vm0, %v1674_v24, 0.0 }
  0x2c   : > { %v326_v22 = vadd.f32 %v325_v10, %v324_v12  ;;  %v525_v12 = vsel %vm299_vm0, %v448_v54, 0.0  ;;  %v1697_v52 = vunpack.c.h.bf16 %v1438_v28  ;;  %v1712_v11 = vunpack.c.h.bf16 %v1439_v46 }
  0x2d   : > { %v520_v59 = vadd.f32 %v519_v47, %v518_v51  ;;  %v533_v51 = vsel %vm299_vm0, %v452_v31, 0.0  ;;  %v458_v31 = vmul.f32 %v1674_v24, %v1674_v24 }
  0x2e   : > { %v328_v29 = vadd.f32 %v327_v18, %v326_v22  ;;  %v527_v22 = vsel %vm299_vm0, %v449_v62, 0.0 }
  0x2f   : > { %v522_v5 = vadd.f32 %v521_v56, %v520_v59  ;;  %v535_v59 = vsel %vm299_vm0, %v453_v39, 0.0 }
  0x30   : > { %v330_v38 = vadd.f32 %v329_v27, %v328_v29 }
  0x31   : > { %v524_v18 = vadd.f32 %v523_v63, %v522_v5 }
  0x32   : > { %v332_v45 = vadd.f32 %v331_v35, %v330_v38  ;;  %v1682_v35 = vunpack.c.h.bf16 %v1437_v8  ;;  %v456_v8 = vmul.f32 %v1659_v0, %v1659_v0 }
  0x33   : > { %v526_v27 = vadd.f32 %v525_v12, %v524_v18  ;;  %v353_v12 = vsel %vm299_vm0, %v1697_v52, 0.0 }
  0x34   : > { %v334_v53 = vadd.f32 %v333_v43, %v332_v45  ;;  %v1689_v43 = vunpack.c.l.bf16 %v1438_v28  ;;  %v1441_v28 = vld [vmem:[%s1515_s17 + $0x80] sm:$0xff]  }
  0x35   : > { %v528_v37 = vadd.f32 %v527_v22, %v526_v27 }
  0x36   : > { %v336_v60 = vadd.f32 %v335_v50, %v334_v53  ;;  %v454_v50 = vmul.f32 %v1644_v49, %v1644_v49  ;;  %v349_v53 = vsel %vm299_vm0, %v1682_v35, 0.0  ;;  %v351_v62 = vsel %vm299_vm0, %v1689_v43, 0.0 }
  0x37   : > { %v530_v45 = vadd.f32 %v529_v32, %v528_v37  ;;  %v541_v32 = vsel %vm299_vm0, %v456_v8, 0.0  ;;  %v357_v37 = vsel %vm299_vm0, %v1712_v11, 0.0 }
  0x38   : > { %v338_v10 = vadd.f32 %v337_v58, %v336_v60  ;;  %v455_v58 = vmul.f32 %v1652_v57, %v1652_v57  ;;  %v1704_v60 = vunpack.c.l.bf16 %v1439_v46 }
  0x39   : > { %v532_v54 = vadd.f32 %v531_v40, %v530_v45  ;;  %v459_v40 = vmul.f32 %v1682_v35, %v1682_v35  ;;  %v1734_v45 = vunpack.c.l.bf16 %v1441_v28 }
  0x3a   : > { %v340_v19 = vadd.f32 %v339_v1, %v338_v10  ;;  %v1440_v1 = vld [vmem:[%s1515_s17 + $0x78] sm:$0xff]   ;;  %v537_v10 = vsel %vm299_vm0, %v454_v50, 0.0  ;;  %v539_v21 = vsel %vm299_vm0, %v455_v58, 0.0  ;;  %v1442_v50 = vld [vmem:[%s1515_s17 + $0x88] sm:$0xff]  }
  0x3b   : > { %v534_v63 = vadd.f32 %v533_v51, %v532_v54  ;;  %v1719_v22 = vunpack.c.l.bf16 %v1440_v1  ;;  %v545_v54 = vsel %vm299_vm0, %v458_v31, 0.0  ;;  %v363_v8 = vsel %vm299_vm0, %v1734_v45, 0.0 }
  0x3c   : > { %v342_v29 = vadd.f32 %v341_v15, %v340_v19  ;;  %v457_v19 = vmul.f32 %v1667_v14, %v1667_v14 }
  0x3d   : > { %v536_v15 = vadd.f32 %v535_v59, %v534_v63  ;;  %v359_v46 = vsel %vm299_vm0, %v1719_v22, 0.0  ;;  %v461_v63 = vmul.f32 %v1697_v52, %v1697_v52 }
  0x3e   : > { %v344_v38 = vadd.f32 %v343_v25, %v342_v29  ;;  %v355_v25 = vsel %vm299_vm0, %v1704_v60, 0.0 }
  0x3f   : > { %v538_v27 = vadd.f32 %v537_v10, %v536_v15  ;;  %v551_v31 = vsel %vm299_vm0, %v461_v63, 0.0 }
  0x40   : > { %v346_v47 = vadd.f32 %v345_v36, %v344_v38  ;;  %v1727_v36 = vunpack.c.h.bf16 %v1440_v1  ;;  %v547_v1 = vsel %vm299_vm0, %v459_v40, 0.0 }
  0x41   : > { %v540_v38 = vadd.f32 %v539_v21, %v538_v27  ;;  %v1757_v21 = vunpack.c.h.bf16 %v1442_v50 }
  0x42   : > { %v348_v56 = vadd.f32 %v347_v44, %v346_v47  ;;  %v543_v44 = vsel %vm299_vm0, %v457_v19, 0.0  ;;  %v361_v58 = vsel %vm299_vm0, %v1727_v36, 0.0 }
  0x43   : > { %v542_v47 = vadd.f32 %v541_v32, %v540_v38 }
  0x44   : > { %v350_v5 = vadd.f32 %v349_v53, %v348_v56  ;;  %v460_v53 = vmul.f32 %v1689_v43, %v1689_v43  ;;  %v1742_v56 = vunpack.c.h.bf16 %v1441_v28 }
  0x45   : > { %v544_v59 = vadd.f32 %v543_v44, %v542_v47  ;;  %v464_v44 = vmul.f32 %v1719_v22, %v1719_v22 }
  0x46   : > { %v352_v18 = vadd.f32 %v351_v62, %v350_v5  ;;  %v1749_v5 = vunpack.c.l.bf16 %v1442_v50  ;;  %v549_v19 = vsel %vm299_vm0, %v460_v53, 0.0  ;;  %v369_v50 = vsel %vm299_vm0, %v1757_v21, 0.0 }
  0x47   : > { %v546_v10 = vadd.f32 %v545_v54, %v544_v59  ;;  %v465_v54 = vmul.f32 %v1727_v36, %v1727_v36 }
  0x48   : > { %v354_v29 = vadd.f32 %v353_v12, %v352_v18  ;;  %v1443_v12 = vld [vmem:[%s1515_s17 + $0x90] sm:$0xff]   ;;  %v462_v18 = vmul.f32 %v1704_v60, %v1704_v60 }
  0x49   : > { %v548_v27 = vadd.f32 %v547_v1, %v546_v10  ;;  %v1764_v32 = vunpack.c.l.bf16 %v1443_v12  ;;  %v1772_v47 = vunpack.c.h.bf16 %v1443_v12  ;;  %v1445_v1 = vld [vmem:[%s1515_s17 + $0xa0] sm:$0xff]   ;;  %v466_v10 = vmul.f32 %v1734_v45, %v1734_v45 }
  0x4a   : > { %v356_v39 = vadd.f32 %v355_v25, %v354_v29  ;;  %v365_v25 = vsel %vm299_vm0, %v1742_v56, 0.0  ;;  %v463_v29 = vmul.f32 %v1712_v11, %v1712_v11  ;;  %v557_v12 = vsel %vm299_vm0, %v464_v44, 0.0 }
  0x4b   : > { %v550_v38 = vadd.f32 %v549_v19, %v548_v27  ;;  %2537 = vst [vmem:[#allocation2_spill] sm:$0xff] %v1772_v47  ;;  %v467_v27 = vmul.f32 %v1742_v56, %v1742_v56  ;;  %v561_v44 = vsel %vm299_vm0, %v466_v10, 0.0  ;;  %v1447_v10 = vld [vmem:[%s1515_s17 + $0xb0] sm:$0xff]  }
  0x4c   : > { %v358_v51 = vadd.f32 %v357_v37, %v356_v39  ;;  %v367_v37 = vsel %vm299_vm0, %v1749_v5, 0.0  ;;  %v1444_v39 = vld [vmem:[%s1515_s17 + $0x98] sm:$0xff]  }
  0x4d   : > { %v1779_v59 = vunpack.c.l.bf16 %v1444_v39 }
  0x4e   : > { %v360_v62 = vadd.f32 %v359_v46, %v358_v51  ;;  %v553_v46 = vsel %vm299_vm0, %v462_v18, 0.0  ;;  %v552_v51 = vadd.f32 %v551_v31, %v550_v38  ;;  %v373_v18 = vsel %vm299_vm0, %v1772_v47, 0.0  ;;  %v1446_v38 = vld [vmem:[%s1515_s17 + $0xa8] sm:$0xff]  }
  0x4f   : > { %2538 = vst [vmem:[#allocation3_spill] sm:$0xff] %v1779_v59  ;;  %v375_v31 = vsel %vm299_vm0, %v1779_v59, 0.0 }
  0x50   : > { %v362_v15 = vadd.f32 %v361_v58, %v360_v62  ;;  %v555_v58 = vsel %vm299_vm0, %v463_v29, 0.0  ;;  %v371_v62 = vsel %vm299_vm0, %v1764_v32, 0.0  ;;  %v554_v63 = vadd.f32 %v553_v46, %v552_v51 }
  0x51   : > { %v1794_v29 = vunpack.c.l.bf16 %v1445_v1  ;;  %v1802_v46 = vunpack.c.h.bf16 %v1445_v1 }
  0x52   : > { %v364_v28 = vadd.f32 %v363_v8, %v362_v15  ;;  %v1787_v15 = vunpack.c.h.bf16 %v1444_v39  ;;  %v556_v19 = vadd.f32 %v555_v58, %v554_v63  ;;  %v563_v58 = vsel %vm299_vm0, %v467_v27, 0.0 }
  0x53   : > { %2540 = vst [vmem:[#allocation5_spill] sm:$0xff] %v1794_v29  ;;  %v379_v63 = vsel %vm299_vm0, %v1794_v29, 0.0 }
  0x54   : > { %v366_v40 = vadd.f32 %v365_v25, %v364_v28  ;;  %2539 = vst [vmem:[#allocation4_spill] sm:$0xff] %v1787_v15  ;;  %v559_v28 = vsel %vm299_vm0, %v465_v54, 0.0  ;;  %v469_v54 = vmul.f32 %v1757_v21, %v1757_v21 }
  0x55   : > { %2541 = vst [vmem:[#allocation6_spill] sm:$0xff] %v1802_v46 }
  0x56   : > { %v368_v53 = vadd.f32 %v367_v37, %v366_v40  ;;  %v558_v37 = vadd.f32 %v557_v12, %v556_v19  ;;  %v468_v40 = vmul.f32 %v1749_v5, %v1749_v5  ;;  %v470_v12 = vmul.f32 %v1764_v32, %v1764_v32 }
  0x57   : > { %v1817_v19 = vunpack.c.h.bf16 %v1446_v38 }
  0x58   : > { %v370_v8 = vadd.f32 %v369_v50, %v368_v53  ;;  %v377_v50 = vsel %vm299_vm0, %v1787_v15, 0.0  ;;  %v560_v51 = vadd.f32 %v559_v28, %v558_v37  ;;  %v567_v37 = vsel %vm299_vm0, %v469_v54, 0.0 }
  0x59   : > { %2543 = vst [vmem:[#allocation8_spill] sm:$0xff] %v1817_v19 }
  0x5a   : > { %v372_v25 = vadd.f32 %v371_v62, %v370_v8  ;;  %v1809_v62 = vunpack.c.l.bf16 %v1446_v38  ;;  %v562_v8 = vadd.f32 %v561_v44, %v560_v51  ;;  %v472_v51 = vmul.f32 %v1779_v59, %v1779_v59 }
  0x5c   : > { %v374_v39 = vadd.f32 %v373_v18, %v372_v25  ;;  %2542 = vst [vmem:[#allocation7_spill] sm:$0xff] %v1809_v62  ;;  %v565_v18 = vsel %vm299_vm0, %v468_v40, 0.0  ;;  %v381_v25 = vsel %vm299_vm0, %v1802_v46, 0.0  ;;  %v564_v27 = vadd.f32 %v563_v58, %v562_v8  ;;  %v1448_v40 = vld [vmem:[%s1515_s17 + $0xb8] sm:$0xff]  }
  0x5d   : > { %v383_v44 = vsel %vm299_vm0, %v1809_v62, 0.0  ;;  %v1832_v58 = vunpack.c.h.bf16 %v1447_v10 }
  0x5e   : > { %v376_v53 = vadd.f32 %v375_v31, %v374_v39  ;;  %v471_v31 = vmul.f32 %v1772_v47, %v1772_v47  ;;  %v1824_v39 = vunpack.c.l.bf16 %v1447_v10 }
  0x5f   : > { %2545 = vst [vmem:[#allocation10_spill] sm:$0xff] %v1832_v58 }
  0x60   : > { %v378_v1 = vadd.f32 %v377_v50, %v376_v53  ;;  %2544 = vst [vmem:[#allocation9_spill] sm:$0xff] %v1824_v39  ;;  %v566_v50 = vadd.f32 %v565_v18, %v564_v27  ;;  %v569_v53 = vsel %vm299_vm0, %v470_v12, 0.0  ;;  %v571_v47 = vsel %vm299_vm0, %v471_v31, 0.0  ;;  %v1449_v12 = vld [vmem:[%s1515_s17 + $0xc0] sm:$0xff]  }
  0x61   : > { %v1839_v18 = vunpack.c.l.bf16 %v1448_v40 }
  0x62   : > { %v380_v28 = vadd.f32 %v379_v63, %v378_v1  ;;  %v385_v63 = vsel %vm299_vm0, %v1817_v19, 0.0  ;;  %v568_v54 = vadd.f32 %v567_v37, %v566_v50  ;;  %v473_v1 = vmul.f32 %v1787_v15, %v1787_v15 }
  0x63   : > { %2546 = vst [vmem:[#allocation11_spill] sm:$0xff] %v1839_v18  ;;  %v573_v37 = vsel %vm299_vm0, %v472_v51, 0.0  ;;  %v389_v50 = vsel %vm299_vm0, %v1832_v58, 0.0  ;;  %v475_v15 = vmul.f32 %v1802_v46, %v1802_v46  ;;  %v1450_v51 = vld [vmem:[%s1515_s17 + $0xc8] sm:$0xff]   ;;  %v477_v46 = vmul.f32 %v1817_v19, %v1817_v19 }
  0x64   : > { %v382_v38 = vadd.f32 %v381_v25, %v380_v28  ;;  %v387_v25 = vsel %vm299_vm0, %v1824_v39, 0.0  ;;  %v570_v27 = vadd.f32 %v569_v53, %v568_v54  ;;  %v474_v28 = vmul.f32 %v1794_v29, %v1794_v29 }
  0x65   : > { %v575_v59 = vsel %vm299_vm0, %v473_v1, 0.0  ;;  %v1854_v53 = vunpack.c.l.bf16 %v1449_v12  ;;  %v579_v29 = vsel %vm299_vm0, %v475_v15, 0.0  ;;  %v479_v19 = vmul.f32 %v1832_v58, %v1832_v58 }
  0x66   : > { %v384_v8 = vadd.f32 %v383_v44, %v382_v38  ;;  %v1847_v44 = vunpack.c.h.bf16 %v1448_v40  ;;  %v572_v31 = vadd.f32 %v571_v47, %v570_v27  ;;  %v577_v47 = vsel %vm299_vm0, %v474_v28, 0.0  ;;  %v1451_v28 = vld [vmem:[%s1515_s17 + $0xd0] sm:$0xff]  }
  0x67   : > { %2548 = vst [vmem:[#allocation13_spill] sm:$0xff] %v1854_v53 }
  0x68   : > { %v386_v10 = vadd.f32 %v385_v63, %v384_v8  ;;  %2547 = vst [vmem:[#allocation12_spill] sm:$0xff] %v1847_v44  ;;  %v391_v63 = vsel %vm299_vm0, %v1839_v18, 0.0  ;;  %v574_v54 = vadd.f32 %v573_v37, %v572_v31  ;;  %v476_v8 = vmul.f32 %v1809_v62, %v1809_v62 }
  0x69   : > { %v393_v27 = vsel %vm299_vm0, %v1847_v44, 0.0  ;;  %v1869_v37 = vunpack.c.l.bf16 %v1450_v51  ;;  %v583_v62 = vsel %vm299_vm0, %v477_v46, 0.0  ;;  %v481_v58 = vmul.f32 %v1847_v44, %v1847_v44 }
  0x6a   : > { %v388_v38 = vadd.f32 %v387_v25, %v386_v10  ;;  %v1862_v25 = vunpack.c.h.bf16 %v1449_v12  ;;  %v576_v1 = vadd.f32 %v575_v59, %v574_v54  ;;  %v581_v59 = vsel %vm299_vm0, %v476_v8, 0.0  ;;  %v1452_v8 = vld [vmem:[%s1515_s17 + $0xd8] sm:$0xff]  }
  0x6b   : > { %2550 = vst [vmem:[#allocation15_spill] sm:$0xff] %v1869_v37 }
  0x6c   : > { %v390_v40 = vadd.f32 %v389_v50, %v388_v38  ;;  %2549 = vst [vmem:[#allocation14_spill] sm:$0xff] %v1862_v25  ;;  %v395_v50 = vsel %vm299_vm0, %v1854_v53, 0.0  ;;  %v578_v31 = vadd.f32 %v577_v47, %v576_v1  ;;  %v478_v38 = vmul.f32 %v1824_v39, %v1824_v39 }
  0x6d   : > { %v397_v54 = vsel %vm299_vm0, %v1862_v25, 0.0  ;;  %v1884_v47 = vunpack.c.l.bf16 %v1451_v28  ;;  %v587_v39 = vsel %vm299_vm0, %v479_v19, 0.0  ;;  %v483_v44 = vmul.f32 %v1862_v25, %v1862_v25 }
  0x6e   : > { %v392_v10 = vadd.f32 %v391_v63, %v390_v40  ;;  %v1877_v63 = vunpack.c.h.bf16 %v1450_v51  ;;  %v580_v15 = vadd.f32 %v579_v29, %v578_v31  ;;  %v585_v29 = vsel %vm299_vm0, %v478_v38, 0.0  ;;  %v1453_v38 = vld [vmem:[%s1515_s17 + $0xe0] sm:$0xff]  }
  0x6f   : > { %2552 = vst [vmem:[#allocation17_spill] sm:$0xff] %v1884_v47 }
  0x70   : > { %v394_v12 = vadd.f32 %v393_v27, %v392_v10  ;;  %2551 = vst [vmem:[#allocation16_spill] sm:$0xff] %v1877_v63  ;;  %v399_v27 = vsel %vm299_vm0, %v1869_v37, 0.0  ;;  %v582_v1 = vadd.f32 %v581_v59, %v580_v15  ;;  %v480_v10 = vmul.f32 %v1839_v18, %v1839_v18 }
  0x71   : > { %v401_v31 = vsel %vm299_vm0, %v1877_v63, 0.0  ;;  %v1899_v59 = vunpack.c.l.bf16 %v1452_v8  ;;  %v591_v18 = vsel %vm299_vm0, %v481_v58, 0.0  ;;  %v485_v25 = vmul.f32 %v1877_v63, %v1877_v63 }
  0x72   : > { %v396_v40 = vadd.f32 %v395_v50, %v394_v12  ;;  %v1892_v50 = vunpack.c.h.bf16 %v1451_v28  ;;  %v584_v46 = vadd.f32 %v583_v62, %v582_v1  ;;  %v589_v62 = vsel %vm299_vm0, %v480_v10, 0.0  ;;  %v1454_v10 = vld [vmem:[%s1515_s17 + $0xe8] sm:$0xff]  }
  0x73   : > { %2554 = vst [vmem:[#allocation19_spill] sm:$0xff] %v1899_v59 }
  0x74   : > { %v398_v51 = vadd.f32 %v397_v54, %v396_v40  ;;  %2553 = vst [vmem:[#allocation18_spill] sm:$0xff] %v1892_v50  ;;  %v403_v54 = vsel %vm299_vm0, %v1884_v47, 0.0  ;;  %v586_v15 = vadd.f32 %v585_v29, %v584_v46  ;;  %v482_v40 = vmul.f32 %v1854_v53, %v1854_v53 }
  0x75   : > { %v405_v1 = vsel %vm299_vm0, %v1892_v50, 0.0  ;;  %v1914_v29 = vunpack.c.l.bf16 %v1453_v38  ;;  %v595_v53 = vsel %vm299_vm0, %v483_v44, 0.0  ;;  %v487_v63 = vmul.f32 %v1892_v50, %v1892_v50 }
  0x76   : > { %v400_v12 = vadd.f32 %v399_v27, %v398_v51  ;;  %v1907_v27 = vunpack.c.h.bf16 %v1452_v8  ;;  %v588_v19 = vadd.f32 %v587_v39, %v586_v15  ;;  %v593_v39 = vsel %vm299_vm0, %v482_v40, 0.0  ;;  %v1455_v40 = vld [vmem:[%s1515_s17 + $0xf0] sm:$0xff]  }
  0x77   : > { %v603_v50 = vsel %vm299_vm0, %v487_v63, 0.0 }
  0x78   : > { %v402_v28 = vadd.f32 %v401_v31, %v400_v12  ;;  %v407_v31 = vsel %vm299_vm0, %v1899_v59, 0.0  ;;  %v590_v46 = vadd.f32 %v589_v62, %v588_v19  ;;  %v484_v12 = vmul.f32 %v1869_v37, %v1869_v37 }
  0x79   : > { %v409_v15 = vsel %vm299_vm0, %v1907_v27, 0.0  ;;  %v1929_v62 = vunpack.c.l.bf16 %v1454_v10  ;;  %v599_v37 = vsel %vm299_vm0, %v485_v25, 0.0 }
  0x7a   : > { %v404_v51 = vadd.f32 %v403_v54, %v402_v28  ;;  %v1922_v54 = vunpack.c.h.bf16 %v1453_v38  ;;  %v592_v58 = vadd.f32 %v591_v18, %v590_v46  ;;  %v597_v18 = vsel %vm299_vm0, %v484_v12, 0.0 }
  0x7c   : > { %v406_v8 = vadd.f32 %v405_v1, %v404_v51  ;;  %2555 = vst [vmem:[#allocation20_spill] sm:$0xff] %v1922_v54  ;;  %v411_v1 = vsel %vm299_vm0, %v1914_v29, 0.0  ;;  %v594_v19 = vadd.f32 %v593_v39, %v592_v58  ;;  %v486_v51 = vmul.f32 %v1884_v47, %v1884_v47 }
  0x7d   : > { %v413_v46 = vsel %vm299_vm0, %v1922_v54, 0.0  ;;  %v1944_v39 = vunpack.c.l.bf16 %v1455_v40  ;;  %v491_v63 = vmul.f32 %v1922_v54, %v1922_v54 }
  0x7e   : > { %v408_v28 = vadd.f32 %v407_v31, %v406_v8  ;;  %v1937_v31 = vunpack.c.h.bf16 %v1454_v10  ;;  %v596_v44 = vadd.f32 %v595_v53, %v594_v19  ;;  %v488_v10 = vmul.f32 %v1899_v59, %v1899_v59 }
  0x7f   : > { %2557 = vst [vmem:[#allocation22_spill] sm:$0xff] %v1944_v39  ;;  %v601_v47 = vsel %vm299_vm0, %v486_v51, 0.0  ;;  %v1952_v53 = vunpack.c.h.bf16 %v1455_v40  ;;  %v490_v40 = vmul.f32 %v1914_v29, %v1914_v29 }
  0x80   : > { %v410_v38 = vadd.f32 %v409_v15, %v408_v28  ;;  %2556 = vst [vmem:[#allocation21_spill] sm:$0xff] %v1937_v31  ;;  %v415_v15 = vsel %vm299_vm0, %v1929_v62, 0.0  ;;  %v598_v58 = vadd.f32 %v597_v18, %v596_v44  ;;  %v1456_v28 = vld [vmem:[%s1515_s17 + $0xf8] sm:$0xff]   ;;  %v605_v51 = vsel %vm299_vm0, %v488_v10, 0.0 }
  0x81   : > { %2558 = vst [vmem:[#allocation23_spill] sm:$0xff] %v1952_v53  ;;  %v1959_v18 = vunpack.c.l.bf16 %v1456_v28  ;;  %v1966_v59 = vunpack.c.h.bf16 %v1456_v28  ;;  %v492_v10 = vmul.f32 %v1929_v62, %v1929_v62  ;;  %v609_v28 = vsel %vm299_vm0, %v490_v40, 0.0 }
  0x82   : > { %v412_v8 = vadd.f32 %v411_v1, %v410_v38  ;;  %v417_v1 = vsel %vm299_vm0, %v1937_v31, 0.0  ;;  %v600_v19 = vadd.f32 %v599_v37, %v598_v58  ;;  %v489_v38 = vmul.f32 %v1907_v27, %v1907_v27 }
  0x83   : > { %2559 = vst [vmem:[#allocation24_spill] sm:$0xff] %v1959_v18  ;;  %v421_v37 = vsel %vm299_vm0, %v1952_v53, 0.0  ;;  %v495_v40 = vmul.f32 %v1952_v53, %v1952_v53 }
  0x84   : > { %v414_v12 = vadd.f32 %v413_v46, %v412_v8  ;;  %v419_v46 = vsel %vm299_vm0, %v1944_v39, 0.0  ;;  %v602_v44 = vadd.f32 %v601_v47, %v600_v19  ;;  %2560 = vst [vmem:[#allocation25_spill] sm:$0xff] %v1966_v59  ;;  %v423_v47 = vsel %vm299_vm0, %v1959_v18, 0.0 }
  0x86   : > { %v416_v25 = vadd.f32 %v415_v15, %v414_v12  ;;  %v604_v15 = vadd.f32 %v603_v50, %v602_v44  ;;  %v607_v12 = vsel %vm299_vm0, %v489_v38, 0.0  ;;  %v493_v44 = vmul.f32 %v1937_v31, %v1937_v31 }
  0x87   : > { %v611_v38 = vsel %vm299_vm0, %v491_v63, 0.0 }
  0x88   : > { %v418_v8 = vadd.f32 %v417_v1, %v416_v25  ;;  %v606_v1 = vadd.f32 %v605_v51, %v604_v15  ;;  %v425_v25 = vsel %vm299_vm0, %v1966_v59, 0.0  ;;  %v494_v51 = vmul.f32 %v1944_v39, %v1944_v39 }
  0x8a   : > { %v420_v58 = vadd.f32 %v419_v46, %v418_v8  ;;  %v608_v50 = vadd.f32 %v607_v12, %v606_v1  ;;  %v615_v12 = vsel %vm299_vm0, %v493_v44, 0.0  ;;  %v617_v63 = vsel %vm299_vm0, %v494_v51, 0.0 }
  0x8c   : > { %v422_v19 = vadd.f32 %v421_v37, %v420_v58  ;;  %v610_v8 = vadd.f32 %v609_v28, %v608_v50  ;;  %v613_v37 = vsel %vm299_vm0, %v492_v10, 0.0  ;;  %v497_v50 = vmul.f32 %v1966_v59, %v1966_v59 }
  0x8d   : > { %v619_v10 = vsel %vm299_vm0, %v495_v40, 0.0 }
  0x8e   : > { %v424_v46 = vadd.f32 %v423_v47, %v422_v19  ;;  %v612_v15 = vadd.f32 %v611_v38, %v610_v8  ;;  %v496_v19 = vmul.f32 %v1959_v18, %v1959_v18  ;;  %v623_v44 = vsel %vm299_vm0, %v497_v50, 0.0 }
  0x90   : > { %v426_v54 = vadd.f32 %v425_v25, %v424_v46  ;;  %v614_v47 = vadd.f32 %v613_v37, %v612_v15  ;;  %v621_v38 = vsel %vm299_vm0, %v496_v19, 0.0 }
  0x92   : > { %v427_v58 = vrot.slane %v426_v54, 4  ;;  %v616_v28 = vadd.f32 %v615_v12, %v614_v47 }
  0x94   : > { %v428_v1 = vadd.f32 %v427_v58, %v426_v54  ;;  %v618_v46 = vadd.f32 %v617_v63, %v616_v28 }
  0x96   : > { %v429_v25 = vrot.slane %v428_v1, 2  ;;  %v620_v53 = vadd.f32 %v619_v10, %v618_v46 }
  0x98   : > { %v430_v8 = vadd.f32 %v429_v25, %v428_v1  ;;  %v622_v54 = vadd.f32 %v621_v38, %v620_v53 }
  0x9a   : > { %v431_v37 = vrot.slane %v430_v8, 1  ;;  %v624_v15 = vadd.f32 %v623_v44, %v622_v54  ;;  %v2034_v54 = vld [vmem:[%s2510_s1] ss:$0 sm:$0xff] }
  0x9c   : > { %v625_v58 = vrot.slane %v624_v15, 4  ;;  %v432_v18 = vadd.f32 %v431_v37, %v430_v8 }
  0x9e   : > { %v626_v51 = vadd.f32 %v625_v58, %v624_v15  ;;  %v1997_v47 = vmul.f32 0.001953125, %v432_v18 }
  0xa0   : > { %v627_v12 = vrot.slane %v626_v51, 2  ;;  %v632_v40 = vmul.f32 %v1997_v47, %v1997_v47  ;;  %v634_v50 = vsub.f32 %v1519_v2, %v1997_v47  ;;  %v635_v18 = vsub.f32 %v1521_v3, %v1997_v47 }
  0xa1   : > { %v639_v38 = vsub.f32 %v1537_v13, %v1997_v47  ;;  %v640_v2 = vsub.f32 %v1541_v16, %v1997_v47  ;;  %v641_v8 = vsub.f32 %v1546_v20, %v1997_v47  ;;  %v642_v3 = vsub.f32 %v1550_v23, %v1997_v47 }
  0xa2   : > { %v628_v39 = vadd.f32 %v627_v12, %v626_v51 }
  0xa4   : > { %v629_v59 = vrot.slane %v628_v39, 1 }
  0xa6   : > { %v630_v31 = vadd.f32 %v629_v59, %v628_v39  ;;  %v636_v59 = vsub.f32 %v1523_v4, %v1997_v47  ;;  %v638_v39 = vsub.f32 %v1528_v7, %v1997_v47  ;;  %v643_v4 = vsub.f32 %v1561_v30, %v1997_v47 }
  0xa7   : > { %v645_v7 = vsub.f32 %v1577_v42, %v1997_v47 }
  0xa8   : > { %v631_v19 = vmul.f32 0.001953125, %v630_v31  ;;  %v637_v31 = vsub.f32 %v1526_v6, %v1997_v47  ;;  %v644_v6 = vsub.f32 %v1567_v34, %v1997_v47 }
  0xaa   : > { %v633_v1 = vsub.f32 %v631_v19, %v632_v40 }
  0xac   : > { %v698_v63 = vadd.f32 1e-05, %v633_v1 }
  0xae   : > { %1467 = vrsqrt.f32 %v698_v63  ;;  %vm705_vm1 = vweird.f32 %v698_v63 }
  0xb4   : > { %v1468_v28 = vpop.eup %1467 }
  0xb5   : > { %v700_v53 = vmul.f32 %v1468_v28, %v698_v63  ;;  %vm706_vm2 = vweird.f32 %v1468_v28 }
  0xb6   : > { %vm707_vm3 = vmor %vm705_vm1, %vm706_vm2 }
  0xb7   : > { %v701_v25 = vmul.f32 %v1468_v28, %v700_v53  ;;  %v2056_v53 = vld [vmem:[%s2511_s2] ss:$0 sm:$0xff] }
  0xb9   : > { %v702_v10 = vmul.f32 0.5, %v701_v25 }
  0xbb   : > { %v703_v46 = vsub.f32 1.5, %v702_v10 }
  0xbd   : > { %v704_v13 = vmul.f32 %v1468_v28, %v703_v46 }
  0xbf   : > { %v2044_v12 = vsel %vm707_vm3, %v1468_v28, %v704_v13 }
  0xc0   : > { %v709_v63 = vmul.f32 %v2044_v12, %v634_v50  ;;  %v710_v28 = vmul.f32 %v2044_v12, %v635_v18  ;;  %v711_v25 = vmul.f32 %v2044_v12, %v636_v59  ;;  %v712_v10 = vmul.f32 %v2044_v12, %v637_v31 }
  0xc1   : > { %v713_v46 = vmul.f32 %v2044_v12, %v638_v39  ;;  %v714_v13 = vmul.f32 %v2044_v12, %v639_v38  ;;  %v715_v1 = vmul.f32 %v2044_v12, %v640_v2  ;;  %v716_v50 = vmul.f32 %v2044_v12, %v641_v8 }
  0xc2   : > { %v777_v19 = vmul.f32 %v2034_v54, %v709_v63  ;;  %v778_v40 = vmul.f32 %v2034_v54, %v710_v28  ;;  %v779_v51 = vmul.f32 %v2034_v54, %v711_v25  ;;  %v780_v18 = vmul.f32 %v2034_v54, %v712_v10 }
  0xc3   : > { %v781_v59 = vmul.f32 %v2034_v54, %v713_v46  ;;  %v782_v31 = vmul.f32 %v2034_v54, %v714_v13  ;;  %v783_v39 = vmul.f32 %v2034_v54, %v715_v1  ;;  %v784_v38 = vmul.f32 %v2034_v54, %v716_v50 }
  0xc4   : > { %v845_v2 = vadd.f32 %v2056_v53, %v777_v19  ;;  %v846_v8 = vadd.f32 %v2056_v53, %v778_v40  ;;  %v847_v63 = vadd.f32 %v2056_v53, %v779_v51  ;;  %v848_v28 = vadd.f32 %v2056_v53, %v780_v18 }
  0xc5   : > { %v849_v25 = vadd.f32 %v2056_v53, %v781_v59  ;;  %v850_v10 = vadd.f32 %v2056_v53, %v782_v31  ;;  %v851_v46 = vadd.f32 %v2056_v53, %v783_v39  ;;  %v852_v13 = vadd.f32 %v2056_v53, %v784_v38 }
  0xc6   : > { %vm909_vm5 = vcmp.ge.f32.partialorder %v845_v2, 0.0  ;;  %v973_v1 = vmul.f32 0.01, %v845_v2  ;;  %vm910_vm6 = vcmp.ge.f32.partialorder %v846_v8, 0.0  ;;  %v974_v50 = vmul.f32 0.01, %v846_v8 }
  0xc7   : > { %vm911_vm7 = vcmp.ge.f32.partialorder %v847_v63, 0.0  ;;  %v975_v19 = vmul.f32 0.01, %v847_v63  ;;  %vm912_vm8 = vcmp.ge.f32.partialorder %v848_v28, 0.0  ;;  %v976_v40 = vmul.f32 0.01, %v848_v28 }
  0xc8   : > { %v1037_v51 = vsel %vm909_vm5, %v845_v2, %v973_v1  ;;  %v1038_v18 = vsel %vm910_vm6, %v846_v8, %v974_v50  ;;  %vm913_vm9 = vcmp.ge.f32.partialorder %v849_v25, 0.0  ;;  %v977_v59 = vmul.f32 0.01, %v849_v25 }
  0xc9   : > { %v1101_v31 = vpack.c.bf16 %v1037_v51, %v1037_v51  ;;  %v1102_v39 = vpack.c.bf16 %v1038_v18, %v1038_v18  ;;  %v1039_v38 = vsel %vm911_vm7, %v847_v63, %v975_v19  ;;  %v1040_v58 = vsel %vm912_vm8, %v848_v28, %v976_v40 }
  0xca   : > { %v1103_v15 = vpack.c.bf16 %v1039_v38, %v1039_v38  ;;  %v1104_v37 = vpack.c.bf16 %v1040_v58, %v1040_v58  ;;  %v1041_v44 = vsel %vm913_vm9, %v849_v25, %v977_v59  ;;  %vm914_vm10 = vcmp.ge.f32.partialorder %v850_v10, 0.0 }
  0xcb   : > { %1166 = vst.msk [vmem:[%s2086_s24] sm:$0xf] %vm1165_vm4, %v1101_v31  ;;  %v1105_v20 = vpack.c.bf16 %v1041_v44, %v1041_v44  ;;  %v978_v16 = vmul.f32 0.01, %v850_v10  ;;  %vm915_vm11 = vcmp.ge.f32.partialorder %v851_v46, 0.0  ;;  %vm916_vm12 = vcmp.ge.f32.partialorder %v852_v13, 0.0 }
  0xcc   : > { %1167 = vst.msk [vmem:[%s2086_s24 + $0x4] sm:$0xf] %vm1165_vm4, %v1102_v39  ;;  %v979_v2 = vmul.f32 0.01, %v851_v46  ;;  %v980_v8 = vmul.f32 0.01, %v852_v13  ;;  %v717_v63 = vmul.f32 %v2044_v12, %v642_v3  ;;  %v718_v58 = vmul.f32 %v2044_v12, %v643_v4 }
  0xcd   : > { %1168 = vst.msk [vmem:[%s2086_s24 + $0x8] sm:$0xf] %vm1165_vm4, %v1103_v15  ;;  %v1042_v44 = vsel %vm914_vm10, %v850_v10, %v978_v16  ;;  %v719_v28 = vmul.f32 %v2044_v12, %v644_v6  ;;  %v720_v23 = vmul.f32 %v2044_v12, %v645_v7  ;;  %v2561_v3 = vsub.f32 %v1584_v48, %v1997_v47 }
  0xce   : > { %1169 = vst.msk [vmem:[%s2086_s24 + $0xc] sm:$0xf] %vm1165_vm4, %v1104_v37  ;;  %v1106_v4 = vpack.c.bf16 %v1042_v44, %v1042_v44  ;;  %v1043_v16 = vsel %vm915_vm11, %v851_v46, %v979_v2  ;;  %v1044_v15 = vsel %vm916_vm12, %v852_v13, %v980_v8  ;;  %v785_v34 = vmul.f32 %v2034_v54, %v717_v63 }
  0xcf   : > { %v721_v30 = vmul.f32 %v2044_v12, %v2561_v3  ;;  %1170 = vst.msk [vmem:[%s2086_s24 + $0x10] sm:$0xf] %vm1165_vm4, %v1105_v20  ;;  %v1107_v6 = vpack.c.bf16 %v1043_v16, %v1043_v16  ;;  %v1108_v42 = vpack.c.bf16 %v1044_v15, %v1044_v15  ;;  %v786_v7 = vmul.f32 %v2034_v54, %v718_v58 }
  0xd0   : > { %v787_v25 = vmul.f32 %v2034_v54, %v719_v28  ;;  %1171 = vst.msk [vmem:[%s2086_s24 + $0x14] sm:$0xf] %vm1165_vm4, %v1106_v4  ;;  %v853_v48 = vadd.f32 %v2056_v53, %v785_v34  ;;  %v788_v37 = vmul.f32 %v2034_v54, %v720_v23  ;;  %v2562_v46 = vsub.f32 %v1592_v55, %v1997_v47 }
  0xd1   : > { %v789_v10 = vmul.f32 %v2034_v54, %v721_v30  ;;  %1172 = vst.msk [vmem:[%s2086_s24 + $0x18] sm:$0xf] %vm1165_vm4, %v1107_v6  ;;  %v854_v20 = vadd.f32 %v2056_v53, %v786_v7  ;;  %v2563_v50 = vsub.f32 %v1599_v61, %v1997_v47  ;;  %v2564_v40 = vsub.f32 %v1607_v9, %v1997_v47 }
  0xd2   : > { %v722_v13 = vmul.f32 %v2044_v12, %v2562_v46  ;;  %v855_v1 = vadd.f32 %v2056_v53, %v787_v25  ;;  %1173 = vst.msk [vmem:[%s2086_s24 + $0x1c] sm:$0xf] %vm1165_vm4, %v1108_v42  ;;  %vm917_vm13 = vcmp.ge.f32.partialorder %v853_v48, 0.0  ;;  %v981_v55 = vmul.f32 0.01, %v853_v48 }
  0xd3   : > { %v723_v19 = vmul.f32 %v2044_v12, %v2563_v50  ;;  %v724_v51 = vmul.f32 %v2044_v12, %v2564_v40  ;;  %v856_v18 = vadd.f32 %v2056_v53, %v788_v37  ;;  %v857_v59 = vadd.f32 %v2056_v53, %v789_v10 }
  0xd4   : > { %vm918_vm14 = vcmp.ge.f32.partialorder %v854_v20, 0.0  ;;  %v982_v31 = vmul.f32 0.01, %v854_v20  ;;  %vm919_vm15 = vcmp.ge.f32.partialorder %v855_v1, 0.0  ;;  %v983_v61 = vmul.f32 0.01, %v855_v1 }
  0xd5   : > { %v1045_v39 = vsel %vm917_vm13, %v853_v48, %v981_v55  ;;  %vm920_vm0 = vcmp.ge.f32.partialorder %v856_v18, 0.0  ;;  %v984_v38 = vmul.f32 0.01, %v856_v18  ;;  %vm921_vm1 = vcmp.ge.f32.partialorder %v857_v59, 0.0 }
  0xd6   : > { %v1109_v9 = vpack.c.bf16 %v1045_v39, %v1045_v39  ;;  %v1046_v2 = vsel %vm918_vm14, %v854_v20, %v982_v31  ;;  %v1047_v8 = vsel %vm919_vm15, %v855_v1, %v983_v61  ;;  %v985_v63 = vmul.f32 0.01, %v857_v59 }
  0xd7   : > { %v1110_v58 = vpack.c.bf16 %v1046_v2, %v1046_v2  ;;  %v1111_v44 = vpack.c.bf16 %v1047_v8, %v1047_v8  ;;  %v1048_v28 = vsel %vm920_vm0, %v856_v18, %v984_v38  ;;  %v790_v23 = vmul.f32 %v2034_v54, %v722_v13 }
  0xd8   : > { %1174 = vst.msk [vmem:[%s2086_s24 + $0x20] sm:$0xf] %vm1165_vm4, %v1109_v9  ;;  %v1112_v3 = vpack.c.bf16 %v1048_v28, %v1048_v28  ;;  %v1049_v30 = vsel %vm921_vm1, %v857_v59, %v985_v63  ;;  %v791_v4 = vmul.f32 %v2034_v54, %v723_v19  ;;  %v792_v16 = vmul.f32 %v2034_v54, %v724_v51 }
  0xd9   : > { %1175 = vst.msk [vmem:[%s2086_s24 + $0x24] sm:$0xf] %vm1165_vm4, %v1110_v58  ;;  %v1113_v15 = vpack.c.bf16 %v1049_v30, %v1049_v30  ;;  %v858_v34 = vadd.f32 %v2056_v53, %v790_v23  ;;  %v2565_v6 = vsub.f32 %v1614_v17, %v1997_v47  ;;  %v2566_v7 = vsub.f32 %v1622_v26, %v1997_v47 }
  0xda   : > { %1176 = vst.msk [vmem:[%s2086_s24 + $0x28] sm:$0xf] %vm1165_vm4, %v1111_v44  ;;  %v859_v48 = vadd.f32 %v2056_v53, %v791_v4  ;;  %v860_v37 = vadd.f32 %v2056_v53, %v792_v16  ;;  %v2567_v10 = vsub.f32 %v1629_v33, %v1997_v47  ;;  %v2568_v17 = vsub.f32 %v1637_v41, %v1997_v47 }
  0xdb   : > { %v725_v42 = vmul.f32 %v2044_v12, %v2565_v6  ;;  %v726_v25 = vmul.f32 %v2044_v12, %v2566_v7  ;;  %1177 = vst.msk [vmem:[%s2086_s24 + $0x2c] sm:$0xf] %vm1165_vm4, %v1112_v3  ;;  %vm922_vm2 = vcmp.ge.f32.partialorder %v858_v34, 0.0  ;;  %v986_v26 = vmul.f32 0.01, %v858_v34 }
  0xdc   : > { %v727_v46 = vmul.f32 %v2044_v12, %v2567_v10  ;;  %v728_v13 = vmul.f32 %v2044_v12, %v2568_v17  ;;  %1178 = vst.msk [vmem:[%s2086_s24 + $0x30] sm:$0xf] %vm1165_vm4, %v1113_v15  ;;  %vm923_vm3 = vcmp.ge.f32.partialorder %v859_v48, 0.0  ;;  %v987_v33 = vmul.f32 0.01, %v859_v48 }
  0xdd   : > { %v793_v20 = vmul.f32 %v2034_v54, %v725_v42  ;;  %v794_v1 = vmul.f32 %v2034_v54, %v726_v25  ;;  %vm924_vm5 = vcmp.ge.f32.partialorder %v860_v37, 0.0  ;;  %v1050_v19 = vsel %vm922_vm2, %v858_v34, %v986_v26 }
  0xde   : > { %v795_v50 = vmul.f32 %v2034_v54, %v727_v46  ;;  %v988_v41 = vmul.f32 0.01, %v860_v37  ;;  %v1114_v55 = vpack.c.bf16 %v1050_v19, %v1050_v19  ;;  %v1051_v18 = vsel %vm923_vm3, %v859_v48, %v987_v33 }
  0xdf   : > { %v861_v40 = vadd.f32 %v2056_v53, %v793_v20  ;;  %v862_v51 = vadd.f32 %v2056_v53, %v794_v1  ;;  %v796_v31 = vmul.f32 %v2034_v54, %v728_v13  ;;  %v1115_v61 = vpack.c.bf16 %v1051_v18, %v1051_v18 }
  0xe0   : > { %v863_v59 = vadd.f32 %v2056_v53, %v795_v50  ;;  %v1052_v39 = vsel %vm924_vm5, %v860_v37, %v988_v41  ;;  %1179 = vst.msk [vmem:[%s2086_s24 + $0x34] sm:$0xf] %vm1165_vm4, %v1114_v55  ;;  %v2569_v44 = vsub.f32 %v1644_v49, %v1997_v47  ;;  %v2570_v30 = vsub.f32 %v1652_v57, %v1997_v47 }
  0xe1   : > { %vm925_vm6 = vcmp.ge.f32.partialorder %v861_v40, 0.0  ;;  %v989_v38 = vmul.f32 0.01, %v861_v40  ;;  %v1116_v9 = vpack.c.bf16 %v1052_v39, %v1052_v39  ;;  %vm926_vm7 = vcmp.ge.f32.partialorder %v862_v51, 0.0  ;;  %1180 = vst.msk [vmem:[%s2086_s24 + $0x38] sm:$0xf] %vm1165_vm4, %v1115_v61 }
  0xe2   : > { %v990_v2 = vmul.f32 0.01, %v862_v51  ;;  %vm927_vm8 = vcmp.ge.f32.partialorder %v863_v59, 0.0  ;;  %v991_v63 = vmul.f32 0.01, %v863_v59  ;;  %v864_v58 = vadd.f32 %v2056_v53, %v796_v31 }
  0xe3   : > { %v1053_v8 = vsel %vm925_vm6, %v861_v40, %v989_v38  ;;  %v729_v28 = vmul.f32 %v2044_v12, %v2569_v44  ;;  %1181 = vst.msk [vmem:[%s2086_s24 + $0x3c] sm:$0xf] %vm1165_vm4, %v1116_v9  ;;  %v730_v4 = vmul.f32 %v2044_v12, %v2570_v30  ;;  %v656_v16 = vsub.f32 %v1659_v0, %v1997_v47 }
  0xe4   : > { %v1117_v23 = vpack.c.bf16 %v1053_v8, %v1053_v8  ;;  %v1054_v3 = vsel %vm926_vm7, %v862_v51, %v990_v2  ;;  %v1055_v34 = vsel %vm927_vm8, %v863_v59, %v991_v63  ;;  %vm928_vm9 = vcmp.ge.f32.partialorder %v864_v58, 0.0 }
  0xe5   : > { %v1118_v15 = vpack.c.bf16 %v1054_v3, %v1054_v3  ;;  %v992_v49 = vmul.f32 0.01, %v864_v58  ;;  %v1119_v6 = vpack.c.bf16 %v1055_v34, %v1055_v34  ;;  %v797_v42 = vmul.f32 %v2034_v54, %v729_v28 }
  0xe6   : > { %1182 = vst.msk [vmem:[%s2086_s24 + $0x40] sm:$0xf] %vm1165_vm4, %v1117_v23  ;;  %v798_v7 = vmul.f32 %v2034_v54, %v730_v4  ;;  %v731_v57 = vmul.f32 %v2044_v12, %v656_v16  ;;  %v657_v0 = vsub.f32 %v1667_v14, %v1997_v47  ;;  %v658_v48 = vsub.f32 %v1674_v24, %v1997_v47 }
  0xe7   : > { %1183 = vst.msk [vmem:[%s2086_s24 + $0x44] sm:$0xf] %vm1165_vm4, %v1118_v15  ;;  %v1056_v25 = vsel %vm928_vm9, %v864_v58, %v992_v49  ;;  %v659_v37 = vsub.f32 %v1682_v35, %v1997_v47  ;;  %v865_v46 = vadd.f32 %v2056_v53, %v797_v42  ;;  %v660_v24 = vsub.f32 %v1689_v43, %v1997_v47 }
  0xe8   : > { %1184 = vst.msk [vmem:[%s2086_s24 + $0x48] sm:$0xf] %vm1165_vm4, %v1119_v6  ;;  %v1120_v10 = vpack.c.bf16 %v1056_v25, %v1056_v25  ;;  %v866_v17 = vadd.f32 %v2056_v53, %v798_v7  ;;  %v799_v13 = vmul.f32 %v2034_v54, %v731_v57  ;;  %v732_v26 = vmul.f32 %v2044_v12, %v657_v0 }
  0xe9   : > { %v733_v20 = vmul.f32 %v2044_v12, %v658_v48  ;;  %v734_v14 = vmul.f32 %v2044_v12, %v659_v37  ;;  %vm929_vm10 = vcmp.ge.f32.partialorder %v865_v46, 0.0  ;;  %v993_v35 = vmul.f32 0.01, %v865_v46 }
  0xea   : > { %1185 = vst.msk [vmem:[%s2086_s24 + $0x4c] sm:$0xf] %vm1165_vm4, %v1120_v10  ;;  %vm930_vm11 = vcmp.ge.f32.partialorder %v866_v17, 0.0  ;;  %v867_v1 = vadd.f32 %v2056_v53, %v799_v13  ;;  %v994_v33 = vmul.f32 0.01, %v866_v17  ;;  %v800_v50 = vmul.f32 %v2034_v54, %v732_v26 }
  0xeb   : > { %v801_v19 = vmul.f32 %v2034_v54, %v733_v20  ;;  %v802_v41 = vmul.f32 %v2034_v54, %v734_v14  ;;  %v1057_v40 = vsel %vm929_vm10, %v865_v46, %v993_v35  ;;  %v735_v43 = vmul.f32 %v2044_v12, %v660_v24 }
  0xec   : > { %vm931_vm12 = vcmp.ge.f32.partialorder %v867_v1, 0.0  ;;  %v995_v51 = vmul.f32 0.01, %v867_v1  ;;  %v1121_v55 = vpack.c.bf16 %v1057_v40, %v1057_v40  ;;  %v1058_v18 = vsel %vm930_vm11, %v866_v17, %v994_v33 }
  0xed   : > { %v868_v59 = vadd.f32 %v2056_v53, %v800_v50  ;;  %v869_v31 = vadd.f32 %v2056_v53, %v801_v19  ;;  %v1122_v61 = vpack.c.bf16 %v1058_v18, %v1058_v18  ;;  %v870_v38 = vadd.f32 %v2056_v53, %v802_v41 }
  0xee   : > { %v1059_v39 = vsel %vm931_vm12, %v867_v1, %v995_v51  ;;  %v803_v9 = vmul.f32 %v2034_v54, %v735_v43  ;;  %1186 = vst.msk [vmem:[%s2086_s24 + $0x50] sm:$0xf] %vm1165_vm4, %v1121_v55  ;;  %v661_v44 = vsub.f32 %v1697_v52, %v1997_v47  ;;  %v662_v3 = vsub.f32 %v1704_v60, %v1997_v47 }
  0xef   : > { %v1123_v2 = vpack.c.bf16 %v1059_v39, %v1059_v39  ;;  %vm932_vm13 = vcmp.ge.f32.partialorder %v868_v59, 0.0  ;;  %v996_v8 = vmul.f32 0.01, %v868_v59  ;;  %vm933_vm14 = vcmp.ge.f32.partialorder %v869_v31, 0.0  ;;  %1187 = vst.msk [vmem:[%s2086_s24 + $0x54] sm:$0xf] %vm1165_vm4, %v1122_v61 }
  0xf0   : > { %v997_v63 = vmul.f32 0.01, %v869_v31  ;;  %vm934_vm15 = vcmp.ge.f32.partialorder %v870_v38, 0.0  ;;  %v871_v58 = vadd.f32 %v2056_v53, %v803_v9  ;;  %v998_v23 = vmul.f32 0.01, %v870_v38 }
  0xf1   : > { %1188 = vst.msk [vmem:[%s2086_s24 + $0x58] sm:$0xf] %vm1165_vm4, %v1123_v2  ;;  %v1060_v28 = vsel %vm932_vm13, %v868_v59, %v996_v8  ;;  %v663_v30 = vsub.f32 %v1712_v11, %v1997_v47  ;;  %v736_v52 = vmul.f32 %v2044_v12, %v661_v44  ;;  %v737_v6 = vmul.f32 %v2044_v12, %v662_v3 }
  0xf2   : > { %v1124_v4 = vpack.c.bf16 %v1060_v28, %v1060_v28  ;;  %v1061_v16 = vsel %vm933_vm14, %v869_v31, %v997_v63  ;;  %vm935_vm0 = vcmp.ge.f32.partialorder %v871_v58, 0.0  ;;  %v999_v15 = vmul.f32 0.01, %v871_v58 }
  0xf3   : > { %v1125_v34 = vpack.c.bf16 %v1061_v16, %v1061_v16  ;;  %v1062_v49 = vsel %vm934_vm15, %v870_v38, %v998_v23  ;;  %v738_v60 = vmul.f32 %v2044_v12, %v663_v30  ;;  %v664_v11 = vsub.f32 %v1719_v22, %v1997_v47 }
  0xf4   : > { %1189 = vst.msk [vmem:[%s2086_s24 + $0x5c] sm:$0xf] %vm1165_vm4, %v1124_v4  ;;  %v1126_v42 = vpack.c.bf16 %v1062_v49, %v1062_v49  ;;  %v1063_v7 = vsel %vm935_vm0, %v871_v58, %v999_v15  ;;  %v804_v25 = vmul.f32 %v2034_v54, %v736_v52  ;;  %v805_v0 = vmul.f32 %v2034_v54, %v737_v6  ;;  %v2571_v15 = vld [vmem:[#allocation2_spill] sm:$0xff] }
  0xf5   : > { %1190 = vst.msk [vmem:[%s2086_s24 + $0x60] sm:$0xf] %vm1165_vm4, %v1125_v34  ;;  %v1127_v57 = vpack.c.bf16 %v1063_v7, %v1063_v7  ;;  %v665_v48 = vsub.f32 %v1727_v36, %v1997_v47  ;;  %v806_v37 = vmul.f32 %v2034_v54, %v738_v60  ;;  %v739_v10 = vmul.f32 %v2044_v12, %v664_v11 }
  0xf6   : > { %1191 = vst.msk [vmem:[%s2086_s24 + $0x64] sm:$0xf] %vm1165_vm4, %v1126_v42  ;;  %v666_v46 = vsub.f32 %v1734_v45, %v1997_v47  ;;  %v667_v22 = vsub.f32 %v1742_v56, %v1997_v47  ;;  %v872_v17 = vadd.f32 %v2056_v53, %v804_v25  ;;  %v873_v13 = vadd.f32 %v2056_v53, %v805_v0  ;;  %v2572_v0 = vld [vmem:[#allocation3_spill] sm:$0xff] }
  0xf7   : > { %1192 = vst.msk [vmem:[%s2086_s24 + $0x68] sm:$0xf] %vm1165_vm4, %v1127_v57  ;;  %v740_v36 = vmul.f32 %v2044_v12, %v665_v48  ;;  %v668_v26 = vsub.f32 %v1749_v5, %v1997_v47  ;;  %v874_v20 = vadd.f32 %v2056_v53, %v806_v37  ;;  %v807_v14 = vmul.f32 %v2034_v54, %v739_v10  ;;  %v2573_v37 = vld [vmem:[#allocation4_spill] sm:$0xff] }
  0xf8   : > { %v741_v45 = vmul.f32 %v2044_v12, %v666_v46  ;;  %v742_v24 = vmul.f32 %v2044_v12, %v667_v22  ;;  %vm936_vm1 = vcmp.ge.f32.partialorder %v872_v17, 0.0  ;;  %v1000_v56 = vmul.f32 0.01, %v872_v17 }
  0xf9   : > { %vm937_vm2 = vcmp.ge.f32.partialorder %v873_v13, 0.0  ;;  %v1001_v35 = vmul.f32 0.01, %v873_v13  ;;  %vm938_vm3 = vcmp.ge.f32.partialorder %v874_v20, 0.0  ;;  %v1002_v1 = vmul.f32 0.01, %v874_v20 }
  0xfa   : > { %v875_v33 = vadd.f32 %v2056_v53, %v807_v14  ;;  %v808_v50 = vmul.f32 %v2034_v54, %v740_v36  ;;  %v1064_v5 = vsel %vm936_vm1, %v872_v17, %v1000_v56  ;;  %v809_v41 = vmul.f32 %v2034_v54, %v741_v45  ;;  %v2574_v17 = vld [vmem:[#allocation5_spill] sm:$0xff]  ;;  %v2575_v36 = vld [vmem:[#allocation6_spill] sm:$0xff] }
  0xfb   : > { %v1065_v19 = vsel %vm937_vm2, %v873_v13, %v1001_v35  ;;  %v810_v40 = vmul.f32 %v2034_v54, %v742_v24  ;;  %v1128_v51 = vpack.c.bf16 %v1064_v5, %v1064_v5  ;;  %v1066_v55 = vsel %vm938_vm3, %v874_v20, %v1002_v1  ;;  %v2576_v5 = vld [vmem:[#allocation7_spill] sm:$0xff] }
  0xfc   : > { %v1129_v43 = vpack.c.bf16 %v1065_v19, %v1065_v19  ;;  %vm939_vm5 = vcmp.ge.f32.partialorder %v875_v33, 0.0  ;;  %v1130_v18 = vpack.c.bf16 %v1066_v55, %v1066_v55  ;;  %v1003_v59 = vmul.f32 0.01, %v875_v33 }
  0xfd   : > { %v876_v31 = vadd.f32 %v2056_v53, %v808_v50  ;;  %v877_v61 = vadd.f32 %v2056_v53, %v809_v41  ;;  %1193 = vst.msk [vmem:[%s2086_s24 + $0x6c] sm:$0xf] %vm1165_vm4, %v1128_v51  ;;  %v878_v39 = vadd.f32 %v2056_v53, %v810_v40  ;;  %v743_v38 = vmul.f32 %v2044_v12, %v668_v26 }
  0xfe   : > { %v669_v9 = vsub.f32 %v1757_v21, %v1997_v47  ;;  %v670_v2 = vsub.f32 %v1764_v32, %v1997_v47  ;;  %1194 = vst.msk [vmem:[%s2086_s24 + $0x70] sm:$0xf] %vm1165_vm4, %v1129_v43  ;;  %v1067_v8 = vsel %vm939_vm5, %v875_v33, %v1003_v59  ;;  %v671_v34 = vsub.f32 %v2571_v15, %v1997_v47 }
  0xff   : > { %vm940_vm6 = vcmp.ge.f32.partialorder %v876_v31, 0.0  ;;  %v1004_v63 = vmul.f32 0.01, %v876_v31  ;;  %vm941_vm7 = vcmp.ge.f32.partialorder %v877_v61, 0.0  ;;  %1195 = vst.msk [vmem:[%s2086_s24 + $0x74] sm:$0xf] %vm1165_vm4, %v1130_v18  ;;  %v1131_v58 = vpack.c.bf16 %v1067_v8, %v1067_v8 }
 0x100   : > { %v1005_v44 = vmul.f32 0.01, %v877_v61  ;;  %vm942_vm8 = vcmp.ge.f32.partialorder %v878_v39, 0.0  ;;  %v811_v28 = vmul.f32 %v2034_v54, %v743_v38  ;;  %v1006_v21 = vmul.f32 0.01, %v878_v39  ;;  %v2577_v38 = vld [vmem:[#allocation8_spill] sm:$0xff] }
 0x101   : > { %v1068_v23 = vsel %vm940_vm6, %v876_v31, %v1004_v63  ;;  %v744_v3 = vmul.f32 %v2044_v12, %v669_v9  ;;  %v745_v32 = vmul.f32 %v2044_v12, %v670_v2  ;;  %1196 = vst.msk [vmem:[%s2086_s24 + $0x78] sm:$0xf] %vm1165_vm4, %v1131_v58  ;;  %v746_v11 = vmul.f32 %v2044_v12, %v671_v34 }
 0x102   : > { %v1132_v30 = vpack.c.bf16 %v1068_v23, %v1068_v23  ;;  %v1069_v4 = vsel %vm941_vm7, %v877_v61, %v1005_v44  ;;  %v879_v16 = vadd.f32 %v2056_v53, %v811_v28  ;;  %v1070_v52 = vsel %vm942_vm8, %v878_v39, %v1006_v21  ;;  %v2578_v21 = vld [vmem:[#allocation9_spill] sm:$0xff] }
 0x103   : > { %v1133_v49 = vpack.c.bf16 %v1069_v4, %v1069_v4  ;;  %v812_v6 = vmul.f32 %v2034_v54, %v744_v3  ;;  %v813_v42 = vmul.f32 %v2034_v54, %v745_v32  ;;  %v1134_v7 = vpack.c.bf16 %v1070_v52, %v1070_v52 }
 0x104   : > { %1197 = vst.msk [vmem:[%s2086_s24 + $0x7c] sm:$0xf] %vm1165_vm4, %v1132_v30  ;;  %vm943_vm9 = vcmp.ge.f32.partialorder %v879_v16, 0.0  ;;  %v1007_v60 = vmul.f32 0.01, %v879_v16  ;;  %v672_v48 = vsub.f32 %v2572_v0, %v1997_v47  ;;  %v673_v10 = vsub.f32 %v2573_v37, %v1997_v47  ;;  %v2579_v30 = vld [vmem:[#allocation10_spill] sm:$0xff] }
 0x105   : > { %1198 = vst.msk [vmem:[%s2086_s24 + $0x80] sm:$0xf] %vm1165_vm4, %v1133_v49  ;;  %v880_v57 = vadd.f32 %v2056_v53, %v812_v6  ;;  %v881_v25 = vadd.f32 %v2056_v53, %v813_v42  ;;  %v814_v22 = vmul.f32 %v2034_v54, %v746_v11  ;;  %v674_v13 = vsub.f32 %v2574_v17, %v1997_v47  ;;  %v2580_v17 = vld [vmem:[#allocation11_spill] sm:$0xff] }
 0x106   : > { %1199 = vst.msk [vmem:[%s2086_s24 + $0x84] sm:$0xf] %vm1165_vm4, %v1134_v7  ;;  %v1071_v46 = vsel %vm943_vm9, %v879_v16, %v1007_v60  ;;  %v675_v26 = vsub.f32 %v2575_v36, %v1997_v47  ;;  %v747_v56 = vmul.f32 %v2044_v12, %v672_v48  ;;  %v748_v35 = vmul.f32 %v2044_v12, %v673_v10  ;;  %v2581_v36 = vld [vmem:[#allocation12_spill] sm:$0xff] }
 0x107   : > { %v1135_v20 = vpack.c.bf16 %v1071_v46, %v1071_v46  ;;  %vm944_vm10 = vcmp.ge.f32.partialorder %v880_v57, 0.0  ;;  %v1008_v14 = vmul.f32 0.01, %v880_v57  ;;  %vm945_vm11 = vcmp.ge.f32.partialorder %v881_v25, 0.0 }
 0x108   : > { %v1009_v45 = vmul.f32 0.01, %v881_v25  ;;  %v882_v24 = vadd.f32 %v2056_v53, %v814_v22  ;;  %v749_v33 = vmul.f32 %v2044_v12, %v674_v13  ;;  %v750_v50 = vmul.f32 %v2044_v12, %v675_v26 }
 0x109   : > { %1200 = vst.msk [vmem:[%s2086_s24 + $0x88] sm:$0xf] %vm1165_vm4, %v1135_v20  ;;  %v1072_v1 = vsel %vm944_vm10, %v880_v57, %v1008_v14  ;;  %v676_v19 = vsub.f32 %v2576_v5, %v1997_v47  ;;  %v815_v55 = vmul.f32 %v2034_v54, %v747_v56  ;;  %v816_v18 = vmul.f32 %v2034_v54, %v748_v35  ;;  %v2582_v20 = vld [vmem:[#allocation13_spill] sm:$0xff] }
 0x10a   : > { %v1136_v41 = vpack.c.bf16 %v1072_v1, %v1072_v1  ;;  %v1073_v40 = vsel %vm945_vm11, %v881_v25, %v1009_v45  ;;  %vm946_vm12 = vcmp.ge.f32.partialorder %v882_v24, 0.0  ;;  %v1010_v51 = vmul.f32 0.01, %v882_v24 }
 0x10b   : > { %v1137_v43 = vpack.c.bf16 %v1073_v40, %v1073_v40  ;;  %v817_v59 = vmul.f32 %v2034_v54, %v749_v33  ;;  %v818_v61 = vmul.f32 %v2034_v54, %v750_v50  ;;  %v751_v39 = vmul.f32 %v2044_v12, %v676_v19 }
 0x10c   : > { %1201 = vst.msk [vmem:[%s2086_s24 + $0x8c] sm:$0xf] %vm1165_vm4, %v1136_v41  ;;  %v1074_v31 = vsel %vm946_vm12, %v882_v24, %v1010_v51  ;;  %v677_v9 = vsub.f32 %v2577_v38, %v1997_v47  ;;  %v883_v8 = vadd.f32 %v2056_v53, %v815_v55  ;;  %v884_v63 = vadd.f32 %v2056_v53, %v816_v18 }
 0x10d   : > { %1202 = vst.msk [vmem:[%s2086_s24 + $0x90] sm:$0xf] %vm1165_vm4, %v1137_v43  ;;  %v1138_v2 = vpack.c.bf16 %v1074_v31, %v1074_v31  ;;  %v885_v58 = vadd.f32 %v2056_v53, %v817_v59  ;;  %v886_v44 = vadd.f32 %v2056_v53, %v818_v61  ;;  %v819_v28 = vmul.f32 %v2034_v54, %v751_v39  ;;  %v2583_v31 = vld [vmem:[#allocation14_spill] sm:$0xff]  ;;  %v2584_v39 = vld [vmem:[#allocation15_spill] sm:$0xff] }
 0x10e   : > { %v752_v23 = vmul.f32 %v2044_v12, %v677_v9  ;;  %v678_v3 = vsub.f32 %v2578_v21, %v1997_v47  ;;  %vm947_vm13 = vcmp.ge.f32.partialorder %v883_v8, 0.0  ;;  %v1011_v32 = vmul.f32 0.01, %v883_v8 }
 0x10f   : > { %1203 = vst.msk [vmem:[%s2086_s24 + $0x94] sm:$0xf] %vm1165_vm4, %v1138_v2  ;;  %vm948_vm14 = vcmp.ge.f32.partialorder %v884_v63, 0.0  ;;  %v679_v4 = vsub.f32 %v2579_v30, %v1997_v47  ;;  %v1012_v16 = vmul.f32 0.01, %v884_v63  ;;  %vm949_vm15 = vcmp.ge.f32.partialorder %v885_v58, 0.0 }
 0x110   : > { %v1013_v15 = vmul.f32 0.01, %v885_v58  ;;  %vm950_vm0 = vcmp.ge.f32.partialorder %v886_v44, 0.0  ;;  %v1075_v34 = vsel %vm947_vm13, %v883_v8, %v1011_v32  ;;  %v1014_v49 = vmul.f32 0.01, %v886_v44 }
 0x111   : > { %v887_v52 = vadd.f32 %v2056_v53, %v819_v28  ;;  %v820_v6 = vmul.f32 %v2034_v54, %v752_v23  ;;  %v1139_v42 = vpack.c.bf16 %v1075_v34, %v1075_v34  ;;  %v1076_v7 = vsel %vm948_vm14, %v884_v63, %v1012_v16 }
 0x112   : > { %v1077_v60 = vsel %vm949_vm15, %v885_v58, %v1013_v15  ;;  %v753_v11 = vmul.f32 %v2044_v12, %v678_v3  ;;  %v1140_v57 = vpack.c.bf16 %v1076_v7, %v1076_v7  ;;  %v1078_v0 = vsel %vm950_vm0, %v886_v44, %v1014_v49  ;;  %v2585_v3 = vld [vmem:[#allocation16_spill] sm:$0xff]  ;;  %v2586_v7 = vld [vmem:[#allocation17_spill] sm:$0xff] }
 0x113   : > { %v1141_v25 = vpack.c.bf16 %v1077_v60, %v1077_v60  ;;  %vm951_vm1 = vcmp.ge.f32.partialorder %v887_v52, 0.0  ;;  %1204 = vst.msk [vmem:[%s2086_s24 + $0x98] sm:$0xf] %vm1165_vm4, %v1139_v42  ;;  %v1142_v48 = vpack.c.bf16 %v1078_v0, %v1078_v0  ;;  %v1015_v37 = vmul.f32 0.01, %v887_v52 }
 0x114   : > { %v888_v10 = vadd.f32 %v2056_v53, %v820_v6  ;;  %v821_v46 = vmul.f32 %v2034_v54, %v753_v11  ;;  %1205 = vst.msk [vmem:[%s2086_s24 + $0x9c] sm:$0xf] %vm1165_vm4, %v1140_v57  ;;  %v754_v22 = vmul.f32 %v2044_v12, %v679_v4  ;;  %v680_v13 = vsub.f32 %v2580_v17, %v1997_v47 }
 0x115   : > { %v681_v26 = vsub.f32 %v2581_v36, %v1997_v47  ;;  %v682_v14 = vsub.f32 %v2582_v20, %v1997_v47  ;;  %1206 = vst.msk [vmem:[%s2086_s24 + $0xa0] sm:$0xf] %vm1165_vm4, %v1141_v25  ;;  %v1079_v45 = vsel %vm951_vm1, %v887_v52, %v1015_v37  ;;  %v683_v61 = vsub.f32 %v2583_v31, %v1997_v47 }
 0x116   : > { %vm952_vm2 = vcmp.ge.f32.partialorder %v888_v10, 0.0  ;;  %v1016_v24 = vmul.f32 0.01, %v888_v10  ;;  %v889_v56 = vadd.f32 %v2056_v53, %v821_v46  ;;  %1207 = vst.msk [vmem:[%s2086_s24 + $0xa4] sm:$0xf] %vm1165_vm4, %v1142_v48  ;;  %v1143_v35 = vpack.c.bf16 %v1079_v45, %v1079_v45  ;;  %v2587_v46 = vld [vmem:[#allocation18_spill] sm:$0xff] }
 0x117   : > { %v822_v1 = vmul.f32 %v2034_v54, %v754_v22  ;;  %v755_v33 = vmul.f32 %v2044_v12, %v680_v13  ;;  %v756_v50 = vmul.f32 %v2044_v12, %v681_v26  ;;  %v757_v41 = vmul.f32 %v2044_v12, %v682_v14  ;;  %v2588_v13 = vld [vmem:[#allocation19_spill] sm:$0xff] }
 0x118   : > { %v1080_v5 = vsel %vm952_vm2, %v888_v10, %v1016_v24  ;;  %vm953_vm3 = vcmp.ge.f32.partialorder %v889_v56, 0.0  ;;  %v1017_v19 = vmul.f32 0.01, %v889_v56  ;;  %1208 = vst.msk [vmem:[%s2086_s24 + $0xa8] sm:$0xf] %vm1165_vm4, %v1143_v35  ;;  %v684_v38 = vsub.f32 %v2584_v39, %v1997_v47 }
 0x119   : > { %v1144_v40 = vpack.c.bf16 %v1080_v5, %v1080_v5  ;;  %v890_v51 = vadd.f32 %v2056_v53, %v822_v1  ;;  %v823_v43 = vmul.f32 %v2034_v54, %v755_v33  ;;  %v824_v55 = vmul.f32 %v2034_v54, %v756_v50 }
 0x11a   : > { %v1081_v18 = vsel %vm953_vm3, %v889_v56, %v1017_v19  ;;  %v825_v59 = vmul.f32 %v2034_v54, %v757_v41  ;;  %v758_v44 = vmul.f32 %v2044_v12, %v683_v61  ;;  %v759_v28 = vmul.f32 %v2044_v12, %v684_v38 }
 0x11b   : > { %1209 = vst.msk [vmem:[%s2086_s24 + $0xac] sm:$0xf] %vm1165_vm4, %v1144_v40  ;;  %v1145_v9 = vpack.c.bf16 %v1081_v18, %v1081_v18  ;;  %vm954_vm5 = vcmp.ge.f32.partialorder %v890_v51, 0.0  ;;  %v1018_v2 = vmul.f32 0.01, %v890_v51  ;;  %v891_v8 = vadd.f32 %v2056_v53, %v823_v43 }
 0x11c   : > { %v892_v63 = vadd.f32 %v2056_v53, %v824_v55  ;;  %v893_v58 = vadd.f32 %v2056_v53, %v825_v59  ;;  %v685_v32 = vsub.f32 %v2585_v3, %v1997_v47  ;;  %v826_v34 = vmul.f32 %v2034_v54, %v758_v44 }
 0x11d   : > { %1210 = vst.msk [vmem:[%s2086_s24 + $0xb0] sm:$0xf] %vm1165_vm4, %v1145_v9  ;;  %v1082_v23 = vsel %vm954_vm5, %v890_v51, %v1018_v2  ;;  %vm955_vm6 = vcmp.ge.f32.partialorder %v891_v8, 0.0  ;;  %v1019_v21 = vmul.f32 0.01, %v891_v8  ;;  %v827_v49 = vmul.f32 %v2034_v54, %v759_v28 }
 0x11e   : > { %v1146_v30 = vpack.c.bf16 %v1082_v23, %v1082_v23  ;;  %vm956_vm7 = vcmp.ge.f32.partialorder %v892_v63, 0.0  ;;  %v1020_v4 = vmul.f32 0.01, %v892_v63  ;;  %vm957_vm8 = vcmp.ge.f32.partialorder %v893_v58, 0.0 }
 0x11f   : > { %v1083_v16 = vsel %vm955_vm6, %v891_v8, %v1019_v21  ;;  %v1021_v15 = vmul.f32 0.01, %v893_v58  ;;  %v760_v42 = vmul.f32 %v2044_v12, %v685_v32  ;;  %v686_v60 = vsub.f32 %v2586_v7, %v1997_v47 }
 0x120   : > { %1211 = vst.msk [vmem:[%s2086_s24 + $0xb4] sm:$0xf] %vm1165_vm4, %v1146_v30  ;;  %v1147_v52 = vpack.c.bf16 %v1083_v16, %v1083_v16  ;;  %v1084_v6 = vsel %vm956_vm7, %v892_v63, %v1020_v4  ;;  %v894_v25 = vadd.f32 %v2056_v53, %v826_v34  ;;  %v895_v0 = vadd.f32 %v2056_v53, %v827_v49 }
 0x121   : > { %v1148_v11 = vpack.c.bf16 %v1084_v6, %v1084_v6  ;;  %v1085_v57 = vsel %vm957_vm8, %v893_v58, %v1021_v15  ;;  %v828_v37 = vmul.f32 %v2034_v54, %v760_v42  ;;  %v761_v10 = vmul.f32 %v2044_v12, %v686_v60  ;;  %v2590_v42 = vld [vmem:[#allocation21_spill] sm:$0xff]  ;;  %v2591_v60 = vld [vmem:[#allocation22_spill] sm:$0xff] }
 0x122   : > { %1212 = vst.msk [vmem:[%s2086_s24 + $0xb8] sm:$0xf] %vm1165_vm4, %v1147_v52  ;;  %v1149_v48 = vpack.c.bf16 %v1085_v57, %v1085_v57  ;;  %v687_v22 = vsub.f32 %v2587_v46, %v1997_v47  ;;  %vm958_vm9 = vcmp.ge.f32.partialorder %v894_v25, 0.0  ;;  %v1022_v17 = vmul.f32 0.01, %v894_v25 }
 0x123   : > { %1213 = vst.msk [vmem:[%s2086_s24 + $0xbc] sm:$0xf] %vm1165_vm4, %v1148_v11  ;;  %vm959_vm10 = vcmp.ge.f32.partialorder %v895_v0, 0.0  ;;  %v688_v36 = vsub.f32 %v2588_v13, %v1997_v47  ;;  %v1023_v26 = vmul.f32 0.01, %v895_v0  ;;  %v896_v20 = vadd.f32 %v2056_v53, %v828_v37  ;;  %v2593_v13 = vld [vmem:[#allocation24_spill] sm:$0xff] }
 0x124   : > { %1214 = vst.msk [vmem:[%s2086_s24 + $0xc0] sm:$0xf] %vm1165_vm4, %v1149_v48  ;;  %v829_v14 = vmul.f32 %v2034_v54, %v761_v10  ;;  %v762_v45 = vmul.f32 %v2044_v12, %v687_v22  ;;  %v1086_v24 = vsel %vm958_vm9, %v894_v25, %v1022_v17  ;;  %v689_v35 = vsub.f32 %v1907_v27, %v1997_v47  ;;  %v2592_v22 = vld [vmem:[#allocation23_spill] sm:$0xff] }
 0x125   : > { %v763_v56 = vmul.f32 %v2044_v12, %v688_v36  ;;  %v690_v1 = vsub.f32 %v1914_v29, %v1997_v47  ;;  %v1150_v33 = vpack.c.bf16 %v1086_v24, %v1086_v24  ;;  %v1087_v50 = vsel %vm959_vm10, %v895_v0, %v1023_v26  ;;  %v2589_v29 = vld [vmem:[#allocation20_spill] sm:$0xff]  ;;  %v2594_v26 = vld [vmem:[#allocation25_spill] sm:$0xff] }
 0x126   : > { %vm960_vm11 = vcmp.ge.f32.partialorder %v896_v20, 0.0  ;;  %v1024_v5 = vmul.f32 0.01, %v896_v20  ;;  %v1151_v19 = vpack.c.bf16 %v1087_v50, %v1087_v50  ;;  %v897_v41 = vadd.f32 %v2056_v53, %v829_v14  ;;  %v1470_v50 = vld [vmem:[%s2511_s2] ss:$0 sm:$0xff] }
 0x127   : > { %v830_v40 = vmul.f32 %v2034_v54, %v762_v45  ;;  %v831_v51 = vmul.f32 %v2034_v54, %v763_v56  ;;  %1215 = vst.msk [vmem:[%s2086_s24 + $0xc4] sm:$0xf] %vm1165_vm4, %v1150_v33  ;;  %v764_v27 = vmul.f32 %v2044_v12, %v689_v35  ;;  %v765_v55 = vmul.f32 %v2044_v12, %v690_v1  ;;  %v1469_v45 = vld [vmem:[%s2510_s1] ss:$0 sm:$0xff] }
 0x128   : > { %v1088_v43 = vsel %vm960_vm11, %v896_v20, %v1024_v5  ;;  %v691_v18 = vsub.f32 %v2589_v29, %v1997_v47  ;;  %1216 = vst.msk [vmem:[%s2086_s24 + $0xc8] sm:$0xf] %vm1165_vm4, %v1151_v19  ;;  %vm961_vm12 = vcmp.ge.f32.partialorder %v897_v41, 0.0  ;;  %v1025_v31 = vmul.f32 0.01, %v897_v41 }
 0x129   : > { %v1152_v59 = vpack.c.bf16 %v1088_v43, %v1088_v43  ;;  %v898_v61 = vadd.f32 %v2056_v53, %v830_v40  ;;  %v899_v39 = vadd.f32 %v2056_v53, %v831_v51  ;;  %v832_v38 = vmul.f32 %v2034_v54, %v764_v27 }
 0x12a   : > { %v833_v9 = vmul.f32 %v2034_v54, %v765_v55  ;;  %v766_v2 = vmul.f32 %v2044_v12, %v691_v18  ;;  %v1089_v8 = vsel %vm961_vm12, %v897_v41, %v1025_v31  ;;  %v692_v58 = vsub.f32 %v1929_v62, %v1997_v47 }
 0x12b   : > { %1217 = vst.msk [vmem:[%s2086_s24 + $0xcc] sm:$0xf] %vm1165_vm4, %v1152_v59  ;;  %vm962_vm13 = vcmp.ge.f32.partialorder %v898_v61, 0.0  ;;  %v1026_v63 = vmul.f32 0.01, %v898_v61  ;;  %v1153_v44 = vpack.c.bf16 %v1089_v8, %v1089_v8  ;;  %vm963_vm14 = vcmp.ge.f32.partialorder %v899_v39, 0.0 }
 0x12c   : > { %v1027_v28 = vmul.f32 0.01, %v899_v39  ;;  %v900_v23 = vadd.f32 %v2056_v53, %v832_v38  ;;  %v901_v3 = vadd.f32 %v2056_v53, %v833_v9  ;;  %v834_v32 = vmul.f32 %v2034_v54, %v766_v2 }
 0x12d   : > { %v1090_v21 = vsel %vm962_vm13, %v898_v61, %v1026_v63  ;;  %v767_v30 = vmul.f32 %v2044_v12, %v692_v58  ;;  %1218 = vst.msk [vmem:[%s2086_s24 + $0xd0] sm:$0xf] %vm1165_vm4, %v1153_v44  ;;  %v693_v7 = vsub.f32 %v2590_v42, %v1997_v47  ;;  %v694_v11 = vsub.f32 %v2591_v60, %v1997_v47 }
 0x12e   : > { %v1154_v4 = vpack.c.bf16 %v1090_v21, %v1090_v21  ;;  %v1091_v16 = vsel %vm963_vm14, %v899_v39, %v1027_v28  ;;  %vm964_vm15 = vcmp.ge.f32.partialorder %v900_v23, 0.0  ;;  %v1028_v62 = vmul.f32 0.01, %v900_v23 }
 0x12f   : > { %v1155_v15 = vpack.c.bf16 %v1091_v16, %v1091_v16  ;;  %vm965_vm0 = vcmp.ge.f32.partialorder %v901_v3, 0.0  ;;  %v1029_v34 = vmul.f32 0.01, %v901_v3  ;;  %v902_v49 = vadd.f32 %v2056_v53, %v834_v32 }
 0x130   : > { %1219 = vst.msk [vmem:[%s2086_s24 + $0xd4] sm:$0xf] %vm1165_vm4, %v1154_v4  ;;  %v1092_v52 = vsel %vm964_vm15, %v900_v23, %v1028_v62  ;;  %v835_v6 = vmul.f32 %v2034_v54, %v767_v30  ;;  %v768_v10 = vmul.f32 %v2044_v12, %v693_v7  ;;  %v769_v54 = vmul.f32 %v2044_v12, %v694_v11 }
 0x131   : > { %1220 = vst.msk [vmem:[%s2086_s24 + $0xd8] sm:$0xf] %vm1165_vm4, %v1155_v15  ;;  %v1156_v57 = vpack.c.bf16 %v1092_v52, %v1092_v52  ;;  %v1093_v25 = vsel %vm965_vm0, %v901_v3, %v1029_v34  ;;  %vm966_vm1 = vcmp.ge.f32.partialorder %v902_v49, 0.0  ;;  %v1030_v0 = vmul.f32 0.01, %v902_v49 }
 0x132   : > { %v1157_v48 = vpack.c.bf16 %v1093_v25, %v1093_v25  ;;  %v903_v37 = vadd.f32 %v2056_v53, %v835_v6  ;;  %v695_v17 = vsub.f32 %v2592_v22, %v1997_v47  ;;  %v696_v36 = vsub.f32 %v2593_v13, %v1997_v47 }
 0x133   : > { %1221 = vst.msk [vmem:[%s2086_s24 + $0xdc] sm:$0xf] %vm1165_vm4, %v1156_v57  ;;  %v1094_v46 = vsel %vm966_vm1, %v902_v49, %v1030_v0  ;;  %v697_v20 = vsub.f32 %v2594_v26, %v1997_v47  ;;  %v836_v24 = vmul.f32 %v1469_v45, %v768_v10  ;;  %v837_v56 = vmul.f32 %v1469_v45, %v769_v54 }
 0x134   : > { %1222 = vst.msk [vmem:[%s2086_s24 + $0xe0] sm:$0xf] %vm1165_vm4, %v1157_v48  ;;  %v1158_v53 = vpack.c.bf16 %v1094_v46, %v1094_v46  ;;  %vm967_vm2 = vcmp.ge.f32.partialorder %v903_v37, 0.0  ;;  %v1031_v14 = vmul.f32 0.01, %v903_v37  ;;  %v770_v35 = vmul.f32 %v2044_v12, %v695_v17 }
 0x135   : > { %v771_v1 = vmul.f32 %v2044_v12, %v696_v36  ;;  %v772_v33 = vmul.f32 %v2044_v12, %v697_v20  ;;  %v904_v5 = vadd.f32 %v1470_v50, %v836_v24  ;;  %v905_v41 = vadd.f32 %v1470_v50, %v837_v56 }
 0x136   : > { %1223 = vst.msk [vmem:[%s2086_s24 + $0xe4] sm:$0xf] %vm1165_vm4, %v1158_v53  ;;  %v1095_v47 = vsel %vm967_vm2, %v903_v37, %v1031_v14  ;;  %v838_v40 = vmul.f32 %v1469_v45, %v770_v35 }
 0x137   : > { %v1159_v19 = vpack.c.bf16 %v1095_v47, %v1095_v47  ;;  %v839_v51 = vmul.f32 %v1469_v45, %v771_v1  ;;  %vm968_vm3 = vcmp.ge.f32.partialorder %v904_v5, 0.0  ;;  %v1032_v43 = vmul.f32 0.01, %v904_v5 }
 0x138   : > { %v840_v27 = vmul.f32 %v1469_v45, %v772_v33  ;;  %vm969_vm5 = vcmp.ge.f32.partialorder %v905_v41, 0.0  ;;  %v1033_v12 = vmul.f32 0.01, %v905_v41  ;;  %v906_v55 = vadd.f32 %v1470_v50, %v838_v40 }
 0x139   : > { %1224 = vst.msk [vmem:[%s2086_s24 + $0xe8] sm:$0xf] %vm1165_vm4, %v1159_v19  ;;  %v907_v29 = vadd.f32 %v1470_v50, %v839_v51  ;;  %v1096_v18 = vsel %vm968_vm3, %v904_v5, %v1032_v43 }
 0x13a   : > { %v908_v59 = vadd.f32 %v1470_v50, %v840_v27  ;;  %v1160_v31 = vpack.c.bf16 %v1096_v18, %v1096_v18  ;;  %v1097_v61 = vsel %vm969_vm5, %v905_v41, %v1033_v12  ;;  %vm970_vm6 = vcmp.ge.f32.partialorder %v906_v55, 0.0 }
 0x13b   : > { %v1034_v39 = vmul.f32 0.01, %v906_v55  ;;  %v1161_v38 = vpack.c.bf16 %v1097_v61, %v1097_v61  ;;  %vm971_vm7 = vcmp.ge.f32.partialorder %v907_v29, 0.0  ;;  %v1035_v9 = vmul.f32 0.01, %v907_v29 }
 0x13c   : > { %vm972_vm8 = vcmp.ge.f32.partialorder %v908_v59, 0.0  ;;  %1225 = vst.msk [vmem:[%s2086_s24 + $0xec] sm:$0xf] %vm1165_vm4, %v1160_v31  ;;  %v1036_v8 = vmul.f32 0.01, %v908_v59 }
 0x13d   : > { %v1098_v2 = vsel %vm970_vm6, %v906_v55, %v1034_v39  ;;  %1226 = vst.msk [vmem:[%s2086_s24 + $0xf0] sm:$0xf] %vm1165_vm4, %v1161_v38  ;;  %v1099_v58 = vsel %vm971_vm7, %v907_v29, %v1035_v9 }
 0x13e   : > { %v1162_v63 = vpack.c.bf16 %v1098_v2, %v1098_v2  ;;  %v1163_v44 = vpack.c.bf16 %v1099_v58, %v1099_v58  ;;  %v1100_v28 = vsel %vm972_vm8, %v908_v59, %v1036_v8 }
 0x13f   : > { %v1164_v23 = vpack.c.bf16 %v1100_v28, %v1100_v28 }
 0x140   : > { %1227 = vst.msk [vmem:[%s2086_s24 + $0xf4] sm:$0xf] %vm1165_vm4, %v1162_v63 }
 0x141   : > { %1228 = vst.msk [vmem:[%s2086_s24 + $0xf8] sm:$0xf] %vm1165_vm4, %v1163_v44 }
 0x142   : > { %1229 = vst.msk [vmem:[%s2086_s24 + $0xfc] sm:$0xf] %vm1165_vm4, %v1164_v23 }
 0x143 PF: > { %s13_s12 = sadd.s32 1, %s1477_s12  }
 0x144   : > { %p10_p4 = scmp.ge.s32.totalorder %s13_s12, 4  }
 0x146   :  { %12 = sbr.rel (!%p10_p4) target bundleno = 1 (0x1), region = 62 }

// kernel: neu2seq_forward.42
= control target key start
LH: loop header
LB: loop body
LE: loop exit
PB: predicated region body
PF: predicated region fallthrough
CT: control target
= control target key end

     0   :  { %s528_s12 = smov 0   ;;  %s576_s0 = inlined_call_operand.vmem [shape: bf16[128,112], index: 0, kind: input, shape index: {}]   ;;  %s577_s1 = inlined_call_operand.vmem [shape: bf16[112,128], index: 1, kind: input, shape index: {}]   ;;  %s578_s2 = inlined_call_operand.vmem [shape: f32[1,128], index: 2, kind: input, shape index: {}]   ;;  %s579_s3 = inlined_call_operand.vmem [shape: bf16[128,128], index: 3, kind: output, shape index: {}]  }
   0x1 LB: > { %s377_s13 = sadd.s32 4294967295, %s506_s12   ;;  %p381_p0 = scmp.ge.s32.totalorder %s506_s12, 1  ;;  %s506_s12 = sphi %s528_s12, %s13_s12  }
   0x2   : > { %p138_p1 = scmp.lt.s32.totalorder %s506_s12, 3 }
   0x4   : > { %p139_p2 = pnand %p381_p0, %p138_p1 }
   0x5   : > { %s382_s20 = sshll.u32 (!%p139_p2), %s377_s13, 3 }
   0x6   : > { %142 = sbr.rel (%p139_p2) target bundleno = 186 (0xba), region = 32  ;;  %p163_p3 = scmp.lt.s32.totalorder (!%p139_p2), %s382_s20, 15 }
   0xb   : > { %v446_v0 = vld [vmem:[%s577_s1 + $0x30] sm:$0xff]  ;;  %v445_v1 = vld [vmem:[%s577_s1 + $0x28] sm:$0xff]  ;;  %v444_v2 = vld [vmem:[%s577_s1 + $0x20] sm:$0xff]  ;;  %s581_s20 = smov (!%p163_p3, %s382_s20), 15  ;;  %vm263_vm0 = vcmask 916480  }
   0xc   : > { %277 = vmatpush.bf16.msra.mxu0 %v446_v0  ;;  %470 = vmatpush.bf16.msra.mxu1 %v446_v0  ;;  %v443_v3 = vld [vmem:[%s577_s1 + $0x18] sm:$0xff]  ;;  %v442_v4 = vld [vmem:[%s577_s1 + $0x10] sm:$0xff]  ;;  %v441_v5 = vld [vmem:[%s577_s1 + $0x8] sm:$0xff]  ;;  %s383_s27 = sshll.u32 %s581_s20, 2 }
   0xd   : > { %471 = vmatpush.bf16.msra.mxu2 %v446_v0  ;;  %472 = vmatpush.bf16.msra.mxu3 %v446_v0  ;;  %v440_v6 = vld [vmem:[%s577_s1] sm:$0xff]  ;;  %s166_s5 = scalar_lea.vmem %s576_s0, %s383_s27  ;;  %s172_s10 = scalar_lea.vmem %s579_s3, %s383_s27 }
   0xe   : > { %v436_v7 = vld [vmem:[%s166_s5] sm:$0xff]  ;;  %v437_v8 = vld [vmem:[%s166_s5 + $0x8] sm:$0xff]  ;;  %v438_v9 = vld [vmem:[%s166_s5 + $0x10] sm:$0xff] }
   0xf   : > { %v439_v10 = vld [vmem:[%s166_s5 + $0x18] sm:$0xff]  ;;  %v499_v13 = vld [vmem:[%s578_s2] ss:$0 sm:$0xff] }
  0x10   : > { %278 = vmatpush.bf16.msra.mxu0 %v445_v1  ;;  %473 = vmatpush.bf16.msra.mxu1 %v445_v1 }
  0x11   : > { %474 = vmatpush.bf16.msra.mxu2 %v445_v1  ;;  %475 = vmatpush.bf16.msra.mxu3 %v445_v1 }
  0x14   : > { %279 = vmatpush.bf16.msra.mxu0 %v444_v2  ;;  %476 = vmatpush.bf16.msra.mxu1 %v444_v2 }
  0x15   : > { %477 = vmatpush.bf16.msra.mxu2 %v444_v2  ;;  %478 = vmatpush.bf16.msra.mxu3 %v444_v2 }
  0x18   : > { %280 = vmatpush.bf16.msra.mxu0 %v443_v3  ;;  %479 = vmatpush.bf16.msra.mxu1 %v443_v3 }
  0x19   : > { %480 = vmatpush.bf16.msra.mxu2 %v443_v3  ;;  %481 = vmatpush.bf16.msra.mxu3 %v443_v3 }
  0x1c   : > { %281 = vmatpush.bf16.msra.mxu0 %v442_v4  ;;  %482 = vmatpush.bf16.msra.mxu1 %v442_v4 }
  0x1d   : > { %483 = vmatpush.bf16.msra.mxu2 %v442_v4  ;;  %484 = vmatpush.bf16.msra.mxu3 %v442_v4 }
  0x20   : > { %282 = vmatpush.bf16.msra.mxu0 %v441_v5  ;;  %485 = vmatpush.bf16.msra.mxu1 %v441_v5 }
  0x21   : > { %486 = vmatpush.bf16.msra.mxu2 %v441_v5  ;;  %487 = vmatpush.bf16.msra.mxu3 %v441_v5 }
  0x24   : > { %283 = vmatpush.bf16.msra.mxu0 %v440_v6  ;;  %488 = vmatpush.bf16.msra.mxu1 %v440_v6 }
  0x25   : > { %489 = vmatpush.bf16.msra.mxu2 %v440_v6  ;;  %490 = vmatpush.bf16.msra.mxu3 %v440_v6 }
  0x27   : > { %430 = vmatmul.msk.bf16.vlgmr.msra.gmra.mxu0 %vm263_vm0, %v436_v7  ;;  %431 = vmatmul.msk.bf16.vlgmr.msra.gmra.mxu1 %vm263_vm0, %v437_v8 }
  0x28   : > { %432 = vmatmul.msk.bf16.vlgmr.msra.gmra.mxu2 %vm263_vm0, %v438_v9  ;;  %433 = vmatmul.msk.bf16.vlgmr.msra.gmra.mxu3 %vm263_vm0, %v439_v10 }
  0xa4   : > { %v285_v11 = vpop.f32.mrf.mxu0  ;;  %v290_v12 = vpop.f32.mrf.mxu1 }
  0xa5   : > { %v286_v18 = vadd.f32 %v499_v13, %v285_v11  ;;  %v291_v19 = vadd.f32 %v499_v13, %v290_v12 }
  0xab   : > { %v295_v14 = vpop.f32.mrf.mxu2  ;;  %v300_v15 = vpop.f32.mrf.mxu3 }
  0xac   : > { %v287_v16 = vpop.f32.mrf.mxu0  ;;  %v292_v17 = vpop.f32.mrf.mxu1  ;;  %v296_v26 = vadd.f32 %v499_v13, %v295_v14  ;;  %v301_v27 = vadd.f32 %v499_v13, %v300_v15 }
  0xad   : > { %v288_v20 = vadd.f32 %v499_v13, %v287_v16  ;;  %v293_v21 = vadd.f32 %v499_v13, %v292_v17 }
  0xaf   : > { %v450_v22 = vpack.c.bf16 %v288_v20, %v286_v18  ;;  %v455_v23 = vpack.c.bf16 %v293_v21, %v291_v19 }
  0xb1   : > { %451 = vst [vmem:[%s172_s10] sm:$0xff] %v450_v22  }
  0xb2   : > { %467 = vst [vmem:[%s172_s10 + $0x8] sm:$0xff] %v455_v23  }
  0xb3   : > { %v297_v24 = vpop.f32.mrf.mxu2  ;;  %v302_v25 = vpop.f32.mrf.mxu3 }
  0xb4   : > { %v298_v28 = vadd.f32 %v499_v13, %v297_v24  ;;  %v303_v29 = vadd.f32 %v499_v13, %v302_v25 }
  0xb6   : > { %v460_v30 = vpack.c.bf16 %v298_v28, %v296_v26  ;;  %v465_v31 = vpack.c.bf16 %v303_v29, %v301_v27 }
  0xb8   : > { %468 = vst [vmem:[%s172_s10 + $0x10] sm:$0xff] %v460_v30  }
  0xb9   : > { %469 = vst [vmem:[%s172_s10 + $0x18] sm:$0xff] %v465_v31  }
  0xba PF: > { %s13_s12 = sadd.s32 1, %s506_s12  }
  0xbb   : > { %p10_p4 = scmp.ge.s32.totalorder %s13_s12, 4  }
  0xbd   :  { %12 = sbr.rel (!%p10_p4) target bundleno = 1 (0x1), region = 62 }

// kernel: neu2seq_forward.43
= control target key start
LH: loop header
LB: loop body
LE: loop exit
PB: predicated region body
PF: predicated region fallthrough
CT: control target
= control target key end

     0   :  { %s461_s12 = smov 0   ;;  %s573_s0 = inlined_call_operand.vmem [shape: bf16[2,64,8], index: 0, kind: input, shape index: {}]   ;;  %s574_s1 = inlined_call_operand.vmem [shape: f32[1,1,8], index: 1, kind: input, shape index: {}]   ;;  %s575_s2 = inlined_call_operand.vmem [shape: f32[1,1,8], index: 2, kind: input, shape index: {}]   ;;  %s576_s3 = inlined_call_operand.vmem [shape: bf16[2,64,8], index: 3, kind: output, shape index: {}]  }
   0x1 LB: > { %s389_s13 = sadd.s32 4294967295, %s439_s12   ;;  %p393_p0 = scmp.ge.s32.totalorder %s439_s12, 1  ;;  %s439_s12 = sphi %s461_s12, %s13_s12  }
   0x2   : > { %p137_p1 = scmp.lt.s32.totalorder %s439_s12, 3 }
   0x4   : > { %p138_p2 = pnand %p393_p0, %p137_p1 }
   0x5   : > { %p161_p3 = scmp.lt.s32.totalorder (!%p138_p2), %s389_s13, 1 }
   0x6   : > { %141 = sbr.rel (%p138_p2) target bundleno = 90 (0x5a), region = 32 }
   0xb   : > { %s578_s13 = smov (!%p161_p3, %s389_s13), 1  ;;  %vm187_vm0 = vcmask 64512   ;;  %vm325_vm4 = vcmask 60416  }
   0xc   : > { %s400_s14 = sshll.u32 %s578_s13, 5 }
   0xd   : > { %s165_s17 = scalar_lea.vmem %s573_s0, %s400_s14  ;;  %s552_s24 = scalar_lea.vmem %s576_s3, %s400_s14 }
   0xe   : > { %v403_v0 = vld [vmem:[%s165_s17] sm:$0xff]   ;;  %v418_v1 = vld [vmem:[%s165_s17 + $0x8] sm:$0xff]   ;;  %v419_v2 = vld [vmem:[%s165_s17 + $0x10] sm:$0xff]  }
   0xf   : > { %v477_v3 = vunpack.c.l.bf16 %v403_v0  ;;  %v479_v4 = vunpack.c.h.bf16 %v403_v0  ;;  %v481_v5 = vunpack.c.l.bf16 %v418_v1  ;;  %v483_v6 = vunpack.c.h.bf16 %v418_v1  ;;  %v420_v8 = vld [vmem:[%s165_s17 + $0x18] sm:$0xff]  }
  0x10   : > { %v485_v7 = vunpack.c.l.bf16 %v419_v2  ;;  %v493_v12 = vunpack.c.h.bf16 %v419_v2  ;;  %v503_v18 = vunpack.c.l.bf16 %v420_v8  ;;  %v514_v28 = vunpack.c.h.bf16 %v420_v8 }
  0x11   : > { %v188_v9 = vsel %vm187_vm0, %v477_v3, 0.0  ;;  %v189_v10 = vsel %vm187_vm0, %v479_v4, 0.0  ;;  %v191_v11 = vsel %vm187_vm0, %v481_v5, 0.0  ;;  %v193_v14 = vsel %vm187_vm0, %v483_v6, 0.0 }
  0x12   : > { %v190_v13 = vadd.f32 %v189_v10, %v188_v9  ;;  %v210_v15 = vmul.f32 %v477_v3, %v477_v3  ;;  %v211_v16 = vmul.f32 %v479_v4, %v479_v4  ;;  %v212_v17 = vmul.f32 %v481_v5, %v481_v5 }
  0x13   : > { %v213_v20 = vmul.f32 %v483_v6, %v483_v6  ;;  %v195_v21 = vsel %vm187_vm0, %v485_v7, 0.0  ;;  %v214_v22 = vmul.f32 %v485_v7, %v485_v7  ;;  %v197_v29 = vsel %vm187_vm0, %v493_v12, 0.0 }
  0x14   : > { %v192_v19 = vadd.f32 %v191_v11, %v190_v13  ;;  %v218_v23 = vsel %vm187_vm0, %v210_v15, 0.0  ;;  %v219_v24 = vsel %vm187_vm0, %v211_v16, 0.0  ;;  %v221_v27 = vsel %vm187_vm0, %v212_v17, 0.0 }
  0x15   : > { %v220_v26 = vadd.f32 %v219_v24, %v218_v23  ;;  %v215_v30 = vmul.f32 %v493_v12, %v493_v12  ;;  %v223_v31 = vsel %vm187_vm0, %v213_v20, 0.0  ;;  %v199_v34 = vsel %vm187_vm0, %v503_v18, 0.0 }
  0x16   : > { %v194_v25 = vadd.f32 %v193_v14, %v192_v19  ;;  %v216_v35 = vmul.f32 %v503_v18, %v503_v18  ;;  %v225_v36 = vsel %vm187_vm0, %v214_v22, 0.0  ;;  %v201_v39 = vsel %vm187_vm0, %v514_v28, 0.0 }
  0x17   : > { %v222_v33 = vadd.f32 %v221_v27, %v220_v26  ;;  %v217_v40 = vmul.f32 %v514_v28, %v514_v28  ;;  %v227_v41 = vsel %vm187_vm0, %v215_v30, 0.0 }
  0x18   : > { %v196_v32 = vadd.f32 %v195_v21, %v194_v25  ;;  %v229_v44 = vsel %vm187_vm0, %v216_v35, 0.0 }
  0x19   : > { %v224_v38 = vadd.f32 %v223_v31, %v222_v33  ;;  %v231_v47 = vsel %vm187_vm0, %v217_v40, 0.0 }
  0x1a   : > { %v198_v37 = vadd.f32 %v197_v29, %v196_v32 }
  0x1b   : > { %v226_v43 = vadd.f32 %v225_v36, %v224_v38 }
  0x1c   : > { %v200_v42 = vadd.f32 %v199_v34, %v198_v37 }
  0x1d   : > { %v228_v46 = vadd.f32 %v227_v41, %v226_v43 }
  0x1e   : > { %v202_v45 = vadd.f32 %v201_v39, %v200_v42 }
  0x1f   : > { %v230_v49 = vadd.f32 %v229_v44, %v228_v46 }
  0x20   : > { %v203_v48 = vrot.slane %v202_v45, 4 }
  0x21   : > { %v232_v51 = vadd.f32 %v231_v47, %v230_v49 }
  0x22   : > { %v204_v50 = vadd.f32 %v203_v48, %v202_v45 }
  0x23   : > { %v233_v53 = vrot.slane %v232_v51, 4 }
  0x24   : > { %v205_v52 = vrot.slane %v204_v50, 2 }
  0x25   : > { %v234_v55 = vadd.f32 %v233_v53, %v232_v51 }
  0x26   : > { %v206_v54 = vadd.f32 %v205_v52, %v204_v50 }
  0x27   : > { %v235_v57 = vrot.slane %v234_v55, 2 }
  0x28   : > { %v207_v56 = vrot.slane %v206_v54, 1 }
  0x29   : > { %v236_v59 = vadd.f32 %v235_v57, %v234_v55 }
  0x2a   : > { %v208_v58 = vadd.f32 %v207_v56, %v206_v54 }
  0x2b   : > { %v237_v61 = vrot.slane %v236_v59, 1 }
  0x2c   : > { %v209_v60 = vmul.f32 0.015625, %v208_v58 }
  0x2d   : > { %v238_v62 = vadd.f32 %v237_v61, %v236_v59 }
  0x2e   : > { %v240_v63 = vmul.f32 %v209_v60, %v209_v60  ;;  %v242_v13 = vsub.f32 %v477_v3, %v209_v60  ;;  %v243_v15 = vsub.f32 %v479_v4, %v209_v60  ;;  %v244_v16 = vsub.f32 %v481_v5, %v209_v60  ;;  %v429_v3 = vld [vmem:[%s574_s1] ss:$0 sm:$0xff] }
  0x2f   : > { %v239_v0 = vmul.f32 0.015625, %v238_v62  ;;  %v245_v17 = vsub.f32 %v483_v6, %v209_v60  ;;  %v246_v19 = vsub.f32 %v485_v7, %v209_v60  ;;  %v247_v21 = vsub.f32 %v493_v12, %v209_v60  ;;  %v430_v4 = vld [vmem:[%s575_s2] ss:$0 sm:$0xff] }
  0x30   : > { %v248_v22 = vsub.f32 %v503_v18, %v209_v60  ;;  %v249_v23 = vsub.f32 %v514_v28, %v209_v60 }
  0x31   : > { %v241_v1 = vsub.f32 %v239_v0, %v240_v63 }
  0x33   : > { %v250_v2 = vadd.f32 1e-05, %v241_v1 }
  0x35   : > { %431 = vrsqrt.f32 %v250_v2  ;;  %vm257_vm1 = vweird.f32 %v250_v2 }
  0x3b   : > { %v432_v8 = vpop.eup %431 }
  0x3c   : > { %v252_v9 = vmul.f32 %v432_v8, %v250_v2  ;;  %vm258_vm2 = vweird.f32 %v432_v8 }
  0x3d   : > { %vm259_vm3 = vmor %vm257_vm1, %vm258_vm2 }
  0x3e   : > { %v253_v10 = vmul.f32 %v432_v8, %v252_v9 }
  0x40   : > { %v254_v11 = vmul.f32 0.5, %v253_v10 }
  0x42   : > { %v255_v14 = vsub.f32 1.5, %v254_v11 }
  0x44   : > { %v256_v20 = vmul.f32 %v432_v8, %v255_v14 }
  0x46   : > { %v260_v24 = vsel %vm259_vm3, %v432_v8, %v256_v20 }
  0x47   : > { %v261_v25 = vmul.f32 %v260_v24, %v242_v13  ;;  %v262_v5 = vmul.f32 %v260_v24, %v243_v15  ;;  %v263_v6 = vmul.f32 %v260_v24, %v244_v16  ;;  %v264_v7 = vmul.f32 %v260_v24, %v245_v17 }
  0x48   : > { %v265_v26 = vmul.f32 %v260_v24, %v246_v19  ;;  %v266_v12 = vmul.f32 %v260_v24, %v247_v21  ;;  %v267_v27 = vmul.f32 %v260_v24, %v248_v22  ;;  %v268_v18 = vmul.f32 %v260_v24, %v249_v23 }
  0x49   : > { %v273_v29 = vmul.f32 %v429_v3, %v261_v25  ;;  %v274_v28 = vmul.f32 %v429_v3, %v262_v5  ;;  %v275_v30 = vmul.f32 %v429_v3, %v263_v6  ;;  %v276_v31 = vmul.f32 %v429_v3, %v264_v7 }
  0x4a   : > { %v277_v32 = vmul.f32 %v429_v3, %v265_v26  ;;  %v278_v33 = vmul.f32 %v429_v3, %v266_v12  ;;  %v279_v34 = vmul.f32 %v429_v3, %v267_v27  ;;  %v280_v35 = vmul.f32 %v429_v3, %v268_v18 }
  0x4b   : > { %v285_v36 = vadd.f32 %v430_v4, %v273_v29  ;;  %v286_v37 = vadd.f32 %v430_v4, %v274_v28  ;;  %v287_v38 = vadd.f32 %v430_v4, %v275_v30  ;;  %v288_v39 = vadd.f32 %v430_v4, %v276_v31 }
  0x4c   : > { %v289_v40 = vadd.f32 %v430_v4, %v277_v32  ;;  %v290_v41 = vadd.f32 %v430_v4, %v278_v33  ;;  %v291_v42 = vadd.f32 %v430_v4, %v279_v34  ;;  %v292_v43 = vadd.f32 %v430_v4, %v280_v35 }
  0x4d   : > { %vm293_vm5 = vcmp.ge.f32.partialorder %v285_v36, 0.0  ;;  %v301_v44 = vmul.f32 0.01, %v285_v36  ;;  %vm294_vm6 = vcmp.ge.f32.partialorder %v286_v37, 0.0  ;;  %v302_v45 = vmul.f32 0.01, %v286_v37 }
  0x4e   : > { %vm295_vm7 = vcmp.ge.f32.partialorder %v287_v38, 0.0  ;;  %v303_v46 = vmul.f32 0.01, %v287_v38  ;;  %vm296_vm8 = vcmp.ge.f32.partialorder %v288_v39, 0.0  ;;  %v304_v47 = vmul.f32 0.01, %v288_v39 }
  0x4f   : > { %v309_v48 = vsel %vm293_vm5, %v285_v36, %v301_v44  ;;  %v310_v49 = vsel %vm294_vm6, %v286_v37, %v302_v45  ;;  %vm297_vm9 = vcmp.ge.f32.partialorder %v289_v40, 0.0  ;;  %v305_v50 = vmul.f32 0.01, %v289_v40 }
  0x50   : > { %v317_v51 = vpack.c.bf16 %v309_v48, %v309_v48  ;;  %v318_v52 = vpack.c.bf16 %v310_v49, %v310_v49  ;;  %v311_v53 = vsel %vm295_vm7, %v287_v38, %v303_v46  ;;  %v312_v54 = vsel %vm296_vm8, %v288_v39, %v304_v47 }
  0x51   : > { %v319_v55 = vpack.c.bf16 %v311_v53, %v311_v53  ;;  %v320_v56 = vpack.c.bf16 %v312_v54, %v312_v54  ;;  %v313_v57 = vsel %vm297_vm9, %v289_v40, %v305_v50  ;;  %vm298_vm10 = vcmp.ge.f32.partialorder %v290_v41, 0.0 }
  0x52   : > { %326 = vst.msk [vmem:[%s552_s24] sm:$0xf] %vm325_vm4, %v317_v51  ;;  %v321_v58 = vpack.c.bf16 %v313_v57, %v313_v57  ;;  %v306_v59 = vmul.f32 0.01, %v290_v41  ;;  %vm299_vm11 = vcmp.ge.f32.partialorder %v291_v42, 0.0  ;;  %vm300_vm12 = vcmp.ge.f32.partialorder %v292_v43, 0.0 }
  0x53   : > { %327 = vst.msk [vmem:[%s552_s24 + $0x4] sm:$0xf] %vm325_vm4, %v318_v52  ;;  %v307_v60 = vmul.f32 0.01, %v291_v42  ;;  %v308_v61 = vmul.f32 0.01, %v292_v43 }
  0x54   : > { %328 = vst.msk [vmem:[%s552_s24 + $0x8] sm:$0xf] %vm325_vm4, %v319_v55  ;;  %v314_v62 = vsel %vm298_vm10, %v290_v41, %v306_v59 }
  0x55   : > { %329 = vst.msk [vmem:[%s552_s24 + $0xc] sm:$0xf] %vm325_vm4, %v320_v56  ;;  %v322_v63 = vpack.c.bf16 %v314_v62, %v314_v62  ;;  %v315_v0 = vsel %vm299_vm11, %v291_v42, %v307_v60  ;;  %v316_v1 = vsel %vm300_vm12, %v292_v43, %v308_v61 }
  0x56   : > { %330 = vst.msk [vmem:[%s552_s24 + $0x10] sm:$0xf] %vm325_vm4, %v321_v58  ;;  %v323_v2 = vpack.c.bf16 %v315_v0, %v315_v0  ;;  %v324_v8 = vpack.c.bf16 %v316_v1, %v316_v1 }
  0x57   : > { %331 = vst.msk [vmem:[%s552_s24 + $0x14] sm:$0xf] %vm325_vm4, %v322_v63 }
  0x58   : > { %332 = vst.msk [vmem:[%s552_s24 + $0x18] sm:$0xf] %vm325_vm4, %v323_v2 }
  0x59   : > { %333 = vst.msk [vmem:[%s552_s24 + $0x1c] sm:$0xf] %vm325_vm4, %v324_v8 }
  0x5a PF: > { %s13_s12 = sadd.s32 1, %s439_s12  }
  0x5b   : > { %p10_p4 = scmp.ge.s32.totalorder %s13_s12, 4  }
  0x5d   :  { %12 = sbr.rel (!%p10_p4) target bundleno = 1 (0x1), region = 62 }

// kernel: neu2seq_forward.44
= control target key start
LH: loop header
LB: loop body
LE: loop exit
PB: predicated region body
PF: predicated region fallthrough
CT: control target
= control target key end

     0   :  { %s677_s12 = smov 0   ;;  %s765_s0 = inlined_call_operand.vmem [shape: bf16[128,216], index: 0, kind: input, shape index: {}]   ;;  %s766_s1 = inlined_call_operand.vmem [shape: bf16[216,128], index: 1, kind: input, shape index: {}]   ;;  %s767_s2 = inlined_call_operand.vmem [shape: f32[1,128], index: 2, kind: input, shape index: {}]   ;;  %s768_s3 = inlined_call_operand.vmem [shape: bf16[128,128], index: 3, kind: output, shape index: {}]  }
   0x1 LB: > { %s481_s13 = sadd.s32 4294967295, %s655_s12   ;;  %p485_p0 = scmp.ge.s32.totalorder %s655_s12, 1  ;;  %s655_s12 = sphi %s677_s12, %s13_s12  }
   0x2   : > { %p139_p1 = scmp.lt.s32.totalorder %s655_s12, 3 }
   0x4   : > { %p140_p2 = pnand %p485_p0, %p139_p1 }
   0x5   : > { %s486_s20 = sshll.u32 (!%p140_p2), %s481_s13, 3 }
   0x6   : > { %143 = sbr.rel (%p140_p2) target bundleno = 217 (0xd9), region = 32  ;;  %p165_p3 = scmp.lt.s32.totalorder (!%p140_p2), %s486_s20, 15 }
   0xb   : > { %v597_v0 = vld [vmem:[%s766_s1 + $0x38] sm:$0xff]  ;;  %v212_v1 = vld [vmem:[%s766_s1 + $0x68] sm:$0xf]  ;;  %vm347_vm0 = vcmask 1043456   ;;  %v596_v3 = vld [vmem:[%s766_s1 + $0x30] sm:$0xff]  ;;  %s770_s20 = smov (!%p165_p3, %s486_s20), 15 }
   0xc   : > { %v306_v2 = vunpack.c.l.b16 %v212_v1  ;;  %351 = vmatpush.bf16.msra.mxu0 %v597_v0  ;;  %626 = vmatpush.bf16.msra.mxu2 %v597_v0  ;;  %v602_v6 = vld [vmem:[%s766_s1 + $0x60] sm:$0xff]  ;;  %v595_v7 = vld [vmem:[%s766_s1 + $0x28] sm:$0xff]  ;;  %v601_v8 = vld [vmem:[%s766_s1 + $0x58] sm:$0xff]  ;;  %s581_s6 = sshll.u32 %s770_s20, 3  ;;  %vm334_vm1 = vcmask 719872   ;;  %s490_s24 = sshll.u32 %s770_s20, 2 }
   0xd   : > { %v594_v9 = vld [vmem:[%s766_s1 + $0x20] sm:$0xff]  ;;  %v600_v10 = vld [vmem:[%s766_s1 + $0x50] sm:$0xff]  ;;  %v593_v11 = vld [vmem:[%s766_s1 + $0x18] sm:$0xff]  ;;  %s724_s14 = scalar_lea.vmem %s765_s0, %s581_s6  ;;  %s175_s27 = scalar_lea.vmem %s768_s3, %s490_s24 }
   0xe   : > { %v320_v4 = vpack.c.b16 %v306_v2, %v306_v2  ;;  %v599_v12 = vld [vmem:[%s766_s1 + $0x48] sm:$0xff]  ;;  %v592_v13 = vld [vmem:[%s766_s1 + $0x10] sm:$0xff]  ;;  %v598_v14 = vld [vmem:[%s766_s1 + $0x40] sm:$0xff] }
   0xf   : > { %v591_v15 = vld [vmem:[%s766_s1 + $0x8] sm:$0xff]  ;;  %v584_v16 = vld [vmem:[%s724_s14 + $0x14] sm:$0xf]  ;;  %v503_v17 = vld [vmem:[%s724_s14 + $0x18] sm:$0xf0] }
  0x10   : > { %v349_v5 = vsel %vm347_vm0, %v320_v4, 0  ;;  %352 = vmatpush.bf16.msra.mxu0 %v596_v3  ;;  %627 = vmatpush.bf16.msra.mxu2 %v596_v3  ;;  %v582_v18 = vld [vmem:[%s724_s14 + $0x4] sm:$0xf]  ;;  %v495_v19 = vld [vmem:[%s724_s14 + $0x8] sm:$0xf0]  ;;  %v506_v20 = vor.u32 %v584_v16, %v503_v17 }
  0x11   : > { %634 = vmatpush.bf16.msra.mxu3 %v349_v5  ;;  %382 = vmatpush.bf16.msra.mxu1 %v349_v5  ;;  %v590_v21 = vld [vmem:[%s766_s1] sm:$0xff]  ;;  %v583_v23 = vld [vmem:[%s724_s14 + $0x4] sm:$0xf0]  ;;  %v498_v24 = vor.u32 %v582_v18, %v495_v19  ;;  %v511_v30 = vld [vmem:[%s724_s14 + $0x28] sm:$0xf0] }
  0x12   : > { %v493_v22 = vld [vmem:[%s724_s14] sm:$0xf]  ;;  %v587_v26 = vld [vmem:[%s724_s14 + $0x24] sm:$0xf0]  ;;  %v586_v29 = vld [vmem:[%s724_s14 + $0x24] sm:$0xf] }
  0x13   : > { %v509_v25 = vld [vmem:[%s724_s14 + $0x20] sm:$0xf]  ;;  %v494_v27 = vor.u32 %v583_v23, %v493_v22  ;;  %v514_v31 = vor.u32 %v586_v29, %v511_v30  ;;  %v501_v32 = vld [vmem:[%s724_s14 + $0x10] sm:$0xf]  ;;  %v585_v33 = vld [vmem:[%s724_s14 + $0x14] sm:$0xf0] }
  0x14   : > { %353 = vmatpush.bf16.msra.mxu0 %v595_v7  ;;  %628 = vmatpush.bf16.msra.mxu2 %v595_v7  ;;  %v510_v28 = vor.u32 %v587_v26, %v509_v25  ;;  %v517_v34 = vld [vmem:[%s724_s14 + $0x30] sm:$0xf]  ;;  %v589_v35 = vld [vmem:[%s724_s14 + $0x34] sm:$0xf0]  ;;  %v502_v36 = vor.u32 %v585_v33, %v501_v32  ;;  %v588_v38 = vld [vmem:[%s724_s14 + $0x34] sm:$0xf] }
  0x15   : > { %635 = vmatpush.bf16.msra.mxu3 %v602_v6  ;;  %383 = vmatpush.bf16.msra.mxu1 %v602_v6  ;;  %v518_v37 = vor.u32 %v589_v35, %v517_v34  ;;  %v519_v39 = vld [vmem:[%s724_s14 + $0x38] sm:$0xf0]  ;;  %v648_v43 = vld [vmem:[%s767_s2] ss:$0 sm:$0xff] }
  0x16   : > { %v522_v40 = vor.u32 %v588_v38, %v519_v39 }
  0x18   : > { %354 = vmatpush.bf16.msra.mxu0 %v594_v9  ;;  %629 = vmatpush.bf16.msra.mxu2 %v594_v9 }
  0x19   : > { %636 = vmatpush.bf16.msra.mxu3 %v601_v8  ;;  %384 = vmatpush.bf16.msra.mxu1 %v601_v8 }
  0x1c   : > { %355 = vmatpush.bf16.msra.mxu0 %v593_v11  ;;  %630 = vmatpush.bf16.msra.mxu2 %v593_v11 }
  0x1d   : > { %637 = vmatpush.bf16.msra.mxu3 %v600_v10  ;;  %385 = vmatpush.bf16.msra.mxu1 %v600_v10 }
  0x20   : > { %356 = vmatpush.bf16.msra.mxu0 %v592_v13  ;;  %631 = vmatpush.bf16.msra.mxu2 %v592_v13 }
  0x21   : > { %638 = vmatpush.bf16.msra.mxu3 %v599_v12  ;;  %386 = vmatpush.bf16.msra.mxu1 %v599_v12 }
  0x24   : > { %357 = vmatpush.bf16.msra.mxu0 %v591_v15  ;;  %632 = vmatpush.bf16.msra.mxu2 %v591_v15 }
  0x25   : > { %639 = vmatpush.bf16.msra.mxu3 %v598_v14  ;;  %387 = vmatpush.bf16.msra.mxu1 %v598_v14 }
  0x28   : > { %576 = vmatmul.msk.bf16.vlgmr.msra.gmra.mxu3 %vm334_vm1, %v506_v20  ;;  %358 = vmatpush.bf16.msra.mxu0 %v590_v21 }
  0x29   : > { %575 = vmatmul.msk.bf16.vlgmr.msra.gmra.mxu1 %vm334_vm1, %v498_v24  ;;  %633 = vmatpush.bf16.msra.mxu2 %v590_v21 }
  0x2b   : > { %359 = vmatmul.bf16.vlgmr.msra.gmra.mxu0 %v494_v27 }
  0x2c   : > { %369 = vmatmul.bf16.vlgmr.msra.gmra.mxu2 %v510_v28 }
  0x38   : > { %577 = vmatmul.msk.bf16.gmra.mxu3 %vm334_vm1, %v514_v31 }
  0x3b   : > { %364 = vmatmul.bf16.gmra.mxu0 %v502_v36 }
  0x3c   : > { %374 = vmatmul.bf16.gmra.mxu2 %v518_v37 }
  0x48   : > { %578 = vmatmul.msk.bf16.gmra.mxu3 %vm334_vm1, %v522_v40 }
  0xa6   : > { %v389_v41 = vpop.f32.mrf.mxu1 }
  0xa8   : > { %v360_v42 = vpop.f32.mrf.mxu0 }
  0xa9   : > { %v361_v45 = vadd.f32 %v648_v43, %v360_v42 }
  0xab   : > { %v394_v44 = vpop.f32.mrf.mxu3  ;;  %v390_v50 = vadd.f32 %v389_v41, %v361_v45 }
  0xae   : > { %v391_v46 = vpop.f32.mrf.mxu1 }
  0xaf   : > { %v370_v47 = vpop.f32.mrf.mxu2 }
  0xb0   : > { %v362_v48 = vpop.f32.mrf.mxu0  ;;  %v371_v57 = vadd.f32 %v648_v43, %v370_v47 }
  0xb1   : > { %v363_v49 = vadd.f32 %v648_v43, %v362_v48 }
  0xb3   : > { %v396_v51 = vpop.f32.mrf.mxu3  ;;  %v392_v52 = vadd.f32 %v391_v46, %v363_v49 }
  0xb5   : > { %v606_v53 = vpack.c.bf16 %v392_v52, %v390_v50 }
  0xb7   : > { %607 = vst [vmem:[%s175_s27] sm:$0xff] %v606_v53   ;;  %v372_v55 = vpop.f32.mrf.mxu2 }
  0xb8   : > { %v365_v54 = vpop.f32.mrf.mxu0  ;;  %v373_v60 = vadd.f32 %v648_v43, %v372_v55 }
  0xb9   : > { %v366_v58 = vadd.f32 %v648_v43, %v365_v54 }
  0xbb   : > { %v399_v56 = vpop.f32.mrf.mxu3  ;;  %v395_v63 = vadd.f32 %v394_v44, %v366_v58 }
  0xbc   : > { %v400_v0 = vadd.f32 %v399_v56, %v371_v57 }
  0xbf   : > { %v375_v3 = vpop.f32.mrf.mxu2 }
  0xc0   : > { %v367_v59 = vpop.f32.mrf.mxu0  ;;  %v376_v8 = vadd.f32 %v648_v43, %v375_v3 }
  0xc1   : > { %v368_v61 = vadd.f32 %v648_v43, %v367_v59 }
  0xc3   : > { %v401_v62 = vpop.f32.mrf.mxu3  ;;  %v397_v1 = vadd.f32 %v396_v51, %v368_v61 }
  0xc4   : > { %v402_v2 = vadd.f32 %v401_v62, %v373_v60 }
  0xc5   : > { %v611_v4 = vpack.c.bf16 %v397_v1, %v395_v63 }
  0xc6   : > { %v616_v5 = vpack.c.bf16 %v402_v2, %v400_v0 }
  0xc7   : > { %623 = vst [vmem:[%s175_s27 + $0x8] sm:$0xff] %v611_v4   ;;  %v377_v7 = vpop.f32.mrf.mxu2 }
  0xc8   : > { %624 = vst [vmem:[%s175_s27 + $0x10] sm:$0xff] %v616_v5   ;;  %v378_v9 = vadd.f32 %v648_v43, %v377_v7 }
  0xcb   : > { %v404_v6 = vpop.f32.mrf.mxu3 }
  0xcc   : > { %v405_v11 = vadd.f32 %v404_v6, %v376_v8 }
  0xd3   : > { %v406_v10 = vpop.f32.mrf.mxu3 }
  0xd4   : > { %v407_v12 = vadd.f32 %v406_v10, %v378_v9 }
  0xd6   : > { %v621_v13 = vpack.c.bf16 %v407_v12, %v405_v11 }
  0xd8   : > { %625 = vst [vmem:[%s175_s27 + $0x18] sm:$0xff] %v621_v13  }
  0xd9 PF: > { %s13_s12 = sadd.s32 1, %s655_s12  }
  0xda   : > { %p10_p4 = scmp.ge.s32.totalorder %s13_s12, 4  }
  0xdc   :  { %12 = sbr.rel (!%p10_p4) target bundleno = 1 (0x1), region = 62 }

// kernel: neu2seq_forward.45
= control target key start
LH: loop header
LB: loop body
LE: loop exit
PB: predicated region body
PF: predicated region fallthrough
CT: control target
= control target key end

     0   :  { %s424_s12 = smov 0   ;;  %s447_s0 = inlined_call_operand.vmem [shape: bf16[128,8], index: 0, kind: input, shape index: {}]   ;;  %s448_s1 = inlined_call_operand.vmem [shape: bf16[8,128], index: 1, kind: input, shape index: {}]   ;;  %s449_s2 = inlined_call_operand.vmem [shape: f32[1,128], index: 2, kind: input, shape index: {}]   ;;  %s450_s3 = inlined_call_operand.vmem [shape: bf16[128,128], index: 3, kind: output, shape index: {}]  }
   0x1 LB: > { %s326_s13 = sadd.s32 4294967295, %s402_s12   ;;  %p330_p0 = scmp.ge.s32.totalorder %s402_s12, 1  ;;  %s402_s12 = sphi %s424_s12, %s13_s12  }
   0x2   : > { %p138_p1 = scmp.lt.s32.totalorder %s402_s12, 3 }
   0x4   : > { %p139_p2 = pnand %p330_p0, %p138_p1 }
   0x5   : > { %s331_s16 = sshll.u32 (!%p139_p2), %s326_s13, 3 }
   0x6   : > { %142 = sbr.rel (%p139_p2) target bundleno = 163 (0xa3), region = 32  ;;  %p163_p3 = scmp.lt.s32.totalorder (!%p139_p2), %s331_s16, 15 }
   0xb   : > { %v183_v0 = vld [vmem:[%s448_s1] sm:$0xf]  ;;  %vm221_vm0 = vcmask 1043456   ;;  %s452_s16 = smov (!%p163_p3, %s331_s16), 15  ;;  %vm208_vm1 = vcmask 64512  }
   0xc   : > { %v223_v1 = vsel %vm221_vm0, %v183_v0, 0  ;;  %s332_s17 = sshll.u32 %s452_s16, 2  ;;  %v395_v8 = vld [vmem:[%s449_s2] ss:$0 sm:$0xff] }
   0xd   : > { %232 = vmatpush.bf16.msra.mxu0 %v223_v1  ;;  %384 = vmatpush.bf16.msra.mxu1 %v223_v1  ;;  %s166_s20 = scalar_lea.vmem %s447_s0, %s332_s17  ;;  %s172_s25 = scalar_lea.vmem %s450_s3, %s332_s17 }
   0xe   : > { %385 = vmatpush.bf16.msra.mxu2 %v223_v1  ;;  %386 = vmatpush.bf16.msra.mxu3 %v223_v1  ;;  %v357_v2 = vld [vmem:[%s166_s20] sm:$0xff]  ;;  %v358_v3 = vld [vmem:[%s166_s20 + $0x8] sm:$0xff]  ;;  %v359_v4 = vld [vmem:[%s166_s20 + $0x10] sm:$0xff] }
   0xf   : > { %v360_v5 = vld [vmem:[%s166_s20 + $0x18] sm:$0xff] }
  0x10   : > { %351 = vmatmul.msk.bf16.vlgmr.msra.gmra.mxu0 %vm208_vm1, %v357_v2  ;;  %352 = vmatmul.msk.bf16.vlgmr.msra.gmra.mxu1 %vm208_vm1, %v358_v3 }
  0x11   : > { %353 = vmatmul.msk.bf16.vlgmr.msra.gmra.mxu2 %vm208_vm1, %v359_v4  ;;  %354 = vmatmul.msk.bf16.vlgmr.msra.gmra.mxu3 %vm208_vm1, %v360_v5 }
  0x8d   : > { %v234_v6 = vpop.f32.mrf.mxu0  ;;  %v239_v7 = vpop.f32.mrf.mxu1 }
  0x8e   : > { %v235_v13 = vadd.f32 %v395_v8, %v234_v6  ;;  %v240_v14 = vadd.f32 %v395_v8, %v239_v7 }
  0x94   : > { %v244_v9 = vpop.f32.mrf.mxu2  ;;  %v249_v10 = vpop.f32.mrf.mxu3 }
  0x95   : > { %v236_v11 = vpop.f32.mrf.mxu0  ;;  %v241_v12 = vpop.f32.mrf.mxu1  ;;  %v245_v21 = vadd.f32 %v395_v8, %v244_v9  ;;  %v250_v22 = vadd.f32 %v395_v8, %v249_v10 }
  0x96   : > { %v237_v15 = vadd.f32 %v395_v8, %v236_v11  ;;  %v242_v16 = vadd.f32 %v395_v8, %v241_v12 }
  0x98   : > { %v364_v17 = vpack.c.bf16 %v237_v15, %v235_v13  ;;  %v369_v18 = vpack.c.bf16 %v242_v16, %v240_v14 }
  0x9a   : > { %365 = vst [vmem:[%s172_s25] sm:$0xff] %v364_v17  }
  0x9b   : > { %381 = vst [vmem:[%s172_s25 + $0x8] sm:$0xff] %v369_v18  }
  0x9c   : > { %v246_v19 = vpop.f32.mrf.mxu2  ;;  %v251_v20 = vpop.f32.mrf.mxu3 }
  0x9d   : > { %v247_v23 = vadd.f32 %v395_v8, %v246_v19  ;;  %v252_v24 = vadd.f32 %v395_v8, %v251_v20 }
  0x9f   : > { %v374_v25 = vpack.c.bf16 %v247_v23, %v245_v21  ;;  %v379_v26 = vpack.c.bf16 %v252_v24, %v250_v22 }
  0xa1   : > { %382 = vst [vmem:[%s172_s25 + $0x10] sm:$0xff] %v374_v25  }
  0xa2   : > { %383 = vst [vmem:[%s172_s25 + $0x18] sm:$0xff] %v379_v26  }
  0xa3 PF: > { %s13_s12 = sadd.s32 1, %s402_s12  }
  0xa4   : > { %p10_p4 = scmp.ge.s32.totalorder %s13_s12, 4  }
  0xa6   :  { %12 = sbr.rel (!%p10_p4) target bundleno = 1 (0x1), region = 62 }

// kernel: neu2seq_forward.46
= control target key start
LH: loop header
LB: loop body
LE: loop exit
PB: predicated region body
PF: predicated region fallthrough
CT: control target
= control target key end

     0   :  { %11 = vsyncpa [#allocation3], 0  ;;  %s1269_s0 = inlined_call_operand.vmem [shape: bf16[2,64,8], index: 0, kind: input, shape index: {}]   ;;  %s1270_s1 = inlined_call_operand.hbm [shape: f32[1,1,8], index: 1, kind: input, shape index: {}]   ;;  %s1271_s2 = inlined_call_operand.hbm [shape: f32[1,1,8], index: 2, kind: input, shape index: {}]   ;;  %s1272_s3 = inlined_call_operand.vmem [shape: bf16[2,64,8], index: 3, kind: input, shape index: {}]   ;;  %s1273_s4 = inlined_call_operand.hbm [shape: f32[1,1,8], index: 4, kind: input, shape index: {}]   ;;  %s1274_s5 = inlined_call_operand.hbm [shape: f32[1,1,8], index: 5, kind: input, shape index: {}]   ;;  %s1275_s6 = inlined_call_operand.vmem [shape: bf16[2,64,8], index: 6, kind: output, shape index: {}]  }
   0x1   :  { %12 = vsyncpa [#allocation5], 0 }
   0x2   :  { %13 = vsyncpa [#allocation8], 0  ;;  %s1029_s21 = smov 0  }
   0x3 LB: > { %s210_s24 = sshll.u32 %s1271_s2, 4  ;;  %s1038_s25 = sadd.s32 4294967295, %s988_s21   ;;  %s988_s21 = sphi %s1029_s21, %s19_s21   ;;  %s211_s24 = int_to_ptr.hbm [resolvable:$true] %s210_s24 }
   0x4   : > { %p733_p0 = scmp.ge.s32.totalorder %s988_s21, 1  ;;  %p186_p1 = scmp.lt.s32.totalorder %s988_s21, 3 }
   0x5   : > { %p822_p2 = scmp.eq.s32.totalorder %s1038_s25, 0  ;;  %s990_s27 = smov [#allocation4]  }
   0x6   : > { %p1043_p3 = pnand %p733_p0, %p186_p1  ;;  %s212_s28 = sshll.u32 %s990_s27, 4  ;;  %s213_s28 = int_to_ptr.vmem [resolvable:$true] %s212_s28 }
   0x7   : > { %s198_s7 = sshll.u32 %s1270_s1, 4  ;;  %s222_s10 = sshll.u32 %s1273_s4, 4  ;;  %s199_s7 = int_to_ptr.hbm [resolvable:$true] %s198_s7  ;;  %s223_s10 = int_to_ptr.hbm [resolvable:$true] %s222_s10 }
   0x8   : > { %p809_p4 = pneg %p1043_p3  ;;  %s991_s12 = smov [#allocation2]  }
   0x9   : > { %s200_s13 = sshll.u32 %s991_s12, 4  ;;  %s992_s14 = smov [#allocation6]   ;;  %s201_s13 = int_to_ptr.vmem [resolvable:$true] %s200_s13 }
   0xa   : > { %p1057_p5 = pnand %p822_p2, %p809_p4  ;;  %s224_s15 = sshll.u32 %s992_s14, 4  ;;  %s225_s15 = int_to_ptr.vmem [resolvable:$true] %s224_s15 }
   0xb   : > { %s234_s18 = sshll.u32 %s1274_s5, 4  ;;  %s993_s19 = smov [#allocation7]   ;;  %s235_s18 = int_to_ptr.hbm [resolvable:$true] %s234_s18 }
   0xc   : > { %815 = dma.hbm_to_vmem [thread:$0]  (!%p1057_p5), %s211_s24, 16, %s213_s28, [#allocation5]  }
   0xd   : > { %812 = dma.hbm_to_vmem [thread:$0]  (!%p1057_p5), %s199_s7, 16, %s201_s13, [#allocation3]  }
   0xe   : > { %818 = dma.hbm_to_vmem [thread:$0]  (!%p1057_p5), %s223_s10, 16, %s225_s15, [#allocation5]  }
   0xf   : > { %s236_s20 = sshll.u32 %s993_s19, 4  ;;  %265 = sbr.rel (%p1043_p3) target bundleno = 120 (0x78), region = 44  ;;  %s237_s20 = int_to_ptr.vmem [resolvable:$true] %s236_s20 }
  0x10   : > { %821 = dma.hbm_to_vmem [thread:$0]  (!%p1057_p5), %s235_s18, 16, %s237_s20, [#allocation8]  }
  0x14   : > { %975 = dma.done.wait (%p822_p2), [#allocation3], 16  }
  0x15   : > { %977 = vsyncadd (%p822_p2), [#allocation3], 4294967280 }
  0x16   : > { %979 = dma.done.wait (%p822_p2), [#allocation5], 32  }
  0x17   : > { %981 = vsyncadd (%p822_p2), [#allocation5], 4294967264 }
  0x18   : > { %983 = dma.done.wait (%p822_p2), [#allocation8], 16  }
  0x19   : > { %985 = vsyncadd (%p822_p2), [#allocation8], 4294967280  ;;  %p316_p6 = scmp.lt.s32.totalorder %s1038_s25, 1  ;;  %vm347_vm0 = vcmask 64512   ;;  %vm614_vm7 = vcmask 60416  }
  0x1b   : > { %s1279_s25 = smov (!%p316_p6, %s1038_s25), 1 }
  0x1c   : > { %s1088_s22 = sshll.u32 %s1279_s25, 5 }
  0x1d   : > { %s320_s26 = scalar_lea.vmem %s1269_s0, %s1088_s22  ;;  %s1116_s28 = scalar_lea.vmem %s1272_s3, %s1088_s22 }
  0x1e   : > { %v756_v0 = vld [vmem:[%s320_s26] sm:$0xff]   ;;  %v787_v1 = vld [vmem:[%s320_s26 + $0x8] sm:$0xff]   ;;  %v788_v2 = vld [vmem:[%s320_s26 + $0x10] sm:$0xff]   ;;  %s1248_s7 = scalar_lea.vmem %s1275_s6, %s1088_s22 }
  0x1f   : > { %v1094_v3 = vunpack.c.l.bf16 %v756_v0  ;;  %v1096_v4 = vunpack.c.h.bf16 %v756_v0  ;;  %v1098_v5 = vunpack.c.l.bf16 %v787_v1  ;;  %v1100_v6 = vunpack.c.h.bf16 %v787_v1  ;;  %v789_v7 = vld [vmem:[%s320_s26 + $0x18] sm:$0xff]   ;;  %v772_v27 = vld [vmem:[%s1116_s28] sm:$0xff]   ;;  %v790_v32 = vld [vmem:[%s1116_s28 + $0x8] sm:$0xff]  }
  0x20   : > { %v1102_v8 = vunpack.c.l.bf16 %v788_v2  ;;  %v1104_v9 = vunpack.c.h.bf16 %v788_v2  ;;  %v1118_v13 = vunpack.c.l.bf16 %v789_v7  ;;  %v1120_v14 = vunpack.c.h.bf16 %v789_v7  ;;  %v791_v41 = vld [vmem:[%s1116_s28 + $0x10] sm:$0xff]   ;;  %v792_v50 = vld [vmem:[%s1116_s28 + $0x18] sm:$0xff]  }
  0x21   : > { %v348_v10 = vsel %vm347_vm0, %v1094_v3, 0.0  ;;  %v349_v11 = vsel %vm347_vm0, %v1096_v4, 0.0  ;;  %v351_v12 = vsel %vm347_vm0, %v1098_v5, 0.0  ;;  %v353_v16 = vsel %vm347_vm0, %v1100_v6, 0.0 }
  0x22   : > { %v350_v15 = vadd.f32 %v349_v11, %v348_v10  ;;  %v370_v17 = vmul.f32 %v1094_v3, %v1094_v3  ;;  %v371_v18 = vmul.f32 %v1096_v4, %v1096_v4  ;;  %v372_v19 = vmul.f32 %v1098_v5, %v1098_v5 }
  0x23   : > { %v355_v21 = vsel %vm347_vm0, %v1102_v8, 0.0  ;;  %v373_v22 = vmul.f32 %v1100_v6, %v1100_v6  ;;  %v374_v23 = vmul.f32 %v1102_v8, %v1102_v8  ;;  %v375_v24 = vmul.f32 %v1104_v9, %v1104_v9 }
  0x24   : > { %v352_v20 = vadd.f32 %v351_v12, %v350_v15  ;;  %v378_v25 = vsel %vm347_vm0, %v370_v17, 0.0  ;;  %v379_v26 = vsel %vm347_vm0, %v371_v18, 0.0  ;;  %v376_v29 = vmul.f32 %v1118_v13, %v1118_v13 }
  0x25   : > { %v380_v30 = vadd.f32 %v379_v26, %v378_v25  ;;  %v381_v31 = vsel %vm347_vm0, %v372_v19, 0.0  ;;  %v357_v33 = vsel %vm347_vm0, %v1104_v9, 0.0  ;;  %v359_v34 = vsel %vm347_vm0, %v1118_v13, 0.0 }
  0x26   : > { %v354_v28 = vadd.f32 %v353_v16, %v352_v20  ;;  %v361_v35 = vsel %vm347_vm0, %v1120_v14, 0.0  ;;  %v383_v36 = vsel %vm347_vm0, %v373_v22, 0.0  ;;  %v1152_v39 = vunpack.c.l.bf16 %v772_v27 }
  0x27   : > { %v382_v38 = vadd.f32 %v381_v31, %v380_v30  ;;  %v1154_v40 = vunpack.c.h.bf16 %v772_v27  ;;  %v377_v42 = vmul.f32 %v1120_v14, %v1120_v14  ;;  %v385_v43 = vsel %vm347_vm0, %v374_v23, 0.0 }
  0x28   : > { %v356_v37 = vadd.f32 %v355_v21, %v354_v28  ;;  %v1160_v44 = vunpack.c.l.bf16 %v790_v32  ;;  %v1162_v45 = vunpack.c.h.bf16 %v790_v32  ;;  %v387_v48 = vsel %vm347_vm0, %v375_v24, 0.0 }
  0x29   : > { %v384_v47 = vadd.f32 %v383_v36, %v382_v38  ;;  %v389_v49 = vsel %vm347_vm0, %v376_v29, 0.0  ;;  %v1167_v51 = vunpack.c.l.bf16 %v791_v41  ;;  %v469_v52 = vsel %vm347_vm0, %v1152_v39, 0.0 }
  0x2a   : > { %v358_v46 = vadd.f32 %v357_v33, %v356_v37  ;;  %v470_v53 = vsel %vm347_vm0, %v1154_v40, 0.0  ;;  %v472_v54 = vsel %vm347_vm0, %v1160_v44, 0.0  ;;  %v1175_v57 = vunpack.c.h.bf16 %v791_v41 }
  0x2b   : > { %v386_v56 = vadd.f32 %v385_v43, %v384_v47  ;;  %v471_v58 = vadd.f32 %v470_v53, %v469_v52  ;;  %v391_v59 = vsel %vm347_vm0, %v377_v42, 0.0  ;;  %v1178_v60 = vunpack.c.l.bf16 %v792_v50 }
  0x2c   : > { %v360_v55 = vadd.f32 %v359_v34, %v358_v46  ;;  %v474_v61 = vsel %vm347_vm0, %v1162_v45, 0.0  ;;  %v491_v62 = vmul.f32 %v1152_v39, %v1152_v39  ;;  %v492_v2 = vmul.f32 %v1154_v40, %v1154_v40 }
  0x2d   : > { %v388_v0 = vadd.f32 %v387_v48, %v386_v56  ;;  %v473_v1 = vadd.f32 %v472_v54, %v471_v58  ;;  %v1186_v7 = vunpack.c.h.bf16 %v792_v50  ;;  %v476_v10 = vsel %vm347_vm0, %v1167_v51, 0.0 }
  0x2e   : > { %v362_v63 = vadd.f32 %v361_v35, %v360_v55  ;;  %v493_v11 = vmul.f32 %v1160_v44, %v1160_v44  ;;  %v494_v12 = vmul.f32 %v1162_v45, %v1162_v45  ;;  %v478_v18 = vsel %vm347_vm0, %v1175_v57, 0.0 }
  0x2f   : > { %v390_v16 = vadd.f32 %v389_v49, %v388_v0  ;;  %v475_v17 = vadd.f32 %v474_v61, %v473_v1  ;;  %v495_v19 = vmul.f32 %v1167_v51, %v1167_v51  ;;  %v499_v20 = vsel %vm347_vm0, %v491_v62, 0.0 }
  0x30   : > { %v363_v15 = vrot.slane %v362_v63, 4  ;;  %v500_v21 = vsel %vm347_vm0, %v492_v2, 0.0  ;;  %v502_v22 = vsel %vm347_vm0, %v493_v11, 0.0  ;;  %v480_v27 = vsel %vm347_vm0, %v1178_v60, 0.0 }
  0x31   : > { %v392_v24 = vadd.f32 %v391_v59, %v390_v16  ;;  %v477_v25 = vadd.f32 %v476_v10, %v475_v17  ;;  %v501_v26 = vadd.f32 %v500_v21, %v499_v20  ;;  %v496_v28 = vmul.f32 %v1175_v57, %v1175_v57 }
  0x32   : > { %v364_v23 = vadd.f32 %v363_v15, %v362_v63  ;;  %v504_v29 = vsel %vm347_vm0, %v494_v12, 0.0  ;;  %v482_v34 = vsel %vm347_vm0, %v1186_v7, 0.0  ;;  %v497_v35 = vmul.f32 %v1178_v60, %v1178_v60 }
  0x33   : > { %v393_v31 = vrot.slane %v392_v24, 4  ;;  %v479_v32 = vadd.f32 %v478_v18, %v477_v25  ;;  %v503_v33 = vadd.f32 %v502_v22, %v501_v26  ;;  %v506_v36 = vsel %vm347_vm0, %v495_v19, 0.0 }
  0x34   : > { %v365_v30 = vrot.slane %v364_v23, 2  ;;  %v498_v43 = vmul.f32 %v1186_v7, %v1186_v7  ;;  %v508_v46 = vsel %vm347_vm0, %v496_v28, 0.0  ;;  %v510_v52 = vsel %vm347_vm0, %v497_v35, 0.0 }
  0x35   : > { %v394_v38 = vadd.f32 %v393_v31, %v392_v24  ;;  %v481_v41 = vadd.f32 %v480_v27, %v479_v32  ;;  %v505_v42 = vadd.f32 %v504_v29, %v503_v33 }
  0x36   : > { %v366_v37 = vadd.f32 %v365_v30, %v364_v23  ;;  %v512_v58 = vsel %vm347_vm0, %v498_v43, 0.0 }
  0x37   : > { %v395_v48 = vrot.slane %v394_v38, 2  ;;  %v483_v49 = vadd.f32 %v482_v34, %v481_v41  ;;  %v507_v50 = vadd.f32 %v506_v36, %v505_v42 }
  0x38   : > { %v367_v47 = vrot.slane %v366_v37, 1 }
  0x39   : > { %v396_v54 = vadd.f32 %v395_v48, %v394_v38  ;;  %v484_v55 = vrot.slane %v483_v49, 4  ;;  %v509_v56 = vadd.f32 %v508_v46, %v507_v50 }
  0x3a   : > { %v368_v53 = vadd.f32 %v367_v47, %v366_v37 }
  0x3b   : > { %v397_v61 = vrot.slane %v396_v54, 1  ;;  %v485_v62 = vadd.f32 %v484_v55, %v483_v49  ;;  %v511_v63 = vadd.f32 %v510_v52, %v509_v56  ;;  %v842_v52 = vld [vmem:[#allocation2] ss:$0 sm:$0xff] }
  0x3c   : > { %v369_v59 = vmul.f32 0.015625, %v368_v53 }
  0x3d   : > { %v398_v0 = vadd.f32 %v397_v61, %v396_v54  ;;  %v486_v2 = vrot.slane %v485_v62, 2  ;;  %v513_v10 = vadd.f32 %v512_v58, %v511_v63 }
  0x3e   : > { %v400_v1 = vmul.f32 %v369_v59, %v369_v59  ;;  %v402_v36 = vsub.f32 %v1094_v3, %v369_v59  ;;  %v403_v37 = vsub.f32 %v1096_v4, %v369_v59  ;;  %v404_v41 = vsub.f32 %v1098_v5, %v369_v59 }
  0x3f   : > { %v399_v11 = vmul.f32 0.015625, %v398_v0  ;;  %v487_v12 = vadd.f32 %v486_v2, %v485_v62  ;;  %v514_v15 = vrot.slane %v513_v10, 4  ;;  %v405_v42 = vsub.f32 %v1100_v6, %v369_v59 }
  0x40   : > { %v406_v43 = vsub.f32 %v1102_v8, %v369_v59  ;;  %v407_v46 = vsub.f32 %v1104_v9, %v369_v59  ;;  %v408_v47 = vsub.f32 %v1118_v13, %v369_v59  ;;  %v409_v48 = vsub.f32 %v1120_v14, %v369_v59  ;;  %v843_v14 = vld [vmem:[#allocation4] ss:$0 sm:$0xff] }
  0x41   : > { %v401_v16 = vsub.f32 %v399_v11, %v400_v1  ;;  %v488_v17 = vrot.slane %v487_v12, 1  ;;  %v515_v18 = vadd.f32 %v514_v15, %v513_v10 }
  0x43   : > { %v410_v19 = vadd.f32 1e-05, %v401_v16  ;;  %v489_v20 = vadd.f32 %v488_v17, %v487_v12  ;;  %v516_v21 = vrot.slane %v515_v18, 2 }
  0x45   : > { %846 = vrsqrt.f32 %v410_v19  ;;  %v1216_v22 = vmul.f32 0.015625, %v489_v20  ;;  %v517_v23 = vadd.f32 %v516_v21, %v515_v18  ;;  %vm417_vm1 = vweird.f32 %v410_v19  ;;  %v844_v20 = vld [vmem:[#allocation6] ss:$0 sm:$0xff] }
  0x47   : > { %v518_v24 = vrot.slane %v517_v23, 1  ;;  %v521_v26 = vmul.f32 %v1216_v22, %v1216_v22  ;;  %v523_v8 = vsub.f32 %v1152_v39, %v1216_v22  ;;  %v524_v9 = vsub.f32 %v1154_v40, %v1216_v22 }
  0x48   : > { %v525_v39 = vsub.f32 %v1160_v44, %v1216_v22  ;;  %v526_v40 = vsub.f32 %v1162_v45, %v1216_v22  ;;  %v527_v12 = vsub.f32 %v1167_v51, %v1216_v22  ;;  %v528_v15 = vsub.f32 %v1175_v57, %v1216_v22 }
  0x49   : > { %v519_v25 = vadd.f32 %v518_v24, %v517_v23  ;;  %v529_v18 = vsub.f32 %v1178_v60, %v1216_v22 }
  0x4b   : > { %v847_v27 = vpop.eup %846  ;;  %v520_v29 = vmul.f32 0.015625, %v519_v25 }
  0x4c   : > { %v412_v28 = vmul.f32 %v847_v27, %v410_v19  ;;  %vm418_vm2 = vweird.f32 %v847_v27  ;;  %v530_v19 = vsub.f32 %v1186_v7, %v1216_v22 }
  0x4d   : > { %v522_v31 = vsub.f32 %v520_v29, %v521_v26  ;;  %vm419_vm3 = vmor %vm417_vm1, %vm418_vm2 }
  0x4e   : > { %v413_v30 = vmul.f32 %v847_v27, %v412_v28  ;;  %v845_v28 = vld [vmem:[#allocation7] ss:$0 sm:$0xff] }
  0x4f   : > { %v531_v33 = vadd.f32 1e-05, %v522_v31 }
  0x50   : > { %v414_v32 = vmul.f32 0.5, %v413_v30 }
  0x51   : > { %848 = vrsqrt.f32 %v531_v33  ;;  %vm538_vm4 = vweird.f32 %v531_v33 }
  0x52   : > { %v415_v34 = vsub.f32 1.5, %v414_v32 }
  0x54   : > { %v416_v35 = vmul.f32 %v847_v27, %v415_v34 }
  0x56   : > { %v420_v38 = vsel %vm419_vm3, %v847_v27, %v416_v35 }
  0x57   : > { %v849_v49 = vpop.eup %848  ;;  %v421_v50 = vmul.f32 %v420_v38, %v402_v36  ;;  %v422_v3 = vmul.f32 %v420_v38, %v403_v37  ;;  %v423_v54 = vmul.f32 %v420_v38, %v404_v41  ;;  %v424_v4 = vmul.f32 %v420_v38, %v405_v42 }
  0x58   : > { %v533_v53 = vmul.f32 %v849_v49, %v531_v33  ;;  %v425_v55 = vmul.f32 %v420_v38, %v406_v43  ;;  %v426_v5 = vmul.f32 %v420_v38, %v407_v46  ;;  %v427_v58 = vmul.f32 %v420_v38, %v408_v47 }
  0x59   : > { %v428_v6 = vmul.f32 %v420_v38, %v409_v48  ;;  %v433_v13 = vmul.f32 %v842_v52, %v421_v50  ;;  %vm539_vm5 = vweird.f32 %v849_v49  ;;  %v434_v61 = vmul.f32 %v842_v52, %v422_v3 }
  0x5a   : > { %v534_v56 = vmul.f32 %v849_v49, %v533_v53  ;;  %v435_v62 = vmul.f32 %v842_v52, %v423_v54  ;;  %v436_v63 = vmul.f32 %v842_v52, %v424_v4  ;;  %v437_v0 = vmul.f32 %v842_v52, %v425_v55  ;;  %vm540_vm6 = vmor %vm538_vm4, %vm539_vm5 }
  0x5b   : > { %v438_v2 = vmul.f32 %v842_v52, %v426_v5  ;;  %v439_v10 = vmul.f32 %v842_v52, %v427_v58  ;;  %v440_v11 = vmul.f32 %v842_v52, %v428_v6  ;;  %v445_v16 = vadd.f32 %v843_v14, %v433_v13 }
  0x5c   : > { %v535_v59 = vmul.f32 0.5, %v534_v56  ;;  %v446_v21 = vadd.f32 %v843_v14, %v434_v61  ;;  %v447_v44 = vadd.f32 %v843_v14, %v435_v62  ;;  %v448_v23 = vadd.f32 %v843_v14, %v436_v63 }
  0x5d   : > { %v449_v24 = vadd.f32 %v843_v14, %v437_v0  ;;  %v450_v25 = vadd.f32 %v843_v14, %v438_v2  ;;  %v451_v26 = vadd.f32 %v843_v14, %v439_v10  ;;  %v452_v51 = vadd.f32 %v843_v14, %v440_v11 }
  0x5e   : > { %v536_v1 = vsub.f32 1.5, %v535_v59 }
  0x60   : > { %v537_v17 = vmul.f32 %v849_v49, %v536_v1 }
  0x62   : > { %v541_v45 = vsel %vm540_vm6, %v849_v49, %v537_v17 }
  0x63   : > { %v542_v27 = vmul.f32 %v541_v45, %v523_v8  ;;  %v543_v57 = vmul.f32 %v541_v45, %v524_v9  ;;  %v544_v29 = vmul.f32 %v541_v45, %v525_v39  ;;  %v545_v30 = vmul.f32 %v541_v45, %v526_v40 }
  0x64   : > { %v546_v31 = vmul.f32 %v541_v45, %v527_v12  ;;  %v547_v32 = vmul.f32 %v541_v45, %v528_v15  ;;  %v548_v60 = vmul.f32 %v541_v45, %v529_v18  ;;  %v549_v33 = vmul.f32 %v541_v45, %v530_v19 }
  0x65   : > { %v554_v34 = vmul.f32 %v844_v20, %v542_v27  ;;  %v555_v7 = vmul.f32 %v844_v20, %v543_v57  ;;  %v556_v22 = vmul.f32 %v844_v20, %v544_v29  ;;  %v557_v35 = vmul.f32 %v844_v20, %v545_v30 }
  0x66   : > { %v558_v36 = vmul.f32 %v844_v20, %v546_v31  ;;  %v559_v37 = vmul.f32 %v844_v20, %v547_v32  ;;  %v560_v38 = vmul.f32 %v844_v20, %v548_v60  ;;  %v561_v41 = vmul.f32 %v844_v20, %v549_v33 }
  0x67   : > { %v566_v42 = vadd.f32 %v845_v28, %v554_v34  ;;  %v567_v43 = vadd.f32 %v845_v28, %v555_v7  ;;  %v568_v46 = vadd.f32 %v845_v28, %v556_v22  ;;  %v569_v47 = vadd.f32 %v845_v28, %v557_v35 }
  0x68   : > { %v570_v48 = vadd.f32 %v845_v28, %v558_v36  ;;  %v571_v49 = vadd.f32 %v845_v28, %v559_v37  ;;  %v572_v50 = vadd.f32 %v845_v28, %v560_v38  ;;  %v573_v52 = vadd.f32 %v845_v28, %v561_v41 }
  0x69   : > { %v574_v53 = vadd.f32 %v566_v42, %v445_v16  ;;  %v575_v3 = vadd.f32 %v567_v43, %v446_v21  ;;  %v576_v54 = vadd.f32 %v568_v46, %v447_v44  ;;  %v577_v4 = vadd.f32 %v569_v47, %v448_v23 }
  0x6a   : > { %v578_v55 = vadd.f32 %v570_v48, %v449_v24  ;;  %v579_v56 = vadd.f32 %v571_v49, %v450_v25  ;;  %v580_v5 = vadd.f32 %v572_v50, %v451_v26  ;;  %v581_v58 = vadd.f32 %v573_v52, %v452_v51 }
  0x6b   : > { %vm582_vm8 = vcmp.ge.f32.partialorder %v574_v53, 0.0  ;;  %v590_v6 = vmul.f32 0.01, %v574_v53  ;;  %vm583_vm9 = vcmp.ge.f32.partialorder %v575_v3, 0.0  ;;  %v591_v8 = vmul.f32 0.01, %v575_v3 }
  0x6c   : > { %vm584_vm10 = vcmp.ge.f32.partialorder %v576_v54, 0.0  ;;  %v592_v9 = vmul.f32 0.01, %v576_v54  ;;  %vm585_vm11 = vcmp.ge.f32.partialorder %v577_v4, 0.0  ;;  %v593_v13 = vmul.f32 0.01, %v577_v4 }
  0x6d   : > { %v598_v14 = vsel %vm582_vm8, %v574_v53, %v590_v6  ;;  %v599_v59 = vsel %vm583_vm9, %v575_v3, %v591_v8  ;;  %vm586_vm12 = vcmp.ge.f32.partialorder %v578_v55, 0.0  ;;  %v594_v61 = vmul.f32 0.01, %v578_v55 }
  0x6e   : > { %v606_v62 = vpack.c.bf16 %v598_v14, %v598_v14  ;;  %v607_v63 = vpack.c.bf16 %v599_v59, %v599_v59  ;;  %v600_v0 = vsel %vm584_vm10, %v576_v54, %v592_v9  ;;  %v601_v1 = vsel %vm585_vm11, %v577_v4, %v593_v13 }
  0x6f   : > { %v608_v2 = vpack.c.bf16 %v600_v0, %v600_v0  ;;  %v609_v10 = vpack.c.bf16 %v601_v1, %v601_v1  ;;  %v602_v11 = vsel %vm586_vm12, %v578_v55, %v594_v61  ;;  %vm587_vm13 = vcmp.ge.f32.partialorder %v579_v56, 0.0 }
  0x70   : > { %615 = vst.msk [vmem:[%s1248_s7] sm:$0xf] %vm614_vm7, %v606_v62  ;;  %v610_v39 = vpack.c.bf16 %v602_v11, %v602_v11  ;;  %v595_v40 = vmul.f32 0.01, %v579_v56  ;;  %vm588_vm14 = vcmp.ge.f32.partialorder %v580_v5, 0.0  ;;  %vm589_vm15 = vcmp.ge.f32.partialorder %v581_v58, 0.0 }
  0x71   : > { %616 = vst.msk [vmem:[%s1248_s7 + $0x4] sm:$0xf] %vm614_vm7, %v607_v63  ;;  %v596_v12 = vmul.f32 0.01, %v580_v5  ;;  %v597_v15 = vmul.f32 0.01, %v581_v58 }
  0x72   : > { %617 = vst.msk [vmem:[%s1248_s7 + $0x8] sm:$0xf] %vm614_vm7, %v608_v2  ;;  %v603_v16 = vsel %vm587_vm13, %v579_v56, %v595_v40 }
  0x73   : > { %618 = vst.msk [vmem:[%s1248_s7 + $0xc] sm:$0xf] %vm614_vm7, %v609_v10  ;;  %v611_v17 = vpack.c.bf16 %v603_v16, %v603_v16  ;;  %v604_v18 = vsel %vm588_vm14, %v580_v5, %v596_v12  ;;  %v605_v19 = vsel %vm589_vm15, %v581_v58, %v597_v15 }
  0x74   : > { %619 = vst.msk [vmem:[%s1248_s7 + $0x10] sm:$0xf] %vm614_vm7, %v610_v39  ;;  %v612_v20 = vpack.c.bf16 %v604_v18, %v604_v18  ;;  %v613_v21 = vpack.c.bf16 %v605_v19, %v605_v19 }
  0x75   : > { %620 = vst.msk [vmem:[%s1248_s7 + $0x14] sm:$0xf] %vm614_vm7, %v611_v17 }
  0x76   : > { %621 = vst.msk [vmem:[%s1248_s7 + $0x18] sm:$0xf] %vm614_vm7, %v612_v20 }
  0x77   : > { %622 = vst.msk [vmem:[%s1248_s7 + $0x1c] sm:$0xf] %vm614_vm7, %v613_v21 }
  0x78 PF: > { %s19_s21 = sadd.s32 1, %s988_s21  }
  0x79   : > { %p16_p7 = scmp.ge.s32.totalorder %s19_s21, 4  }
  0x7b   :  { %18 = sbr.rel (!%p16_p7) target bundleno = 3 (0x3), region = 94 }
  0x80   :  { %644 = vsyncpa [#allocation3], 1 }
  0x81   :  { %646 = vsyncpa [#allocation3 + $0x1], 1 }
  0x82   :  { %647 = vsyncpa [#allocation5], 1 }
  0x83   :  { %648 = vsyncpa [#allocation8], 1 }

// kernel: neu2seq_forward.47
= control target key start
LH: loop header
LB: loop body
LE: loop exit
PB: predicated region body
PF: predicated region fallthrough
CT: control target
= control target key end

     0   :  { %vm142_vm0 = vcmask 1043456   ;;  %vm138_vm1 = vcmask 719872   ;;  %s344_s1 = inlined_call_operand.vmem [shape: bf16[216,128], index: 1, kind: input, shape index: {}]   ;;  %s345_s0 = inlined_call_operand.vmem [shape: bf16[16,216], index: 0, kind: input, shape index: {}]   ;;  %s346_s2 = inlined_call_operand.vmem [shape: f32[1,128], index: 2, kind: input, shape index: {}]   ;;  %s347_s3 = inlined_call_operand.vmem [shape: bf16[16,128], index: 3, kind: output, shape index: {}]  }
   0x1   :  { %v252_v0 = vld [vmem:[%s344_s1 + $0x38] sm:$0xff]  ;;  %v43_v1 = vld [vmem:[%s344_s1 + $0x68] sm:$0xf]  ;;  %v251_v3 = vld [vmem:[%s344_s1 + $0x30] sm:$0xff] }
   0x2   :  { %v110_v2 = vunpack.c.l.b16 %v43_v1  ;;  %146 = vmatpush.bf16.msra.mxu0 %v252_v0  ;;  %v257_v6 = vld [vmem:[%s344_s1 + $0x60] sm:$0xff]  ;;  %v250_v7 = vld [vmem:[%s344_s1 + $0x28] sm:$0xff]  ;;  %v256_v8 = vld [vmem:[%s344_s1 + $0x58] sm:$0xff] }
   0x3   :  { %v249_v9 = vld [vmem:[%s344_s1 + $0x20] sm:$0xff]  ;;  %v255_v10 = vld [vmem:[%s344_s1 + $0x50] sm:$0xff]  ;;  %v248_v11 = vld [vmem:[%s344_s1 + $0x18] sm:$0xff] }
   0x4   :  { %v124_v4 = vpack.c.b16 %v110_v2, %v110_v2  ;;  %v254_v12 = vld [vmem:[%s344_s1 + $0x48] sm:$0xff]  ;;  %v247_v13 = vld [vmem:[%s344_s1 + $0x10] sm:$0xff]  ;;  %v253_v14 = vld [vmem:[%s344_s1 + $0x40] sm:$0xff] }
   0x5   :  { %v246_v15 = vld [vmem:[%s344_s1 + $0x8] sm:$0xff]  ;;  %v243_v16 = vld [vmem:[%s345_s0 + $0x4] sm:$0xf]  ;;  %v184_v20 = vld [vmem:[%s345_s0] sm:$0xf] }
   0x6   :  { %v144_v5 = vsel %vm142_vm0, %v124_v4, 0  ;;  %147 = vmatpush.bf16.msra.mxu0 %v251_v3  ;;  %v186_v17 = vld [vmem:[%s345_s0 + $0x8] sm:$0xf0]  ;;  %v245_v19 = vld [vmem:[%s344_s1] sm:$0xff]  ;;  %v244_v21 = vld [vmem:[%s345_s0 + $0x4] sm:$0xf0] }
   0x7   :  { %162 = vmatpush.bf16.msra.mxu1 %v144_v5  ;;  %v189_v18 = vor.u32 %v243_v16, %v186_v17  ;;  %v185_v22 = vor.u32 %v244_v21, %v184_v20  ;;  %v263_v25 = vld [vmem:[%s346_s2] ss:$0 sm:$0xff] }
   0xa   :  { %148 = vmatpush.bf16.msra.mxu0 %v250_v7 }
   0xb   :  { %163 = vmatpush.bf16.msra.mxu1 %v257_v6 }
   0xe   :  { %149 = vmatpush.bf16.msra.mxu0 %v249_v9 }
   0xf   :  { %164 = vmatpush.bf16.msra.mxu1 %v256_v8 }
  0x12   :  { %150 = vmatpush.bf16.msra.mxu0 %v248_v11 }
  0x13   :  { %165 = vmatpush.bf16.msra.mxu1 %v255_v10 }
  0x16   :  { %151 = vmatpush.bf16.msra.mxu0 %v247_v13 }
  0x17   :  { %166 = vmatpush.bf16.msra.mxu1 %v254_v12 }
  0x1a   :  { %152 = vmatpush.bf16.msra.mxu0 %v246_v15 }
  0x1b   :  { %167 = vmatpush.bf16.msra.mxu1 %v253_v14 }
  0x1e   :  { %242 = vmatmul.msk.bf16.vlgmr.msra.gmra.mxu1 %vm138_vm1, %v189_v18  ;;  %153 = vmatpush.bf16.msra.mxu0 %v245_v19 }
  0x21   :  { %154 = vmatmul.bf16.vlgmr.msra.gmra.mxu0 %v185_v22 }
  0x9b   :  { %v169_v23 = vpop.f32.mrf.mxu1 }
  0x9e   :  { %v155_v24 = vpop.f32.mrf.mxu0 }
  0x9f   :  { %v156_v26 = vadd.f32 %v263_v25, %v155_v24 }
  0xa1   :  { %v170_v30 = vadd.f32 %v169_v23, %v156_v26 }
  0xa3   :  { %v171_v29 = vpop.f32.mrf.mxu1 }
  0xa6   :  { %v157_v27 = vpop.f32.mrf.mxu0 }
  0xa7   :  { %v158_v28 = vadd.f32 %v263_v25, %v157_v27 }
  0xa9   :  { %v172_v31 = vadd.f32 %v171_v29, %v158_v28 }
  0xab   :  { %v261_v32 = vpack.c.bf16 %v172_v31, %v170_v30 }
  0xad   :  { %262 = vst [vmem:[%s347_s3] sm:$0xff] %v261_v32  }

// kernel: neu2seq_forward.48
= control target key start
LH: loop header
LB: loop body
LE: loop exit
PB: predicated region body
PF: predicated region fallthrough
CT: control target
= control target key end

     0   :  { %8 = vsyncpa [#allocation3], 0  ;;  %s509_s0 = inlined_call_operand.vmem [shape: bf16[2,8,16], index: 0, kind: input, shape index: {}]   ;;  %s510_s1 = inlined_call_operand.hbm [shape: f32[1,1,16], index: 1, kind: input, shape index: {}]   ;;  %s511_s2 = inlined_call_operand.hbm [shape: f32[1,1,16], index: 2, kind: input, shape index: {}]   ;;  %s512_s3 = inlined_call_operand.vmem [shape: bf16[2,8,16], index: 3, kind: output, shape index: {}]  }
   0x1   :  { %9 = vsyncpa [#allocation5], 0  ;;  %s466_s12 = smov 0  }
   0x2 LB: > { %s126_s15 = sshll.u32 %s510_s1, 4  ;;  %s322_s16 = sadd.s32 4294967295, %s442_s12   ;;  %s442_s12 = sphi %s466_s12, %s15_s12   ;;  %s127_s15 = int_to_ptr.hbm [resolvable:$true] %s126_s15 }
   0x3   : > { %p324_p0 = scmp.ge.s32.totalorder %s442_s12, 1  ;;  %p114_p1 = scmp.lt.s32.totalorder %s442_s12, 3 }
   0x4   : > { %p350_p2 = scmp.eq.s32.totalorder %s322_s16, 0  ;;  %s444_s18 = smov [#allocation2]  }
   0x5   : > { %p477_p3 = pnand %p324_p0, %p114_p1  ;;  %s128_s19 = sshll.u32 %s444_s18, 4  ;;  %s129_s19 = int_to_ptr.vmem [resolvable:$true] %s128_s19 }
   0x6   : > { %s138_s22 = sshll.u32 %s511_s2, 4  ;;  %s445_s23 = smov [#allocation4]   ;;  %s139_s22 = int_to_ptr.hbm [resolvable:$true] %s138_s22 }
   0x7   : > { %p343_p4 = pneg %p477_p3  ;;  %s140_s24 = sshll.u32 %s445_s23, 4  ;;  %s141_s24 = int_to_ptr.vmem [resolvable:$true] %s140_s24 }
   0x8   : > { %160 = sbr.rel (%p477_p3) target bundleno = 75 (0x4b), region = 32 }
   0x9   : > { %p344_p5 = pnand %p350_p2, %p343_p4 }
   0xb   : > { %346 = dma.hbm_to_vmem [thread:$0]  (!%p344_p5), %s127_s15, 16, %s129_s19, [#allocation3]  }
   0xc   : > { %349 = dma.hbm_to_vmem [thread:$0]  (!%p344_p5), %s139_s22, 16, %s141_s24, [#allocation5]  }
   0xd   : > { %433 = dma.done.wait (%p350_p2), [#allocation3], 16  }
   0xe   : > { %435 = vsyncadd (%p350_p2), [#allocation3], 4294967280 }
   0xf   : > { %437 = dma.done.wait (%p350_p2), [#allocation5], 16  }
  0x10   : > { %439 = vsyncadd (%p350_p2), [#allocation5], 4294967280  ;;  %p188_p6 = scmp.lt.s32.totalorder %s322_s16, 1  ;;  %vm198_vm0 = vcmask 130048   ;;  %v364_v29 = vld [vmem:[#allocation2] ss:$0 sm:$0xff] }
  0x11   : > { %v365_v32 = vld [vmem:[#allocation4] ss:$0 sm:$0xff]  ;;  %vm245_vm5 = vcmask 125952  }
  0x12   : > { %s515_s16 = smov (!%p188_p6, %s322_s16), 1 }
  0x13   : > { %s331_s25 = sshll.u32 %s515_s16, 2 }
  0x14   : > { %s191_s28 = scalar_lea.vmem %s509_s0, %s331_s25  ;;  %s195_s4 = scalar_lea.vmem %s512_s3, %s331_s25 }
  0x15   : > { %v196_v0 = vld [vmem:[%s191_s28] sm:$0xf] }
  0x16   : > { %v197_v1 = vunpack.c.l.bf16 %v196_v0 }
  0x18   : > { %v199_v2 = vsel %vm198_vm0, %v197_v1, 0.0  ;;  %v207_v3 = vmul.f32 %v197_v1, %v197_v1 }
  0x19   : > { %v200_v4 = vrot.slane %v199_v2, 4 }
  0x1a   : > { %v208_v5 = vsel %vm198_vm0, %v207_v3, 0.0 }
  0x1b   : > { %v201_v6 = vadd.f32 %v200_v4, %v199_v2  ;;  %v209_v7 = vrot.slane %v208_v5, 4 }
  0x1d   : > { %v202_v8 = vrot.slane %v201_v6, 2  ;;  %v210_v9 = vadd.f32 %v209_v7, %v208_v5 }
  0x1f   : > { %v203_v10 = vadd.f32 %v202_v8, %v201_v6  ;;  %v211_v11 = vrot.slane %v210_v9, 2 }
  0x21   : > { %v204_v12 = vrot.slane %v203_v10, 1  ;;  %v212_v13 = vadd.f32 %v211_v11, %v210_v9 }
  0x23   : > { %v205_v14 = vadd.f32 %v204_v12, %v203_v10  ;;  %v213_v15 = vrot.slane %v212_v13, 1 }
  0x25   : > { %v206_v16 = vmul.f32 0.125, %v205_v14  ;;  %v214_v17 = vadd.f32 %v213_v15, %v212_v13 }
  0x27   : > { %v215_v18 = vmul.f32 0.125, %v214_v17  ;;  %v216_v19 = vmul.f32 %v206_v16, %v206_v16  ;;  %v218_v27 = vsub.f32 %v197_v1, %v206_v16 }
  0x29   : > { %v217_v20 = vsub.f32 %v215_v18, %v216_v19 }
  0x2b   : > { %v219_v21 = vadd.f32 1e-05, %v217_v20 }
  0x2d   : > { %366 = vrsqrt.f32 %v219_v21  ;;  %vm226_vm1 = vweird.f32 %v219_v21 }
  0x33   : > { %v367_v22 = vpop.eup %366 }
  0x34   : > { %v221_v23 = vmul.f32 %v367_v22, %v219_v21  ;;  %vm227_vm2 = vweird.f32 %v367_v22 }
  0x35   : > { %vm228_vm3 = vmor %vm226_vm1, %vm227_vm2 }
  0x36   : > { %v222_v24 = vmul.f32 %v367_v22, %v221_v23 }
  0x38   : > { %v223_v25 = vmul.f32 0.5, %v222_v24 }
  0x3a   : > { %v224_v26 = vsub.f32 1.5, %v223_v25 }
  0x3c   : > { %v225_v28 = vmul.f32 %v367_v22, %v224_v26 }
  0x3e   : > { %v229_v30 = vsel %vm228_vm3, %v367_v22, %v225_v28 }
  0x3f   : > { %v230_v31 = vmul.f32 %v229_v30, %v218_v27 }
  0x41   : > { %v235_v33 = vmul.f32 %v364_v29, %v230_v31 }
  0x43   : > { %v240_v34 = vadd.f32 %v365_v32, %v235_v33 }
  0x45   : > { %vm241_vm4 = vcmp.ge.f32.partialorder %v240_v34, 0.0  ;;  %v242_v35 = vmul.f32 0.01, %v240_v34 }
  0x47   : > { %v243_v36 = vsel %vm241_vm4, %v240_v34, %v242_v35 }
  0x48   : > { %v244_v37 = vpack.c.bf16 %v243_v36, %v243_v36 }
  0x4a   : > { %246 = vst.msk [vmem:[%s195_s4] sm:$0xf] %vm245_vm5, %v244_v37 }
  0x4b PF: > { %s15_s12 = sadd.s32 1, %s442_s12  }
  0x4c   : > { %p12_p7 = scmp.ge.s32.totalorder %s15_s12, 4  }
  0x4e   :  { %14 = sbr.rel (!%p12_p7) target bundleno = 2 (0x2), region = 71 }
  0x53   :  { %266 = vsyncpa [#allocation3], 1 }
  0x54   :  { %268 = vsyncpa [#allocation3 + $0x1], 1 }
  0x55   :  { %269 = vsyncpa [#allocation5], 1 }

// kernel: neu2seq_forward.51
= control target key start
LH: loop header
LB: loop body
LE: loop exit
PB: predicated region body
PF: predicated region fallthrough
CT: control target
= control target key end

     0   :  { %11 = vsyncpa [#allocation3], 0  ;;  %s703_s0 = inlined_call_operand.vmem [shape: bf16[2,8,16], index: 0, kind: input, shape index: {}]   ;;  %s704_s1 = inlined_call_operand.vmem [shape: f32[1,1,16], index: 1, kind: input, shape index: {}]   ;;  %s705_s2 = inlined_call_operand.vmem [shape: f32[1,1,16], index: 2, kind: input, shape index: {}]   ;;  %s706_s3 = inlined_call_operand.vmem [shape: bf16[2,8,16], index: 3, kind: input, shape index: {}]   ;;  %s707_s4 = inlined_call_operand.hbm [shape: f32[1,1,16], index: 4, kind: input, shape index: {}]   ;;  %s708_s5 = inlined_call_operand.hbm [shape: f32[1,1,16], index: 5, kind: input, shape index: {}]   ;;  %s709_s6 = inlined_call_operand.vmem [shape: bf16[2,8,16], index: 6, kind: output, shape index: {}]  }
   0x1   :  { %12 = vsyncpa [#allocation5], 0  ;;  %s641_s21 = smov 0  }
   0x2 LB: > { %s203_s24 = sshll.u32 %s707_s4, 4  ;;  %s477_s25 = sadd.s32 4294967295, %s602_s21   ;;  %s602_s21 = sphi %s641_s21, %s18_s21   ;;  %s204_s24 = int_to_ptr.hbm [resolvable:$true] %s203_s24 }
   0x3   : > { %p479_p0 = scmp.ge.s32.totalorder %s602_s21, 1  ;;  %p185_p1 = scmp.lt.s32.totalorder %s602_s21, 3 }
   0x4   : > { %p506_p2 = scmp.eq.s32.totalorder %s477_s25, 0  ;;  %s604_s27 = smov [#allocation2]  }
   0x5   : > { %p652_p3 = pnand %p479_p0, %p185_p1  ;;  %s205_s28 = sshll.u32 %s604_s27, 4  ;;  %s206_s28 = int_to_ptr.vmem [resolvable:$true] %s205_s28 }
   0x6   : > { %s215_s7 = sshll.u32 %s708_s5, 4  ;;  %s605_s8 = smov [#allocation4]   ;;  %s216_s7 = int_to_ptr.hbm [resolvable:$true] %s215_s7 }
   0x7   : > { %p499_p4 = pneg %p652_p3  ;;  %s217_s9 = sshll.u32 %s605_s8, 4  ;;  %s218_s9 = int_to_ptr.vmem [resolvable:$true] %s217_s9 }
   0x8   : > { %244 = sbr.rel (%p652_p3) target bundleno = 78 (0x4e), region = 44 }
   0x9   : > { %p500_p5 = pnand %p506_p2, %p499_p4 }
   0xb   : > { %502 = dma.hbm_to_vmem [thread:$0]  (!%p500_p5), %s204_s24, 16, %s206_s28, [#allocation3]  }
   0xc   : > { %505 = dma.hbm_to_vmem [thread:$0]  (!%p500_p5), %s216_s7, 16, %s218_s9, [#allocation5]  }
   0xd   : > { %593 = dma.done.wait (%p506_p2), [#allocation3], 16  }
   0xe   : > { %595 = vsyncadd (%p506_p2), [#allocation3], 4294967280 }
   0xf   : > { %597 = dma.done.wait (%p506_p2), [#allocation5], 16  }
  0x10   : > { %599 = vsyncadd (%p506_p2), [#allocation5], 4294967280  ;;  %p282_p6 = scmp.lt.s32.totalorder %s477_s25, 1  ;;  %vm296_vm0 = vcmask 130048   ;;  %v520_v57 = vld [vmem:[%s704_s1] ss:$0 sm:$0xff] }
  0x11   : > { %v522_v60 = vld [vmem:[#allocation2] ss:$0 sm:$0xff]  ;;  %vm388_vm8 = vcmask 125952  }
  0x12   : > { %s712_s25 = smov (!%p282_p6, %s477_s25), 1  ;;  %v521_v62 = vld [vmem:[%s705_s2] ss:$0 sm:$0xff] }
  0x13   : > { %s668_s10 = sshll.u32 %s712_s25, 2 }
  0x14   : > { %s285_s13 = scalar_lea.vmem %s703_s0, %s668_s10  ;;  %s289_s16 = scalar_lea.vmem %s706_s3, %s668_s10 }
  0x15   : > { %v294_v0 = vld [vmem:[%s285_s13] sm:$0xf]  ;;  %s293_s24 = scalar_lea.vmem %s709_s6, %s668_s10 }
  0x16   : > { %v678_v1 = vunpack.c.l.bf16 %v294_v0  ;;  %v339_v2 = vld [vmem:[%s289_s16] sm:$0xf] }
  0x17   : > { %v680_v3 = vunpack.c.l.bf16 %v339_v2 }
  0x18   : > { %v297_v4 = vsel %vm296_vm0, %v678_v1, 0.0  ;;  %v305_v5 = vmul.f32 %v678_v1, %v678_v1 }
  0x19   : > { %v298_v6 = vrot.slane %v297_v4, 4  ;;  %v341_v7 = vsel %vm296_vm0, %v680_v3, 0.0  ;;  %v349_v8 = vmul.f32 %v680_v3, %v680_v3 }
  0x1a   : > { %v306_v9 = vsel %vm296_vm0, %v305_v5, 0.0  ;;  %v342_v10 = vrot.slane %v341_v7, 4 }
  0x1b   : > { %v299_v11 = vadd.f32 %v298_v6, %v297_v4  ;;  %v307_v12 = vrot.slane %v306_v9, 4  ;;  %v350_v13 = vsel %vm296_vm0, %v349_v8, 0.0 }
  0x1c   : > { %v343_v14 = vadd.f32 %v342_v10, %v341_v7  ;;  %v351_v15 = vrot.slane %v350_v13, 4 }
  0x1d   : > { %v300_v16 = vrot.slane %v299_v11, 2  ;;  %v308_v17 = vadd.f32 %v307_v12, %v306_v9 }
  0x1e   : > { %v344_v18 = vrot.slane %v343_v14, 2  ;;  %v352_v19 = vadd.f32 %v351_v15, %v350_v13 }
  0x1f   : > { %v301_v20 = vadd.f32 %v300_v16, %v299_v11  ;;  %v309_v21 = vrot.slane %v308_v17, 2 }
  0x20   : > { %v345_v22 = vadd.f32 %v344_v18, %v343_v14  ;;  %v353_v23 = vrot.slane %v352_v19, 2 }
  0x21   : > { %v302_v24 = vrot.slane %v301_v20, 1  ;;  %v310_v25 = vadd.f32 %v309_v21, %v308_v17 }
  0x22   : > { %v346_v26 = vrot.slane %v345_v22, 1  ;;  %v354_v27 = vadd.f32 %v353_v23, %v352_v19 }
  0x23   : > { %v303_v28 = vadd.f32 %v302_v24, %v301_v20  ;;  %v311_v29 = vrot.slane %v310_v25, 1 }
  0x24   : > { %v347_v30 = vadd.f32 %v346_v26, %v345_v22  ;;  %v355_v31 = vrot.slane %v354_v27, 1 }
  0x25   : > { %v304_v32 = vmul.f32 0.125, %v303_v28  ;;  %v312_v33 = vadd.f32 %v311_v29, %v310_v25 }
  0x26   : > { %v348_v34 = vmul.f32 0.125, %v347_v30  ;;  %v356_v35 = vadd.f32 %v355_v31, %v354_v27 }
  0x27   : > { %v313_v36 = vmul.f32 0.125, %v312_v33  ;;  %v314_v37 = vmul.f32 %v304_v32, %v304_v32  ;;  %v316_v53 = vsub.f32 %v678_v1, %v304_v32  ;;  %v523_v1 = vld [vmem:[#allocation4] ss:$0 sm:$0xff] }
  0x28   : > { %v357_v38 = vmul.f32 0.125, %v356_v35  ;;  %v358_v39 = vmul.f32 %v348_v34, %v348_v34  ;;  %v360_v56 = vsub.f32 %v680_v3, %v348_v34 }
  0x29   : > { %v315_v40 = vsub.f32 %v313_v36, %v314_v37 }
  0x2a   : > { %v359_v41 = vsub.f32 %v357_v38, %v358_v39 }
  0x2b   : > { %v317_v42 = vadd.f32 1e-05, %v315_v40 }
  0x2c   : > { %v361_v43 = vadd.f32 1e-05, %v359_v41 }
  0x2d   : > { %524 = vrsqrt.f32 %v317_v42  ;;  %vm324_vm1 = vweird.f32 %v317_v42 }
  0x2e   : > { %526 = vrsqrt.f32 %v361_v43  ;;  %vm368_vm3 = vweird.f32 %v361_v43 }
  0x33   : > { %v525_v44 = vpop.eup %524 }
  0x34   : > { %v527_v45 = vpop.eup %526  ;;  %v319_v46 = vmul.f32 %v525_v44, %v317_v42  ;;  %vm325_vm2 = vweird.f32 %v525_v44 }
  0x35   : > { %v363_v47 = vmul.f32 %v527_v45, %v361_v43  ;;  %vm369_vm4 = vweird.f32 %v527_v45  ;;  %vm326_vm5 = vmor %vm324_vm1, %vm325_vm2 }
  0x36   : > { %v320_v48 = vmul.f32 %v525_v44, %v319_v46  ;;  %vm370_vm6 = vmor %vm368_vm3, %vm369_vm4 }
  0x37   : > { %v364_v49 = vmul.f32 %v527_v45, %v363_v47 }
  0x38   : > { %v321_v50 = vmul.f32 0.5, %v320_v48 }
  0x39   : > { %v365_v51 = vmul.f32 0.5, %v364_v49 }
  0x3a   : > { %v322_v52 = vsub.f32 1.5, %v321_v50 }
  0x3b   : > { %v366_v54 = vsub.f32 1.5, %v365_v51 }
  0x3c   : > { %v323_v55 = vmul.f32 %v525_v44, %v322_v52 }
  0x3d   : > { %v367_v58 = vmul.f32 %v527_v45, %v366_v54 }
  0x3e   : > { %v327_v59 = vsel %vm326_vm5, %v525_v44, %v323_v55 }
  0x3f   : > { %v328_v61 = vmul.f32 %v327_v59, %v316_v53  ;;  %v371_v63 = vsel %vm370_vm6, %v527_v45, %v367_v58 }
  0x40   : > { %v372_v0 = vmul.f32 %v371_v63, %v360_v56 }
  0x41   : > { %v333_v2 = vmul.f32 %v520_v57, %v328_v61 }
  0x42   : > { %v377_v4 = vmul.f32 %v522_v60, %v372_v0 }
  0x43   : > { %v338_v3 = vadd.f32 %v521_v62, %v333_v2 }
  0x44   : > { %v382_v5 = vadd.f32 %v523_v1, %v377_v4 }
  0x46   : > { %v383_v6 = vadd.f32 %v382_v5, %v338_v3 }
  0x48   : > { %vm384_vm7 = vcmp.ge.f32.partialorder %v383_v6, 0.0  ;;  %v385_v7 = vmul.f32 0.01, %v383_v6 }
  0x4a   : > { %v386_v8 = vsel %vm384_vm7, %v383_v6, %v385_v7 }
  0x4b   : > { %v387_v9 = vpack.c.bf16 %v386_v8, %v386_v8 }
  0x4d   : > { %389 = vst.msk [vmem:[%s293_s24] sm:$0xf] %vm388_vm8, %v387_v9 }
  0x4e PF: > { %s18_s21 = sadd.s32 1, %s602_s21  }
  0x4f   : > { %p15_p7 = scmp.ge.s32.totalorder %s18_s21, 4  }
  0x51   :  { %17 = sbr.rel (!%p15_p7) target bundleno = 2 (0x2), region = 86 }
  0x56   :  { %409 = vsyncpa [#allocation3], 1 }
  0x57   :  { %411 = vsyncpa [#allocation3 + $0x1], 1 }
  0x58   :  { %412 = vsyncpa [#allocation5], 1 }

// kernel: neu2seq_forward.50
= control target key start
LH: loop header
LB: loop body
LE: loop exit
PB: predicated region body
PF: predicated region fallthrough
CT: control target
= control target key end

     0   :  { %vm31_vm0 = vcmask 1043456   ;;  %vm27_vm1 = vcmask 64512   ;;  %s101_s1 = inlined_call_operand.vmem [shape: bf16[8,128], index: 1, kind: input, shape index: {}]   ;;  %s102_s0 = inlined_call_operand.vmem [shape: bf16[16,8], index: 0, kind: input, shape index: {}]   ;;  %s103_s2 = inlined_call_operand.vmem [shape: f32[1,128], index: 2, kind: input, shape index: {}]   ;;  %s104_s3 = inlined_call_operand.vmem [shape: bf16[16,128], index: 3, kind: output, shape index: {}]  }
   0x1   :  { %v17_v0 = vld [vmem:[%s101_s1] sm:$0xf] }
   0x2   :  { %v33_v1 = vsel %vm31_vm0, %v17_v0, 0  ;;  %v62_v2 = vld [vmem:[%s102_s0] sm:$0xff] }
   0x3   :  { %42 = vmatpush.bf16.msra.mxu0 %v33_v1  ;;  %v68_v4 = vld [vmem:[%s103_s2] ss:$0 sm:$0xff] }
   0x6   :  { %61 = vmatmul.msk.bf16.vlgmr.msra.gmra.mxu0 %vm27_vm1, %v62_v2 }
  0x83   :  { %v44_v3 = vpop.f32.mrf.mxu0 }
  0x84   :  { %v45_v6 = vadd.f32 %v68_v4, %v44_v3 }
  0x8b   :  { %v46_v5 = vpop.f32.mrf.mxu0 }
  0x8c   :  { %v47_v7 = vadd.f32 %v68_v4, %v46_v5 }
  0x8e   :  { %v66_v8 = vpack.c.bf16 %v47_v7, %v45_v6 }
  0x90   :  { %67 = vst [vmem:[%s104_s3] sm:$0xff] %v66_v8  }

// kernel: neu2seq_forward.52
= control target key start
LH: loop header
LB: loop body
LE: loop exit
PB: predicated region body
PF: predicated region fallthrough
CT: control target
= control target key end

     0   :  { %vm34_vm0 = vcmask 130048   ;;  %s105_s1 = inlined_call_operand.vmem [shape: bf16[16,128], index: 1, kind: input, shape index: {}]   ;;  %s106_s0 = inlined_call_operand.vmem [shape: bf16[16,16], index: 0, kind: input, shape index: {}]   ;;  %s107_s2 = inlined_call_operand.vmem [shape: f32[1,128], index: 2, kind: input, shape index: {}]   ;;  %s108_s3 = inlined_call_operand.vmem [shape: f32[16,128], index: 3, kind: output, shape index: {}]  }
   0x1   :  { %v68_v0 = vld [vmem:[%s105_s1] sm:$0xff] }
   0x2   :  { %v67_v1 = vld [vmem:[%s106_s0] sm:$0xff]  ;;  %45 = vmatpush.bf16.msra.mxu0 %v68_v0 }
   0x3   :  { %v69_v2 = vld [vmem:[%s107_s2] ss:$0 sm:$0xff] }
   0x5   :  { %66 = vmatmul.msk.bf16.vlgmr.msra.gmra.mxu0 %vm34_vm0, %v67_v1 }
  0x82   :  { %v47_v3 = vpop.f32.mrf.mxu0 }
  0x83   :  { %v48_v4 = vadd.f32 %v69_v2, %v47_v3 }
  0x85   :  { %52 = vst [vmem:[%s108_s3] sm:$0xff] %v48_v4 }
  0x8a   :  { %v49_v5 = vpop.f32.mrf.mxu0 }
  0x8b   :  { %v50_v6 = vadd.f32 %v69_v2, %v49_v5 }
  0x8d   :  { %53 = vst [vmem:[%s108_s3 + $0x8] sm:$0xff] %v50_v6 }

// kernel: neu2seq_forward.49
= control target key start
LH: loop header
LB: loop body
LE: loop exit
PB: predicated region body
PF: predicated region fallthrough
CT: control target
= control target key end

     0   :  { %vm258_vm0 = vcmask 392192   ;;  %s619_s1 = inlined_call_operand.vmem [shape: bf16[432,128], index: 1, kind: input, shape index: {}]   ;;  %s620_s0 = inlined_call_operand.vmem [shape: bf16[16,432], index: 0, kind: input, shape index: {}]   ;;  %s621_s2 = inlined_call_operand.vmem [shape: f32[1,128], index: 2, kind: input, shape index: {}]   ;;  %s622_s3 = inlined_call_operand.vmem [shape: bf16[16,128], index: 3, kind: output, shape index: {}]  }
   0x1   :  { %v462_v0 = vld [vmem:[%s619_s1 + $0x38] sm:$0xff]  ;;  %v461_v3 = vld [vmem:[%s619_s1 + $0x30] sm:$0xff]  ;;  %v460_v7 = vld [vmem:[%s619_s1 + $0x28] sm:$0xff] }
   0x2   :  { %v470_v1 = vld [vmem:[%s619_s1 + $0x78] sm:$0xff]  ;;  %262 = vmatpush.bf16.msra.mxu0 %v462_v0  ;;  %v469_v4 = vld [vmem:[%s619_s1 + $0x70] sm:$0xff]  ;;  %v468_v8 = vld [vmem:[%s619_s1 + $0x68] sm:$0xff] }
   0x3   :  { %v478_v2 = vld [vmem:[%s619_s1 + $0xb8] sm:$0xff]  ;;  %276 = vmatpush.bf16.msra.mxu1 %v470_v1  ;;  %v477_v5 = vld [vmem:[%s619_s1 + $0xb0] sm:$0xff]  ;;  %v476_v9 = vld [vmem:[%s619_s1 + $0xa8] sm:$0xff] }
   0x4   :  { %290 = vmatpush.bf16.msra.mxu2 %v478_v2  ;;  %v481_v6 = vld [vmem:[%s619_s1 + $0xd0] sm:$0xff]  ;;  %v480_v10 = vld [vmem:[%s619_s1 + $0xc8] sm:$0xff]  ;;  %v459_v11 = vld [vmem:[%s619_s1 + $0x20] sm:$0xff] }
   0x5   :  { %309 = vmatpush.bf16.msra.mxu3 %v481_v6  ;;  %v467_v12 = vld [vmem:[%s619_s1 + $0x60] sm:$0xff]  ;;  %v452_v15 = vld [vmem:[%s620_s0 + $0xc] sm:$0xf]  ;;  %v338_v16 = vld [vmem:[%s620_s0 + $0x18] sm:$0xf0] }
   0x6   :  { %263 = vmatpush.bf16.msra.mxu0 %v461_v3  ;;  %v475_v13 = vld [vmem:[%s619_s1 + $0xa0] sm:$0xff]  ;;  %v458_v17 = vld [vmem:[%s619_s1 + $0x18] sm:$0xff]  ;;  %v341_v20 = vor.u32 %v452_v15, %v338_v16  ;;  %v457_v21 = vld [vmem:[%s619_s1 + $0x10] sm:$0xff] }
   0x7   :  { %277 = vmatpush.bf16.msra.mxu1 %v469_v4  ;;  %v479_v14 = vld [vmem:[%s619_s1 + $0xc0] sm:$0xff]  ;;  %v466_v18 = vld [vmem:[%s619_s1 + $0x58] sm:$0xff]  ;;  %v465_v22 = vld [vmem:[%s619_s1 + $0x50] sm:$0xff] }
   0x8   :  { %291 = vmatpush.bf16.msra.mxu2 %v477_v5  ;;  %v474_v19 = vld [vmem:[%s619_s1 + $0x98] sm:$0xff]  ;;  %v473_v23 = vld [vmem:[%s619_s1 + $0x90] sm:$0xff]  ;;  %v456_v24 = vld [vmem:[%s619_s1 + $0x8] sm:$0xff] }
   0x9   :  { %310 = vmatpush.bf16.msra.mxu3 %v480_v10  ;;  %v464_v25 = vld [vmem:[%s619_s1 + $0x48] sm:$0xff]  ;;  %v455_v27 = vld [vmem:[%s619_s1] sm:$0xff]  ;;  %v453_v30 = vld [vmem:[%s620_s0 + $0xc] sm:$0xf0] }
   0xa   :  { %264 = vmatpush.bf16.msra.mxu0 %v460_v7  ;;  %v472_v26 = vld [vmem:[%s619_s1 + $0x88] sm:$0xff]  ;;  %v463_v28 = vld [vmem:[%s619_s1 + $0x40] sm:$0xff]  ;;  %v330_v32 = vld [vmem:[%s620_s0 + $0x10] sm:$0xf0] }
   0xb   :  { %278 = vmatpush.bf16.msra.mxu1 %v468_v8  ;;  %v328_v29 = vld [vmem:[%s620_s0] sm:$0xf]  ;;  %v451_v31 = vld [vmem:[%s620_s0 + $0x4] sm:$0xf]  ;;  %v336_v34 = vld [vmem:[%s620_s0 + $0x8] sm:$0xf] }
   0xc   :  { %292 = vmatpush.bf16.msra.mxu2 %v476_v9  ;;  %v471_v33 = vld [vmem:[%s619_s1 + $0x80] sm:$0xff]  ;;  %v454_v35 = vld [vmem:[%s620_s0 + $0x14] sm:$0xf0]  ;;  %v329_v36 = vor.u32 %v453_v30, %v328_v29  ;;  %v333_v37 = vor.u32 %v451_v31, %v330_v32 }
   0xd   :  { %311 = vmatpush.bf16.msra.mxu3 %v479_v14  ;;  %v337_v38 = vor.u32 %v454_v35, %v336_v34  ;;  %v487_v40 = vld [vmem:[%s621_s2] ss:$0 sm:$0xff] }
   0xe   :  { %265 = vmatpush.bf16.msra.mxu0 %v459_v11 }
   0xf   :  { %279 = vmatpush.bf16.msra.mxu1 %v467_v12 }
  0x10   :  { %293 = vmatpush.bf16.msra.mxu2 %v475_v13  ;;  %450 = vmatmul.msk.bf16.vlgmr.msra.gmra.mxu3 %vm258_vm0, %v341_v20 }
  0x12   :  { %266 = vmatpush.bf16.msra.mxu0 %v458_v17 }
  0x13   :  { %280 = vmatpush.bf16.msra.mxu1 %v466_v18 }
  0x14   :  { %294 = vmatpush.bf16.msra.mxu2 %v474_v19 }
  0x16   :  { %267 = vmatpush.bf16.msra.mxu0 %v457_v21 }
  0x17   :  { %281 = vmatpush.bf16.msra.mxu1 %v465_v22 }
  0x18   :  { %295 = vmatpush.bf16.msra.mxu2 %v473_v23 }
  0x1a   :  { %268 = vmatpush.bf16.msra.mxu0 %v456_v24 }
  0x1b   :  { %282 = vmatpush.bf16.msra.mxu1 %v464_v25 }
  0x1c   :  { %296 = vmatpush.bf16.msra.mxu2 %v472_v26 }
  0x1e   :  { %269 = vmatpush.bf16.msra.mxu0 %v455_v27 }
  0x1f   :  { %283 = vmatpush.bf16.msra.mxu1 %v463_v28 }
  0x20   :  { %297 = vmatpush.bf16.msra.mxu2 %v471_v33 }
  0x21   :  { %270 = vmatmul.bf16.vlgmr.msra.gmra.mxu0 %v329_v36 }
  0x22   :  { %284 = vmatmul.bf16.vlgmr.msra.gmra.mxu1 %v333_v37 }
  0x23   :  { %298 = vmatmul.bf16.vlgmr.msra.gmra.mxu2 %v337_v38 }
  0x93   :  { %v313_v43 = vpop.f32.mrf.mxu3 }
  0x9b   :  { %v315_v53 = vpop.f32.mrf.mxu3 }
  0x9e   :  { %v271_v39 = vpop.f32.mrf.mxu0 }
  0x9f   :  { %v285_v41 = vpop.f32.mrf.mxu1  ;;  %v272_v42 = vadd.f32 %v487_v40, %v271_v39 }
  0xa1   :  { %v286_v46 = vadd.f32 %v285_v41, %v272_v42 }
  0xa6   :  { %v299_v44 = vpop.f32.mrf.mxu2  ;;  %v273_v45 = vpop.f32.mrf.mxu0 }
  0xa7   :  { %v274_v47 = vadd.f32 %v487_v40, %v273_v45  ;;  %v287_v48 = vpop.f32.mrf.mxu1  ;;  %v300_v49 = vadd.f32 %v299_v44, %v286_v46 }
  0xa9   :  { %v288_v50 = vadd.f32 %v287_v48, %v274_v47  ;;  %v314_v54 = vadd.f32 %v313_v43, %v300_v49 }
  0xae   :  { %v301_v51 = vpop.f32.mrf.mxu2 }
  0xaf   :  { %v302_v52 = vadd.f32 %v301_v51, %v288_v50 }
  0xb1   :  { %v316_v55 = vadd.f32 %v315_v53, %v302_v52 }
  0xb3   :  { %v485_v56 = vpack.c.bf16 %v316_v55, %v314_v54 }
  0xb5   :  { %486 = vst [vmem:[%s622_s3] sm:$0xff] %v485_v56  }

// kernel: neu2seq_forward.53
= control target key start
LH: loop header
LB: loop body
LE: loop exit
PB: predicated region body
PF: predicated region fallthrough
CT: control target
= control target key end

     0   :  { %vm42_vm0 = vcmask 261120   ;;  %s125_s1 = inlined_call_operand.vmem [shape: bf16[32,128], index: 1, kind: input, shape index: {}]   ;;  %s126_s2 = inlined_call_operand.vmem [shape: f32[1,128], index: 2, kind: input, shape index: {}]   ;;  %s127_s0 = inlined_call_operand.vmem [shape: bf16[16,32], index: 0, kind: input, shape index: {}]   ;;  %s128_s3 = inlined_call_operand.vmem [shape: bf16[16,128], index: 3, kind: output, shape index: {}]  }
   0x1   :  { %v83_v0 = vld [vmem:[%s125_s1 + $0x8] sm:$0xff]  ;;  %v82_v1 = vld [vmem:[%s125_s1] sm:$0xff] }
   0x2   :  { %52 = vmatpush.bf16.msra.mxu0 %v83_v0  ;;  %v81_v2 = vld [vmem:[%s127_s0] sm:$0xff] }
   0x3   :  { %v89_v4 = vld [vmem:[%s126_s2] ss:$0 sm:$0xff] }
   0x6   :  { %53 = vmatpush.bf16.msra.mxu0 %v82_v1 }
   0x9   :  { %80 = vmatmul.msk.bf16.vlgmr.msra.gmra.mxu0 %vm42_vm0, %v81_v2 }
  0x86   :  { %v55_v3 = vpop.f32.mrf.mxu0 }
  0x87   :  { %v56_v6 = vadd.f32 %v89_v4, %v55_v3 }
  0x8e   :  { %v57_v5 = vpop.f32.mrf.mxu0 }
  0x8f   :  { %v58_v7 = vadd.f32 %v89_v4, %v57_v5 }
  0x91   :  { %v87_v8 = vpack.c.bf16 %v58_v7, %v56_v6 }
  0x93   :  { %88 = vst [vmem:[%s128_s3] sm:$0xff] %v87_v8  }

// kernel: neu2seq_forward.57
= control target key start
LH: loop header
LB: loop body
LE: loop exit
PB: predicated region body
PF: predicated region fallthrough
CT: control target
= control target key end

     0   :  { %9 = vsyncpa [#allocation3], 0  ;;  %s563_s0 = inlined_call_operand.vmem [shape: f32[16,32], index: 0, kind: input, shape index: {}]   ;;  %s564_s1 = inlined_call_operand.vmem [shape: f32[16,32], index: 1, kind: input, shape index: {}]   ;;  %s565_s2 = inlined_call_operand.hbm [shape: f32[1,32], index: 2, kind: input, shape index: {}]   ;;  %s566_s3 = inlined_call_operand.hbm [shape: f32[1,32], index: 3, kind: input, shape index: {}]   ;;  %s567_s4 = inlined_call_operand.vmem [shape: f32[16,32], index: 4, kind: output, shape index: {}]  }
   0x1   :  { %10 = vsyncpa [#allocation5], 0  ;;  %s516_s15 = smov 0  }
   0x2 LB: > { %s153_s18 = sshll.u32 %s565_s2, 4  ;;  %s366_s19 = sadd.s32 4294967295, %s487_s15   ;;  %s487_s15 = sphi %s516_s15, %s16_s15   ;;  %s154_s18 = int_to_ptr.hbm [resolvable:$true] %s153_s18 }
   0x3   : > { %p368_p0 = scmp.ge.s32.totalorder %s487_s15, 1  ;;  %p141_p1 = scmp.lt.s32.totalorder %s487_s15, 3 }
   0x4   : > { %p395_p2 = scmp.eq.s32.totalorder %s366_s19, 0  ;;  %s489_s21 = smov [#allocation2]  }
   0x5   : > { %p527_p3 = pnand %p368_p0, %p141_p1  ;;  %s155_s22 = sshll.u32 %s489_s21, 4  ;;  %s156_s22 = int_to_ptr.vmem [resolvable:$true] %s155_s22 }
   0x6   : > { %s165_s25 = sshll.u32 %s566_s3, 4  ;;  %s490_s26 = smov [#allocation4]   ;;  %s166_s25 = int_to_ptr.hbm [resolvable:$true] %s165_s25 }
   0x7   : > { %p388_p4 = pneg %p527_p3  ;;  %s167_s27 = sshll.u32 %s490_s26, 4  ;;  %s168_s27 = int_to_ptr.vmem [resolvable:$true] %s167_s27 }
   0x8   : > { %194 = sbr.rel (%p527_p3) target bundleno = 181 (0xb5), region = 36 }
   0x9   : > { %p389_p5 = pnand %p395_p2, %p388_p4 }
   0xb   : > { %391 = dma.hbm_to_vmem [thread:$0]  (!%p389_p5), %s154_s18, 16, %s156_s22, [#allocation3]  }
   0xc   : > { %394 = dma.hbm_to_vmem [thread:$0]  (!%p389_p5), %s166_s25, 16, %s168_s27, [#allocation5]  }
   0xd   : > { %478 = dma.done.wait (%p395_p2), [#allocation3], 16  }
   0xe   : > { %480 = vsyncadd (%p395_p2), [#allocation3], 4294967280 }
   0xf   : > { %482 = dma.done.wait (%p395_p2), [#allocation5], 16  }
  0x10   : > { %484 = vsyncadd (%p395_p2), [#allocation5], 4294967280  ;;  %p228_p6 = scmp.lt.s32.totalorder %s366_s19, 1  ;;  %vm243_vm0 = vcmask 261120   ;;  %v409_v20 = vld [vmem:[#allocation2] ss:$0 sm:$0xff] }
  0x11   : > { %v410_v22 = vld [vmem:[#allocation4] ss:$0 sm:$0xff] }
  0x12   : > { %s570_s19 = smov (!%p228_p6, %s366_s19), 1 }
  0x13   : > { %s543_s28 = sshll.u32 %s570_s19, 3 }
  0x14   : > { %s231_s5 = scalar_lea.vmem %s563_s0, %s543_s28  ;;  %s235_s8 = scalar_lea.vmem %s564_s1, %s543_s28 }
  0x15   : > { %v240_v0 = vld [vmem:[%s231_s5] sm:$0xff]  ;;  %s239_s11 = scalar_lea.vmem %s567_s4, %s543_s28 }
  0x16   : > { %v241_v1 = vld [vmem:[%s235_s8] sm:$0xff] }
  0x17   : > { %v242_v2 = vadd.f32 %v241_v1, %v240_v0 }
  0x19   : > { %v244_v3 = vsel %vm243_vm0, %v242_v2, 0.0  ;;  %v248_v4 = vmul.f32 %v242_v2, %v242_v2 }
  0x1a   : > { %245 = vadd.xlane.f32.xlu0 %v244_v3 }
  0x1b   : > { %v249_v5 = vsel %vm243_vm0, %v248_v4, 0.0 }
  0x22   : > { %250 = vadd.xlane.f32.xlu0 %v249_v5 }
  0x8d   : > { %v246_v6 = vpop.xlane.xlu0 %245 }
  0x8e   : > { %v247_v7 = vmul.f32 0.03125, %v246_v6 }
  0x90   : > { %v253_v9 = vmul.f32 %v247_v7, %v247_v7  ;;  %v255_v19 = vsub.f32 %v242_v2, %v247_v7 }
  0x95   : > { %v251_v8 = vpop.xlane.xlu0 %250 }
  0x96   : > { %v252_v10 = vmul.f32 0.03125, %v251_v8 }
  0x98   : > { %v254_v11 = vsub.f32 %v252_v10, %v253_v9 }
  0x9a   : > { %v256_v12 = vadd.f32 1e-05, %v254_v11 }
  0x9c   : > { %411 = vrsqrt.f32 %v256_v12  ;;  %vm263_vm2 = vweird.f32 %v256_v12 }
  0xa2   : > { %v412_v13 = vpop.eup %411 }
  0xa3   : > { %v258_v14 = vmul.f32 %v412_v13, %v256_v12  ;;  %vm264_vm1 = vweird.f32 %v412_v13 }
  0xa4   : > { %vm265_vm3 = vmor %vm263_vm2, %vm264_vm1 }
  0xa5   : > { %v259_v15 = vmul.f32 %v412_v13, %v258_v14 }
  0xa7   : > { %v260_v16 = vmul.f32 0.5, %v259_v15 }
  0xa9   : > { %v261_v17 = vsub.f32 1.5, %v260_v16 }
  0xab   : > { %v262_v18 = vmul.f32 %v412_v13, %v261_v17 }
  0xad   : > { %v266_v21 = vsel %vm265_vm3, %v412_v13, %v262_v18 }
  0xae   : > { %v267_v23 = vmul.f32 %v266_v21, %v255_v19 }
  0xb0   : > { %v272_v24 = vmul.f32 %v409_v20, %v267_v23 }
  0xb2   : > { %v277_v25 = vadd.f32 %v410_v22, %v272_v24 }
  0xb4   : > { %278 = vst.msk [vmem:[%s239_s11] sm:$0xff] %vm243_vm0, %v277_v25 }
  0xb5 PF: > { %s16_s15 = sadd.s32 1, %s487_s15  }
  0xb6   : > { %p13_p7 = scmp.ge.s32.totalorder %s16_s15, 4  }
  0xb8   :  { %15 = sbr.rel (!%p13_p7) target bundleno = 2 (0x2), region = 78 }
  0xbd   :  { %298 = vsyncpa [#allocation3], 1 }
  0xbe   :  { %300 = vsyncpa [#allocation3 + $0x1], 1 }
  0xbf   :  { %301 = vsyncpa [#allocation5], 1 }

// kernel: neu2seq_forward.56
= control target key start
LH: loop header
LB: loop body
LE: loop exit
PB: predicated region body
PF: predicated region fallthrough
CT: control target
= control target key end

     0   :  { %vm42_vm0 = vcmask 261120   ;;  %s121_s1 = inlined_call_operand.vmem [shape: bf16[32,128], index: 1, kind: input, shape index: {}]   ;;  %s122_s2 = inlined_call_operand.vmem [shape: f32[1,128], index: 2, kind: input, shape index: {}]   ;;  %s123_s0 = inlined_call_operand.vmem [shape: bf16[16,32], index: 0, kind: input, shape index: {}]   ;;  %s124_s3 = inlined_call_operand.vmem [shape: f32[16,128], index: 3, kind: output, shape index: {}]  }
   0x1   :  { %v81_v0 = vld [vmem:[%s121_s1 + $0x8] sm:$0xff]  ;;  %v80_v1 = vld [vmem:[%s121_s1] sm:$0xff] }
   0x2   :  { %52 = vmatpush.bf16.msra.mxu0 %v81_v0  ;;  %v79_v2 = vld [vmem:[%s123_s0] sm:$0xff] }
   0x3   :  { %v82_v3 = vld [vmem:[%s122_s2] ss:$0 sm:$0xff] }
   0x6   :  { %53 = vmatpush.bf16.msra.mxu0 %v80_v1 }
   0x9   :  { %78 = vmatmul.msk.bf16.vlgmr.msra.gmra.mxu0 %vm42_vm0, %v79_v2 }
  0x86   :  { %v55_v4 = vpop.f32.mrf.mxu0 }
  0x87   :  { %v56_v5 = vadd.f32 %v82_v3, %v55_v4 }
  0x89   :  { %60 = vst [vmem:[%s124_s3] sm:$0xff] %v56_v5 }
  0x8e   :  { %v57_v6 = vpop.f32.mrf.mxu0 }
  0x8f   :  { %v58_v7 = vadd.f32 %v82_v3, %v57_v6 }
  0x91   :  { %61 = vst [vmem:[%s124_s3 + $0x8] sm:$0xff] %v58_v7 }

// kernel: neu2seq_forward.55
= control target key start
LH: loop header
LB: loop body
LE: loop exit
PB: predicated region body
PF: predicated region fallthrough
CT: control target
= control target key end

     0   :  { %s605_s12 = smov 0   ;;  %s658_s0 = inlined_call_operand.vmem [shape: bf16[8,8,8], index: 0, kind: input, shape index: {}]   ;;  %s659_s1 = inlined_call_operand.vmem [shape: bf16[8,8,8], index: 1, kind: input, shape index: {}]   ;;  %s660_s2 = inlined_call_operand.vmem [shape: bf16[8,8,8], index: 2, kind: input, shape index: {}]   ;;  %s661_s3 = inlined_call_operand.vmem [shape: bf16[8,8,8], index: 3, kind: output, shape index: {}]  }
   0x1 LB: > { %s530_s13 = sadd.s32 4294967295, %s583_s12   ;;  %p534_p0 = scmp.ge.s32.totalorder %s583_s12, 1  ;;  %s583_s12 = sphi %s605_s12, %s13_s12  }
   0x2   : > { %p160_p1 = scmp.lt.s32.totalorder %s583_s12, 3 }
   0x4   : > { %p161_p2 = pnand %p534_p0, %p160_p1 }
   0x5   : > { %s535_s14 = sshll.u32 (!%p161_p2), %s530_s13, 2 }
   0x6   : > { %164 = sbr.rel (%p161_p2) target bundleno = 435 (0x1b3), region = 32  ;;  %p195_p3 = scmp.lt.s32.totalorder (!%p161_p2), %s535_s14, 7 }
   0xb   : > { %s663_s14 = smov (!%p195_p3, %s535_s14), 7  ;;  %vm231_vm0 = vcmask 64512   ;;  %vm363_vm1 = vcmask 1043456   ;;  %vm445_vm2 = vcmask 60416  }
   0xc   : > { %s613_s15 = sshll.u32 %s663_s14, 2 }
   0xd   : > { %s204_s18 = scalar_lea.vmem %s659_s1, %s613_s15  ;;  %s198_s21 = scalar_lea.vmem %s658_s0, %s613_s15 }
   0xe   : > { %v223_v0 = vld [vmem:[%s204_s18] sm:$0xf]  ;;  %v225_v1 = vld [vmem:[%s204_s18 + $0x8] sm:$0xf]  ;;  %v226_v2 = vld [vmem:[%s204_s18 + $0xc] sm:$0xf]  ;;  %s210_s24 = scalar_lea.vmem %s660_s2, %s613_s15  ;;  %s216_s27 = scalar_lea.vmem %s661_s3, %s613_s15 }
   0xf   : > { %v236_v3 = vsel %vm231_vm0, %v223_v0, 0  ;;  %v274_v4 = vsel %vm231_vm0, %v225_v1, 0  ;;  %v293_v5 = vsel %vm231_vm0, %v226_v2, 0  ;;  %v224_v6 = vld [vmem:[%s204_s18 + $0x4] sm:$0xf] }
  0x10   : > { %245 = vmatpush.bf16.xpose.msra.mxu0 %v236_v3  ;;  %283 = vmatpush.bf16.xpose.msra.mxu2 %v274_v4  ;;  %v255_v7 = vsel %vm231_vm0, %v224_v6, 0  ;;  %v219_v8 = vld [vmem:[%s198_s21] sm:$0xf]  ;;  %v221_v9 = vld [vmem:[%s198_s21 + $0x8] sm:$0xf] }
  0x11   : > { %302 = vmatpush.bf16.xpose.msra.mxu3 %v293_v5  ;;  %264 = vmatpush.bf16.xpose.msra.mxu1 %v255_v7  ;;  %v222_v10 = vld [vmem:[%s198_s21 + $0xc] sm:$0xf]  ;;  %v220_v11 = vld [vmem:[%s198_s21 + $0x4] sm:$0xf]  ;;  %v227_v28 = vld [vmem:[%s210_s24] sm:$0xf] }
  0x12   : > { %v365_v29 = vsel %vm363_vm1, %v227_v28, 0  ;;  %v229_v30 = vld [vmem:[%s210_s24 + $0x8] sm:$0xf]  ;;  %v230_v31 = vld [vmem:[%s210_s24 + $0xc] sm:$0xf] }
  0x13   : > { %v403_v32 = vsel %vm363_vm1, %v229_v30, 0  ;;  %v422_v33 = vsel %vm363_vm1, %v230_v31, 0  ;;  %v228_v34 = vld [vmem:[%s210_s24 + $0x4] sm:$0xf] }
  0x14   : > { %v384_v35 = vsel %vm363_vm1, %v228_v34, 0 }
  0x17   : > { %543 = vmatmul.msk.bf16.vlgmr.msra.gmra.mxu0 %vm231_vm0, %v219_v8  ;;  %545 = vmatmul.msk.bf16.vlgmr.msra.gmra.mxu2 %vm231_vm0, %v221_v9 }
  0x18   : > { %546 = vmatmul.msk.bf16.vlgmr.msra.gmra.mxu3 %vm231_vm0, %v222_v10  ;;  %544 = vmatmul.msk.bf16.vlgmr.msra.gmra.mxu1 %vm231_vm0, %v220_v11 }
  0x19   : > { %374 = vmatpush.bf16.msrb.mxu0 %v365_v29  ;;  %412 = vmatpush.bf16.msrb.mxu2 %v403_v32 }
  0x1a   : > { %431 = vmatpush.bf16.msrb.mxu3 %v422_v33  ;;  %393 = vmatpush.bf16.msrb.mxu1 %v384_v35 }
  0x94   : > { %v247_v12 = vpop.f32.mrf.mxu0 }
  0x95   : > { %v308_v13 = vmul.f32 0.35355338, %v247_v12  ;;  %v266_v14 = vpop.f32.mrf.mxu1 }
  0x96   : > { %v309_v16 = vmul.f32 0.35355338, %v266_v14 }
  0x97   : > { %v312_v15 = vsel %vm231_vm0, %v308_v13, -inf }
  0x98   : > { %313 = vmax.xlane.f32.xlu1 %v312_v15  ;;  %v315_v22 = vsel %vm231_vm0, %v309_v16, -inf }
  0x9a   : > { %v285_v17 = vpop.f32.mrf.mxu2 }
  0x9b   : > { %v310_v18 = vmul.f32 0.35355338, %v285_v17  ;;  %v304_v19 = vpop.f32.mrf.mxu3 }
  0x9c   : > { %v249_v20 = vpop.f32.mrf.mxu0  ;;  %v311_v24 = vmul.f32 0.35355338, %v304_v19 }
  0x9d   : > { %v318_v21 = vsel %vm231_vm0, %v310_v18, -inf  ;;  %v268_v23 = vpop.f32.mrf.mxu1 }
  0x9e   : > { %319 = vmax.xlane.f32.xlu0 %v318_v21  ;;  %v321_v27 = vsel %vm231_vm0, %v311_v24, -inf }
  0xa0   : > { %316 = vmax.xlane.f32.xlu1 %v315_v22 }
  0xa2   : > { %v287_v25 = vpop.f32.mrf.mxu2 }
  0xa3   : > { %v306_v26 = vpop.f32.mrf.mxu3 }
  0xa6   : > { %322 = vmax.xlane.f32.xlu0 %v321_v27 }
 0x10b   : > { %v314_v36 = vpop.xlane.xlu1 %313 }
 0x10c   : > { %v324_v37 = vsub.f32 %v308_v13, %v314_v36 }
 0x10e   : > { %v328_v38 = vmul.f32 1.442695, %v324_v37 }
 0x110   : > { %561 = vpow2.f32 %v328_v38 }
 0x111   : > { %v320_v39 = vpop.xlane.xlu0 %319 }
 0x112   : > { %v326_v40 = vsub.f32 %v310_v18, %v320_v39 }
 0x113   : > { %v317_v41 = vpop.xlane.xlu1 %316 }
 0x114   : > { %v332_v42 = vmul.f32 1.442695, %v326_v40  ;;  %v325_v43 = vsub.f32 %v309_v16, %v317_v41 }
 0x116   : > { %v562_v44 = vpop.eup %561  ;;  %563 = vpow2.f32 %v332_v42  ;;  %v330_v45 = vmul.f32 1.442695, %v325_v43 }
 0x117   : > { %v336_v46 = vsel %vm231_vm0, %v562_v44, 0.0  ;;  %v356_v47 = vpack.c.bf16 %v562_v44, %v562_v44 }
 0x118   : > { %565 = vpow2.f32 %v330_v45  ;;  %337 = vadd.xlane.f32.xlu2 %v336_v46 }
 0x119   : > { %v323_v48 = vpop.xlane.xlu0 %322  ;;  %547 = vmatmul.msk.bf16.vlgmr.msrb.gmra.mxu0 %vm231_vm0, %v356_v47 }
 0x11a   : > { %v327_v49 = vsub.f32 %v311_v24, %v323_v48 }
 0x11c   : > { %v564_v50 = vpop.eup %563  ;;  %v334_v51 = vmul.f32 1.442695, %v327_v49 }
 0x11d   : > { %v342_v52 = vsel %vm231_vm0, %v564_v50, 0.0  ;;  %v358_v53 = vpack.c.bf16 %v564_v50, %v564_v50 }
 0x11e   : > { %v566_v54 = vpop.eup %565  ;;  %567 = vpow2.f32 %v334_v51  ;;  %343 = vadd.xlane.f32.xlu0 %v342_v52 }
 0x11f   : > { %549 = vmatmul.msk.bf16.vlgmr.msrb.gmra.mxu2 %vm231_vm0, %v358_v53  ;;  %v339_v55 = vsel %vm231_vm0, %v566_v54, 0.0  ;;  %v357_v56 = vpack.c.bf16 %v566_v54, %v566_v54 }
 0x120   : > { %340 = vadd.xlane.f32.xlu2 %v339_v55 }
 0x121   : > { %548 = vmatmul.msk.bf16.vlgmr.msrb.gmra.mxu1 %vm231_vm0, %v357_v56 }
 0x124   : > { %v568_v57 = vpop.eup %567 }
 0x125   : > { %v345_v58 = vsel %vm231_vm0, %v568_v57, 0.0  ;;  %v359_v59 = vpack.c.bf16 %v568_v57, %v568_v57 }
 0x126   : > { %346 = vadd.xlane.f32.xlu1 %v345_v58 }
 0x127   : > { %550 = vmatmul.msk.bf16.vlgmr.msrb.gmra.mxu3 %vm231_vm0, %v359_v59 }
 0x18b   : > { %v338_v60 = vpop.xlane.xlu2 %337 }
 0x18c   : > { %v348_v61 = vmax.f32 %v338_v60, 1e-20 }
 0x18e   : > { %569 = vrcp.f32 %v348_v61 }
 0x191   : > { %v344_v0 = vpop.xlane.xlu0 %343 }
 0x192   : > { %v350_v4 = vmax.f32 %v344_v0, 1e-20 }
 0x193   : > { %v341_v62 = vpop.xlane.xlu2 %340 }
 0x194   : > { %v349_v63 = vmax.f32 %v341_v62, 1e-20  ;;  %v570_v1 = vpop.eup %569 }
 0x196   : > { %v376_v2 = vpop.f32.mrf.mxu0  ;;  %571 = vrcp.f32 %v349_v63 }
 0x197   : > { %v437_v3 = vmul.f32 %v570_v1, %v376_v2  ;;  %573 = vrcp.f32 %v350_v4 }
 0x199   : > { %v441_v5 = vpack.c.bf16 %v437_v3, %v437_v3  ;;  %v347_v6 = vpop.xlane.xlu1 %346 }
 0x19a   : > { %v351_v11 = vmax.f32 %v347_v6, 1e-20 }
 0x19b   : > { %446 = vst.msk [vmem:[%s216_s27] sm:$0xf] %vm445_vm2, %v441_v5 }
 0x19c   : > { %v572_v7 = vpop.eup %571  ;;  %575 = vrcp.f32 %v351_v11 }
 0x19d   : > { %v574_v13 = vpop.eup %573 }
 0x19e   : > { %v378_v8 = vpop.f32.mrf.mxu0  ;;  %v395_v9 = vpop.f32.mrf.mxu1 }
 0x19f   : > { %v438_v10 = vmul.f32 %v572_v7, %v395_v9 }
 0x1a1   : > { %v442_v12 = vpack.c.bf16 %v438_v10, %v438_v10 }
 0x1a2   : > { %v414_v14 = vpop.f32.mrf.mxu2  ;;  %v576_v18 = vpop.eup %575 }
 0x1a3   : > { %447 = vst.msk [vmem:[%s216_s27 + $0x4] sm:$0xf] %vm445_vm2, %v442_v12  ;;  %v439_v15 = vmul.f32 %v574_v13, %v414_v14 }
 0x1a5   : > { %v443_v16 = vpack.c.bf16 %v439_v15, %v439_v15 }
 0x1a6   : > { %v397_v17 = vpop.f32.mrf.mxu1 }
 0x1a7   : > { %448 = vst.msk [vmem:[%s216_s27 + $0x8] sm:$0xf] %vm445_vm2, %v443_v16 }
 0x1aa   : > { %v416_v19 = vpop.f32.mrf.mxu2  ;;  %v433_v20 = vpop.f32.mrf.mxu3 }
 0x1ab   : > { %v440_v21 = vmul.f32 %v576_v18, %v433_v20 }
 0x1ad   : > { %v444_v22 = vpack.c.bf16 %v440_v21, %v440_v21 }
 0x1af   : > { %449 = vst.msk [vmem:[%s216_s27 + $0xc] sm:$0xf] %vm445_vm2, %v444_v22 }
 0x1b2   : > { %v435_v23 = vpop.f32.mrf.mxu3 }
 0x1b3 PF: > { %s13_s12 = sadd.s32 1, %s583_s12  }
 0x1b4   : > { %p10_p4 = scmp.ge.s32.totalorder %s13_s12, 4  }
 0x1b6   :  { %12 = sbr.rel (!%p10_p4) target bundleno = 1 (0x1), region = 68 }

// kernel: neu2seq_forward.58
= control target key start
LH: loop header
LB: loop body
LE: loop exit
PB: predicated region body
PF: predicated region fallthrough
CT: control target
= control target key end

     0   :  { %8 = vsyncpa [#allocation3], 0  ;;  %s134_s15 = smov [#allocation2]   ;;  %s170_s0 = inlined_call_operand.vmem [shape: bf16[16,32], index: 0, kind: input, shape index: {}]   ;;  %s171_s1 = inlined_call_operand.vmem [shape: bf16[32,128], index: 1, kind: input, shape index: {}]   ;;  %s172_s2 = inlined_call_operand.hbm [shape: f32[1,128], index: 2, kind: input, shape index: {}]   ;;  %s173_s3 = inlined_call_operand.vmem [shape: bf16[16,128], index: 3, kind: output, shape index: {}]  }
   0x1   :  { %s18_s14 = sshll.u32 %s172_s2, 4  ;;  %s20_s16 = sshll.u32 %s134_s15, 4  ;;  %s19_s14 = int_to_ptr.hbm [resolvable:$true] %s18_s14  ;;  %s21_s16 = int_to_ptr.vmem [resolvable:$true] %s20_s16 }
   0x2   :  { %23 = dma.hbm_to_vmem [thread:$0]  %s19_s14, 16, %s21_s16, [#allocation3]  }
   0x3   :  { %132 = dma.done.wait [#allocation3], 16  }
   0x4   :  { %133 = vsyncadd [#allocation3], 4294967280  ;;  %v100_v0 = vld [vmem:[%s171_s1 + $0x8] sm:$0xff]  ;;  %v99_v1 = vld [vmem:[%s171_s1] sm:$0xff]  ;;  %vm56_vm0 = vcmask 261120  }
   0x5   :  { %66 = vmatpush.bf16.msra.mxu0 %v100_v0  ;;  %v98_v2 = vld [vmem:[%s170_s0] sm:$0xff] }
   0x6   :  { %v107_v4 = vld [vmem:[#allocation2] ss:$0 sm:$0xff] }
   0x9   :  { %67 = vmatpush.bf16.msra.mxu0 %v99_v1 }
   0xc   :  { %97 = vmatmul.msk.bf16.vlgmr.msra.gmra.mxu0 %vm56_vm0, %v98_v2 }
  0x89   :  { %v69_v3 = vpop.f32.mrf.mxu0 }
  0x8a   :  { %v70_v5 = vadd.f32 %v107_v4, %v69_v3 }
  0x8c   :  { %v74_v8 = vmax.f32 %v70_v5, 0.0 }
  0x91   :  { %v71_v6 = vpop.f32.mrf.mxu0 }
  0x92   :  { %v72_v7 = vadd.f32 %v107_v4, %v71_v6 }
  0x94   :  { %v75_v9 = vmax.f32 %v72_v7, 0.0 }
  0x96   :  { %v104_v10 = vpack.c.bf16 %v75_v9, %v74_v8 }
  0x98   :  { %105 = vst [vmem:[%s173_s3] sm:$0xff] %v104_v10  }
  0x99   :  { %84 = vsyncpa [#allocation3], 1 }

// kernel: neu2seq_forward.59
= control target key start
LH: loop header
LB: loop body
LE: loop exit
PB: predicated region body
PF: predicated region fallthrough
CT: control target
= control target key end

     0   :  { %s212_s1 = inlined_call_operand.vmem [shape: bf16[128,128], index: 1, kind: input, shape index: {}]   ;;  %s213_s2 = inlined_call_operand.vmem [shape: f32[1,128], index: 2, kind: input, shape index: {}]   ;;  %s214_s0 = inlined_call_operand.vmem [shape: bf16[16,128], index: 0, kind: input, shape index: {}]   ;;  %s215_s3 = inlined_call_operand.vmem [shape: f32[16,128], index: 3, kind: output, shape index: {}]  }
   0x1   :  { %v154_v0 = vld [vmem:[%s212_s1 + $0x38] sm:$0xff]  ;;  %v153_v1 = vld [vmem:[%s212_s1 + $0x30] sm:$0xff]  ;;  %v152_v2 = vld [vmem:[%s212_s1 + $0x28] sm:$0xff] }
   0x2   :  { %90 = vmatpush.bf16.msra.mxu0 %v154_v0  ;;  %v151_v3 = vld [vmem:[%s212_s1 + $0x20] sm:$0xff]  ;;  %v150_v4 = vld [vmem:[%s212_s1 + $0x18] sm:$0xff]  ;;  %v149_v5 = vld [vmem:[%s212_s1 + $0x10] sm:$0xff] }
   0x3   :  { %v148_v6 = vld [vmem:[%s212_s1 + $0x8] sm:$0xff]  ;;  %v147_v7 = vld [vmem:[%s212_s1] sm:$0xff] }
   0x4   :  { %v146_v8 = vld [vmem:[%s214_s0] sm:$0xff] }
   0x5   :  { %v155_v9 = vld [vmem:[%s213_s2] ss:$0 sm:$0xff] }
   0x6   :  { %91 = vmatpush.bf16.msra.mxu0 %v153_v1 }
   0xa   :  { %92 = vmatpush.bf16.msra.mxu0 %v152_v2 }
   0xe   :  { %93 = vmatpush.bf16.msra.mxu0 %v151_v3 }
  0x12   :  { %94 = vmatpush.bf16.msra.mxu0 %v150_v4 }
  0x16   :  { %95 = vmatpush.bf16.msra.mxu0 %v149_v5 }
  0x1a   :  { %96 = vmatpush.bf16.msra.mxu0 %v148_v6 }
  0x1e   :  { %97 = vmatpush.bf16.msra.mxu0 %v147_v7 }
  0x21   :  { %98 = vmatmul.bf16.vlgmr.msra.gmra.mxu0 %v146_v8 }
  0x9e   :  { %v99_v10 = vpop.f32.mrf.mxu0 }
  0x9f   :  { %v100_v11 = vadd.f32 %v155_v9, %v99_v10 }
  0xa1   :  { %104 = vst [vmem:[%s215_s3] sm:$0xff] %v100_v11 }
  0xa6   :  { %v101_v12 = vpop.f32.mrf.mxu0 }
  0xa7   :  { %v102_v13 = vadd.f32 %v155_v9, %v101_v12 }
  0xa9   :  { %105 = vst [vmem:[%s215_s3 + $0x8] sm:$0xff] %v102_v13 }

// kernel: neu2seq_forward.74
= control target key start
LH: loop header
LB: loop body
LE: loop exit
PB: predicated region body
PF: predicated region fallthrough
CT: control target
= control target key end

     0   :  { %9 = vsyncpa [#allocation3], 0  ;;  %s444_s15 = smov 0   ;;  %s478_s0 = inlined_call_operand.vmem [shape: f32[16,32], index: 0, kind: input, shape index: {}]   ;;  %s479_s1 = inlined_call_operand.vmem [shape: f32[16,32], index: 1, kind: input, shape index: {}]   ;;  %s480_s2 = inlined_call_operand.vmem [shape: f32[1,32], index: 2, kind: input, shape index: {}]   ;;  %s481_s3 = inlined_call_operand.hbm [shape: f32[1,32], index: 3, kind: input, shape index: {}]   ;;  %s482_s4 = inlined_call_operand.vmem [shape: f32[16,32], index: 4, kind: output, shape index: {}]  }
   0x1 LB: > { %s341_s16 = sadd.s32 4294967295, %s416_s15   ;;  %p343_p0 = scmp.ge.s32.totalorder %s416_s15, 1  ;;  %s416_s15 = sphi %s444_s15, %s15_s15  }
   0x2   : > { %p140_p1 = scmp.lt.s32.totalorder %s416_s15, 3  ;;  %s155_s19 = sshll.u32 %s481_s3, 4  ;;  %s156_s19 = int_to_ptr.hbm [resolvable:$true] %s155_s19 }
   0x3   : > { %p361_p3 = scmp.eq.s32.totalorder %s341_s16, 0  ;;  %s418_s20 = smov [#allocation2]  }
   0x4   : > { %p141_p2 = pnand %p343_p0, %p140_p1  ;;  %s157_s21 = sshll.u32 %s418_s20, 4  ;;  %s158_s21 = int_to_ptr.vmem [resolvable:$true] %s157_s21 }
   0x6   : > { %p357_p4 = pneg %p141_p2  ;;  %184 = sbr.rel (%p141_p2) target bundleno = 177 (0xb1), region = 36 }
   0x8   : > { %p358_p5 = pnand %p361_p3, %p357_p4 }
   0xa   : > { %360 = dma.hbm_to_vmem [thread:$0]  (!%p358_p5), %s156_s19, 16, %s158_s21, [#allocation3]  }
   0xb   : > { %411 = dma.done.wait (%p361_p3), [#allocation3], 16  }
   0xc   : > { %413 = vsyncadd (%p361_p3), [#allocation3], 4294967280  ;;  %p213_p6 = scmp.lt.s32.totalorder %s341_s16, 1  ;;  %vm228_vm0 = vcmask 261120   ;;  %v372_v20 = vld [vmem:[%s480_s2] ss:$0 sm:$0xff] }
   0xd   : > { %v373_v22 = vld [vmem:[#allocation2] ss:$0 sm:$0xff] }
   0xe   : > { %s484_s16 = smov (!%p213_p6, %s341_s16), 1 }
   0xf   : > { %s455_s22 = sshll.u32 %s484_s16, 3 }
  0x10   : > { %s216_s25 = scalar_lea.vmem %s478_s0, %s455_s22  ;;  %s220_s28 = scalar_lea.vmem %s479_s1, %s455_s22 }
  0x11   : > { %v225_v0 = vld [vmem:[%s216_s25] sm:$0xff]  ;;  %s224_s7 = scalar_lea.vmem %s482_s4, %s455_s22 }
  0x12   : > { %v226_v1 = vld [vmem:[%s220_s28] sm:$0xff] }
  0x13   : > { %v227_v2 = vadd.f32 %v226_v1, %v225_v0 }
  0x15   : > { %v229_v3 = vsel %vm228_vm0, %v227_v2, 0.0  ;;  %v233_v4 = vmul.f32 %v227_v2, %v227_v2 }
  0x16   : > { %230 = vadd.xlane.f32.xlu0 %v229_v3 }
  0x17   : > { %v234_v5 = vsel %vm228_vm0, %v233_v4, 0.0 }
  0x1e   : > { %235 = vadd.xlane.f32.xlu0 %v234_v5 }
  0x89   : > { %v231_v6 = vpop.xlane.xlu0 %230 }
  0x8a   : > { %v232_v7 = vmul.f32 0.03125, %v231_v6 }
  0x8c   : > { %v238_v9 = vmul.f32 %v232_v7, %v232_v7  ;;  %v240_v19 = vsub.f32 %v227_v2, %v232_v7 }
  0x91   : > { %v236_v8 = vpop.xlane.xlu0 %235 }
  0x92   : > { %v237_v10 = vmul.f32 0.03125, %v236_v8 }
  0x94   : > { %v239_v11 = vsub.f32 %v237_v10, %v238_v9 }
  0x96   : > { %v241_v12 = vadd.f32 1e-05, %v239_v11 }
  0x98   : > { %374 = vrsqrt.f32 %v241_v12  ;;  %vm248_vm2 = vweird.f32 %v241_v12 }
  0x9e   : > { %v375_v13 = vpop.eup %374 }
  0x9f   : > { %v243_v14 = vmul.f32 %v375_v13, %v241_v12  ;;  %vm249_vm1 = vweird.f32 %v375_v13 }
  0xa0   : > { %vm250_vm3 = vmor %vm248_vm2, %vm249_vm1 }
  0xa1   : > { %v244_v15 = vmul.f32 %v375_v13, %v243_v14 }
  0xa3   : > { %v245_v16 = vmul.f32 0.5, %v244_v15 }
  0xa5   : > { %v246_v17 = vsub.f32 1.5, %v245_v16 }
  0xa7   : > { %v247_v18 = vmul.f32 %v375_v13, %v246_v17 }
  0xa9   : > { %v251_v21 = vsel %vm250_vm3, %v375_v13, %v247_v18 }
  0xaa   : > { %v252_v23 = vmul.f32 %v251_v21, %v240_v19 }
  0xac   : > { %v257_v24 = vmul.f32 %v372_v20, %v252_v23 }
  0xae   : > { %v262_v25 = vadd.f32 %v373_v22, %v257_v24 }
  0xb0   : > { %263 = vst.msk [vmem:[%s224_s7] sm:$0xff] %vm228_vm0, %v262_v25 }
  0xb1 PF: > { %s15_s15 = sadd.s32 1, %s416_s15  }
  0xb2   : > { %p12_p7 = scmp.ge.s32.totalorder %s15_s15, 4  }
  0xb4   :  { %14 = sbr.rel (!%p12_p7) target bundleno = 1 (0x1), region = 74 }
  0xb9   :  { %283 = vsyncpa [#allocation3], 1 }
  0xba   :  { %285 = vsyncpa [#allocation3 + $0x1], 1 }

// kernel: neu2seq_forward.63
= control target key start
LH: loop header
LB: loop body
LE: loop exit
PB: predicated region body
PF: predicated region fallthrough
CT: control target
= control target key end

     0   :  { %s701_s15 = smov 0   ;;  %s767_s0 = inlined_call_operand.vmem [shape: bf16[8,8,8], index: 0, kind: input, shape index: {}]   ;;  %s768_s1 = inlined_call_operand.vmem [shape: bf16[8,8,8], index: 1, kind: input, shape index: {}]   ;;  %s769_s2 = inlined_call_operand.vmem [shape: bf16[8,8,8], index: 2, kind: input, shape index: {}]   ;;  %s770_s3 = inlined_call_operand.vmem [shape: f32[8,1,8], index: 3, kind: input, shape index: {}]   ;;  %s771_s4 = inlined_call_operand.vmem [shape: bf16[8,8,8], index: 4, kind: output, shape index: {}]  }
   0x1 LB: > { %s616_s16 = sadd.s32 4294967295, %s674_s15   ;;  %p620_p0 = scmp.ge.s32.totalorder %s674_s15, 1  ;;  %s674_s15 = sphi %s701_s15, %s14_s15  }
   0x2   : > { %p195_p1 = scmp.lt.s32.totalorder %s674_s15, 3 }
   0x4   : > { %p196_p2 = pnand %p620_p0, %p195_p1 }
   0x5   : > { %s621_s17 = sshll.u32 (!%p196_p2), %s616_s16, 2 }
   0x6   : > { %199 = sbr.rel (%p196_p2) target bundleno = 438 (0x1b6), region = 36  ;;  %p236_p3 = scmp.lt.s32.totalorder (!%p196_p2), %s621_s17, 7 }
   0xb   : > { %s773_s17 = smov (!%p236_p3, %s621_s17), 7  ;;  %vm277_vm0 = vcmask 64512   ;;  %v378_v12 = vlaneseq  ;;  %vm440_vm2 = vcmask 1043456   ;;  %vm522_vm3 = vcmask 60416  }
   0xc   : > { %s709_s18 = sshll.u32 %s773_s17, 2  ;;  %s714_s21 = scalar_lea.vmem %s770_s3, %s773_s17 }
   0xd   : > { %s245_s24 = scalar_lea.vmem %s768_s1, %s709_s18  ;;  %s239_s27 = scalar_lea.vmem %s767_s0, %s709_s18  ;;  %v379_v13 = vshrl.u32 %v378_v12, 7  ;;  %v381_v14 = vand.u32 127, %v378_v12  ;;  %v648_v15 = vld [vmem:[%s714_s21] ss:$0 sm:$0xff]  ;;  %v651_v18 = vld [vmem:[%s714_s21 + $0x1] ss:$0 sm:$0xff] }
   0xe   : > { %v269_v0 = vld [vmem:[%s245_s24] sm:$0xf]  ;;  %v271_v1 = vld [vmem:[%s245_s24 + $0x8] sm:$0xf]  ;;  %v272_v2 = vld [vmem:[%s245_s24 + $0xc] sm:$0xf]  ;;  %s251_s30 = scalar_lea.vmem %s769_s2, %s709_s18  ;;  %s262_s7 = scalar_lea.vmem %s771_s4, %s709_s18 }
   0xf   : > { %v282_v3 = vsel %vm277_vm0, %v269_v0, 0  ;;  %v320_v4 = vsel %vm277_vm0, %v271_v1, 0  ;;  %v339_v5 = vsel %vm277_vm0, %v272_v2, 0  ;;  %v270_v6 = vld [vmem:[%s245_s24 + $0x4] sm:$0xf]  ;;  %vm382_vm1 = vcmp.gt.s32.totalorder %v381_v14, %v379_v13 }
  0x10   : > { %291 = vmatpush.bf16.xpose.msra.mxu0 %v282_v3  ;;  %329 = vmatpush.bf16.xpose.msra.mxu2 %v320_v4  ;;  %v301_v7 = vsel %vm277_vm0, %v270_v6, 0  ;;  %v265_v8 = vld [vmem:[%s239_s27] sm:$0xf]  ;;  %v267_v9 = vld [vmem:[%s239_s27 + $0x8] sm:$0xf] }
  0x11   : > { %348 = vmatpush.bf16.xpose.msra.mxu3 %v339_v5  ;;  %310 = vmatpush.bf16.xpose.msra.mxu1 %v301_v7  ;;  %v268_v10 = vld [vmem:[%s239_s27 + $0xc] sm:$0xf]  ;;  %v266_v11 = vld [vmem:[%s239_s27 + $0x4] sm:$0xf]  ;;  %v649_v22 = vld [vmem:[%s714_s21 + $0x2] ss:$0 sm:$0xff] }
  0x12   : > { %v650_v29 = vld [vmem:[%s714_s21 + $0x3] ss:$0 sm:$0xff]  ;;  %v275_v45 = vld [vmem:[%s251_s30 + $0x8] sm:$0xf]  ;;  %v276_v46 = vld [vmem:[%s251_s30 + $0xc] sm:$0xf] }
  0x13   : > { %v273_v43 = vld [vmem:[%s251_s30] sm:$0xf]  ;;  %v480_v47 = vsel %vm440_vm2, %v275_v45, 0  ;;  %v499_v48 = vsel %vm440_vm2, %v276_v46, 0  ;;  %v274_v49 = vld [vmem:[%s251_s30 + $0x4] sm:$0xf] }
  0x14   : > { %v442_v44 = vsel %vm440_vm2, %v273_v43, 0  ;;  %v461_v50 = vsel %vm440_vm2, %v274_v49, 0 }
  0x17   : > { %630 = vmatmul.msk.bf16.vlgmr.msra.gmra.mxu0 %vm277_vm0, %v265_v8  ;;  %632 = vmatmul.msk.bf16.vlgmr.msra.gmra.mxu2 %vm277_vm0, %v267_v9 }
  0x18   : > { %633 = vmatmul.msk.bf16.vlgmr.msra.gmra.mxu3 %vm277_vm0, %v268_v10  ;;  %631 = vmatmul.msk.bf16.vlgmr.msra.gmra.mxu1 %vm277_vm0, %v266_v11 }
  0x19   : > { %451 = vmatpush.bf16.msrb.mxu0 %v442_v44  ;;  %489 = vmatpush.bf16.msrb.mxu2 %v480_v47 }
  0x1a   : > { %508 = vmatpush.bf16.msrb.mxu3 %v499_v48  ;;  %470 = vmatpush.bf16.msrb.mxu1 %v461_v50 }
  0x94   : > { %v293_v16 = vpop.f32.mrf.mxu0 }
  0x95   : > { %v354_v17 = vmul.f32 0.35355338, %v293_v16  ;;  %v312_v19 = vpop.f32.mrf.mxu1 }
  0x96   : > { %v355_v21 = vmul.f32 0.35355338, %v312_v19 }
  0x97   : > { %v374_v20 = vadd.f32 %v648_v15, %v354_v17 }
  0x98   : > { %v375_v24 = vadd.f32 %v651_v18, %v355_v21 }
  0x99   : > { %v385_v23 = vsel %vm382_vm1, -1e+09, %v374_v20 }
  0x9a   : > { %v331_v25 = vpop.f32.mrf.mxu2  ;;  %v389_v26 = vsel %vm277_vm0, %v385_v23, -inf  ;;  %v386_v33 = vsel %vm382_vm1, -1e+09, %v375_v24 }
  0x9b   : > { %v356_v27 = vmul.f32 0.35355338, %v331_v25  ;;  %v350_v28 = vpop.f32.mrf.mxu3  ;;  %390 = vmax.xlane.f32.xlu1 %v389_v26  ;;  %v392_v38 = vsel %vm277_vm0, %v386_v33, -inf }
  0x9c   : > { %v357_v30 = vmul.f32 0.35355338, %v350_v28  ;;  %v295_v31 = vpop.f32.mrf.mxu0 }
  0x9d   : > { %v376_v32 = vadd.f32 %v649_v22, %v356_v27  ;;  %v314_v34 = vpop.f32.mrf.mxu1 }
  0x9e   : > { %v377_v35 = vadd.f32 %v650_v29, %v357_v30 }
  0x9f   : > { %v387_v36 = vsel %vm382_vm1, -1e+09, %v376_v32 }
  0xa0   : > { %v395_v37 = vsel %vm277_vm0, %v387_v36, -inf  ;;  %v388_v41 = vsel %vm382_vm1, -1e+09, %v377_v35 }
  0xa1   : > { %396 = vmax.xlane.f32.xlu0 %v395_v37  ;;  %v398_v42 = vsel %vm277_vm0, %v388_v41, -inf }
  0xa2   : > { %v333_v39 = vpop.f32.mrf.mxu2 }
  0xa3   : > { %v352_v40 = vpop.f32.mrf.mxu3  ;;  %393 = vmax.xlane.f32.xlu1 %v392_v38 }
  0xa9   : > { %399 = vmax.xlane.f32.xlu0 %v398_v42 }
 0x10e   : > { %v391_v51 = vpop.xlane.xlu1 %390 }
 0x10f   : > { %v401_v52 = vsub.f32 %v385_v23, %v391_v51 }
 0x111   : > { %v405_v53 = vmul.f32 1.442695, %v401_v52 }
 0x113   : > { %652 = vpow2.f32 %v405_v53 }
 0x114   : > { %v397_v54 = vpop.xlane.xlu0 %396 }
 0x115   : > { %v403_v55 = vsub.f32 %v387_v36, %v397_v54 }
 0x116   : > { %v394_v56 = vpop.xlane.xlu1 %393 }
 0x117   : > { %v409_v57 = vmul.f32 1.442695, %v403_v55  ;;  %v402_v58 = vsub.f32 %v386_v33, %v394_v56 }
 0x119   : > { %v653_v59 = vpop.eup %652  ;;  %654 = vpow2.f32 %v409_v57  ;;  %v407_v60 = vmul.f32 1.442695, %v402_v58 }
 0x11a   : > { %v413_v61 = vsel %vm277_vm0, %v653_v59, 0.0  ;;  %v433_v62 = vpack.c.bf16 %v653_v59, %v653_v59 }
 0x11b   : > { %656 = vpow2.f32 %v407_v60  ;;  %414 = vadd.xlane.f32.xlu2 %v413_v61 }
 0x11c   : > { %v400_v63 = vpop.xlane.xlu0 %399  ;;  %634 = vmatmul.msk.bf16.vlgmr.msrb.gmra.mxu0 %vm277_vm0, %v433_v62 }
 0x11d   : > { %v404_v0 = vsub.f32 %v388_v41, %v400_v63 }
 0x11f   : > { %v655_v1 = vpop.eup %654  ;;  %v411_v2 = vmul.f32 1.442695, %v404_v0 }
 0x120   : > { %v419_v3 = vsel %vm277_vm0, %v655_v1, 0.0  ;;  %v435_v4 = vpack.c.bf16 %v655_v1, %v655_v1 }
 0x121   : > { %v657_v5 = vpop.eup %656  ;;  %658 = vpow2.f32 %v411_v2  ;;  %420 = vadd.xlane.f32.xlu0 %v419_v3 }
 0x122   : > { %636 = vmatmul.msk.bf16.vlgmr.msrb.gmra.mxu2 %vm277_vm0, %v435_v4  ;;  %v416_v6 = vsel %vm277_vm0, %v657_v5, 0.0  ;;  %v434_v7 = vpack.c.bf16 %v657_v5, %v657_v5 }
 0x123   : > { %417 = vadd.xlane.f32.xlu2 %v416_v6 }
 0x124   : > { %635 = vmatmul.msk.bf16.vlgmr.msrb.gmra.mxu1 %vm277_vm0, %v434_v7 }
 0x127   : > { %v659_v8 = vpop.eup %658 }
 0x128   : > { %v422_v9 = vsel %vm277_vm0, %v659_v8, 0.0  ;;  %v436_v10 = vpack.c.bf16 %v659_v8, %v659_v8 }
 0x129   : > { %423 = vadd.xlane.f32.xlu1 %v422_v9 }
 0x12a   : > { %637 = vmatmul.msk.bf16.vlgmr.msrb.gmra.mxu3 %vm277_vm0, %v436_v10 }
 0x18e   : > { %v415_v11 = vpop.xlane.xlu2 %414 }
 0x18f   : > { %v425_v12 = vmax.f32 %v415_v11, 1e-20 }
 0x191   : > { %660 = vrcp.f32 %v425_v12 }
 0x194   : > { %v421_v15 = vpop.xlane.xlu0 %420 }
 0x195   : > { %v427_v19 = vmax.f32 %v421_v15, 1e-20 }
 0x196   : > { %v418_v13 = vpop.xlane.xlu2 %417 }
 0x197   : > { %v426_v14 = vmax.f32 %v418_v13, 1e-20  ;;  %v661_v16 = vpop.eup %660 }
 0x199   : > { %v453_v17 = vpop.f32.mrf.mxu0  ;;  %662 = vrcp.f32 %v426_v14 }
 0x19a   : > { %v514_v18 = vmul.f32 %v661_v16, %v453_v17  ;;  %664 = vrcp.f32 %v427_v19 }
 0x19c   : > { %v518_v20 = vpack.c.bf16 %v514_v18, %v514_v18  ;;  %v424_v21 = vpop.xlane.xlu1 %423 }
 0x19d   : > { %v428_v26 = vmax.f32 %v424_v21, 1e-20 }
 0x19e   : > { %523 = vst.msk [vmem:[%s262_s7] sm:$0xf] %vm522_vm3, %v518_v20 }
 0x19f   : > { %v663_v22 = vpop.eup %662  ;;  %666 = vrcp.f32 %v428_v26 }
 0x1a0   : > { %v665_v28 = vpop.eup %664 }
 0x1a1   : > { %v455_v23 = vpop.f32.mrf.mxu0  ;;  %v472_v24 = vpop.f32.mrf.mxu1 }
 0x1a2   : > { %v515_v25 = vmul.f32 %v663_v22, %v472_v24 }
 0x1a4   : > { %v519_v27 = vpack.c.bf16 %v515_v25, %v515_v25 }
 0x1a5   : > { %v491_v29 = vpop.f32.mrf.mxu2  ;;  %v667_v33 = vpop.eup %666 }
 0x1a6   : > { %524 = vst.msk [vmem:[%s262_s7 + $0x4] sm:$0xf] %vm522_vm3, %v519_v27  ;;  %v516_v30 = vmul.f32 %v665_v28, %v491_v29 }
 0x1a8   : > { %v520_v31 = vpack.c.bf16 %v516_v30, %v516_v30 }
 0x1a9   : > { %v474_v32 = vpop.f32.mrf.mxu1 }
 0x1aa   : > { %525 = vst.msk [vmem:[%s262_s7 + $0x8] sm:$0xf] %vm522_vm3, %v520_v31 }
 0x1ad   : > { %v493_v34 = vpop.f32.mrf.mxu2  ;;  %v510_v35 = vpop.f32.mrf.mxu3 }
 0x1ae   : > { %v517_v36 = vmul.f32 %v667_v33, %v510_v35 }
 0x1b0   : > { %v521_v37 = vpack.c.bf16 %v517_v36, %v517_v36 }
 0x1b2   : > { %526 = vst.msk [vmem:[%s262_s7 + $0xc] sm:$0xf] %vm522_vm3, %v521_v37 }
 0x1b5   : > { %v512_v38 = vpop.f32.mrf.mxu3 }
 0x1b6 PF: > { %s14_s15 = sadd.s32 1, %s674_s15  }
 0x1b7   : > { %p11_p4 = scmp.ge.s32.totalorder %s14_s15, 4  }
 0x1b9   :  { %13 = sbr.rel (!%p11_p4) target bundleno = 1 (0x1), region = 75 }

</bundles_post_ra>
